<compile_context>
chip_gen: v6e
topology: v6e:2x2x1
jax: 0.10.0
libtpu: 0.0.40
codegen_flags: <defaults>
</compile_context>

<pallas_src>
import functools

import jax
import jax.numpy as jnp
import numpy as np
from jax import lax
from jax.experimental import pallas as pl
from jax.experimental.pallas import tpu as pltpu

H = 128                  # LSTM hidden / MLP width
H2 = 2 * H               # fused actor+critic feature width
INFO_DIM = 70
LSTM_IN = 16
N_ACTIONS = 43
VALUE_LANE = 64          # lane of the fused (B,128) output that carries the critic value

# ---- row offsets inside the packed weight slabs -----------------------------
# lstm slab (273, 1024): [0:16]=W_ih, [16:272]=block-diag W_hh, [272]=bias
_WIH_OFF = 0
_WHH_OFF = LSTM_IN
_LSTM_B_OFF = LSTM_IN + H2
# head slab (586, 256): [0:70]=fc1 (padded to 72 rows), [72:584]=fc2, [584]=b1, [585]=b2
_FC1_OFF = 0
_FC2_OFF = 72
_FC1B_OFF = _FC2_OFF + 4 * H
_FC2B_OFF = _FC1B_OFF + 1
# fc3 slab (257, 128): [0:256]=fc3, [256]=b3
_FC3B_OFF = H2


# -----------------------------------------------------------------------------
# Kernel
# -----------------------------------------------------------------------------
def _actor_critic_kernel(info_ref, cogx_ref, allowed_ref,
                         lstm_ref, head_ref, fc3_ref, out_ref, *, T, B):
  f32 = jnp.float32

  # ---- hoisted input projection: one matmul covers every timestep of BOTH LSTMs
  w_ih = lstm_ref[pl.ds(_WIH_OFF, LSTM_IN), :]                       # (16, 8H)
  bias = lstm_ref[pl.ds(_LSTM_B_OFF, 1), :]                          # (1, 8H)
  xg = jnp.dot(cogx_ref[...], w_ih, preferred_element_type=f32) + bias   # (T*B, 8H)

  # ---- fused actor+critic recurrence: carry h=[h_a|h_c], c=[c_a|c_c]
  w_hh = lstm_ref[pl.ds(_WHH_OFF, H2), :]                            # (2H, 8H) block-diag
  h = jnp.zeros((B, H2), f32)
  c = jnp.zeros((B, H2), f32)
  for t in range(T):                                                 # static unroll
    gates = xg[t * B:(t + 1) * B, :] + jnp.dot(h, w_hh, preferred_element_type=f32)
    i_g = jax.nn.sigmoid(gates[:, 0 * H2:1 * H2])                    # [i_a | i_c]
    f_g = jax.nn.sigmoid(gates[:, 1 * H2:2 * H2])
    g_g = jnp.tanh(gates[:, 2 * H2:3 * H2])
    o_g = jax.nn.sigmoid(gates[:, 3 * H2:4 * H2])
    c = f_g * c + i_g * g_g
    h = o_g * jnp.tanh(c)                                            # (B, 2H) = [h_a | h_c]

  # ---- shared fc1, block-diagonal fc2 (single K=512 dot), block-diagonal fc3
  fc1_w = head_ref[pl.ds(_FC1_OFF, INFO_DIM), :]                     # (70, 2H)
  fc1_b = head_ref[pl.ds(_FC1B_OFF, 1), :]                           # (1, 2H)
  fc2_w = head_ref[pl.ds(_FC2_OFF, 4 * H), :]                        # (4H, 2H)
  fc2_b = head_ref[pl.ds(_FC2B_OFF, 1), :]                           # (1, 2H)
  x = jnp.maximum(
      jnp.dot(info_ref[...], fc1_w, preferred_element_type=f32) + fc1_b, 0.0)   # [x_a|x_c]
  xh = jnp.concatenate([x, h], axis=-1)                              # (B, 4H) = [x_a|x_c|h_a|h_c]
  y = jnp.maximum(
      jnp.dot(xh, fc2_w, preferred_element_type=f32) + fc2_b, 0.0)   # (B, 2H) = [y_a|y_c]

  fc3_w = fc3_ref[pl.ds(0, H2), :]                                   # (2H, 128)
  fc3_b = fc3_ref[pl.ds(_FC3B_OFF, 1), :]                            # (1, 128)
  out3 = jnp.dot(y, fc3_w, preferred_element_type=f32) + fc3_b       # logits in 0:43, value at 64

  # ---- masked softmax over the padded 128-lane logits (lanes >= 43 stay masked)
  logits = jnp.where(allowed_ref[...] == 0.0, f32(-1000000000.0), out3)
  m = jnp.max(logits, axis=-1, keepdims=True)
  e = jnp.exp(logits - m)
  s = jnp.sum(e, axis=-1, keepdims=True)
  inv = pl.reciprocal(s, approx=True)
  inv = inv * (2.0 - s * inv)            # one Newton step -> ~f32 accuracy from EUP vrcp
  probs = e * inv

  # fuse probs and value into one lane-dense (B, 128) output slab
  lane = lax.broadcasted_iota(jnp.int32, (B, H), 1)
  out_ref[...] = jnp.where(lane == VALUE_LANE, out3, probs)


# -----------------------------------------------------------------------------
# Parameters (deterministic, PyTorch-default-style uniform init)
# -----------------------------------------------------------------------------
def _uniform(key, shape, bound):
  return jax.random.uniform(key, shape, jnp.float32, -bound, bound)


def init_params(key):
  ks = iter(jax.random.split(key, 32))
  params = {}
  for branch, out3 in (("actor", N_ACTIONS), ("critic", 1)):
    b = 1.0 / np.sqrt(H)
    p = {
        "w_ih": _uniform(next(ks), (4 * H, LSTM_IN), b),
        "w_hh": _uniform(next(ks), (4 * H, H), b),
        "b_ih": _uniform(next(ks), (4 * H,), b),
        "b_hh": _uniform(next(ks), (4 * H,), b),
    }
    b1 = 1.0 / np.sqrt(INFO_DIM)
    p["fc1_w"] = _uniform(next(ks), (H, INFO_DIM), b1)
    p["fc1_b"] = _uniform(next(ks), (H,), b1)
    b2 = 1.0 / np.sqrt(2 * H)
    p["fc2_w"] = _uniform(next(ks), (H, 2 * H), b2)
    p["fc2_b"] = _uniform(next(ks), (H,), b2)
    b3 = 1.0 / np.sqrt(H)
    p["fc3_w"] = _uniform(next(ks), (out3, H), b3)
    p["fc3_b"] = _uniform(next(ks), (out3,), b3)
    params[branch] = p
  return params


# -----------------------------------------------------------------------------
# Weight packing: 20 tensors -> 3 contiguous, lane-aligned VMEM slabs
# -----------------------------------------------------------------------------
def _gate_interleave(a, c):
  """(K, 4H) torch-order [i|f|g|o] for actor/critic -> (K, 8H) [i_a,i_c,f_a,f_c,g_a,g_c,o_a,o_c]."""
  k = a.shape[0]
  return jnp.stack([a.reshape(k, 4, H), c.reshape(k, 4, H)], axis=2).reshape(k, 8 * H)


def pack_params(params):
  pa, pc = params["actor"], params["critic"]
  f32 = jnp.float32
  # TODO(synk): optionally cast weight slabs to bf16 to halve HBM->VMEM traffic
  # (matmuls already accumulate in f32); kept f32 here for exact-tolerance checks.

  # --- LSTM slab (273, 1024) ---
  w_ih = _gate_interleave(pa["w_ih"].T, pc["w_ih"].T)                      # (16, 8H)
  zero_h = jnp.zeros((H, 4 * H), f32)
  w_hh = jnp.concatenate([_gate_interleave(pa["w_hh"].T, zero_h),          # rows for h_a
                          _gate_interleave(zero_h, pc["w_hh"].T)], axis=0)  # rows for h_c
  bias = _gate_interleave((pa["b_ih"] + pa["b_hh"]).reshape(1, 4 * H),
                          (pc["b_ih"] + pc["b_hh"]).reshape(1, 4 * H))
  lstm_slab = jnp.concatenate([w_ih, w_hh, bias], axis=0)

  # --- head slab (586, 256): shared fc1 + block-diagonal fc2 + biases ---
  fc1_w = jnp.concatenate([pa["fc1_w"].T, pc["fc1_w"].T], axis=1)          # (70, 2H)
  fc1_w = jnp.pad(fc1_w, ((0, _FC2_OFF - INFO_DIM), (0, 0)))               # pad rows 70 -> 72
  z = jnp.zeros((H, H), f32)
  w2a, w2c = pa["fc2_w"].T, pc["fc2_w"].T                                  # (2H, H) each
  fc2_w = jnp.concatenate([
      jnp.concatenate([w2a[:H], z], axis=1),      # rows acting on x_a
      jnp.concatenate([z, w2c[:H]], axis=1),      # rows acting on x_c
      jnp.concatenate([w2a[H:], z], axis=1),      # rows acting on h_a
      jnp.concatenate([z, w2c[H:]], axis=1),      # rows acting on h_c
  ], axis=0)                                                               # (4H, 2H)
  fc1_b = jnp.concatenate([pa["fc1_b"], pc["fc1_b"]]).reshape(1, 2 * H)
  fc2_b = jnp.concatenate([pa["fc2_b"], pc["fc2_b"]]).reshape(1, 2 * H)
  head_slab = jnp.concatenate([fc1_w, fc2_w, fc1_b, fc2_b], axis=0)

  # --- fc3 slab (257, 128): actor logits in lanes [0:43], critic value in lane 64 ---
  w3a = jnp.zeros((H, H), f32).at[:, :N_ACTIONS].set(pa["fc3_w"].T)
  w3c = jnp.zeros((H, H), f32).at[:, VALUE_LANE].set(pc["fc3_w"].T[:, 0])
  b3 = jnp.zeros((1, H), f32).at[0, :N_ACTIONS].set(pa["fc3_b"])
  b3 = b3.at[0, VALUE_LANE].set(pc["fc3_b"][0])
  fc3_slab = jnp.concatenate([w3a, w3c, b3], axis=0)

  return {"lstm": lstm_slab, "head": head_slab, "fc3": fc3_slab}


# -----------------------------------------------------------------------------
# Wrapper
# -----------------------------------------------------------------------------
@jax.jit
def actor_critic_forward(info_vector, course_of_game, allowed_actions, packed):
  T, B, _ = course_of_game.shape
  cog_flat = course_of_game.reshape(T * B, LSTM_IN)
  allowed_pad = jnp.pad(allowed_actions, ((0, 0), (0, H - N_ACTIONS)))   # (B, 128)

  vmem = pl.BlockSpec(memory_space=pltpu.MemorySpace.VMEM)
  kernel = functools.partial(_actor_critic_kernel, T=T, B=B)
  out = pl.pallas_call(
      kernel,
      out_shape=jax.ShapeDtypeStruct((B, H), jnp.float32),
      in_specs=[vmem] * 6,
      out_specs=vmem,
  )(info_vector, cog_flat, allowed_pad,
    packed["lstm"], packed["head"], packed["fc3"])
  # TODO(synk): at large batch on v7x, add a batch grid with
  # dimension_semantics=("parallel",) so the second TensorCore is used.
  return out[:, :N_ACTIONS], out[:, VALUE_LANE:VALUE_LANE + 1]


# -----------------------------------------------------------------------------
# Pure-JAX reference (mirrors the PyTorch forward) for a correctness check
# -----------------------------------------------------------------------------
def _reference(info, cog, allowed, params):
  def lstm(p):
    h = jnp.zeros((cog.shape[1], H), jnp.float32)
    c = jnp.zeros_like(h)
    for t in range(cog.shape[0]):
      g = cog[t] @ p["w_ih"].T + h @ p["w_hh"].T + p["b_ih"] + p["b_hh"]
      i, f, gg, o = jnp.split(g, 4, axis=-1)
      c = jax.nn.sigmoid(f) * c + jax.nn.sigmoid(i) * jnp.tanh(gg)
      h = jax.nn.sigmoid(o) * jnp.tanh(c)
    return h

  def head(p, hh):
    x = jax.nn.relu(info @ p["fc1_w"].T + p["fc1_b"])
    x = jnp.concatenate([x, hh], axis=-1)
    x = jax.nn.relu(x @ p["fc2_w"].T + p["fc2_b"])
    return x @ p["fc3_w"].T + p["fc3_b"]

  la = head(params["actor"], lstm(params["actor"]))
  la = jnp.where(allowed == 0.0, -1e9, la)
  probs = jax.nn.softmax(la, axis=-1)
  val = head(params["critic"], lstm(params["critic"]))
  return probs, val


# -----------------------------------------------------------------------------
if __name__ == "__main__":
  key = jax.random.PRNGKey(0)
  k_par, k_info, k_cog, k_allow = jax.random.split(key, 4)

  B, T = 4, 8
  params = init_params(k_par)
  packed = pack_params(params)

  info_vector = jax.random.normal(k_info, (B, INFO_DIM), jnp.float32)
  course_of_game = jax.random.normal(k_cog, (T, B, LSTM_IN), jnp.float32)
  allowed_actions = jax.random.bernoulli(
      k_allow, 0.5, (B, N_ACTIONS)).astype(jnp.float32)
  # guarantee at least one legal action per row
  allowed_actions = allowed_actions.at[:, 0].set(1.0)

  probs, value = actor_critic_forward(
      info_vector, course_of_game, allowed_actions, packed)
  jax.block_until_ready((probs, value))

  ref_probs, ref_value = _reference(
      info_vector, course_of_game, allowed_actions, params)
  np.testing.assert_allclose(np.asarray(probs), np.asarray(ref_probs),
                             rtol=1e-4, atol=1e-5)
  np.testing.assert_allclose(np.asarray(value), np.asarray(ref_value),
                             rtol=1e-4, atol=1e-4)
  np.testing.assert_allclose(np.asarray(probs).sum(-1), np.ones(B),
                             rtol=1e-5, atol=1e-4)

  print("KERNEL_OK")
</pallas_src>

<mosaic_0001>
module attributes {stable_mosaic.version = 11 : i64} {
  func.func @_actor_critic_kernel(%arg0: memref<4x70xf32, #tpu.memory_space<vmem>>, %arg1: memref<32x16xf32, #tpu.memory_space<vmem>>, %arg2: memref<4x128xf32, #tpu.memory_space<vmem>>, %arg3: memref<273x1024xf32, #tpu.memory_space<vmem>>, %arg4: memref<586x256xf32, #tpu.memory_space<vmem>>, %arg5: memref<257x128xf32, #tpu.memory_space<vmem>>, %arg6: memref<4x128xf32, #tpu.memory_space<vmem>>) attributes {dimension_semantics = [], scalar_prefetch = 0 : i64, scratch_operands = 0 : i64, tpu.core_type = #tpu.core_type<tc>} {
    %c0 = arith.constant 0 : index
    %c0_0 = arith.constant 0 : index
    %0 = vector.load %arg3[%c0, %c0_0] : memref<273x1024xf32, #tpu.memory_space<vmem>>, vector<16x1024xf32>
    %c272 = arith.constant 272 : index
    %c0_1 = arith.constant 0 : index
    %1 = vector.load %arg3[%c272, %c0_1] : memref<273x1024xf32, #tpu.memory_space<vmem>>, vector<1x1024xf32>
    %c0_2 = arith.constant 0 : index
    %c0_3 = arith.constant 0 : index
    %2 = vector.load %arg1[%c0_2, %c0_3] : memref<32x16xf32, #tpu.memory_space<vmem>>, vector<32x16xf32>
    %cst = arith.constant dense<0.000000e+00> : vector<32x1024xf32>
    %3 = tpu.matmul %2, %0, %cst {dimension_numbers = #tpu.dot_dimension_numbers<[1], [0], [0], [1], [0, 0, 1, 1], [], []>} : vector<32x16xf32>, vector<16x1024xf32>, vector<32x1024xf32> -> vector<32x1024xf32>
    %4 = vector.broadcast %1 : vector<1x1024xf32> to vector<32x1024xf32>
    %5 = arith.addf %3, %4 : vector<32x1024xf32>
    %c16 = arith.constant 16 : index
    %c0_4 = arith.constant 0 : index
    %6 = vector.load %arg3[%c16, %c0_4] : memref<273x1024xf32, #tpu.memory_space<vmem>>, vector<256x1024xf32>
    %cst_5 = arith.constant 0.000000e+00 : f32
    %7 = vector.broadcast %cst_5 : f32 to vector<4x256xf32>
    %cst_6 = arith.constant 0.000000e+00 : f32
    %8 = vector.broadcast %cst_6 : f32 to vector<4x256xf32>
    %9 = vector.extract_strided_slice %5 {offsets = [0, 0], sizes = [4, 1024], strides = [1, 1]} : vector<32x1024xf32> to vector<4x1024xf32>
    %cst_7 = arith.constant dense<0.000000e+00> : vector<4x1024xf32>
    %10 = tpu.matmul %7, %6, %cst_7 {dimension_numbers = #tpu.dot_dimension_numbers<[1], [0], [0], [1], [0, 0, 1, 1], [], []>} : vector<4x256xf32>, vector<256x1024xf32>, vector<4x1024xf32> -> vector<4x1024xf32>
    %11 = arith.addf %9, %10 : vector<4x1024xf32>
    %12 = vector.extract_strided_slice %11 {offsets = [0, 0], sizes = [4, 256], strides = [1, 1]} : vector<4x1024xf32> to vector<4x256xf32>
    %13 = arith.negf %12 : vector<4x256xf32>
    %14 = math.exp %13 : vector<4x256xf32>
    %cst_8 = arith.constant 1.000000e+00 : f32
    %15 = vector.broadcast %cst_8 : f32 to vector<4x256xf32>
    %16 = arith.addf %15, %14 : vector<4x256xf32>
    %17 = arith.divf %15, %16 : vector<4x256xf32>
    %18 = vector.extract_strided_slice %11 {offsets = [0, 256], sizes = [4, 256], strides = [1, 1]} : vector<4x1024xf32> to vector<4x256xf32>
    %19 = arith.negf %18 : vector<4x256xf32>
    %20 = math.exp %19 : vector<4x256xf32>
    %cst_9 = arith.constant 1.000000e+00 : f32
    %21 = vector.broadcast %cst_9 : f32 to vector<4x256xf32>
    %22 = arith.addf %21, %20 : vector<4x256xf32>
    %23 = arith.divf %21, %22 : vector<4x256xf32>
    %24 = vector.extract_strided_slice %11 {offsets = [0, 512], sizes = [4, 256], strides = [1, 1]} : vector<4x1024xf32> to vector<4x256xf32>
    %25 = math.tanh %24 : vector<4x256xf32>
    %26 = vector.extract_strided_slice %11 {offsets = [0, 768], sizes = [4, 256], strides = [1, 1]} : vector<4x1024xf32> to vector<4x256xf32>
    %27 = arith.negf %26 : vector<4x256xf32>
    %28 = math.exp %27 : vector<4x256xf32>
    %cst_10 = arith.constant 1.000000e+00 : f32
    %29 = vector.broadcast %cst_10 : f32 to vector<4x256xf32>
    %30 = arith.addf %29, %28 : vector<4x256xf32>
    %31 = arith.divf %29, %30 : vector<4x256xf32>
    %32 = arith.mulf %23, %8 : vector<4x256xf32>
    %33 = arith.mulf %17, %25 : vector<4x256xf32>
    %34 = arith.addf %32, %33 : vector<4x256xf32>
    %35 = math.tanh %34 : vector<4x256xf32>
    %36 = arith.mulf %31, %35 : vector<4x256xf32>
    %37 = vector.extract_strided_slice %5 {offsets = [4, 0], sizes = [4, 1024], strides = [1, 1]} : vector<32x1024xf32> to vector<4x1024xf32>
    %cst_11 = arith.constant dense<0.000000e+00> : vector<4x1024xf32>
    %38 = tpu.matmul %36, %6, %cst_11 {dimension_numbers = #tpu.dot_dimension_numbers<[1], [0], [0], [1], [0, 0, 1, 1], [], []>} : vector<4x256xf32>, vector<256x1024xf32>, vector<4x1024xf32> -> vector<4x1024xf32>
    %39 = arith.addf %37, %38 : vector<4x1024xf32>
    %40 = vector.extract_strided_slice %39 {offsets = [0, 0], sizes = [4, 256], strides = [1, 1]} : vector<4x1024xf32> to vector<4x256xf32>
    %41 = arith.negf %40 : vector<4x256xf32>
    %42 = math.exp %41 : vector<4x256xf32>
    %cst_12 = arith.constant 1.000000e+00 : f32
    %43 = vector.broadcast %cst_12 : f32 to vector<4x256xf32>
    %44 = arith.addf %43, %42 : vector<4x256xf32>
    %45 = arith.divf %43, %44 : vector<4x256xf32>
    %46 = vector.extract_strided_slice %39 {offsets = [0, 256], sizes = [4, 256], strides = [1, 1]} : vector<4x1024xf32> to vector<4x256xf32>
    %47 = arith.negf %46 : vector<4x256xf32>
    %48 = math.exp %47 : vector<4x256xf32>
    %cst_13 = arith.constant 1.000000e+00 : f32
    %49 = vector.broadcast %cst_13 : f32 to vector<4x256xf32>
    %50 = arith.addf %49, %48 : vector<4x256xf32>
    %51 = arith.divf %49, %50 : vector<4x256xf32>
    %52 = vector.extract_strided_slice %39 {offsets = [0, 512], sizes = [4, 256], strides = [1, 1]} : vector<4x1024xf32> to vector<4x256xf32>
    %53 = math.tanh %52 : vector<4x256xf32>
    %54 = vector.extract_strided_slice %39 {offsets = [0, 768], sizes = [4, 256], strides = [1, 1]} : vector<4x1024xf32> to vector<4x256xf32>
    %55 = arith.negf %54 : vector<4x256xf32>
    %56 = math.exp %55 : vector<4x256xf32>
    %cst_14 = arith.constant 1.000000e+00 : f32
    %57 = vector.broadcast %cst_14 : f32 to vector<4x256xf32>
    %58 = arith.addf %57, %56 : vector<4x256xf32>
    %59 = arith.divf %57, %58 : vector<4x256xf32>
    %60 = arith.mulf %51, %34 : vector<4x256xf32>
    %61 = arith.mulf %45, %53 : vector<4x256xf32>
    %62 = arith.addf %60, %61 : vector<4x256xf32>
    %63 = math.tanh %62 : vector<4x256xf32>
    %64 = arith.mulf %59, %63 : vector<4x256xf32>
    %65 = vector.extract_strided_slice %5 {offsets = [8, 0], sizes = [4, 1024], strides = [1, 1]} : vector<32x1024xf32> to vector<4x1024xf32>
    %cst_15 = arith.constant dense<0.000000e+00> : vector<4x1024xf32>
    %66 = tpu.matmul %64, %6, %cst_15 {dimension_numbers = #tpu.dot_dimension_numbers<[1], [0], [0], [1], [0, 0, 1, 1], [], []>} : vector<4x256xf32>, vector<256x1024xf32>, vector<4x1024xf32> -> vector<4x1024xf32>
    %67 = arith.addf %65, %66 : vector<4x1024xf32>
    %68 = vector.extract_strided_slice %67 {offsets = [0, 0], sizes = [4, 256], strides = [1, 1]} : vector<4x1024xf32> to vector<4x256xf32>
    %69 = arith.negf %68 : vector<4x256xf32>
    %70 = math.exp %69 : vector<4x256xf32>
    %cst_16 = arith.constant 1.000000e+00 : f32
    %71 = vector.broadcast %cst_16 : f32 to vector<4x256xf32>
    %72 = arith.addf %71, %70 : vector<4x256xf32>
    %73 = arith.divf %71, %72 : vector<4x256xf32>
    %74 = vector.extract_strided_slice %67 {offsets = [0, 256], sizes = [4, 256], strides = [1, 1]} : vector<4x1024xf32> to vector<4x256xf32>
    %75 = arith.negf %74 : vector<4x256xf32>
    %76 = math.exp %75 : vector<4x256xf32>
    %cst_17 = arith.constant 1.000000e+00 : f32
    %77 = vector.broadcast %cst_17 : f32 to vector<4x256xf32>
    %78 = arith.addf %77, %76 : vector<4x256xf32>
    %79 = arith.divf %77, %78 : vector<4x256xf32>
    %80 = vector.extract_strided_slice %67 {offsets = [0, 512], sizes = [4, 256], strides = [1, 1]} : vector<4x1024xf32> to vector<4x256xf32>
    %81 = math.tanh %80 : vector<4x256xf32>
    %82 = vector.extract_strided_slice %67 {offsets = [0, 768], sizes = [4, 256], strides = [1, 1]} : vector<4x1024xf32> to vector<4x256xf32>
    %83 = arith.negf %82 : vector<4x256xf32>
    %84 = math.exp %83 : vector<4x256xf32>
    %cst_18 = arith.constant 1.000000e+00 : f32
    %85 = vector.broadcast %cst_18 : f32 to vector<4x256xf32>
    %86 = arith.addf %85, %84 : vector<4x256xf32>
    %87 = arith.divf %85, %86 : vector<4x256xf32>
    %88 = arith.mulf %79, %62 : vector<4x256xf32>
    %89 = arith.mulf %73, %81 : vector<4x256xf32>
    %90 = arith.addf %88, %89 : vector<4x256xf32>
    %91 = math.tanh %90 : vector<4x256xf32>
    %92 = arith.mulf %87, %91 : vector<4x256xf32>
    %93 = vector.extract_strided_slice %5 {offsets = [12, 0], sizes = [4, 1024], strides = [1, 1]} : vector<32x1024xf32> to vector<4x1024xf32>
    %cst_19 = arith.constant dense<0.000000e+00> : vector<4x1024xf32>
    %94 = tpu.matmul %92, %6, %cst_19 {dimension_numbers = #tpu.dot_dimension_numbers<[1], [0], [0], [1], [0, 0, 1, 1], [], []>} : vector<4x256xf32>, vector<256x1024xf32>, vector<4x1024xf32> -> vector<4x1024xf32>
    %95 = arith.addf %93, %94 : vector<4x1024xf32>
    %96 = vector.extract_strided_slice %95 {offsets = [0, 0], sizes = [4, 256], strides = [1, 1]} : vector<4x1024xf32> to vector<4x256xf32>
    %97 = arith.negf %96 : vector<4x256xf32>
    %98 = math.exp %97 : vector<4x256xf32>
    %cst_20 = arith.constant 1.000000e+00 : f32
    %99 = vector.broadcast %cst_20 : f32 to vector<4x256xf32>
    %100 = arith.addf %99, %98 : vector<4x256xf32>
    %101 = arith.divf %99, %100 : vector<4x256xf32>
    %102 = vector.extract_strided_slice %95 {offsets = [0, 256], sizes = [4, 256], strides = [1, 1]} : vector<4x1024xf32> to vector<4x256xf32>
    %103 = arith.negf %102 : vector<4x256xf32>
    %104 = math.exp %103 : vector<4x256xf32>
    %cst_21 = arith.constant 1.000000e+00 : f32
    %105 = vector.broadcast %cst_21 : f32 to vector<4x256xf32>
    %106 = arith.addf %105, %104 : vector<4x256xf32>
    %107 = arith.divf %105, %106 : vector<4x256xf32>
    %108 = vector.extract_strided_slice %95 {offsets = [0, 512], sizes = [4, 256], strides = [1, 1]} : vector<4x1024xf32> to vector<4x256xf32>
    %109 = math.tanh %108 : vector<4x256xf32>
    %110 = vector.extract_strided_slice %95 {offsets = [0, 768], sizes = [4, 256], strides = [1, 1]} : vector<4x1024xf32> to vector<4x256xf32>
    %111 = arith.negf %110 : vector<4x256xf32>
    %112 = math.exp %111 : vector<4x256xf32>
    %cst_22 = arith.constant 1.000000e+00 : f32
    %113 = vector.broadcast %cst_22 : f32 to vector<4x256xf32>
    %114 = arith.addf %113, %112 : vector<4x256xf32>
    %115 = arith.divf %113, %114 : vector<4x256xf32>
    %116 = arith.mulf %107, %90 : vector<4x256xf32>
    %117 = arith.mulf %101, %109 : vector<4x256xf32>
    %118 = arith.addf %116, %117 : vector<4x256xf32>
    %119 = math.tanh %118 : vector<4x256xf32>
    %120 = arith.mulf %115, %119 : vector<4x256xf32>
    %121 = vector.extract_strided_slice %5 {offsets = [16, 0], sizes = [4, 1024], strides = [1, 1]} : vector<32x1024xf32> to vector<4x1024xf32>
    %cst_23 = arith.constant dense<0.000000e+00> : vector<4x1024xf32>
    %122 = tpu.matmul %120, %6, %cst_23 {dimension_numbers = #tpu.dot_dimension_numbers<[1], [0], [0], [1], [0, 0, 1, 1], [], []>} : vector<4x256xf32>, vector<256x1024xf32>, vector<4x1024xf32> -> vector<4x1024xf32>
    %123 = arith.addf %121, %122 : vector<4x1024xf32>
    %124 = vector.extract_strided_slice %123 {offsets = [0, 0], sizes = [4, 256], strides = [1, 1]} : vector<4x1024xf32> to vector<4x256xf32>
    %125 = arith.negf %124 : vector<4x256xf32>
    %126 = math.exp %125 : vector<4x256xf32>
    %cst_24 = arith.constant 1.000000e+00 : f32
    %127 = vector.broadcast %cst_24 : f32 to vector<4x256xf32>
    %128 = arith.addf %127, %126 : vector<4x256xf32>
    %129 = arith.divf %127, %128 : vector<4x256xf32>
    %130 = vector.extract_strided_slice %123 {offsets = [0, 256], sizes = [4, 256], strides = [1, 1]} : vector<4x1024xf32> to vector<4x256xf32>
    %131 = arith.negf %130 : vector<4x256xf32>
    %132 = math.exp %131 : vector<4x256xf32>
    %cst_25 = arith.constant 1.000000e+00 : f32
    %133 = vector.broadcast %cst_25 : f32 to vector<4x256xf32>
    %134 = arith.addf %133, %132 : vector<4x256xf32>
    %135 = arith.divf %133, %134 : vector<4x256xf32>
    %136 = vector.extract_strided_slice %123 {offsets = [0, 512], sizes = [4, 256], strides = [1, 1]} : vector<4x1024xf32> to vector<4x256xf32>
    %137 = math.tanh %136 : vector<4x256xf32>
    %138 = vector.extract_strided_slice %123 {offsets = [0, 768], sizes = [4, 256], strides = [1, 1]} : vector<4x1024xf32> to vector<4x256xf32>
    %139 = arith.negf %138 : vector<4x256xf32>
    %140 = math.exp %139 : vector<4x256xf32>
    %cst_26 = arith.constant 1.000000e+00 : f32
    %141 = vector.broadcast %cst_26 : f32 to vector<4x256xf32>
    %142 = arith.addf %141, %140 : vector<4x256xf32>
    %143 = arith.divf %141, %142 : vector<4x256xf32>
    %144 = arith.mulf %135, %118 : vector<4x256xf32>
    %145 = arith.mulf %129, %137 : vector<4x256xf32>
    %146 = arith.addf %144, %145 : vector<4x256xf32>
    %147 = math.tanh %146 : vector<4x256xf32>
    %148 = arith.mulf %143, %147 : vector<4x256xf32>
    %149 = vector.extract_strided_slice %5 {offsets = [20, 0], sizes = [4, 1024], strides = [1, 1]} : vector<32x1024xf32> to vector<4x1024xf32>
    %cst_27 = arith.constant dense<0.000000e+00> : vector<4x1024xf32>
    %150 = tpu.matmul %148, %6, %cst_27 {dimension_numbers = #tpu.dot_dimension_numbers<[1], [0], [0], [1], [0, 0, 1, 1], [], []>} : vector<4x256xf32>, vector<256x1024xf32>, vector<4x1024xf32> -> vector<4x1024xf32>
    %151 = arith.addf %149, %150 : vector<4x1024xf32>
    %152 = vector.extract_strided_slice %151 {offsets = [0, 0], sizes = [4, 256], strides = [1, 1]} : vector<4x1024xf32> to vector<4x256xf32>
    %153 = arith.negf %152 : vector<4x256xf32>
    %154 = math.exp %153 : vector<4x256xf32>
    %cst_28 = arith.constant 1.000000e+00 : f32
    %155 = vector.broadcast %cst_28 : f32 to vector<4x256xf32>
    %156 = arith.addf %155, %154 : vector<4x256xf32>
    %157 = arith.divf %155, %156 : vector<4x256xf32>
    %158 = vector.extract_strided_slice %151 {offsets = [0, 256], sizes = [4, 256], strides = [1, 1]} : vector<4x1024xf32> to vector<4x256xf32>
    %159 = arith.negf %158 : vector<4x256xf32>
    %160 = math.exp %159 : vector<4x256xf32>
    %cst_29 = arith.constant 1.000000e+00 : f32
    %161 = vector.broadcast %cst_29 : f32 to vector<4x256xf32>
    %162 = arith.addf %161, %160 : vector<4x256xf32>
    %163 = arith.divf %161, %162 : vector<4x256xf32>
    %164 = vector.extract_strided_slice %151 {offsets = [0, 512], sizes = [4, 256], strides = [1, 1]} : vector<4x1024xf32> to vector<4x256xf32>
    %165 = math.tanh %164 : vector<4x256xf32>
    %166 = vector.extract_strided_slice %151 {offsets = [0, 768], sizes = [4, 256], strides = [1, 1]} : vector<4x1024xf32> to vector<4x256xf32>
    %167 = arith.negf %166 : vector<4x256xf32>
    %168 = math.exp %167 : vector<4x256xf32>
    %cst_30 = arith.constant 1.000000e+00 : f32
    %169 = vector.broadcast %cst_30 : f32 to vector<4x256xf32>
    %170 = arith.addf %169, %168 : vector<4x256xf32>
    %171 = arith.divf %169, %170 : vector<4x256xf32>
    %172 = arith.mulf %163, %146 : vector<4x256xf32>
    %173 = arith.mulf %157, %165 : vector<4x256xf32>
    %174 = arith.addf %172, %173 : vector<4x256xf32>
    %175 = math.tanh %174 : vector<4x256xf32>
    %176 = arith.mulf %171, %175 : vector<4x256xf32>
    %177 = vector.extract_strided_slice %5 {offsets = [24, 0], sizes = [4, 1024], strides = [1, 1]} : vector<32x1024xf32> to vector<4x1024xf32>
    %cst_31 = arith.constant dense<0.000000e+00> : vector<4x1024xf32>
    %178 = tpu.matmul %176, %6, %cst_31 {dimension_numbers = #tpu.dot_dimension_numbers<[1], [0], [0], [1], [0, 0, 1, 1], [], []>} : vector<4x256xf32>, vector<256x1024xf32>, vector<4x1024xf32> -> vector<4x1024xf32>
    %179 = arith.addf %177, %178 : vector<4x1024xf32>
    %180 = vector.extract_strided_slice %179 {offsets = [0, 0], sizes = [4, 256], strides = [1, 1]} : vector<4x1024xf32> to vector<4x256xf32>
    %181 = arith.negf %180 : vector<4x256xf32>
    %182 = math.exp %181 : vector<4x256xf32>
    %cst_32 = arith.constant 1.000000e+00 : f32
    %183 = vector.broadcast %cst_32 : f32 to vector<4x256xf32>
    %184 = arith.addf %183, %182 : vector<4x256xf32>
    %185 = arith.divf %183, %184 : vector<4x256xf32>
    %186 = vector.extract_strided_slice %179 {offsets = [0, 256], sizes = [4, 256], strides = [1, 1]} : vector<4x1024xf32> to vector<4x256xf32>
    %187 = arith.negf %186 : vector<4x256xf32>
    %188 = math.exp %187 : vector<4x256xf32>
    %cst_33 = arith.constant 1.000000e+00 : f32
    %189 = vector.broadcast %cst_33 : f32 to vector<4x256xf32>
    %190 = arith.addf %189, %188 : vector<4x256xf32>
    %191 = arith.divf %189, %190 : vector<4x256xf32>
    %192 = vector.extract_strided_slice %179 {offsets = [0, 512], sizes = [4, 256], strides = [1, 1]} : vector<4x1024xf32> to vector<4x256xf32>
    %193 = math.tanh %192 : vector<4x256xf32>
    %194 = vector.extract_strided_slice %179 {offsets = [0, 768], sizes = [4, 256], strides = [1, 1]} : vector<4x1024xf32> to vector<4x256xf32>
    %195 = arith.negf %194 : vector<4x256xf32>
    %196 = math.exp %195 : vector<4x256xf32>
    %cst_34 = arith.constant 1.000000e+00 : f32
    %197 = vector.broadcast %cst_34 : f32 to vector<4x256xf32>
    %198 = arith.addf %197, %196 : vector<4x256xf32>
    %199 = arith.divf %197, %198 : vector<4x256xf32>
    %200 = arith.mulf %191, %174 : vector<4x256xf32>
    %201 = arith.mulf %185, %193 : vector<4x256xf32>
    %202 = arith.addf %200, %201 : vector<4x256xf32>
    %203 = math.tanh %202 : vector<4x256xf32>
    %204 = arith.mulf %199, %203 : vector<4x256xf32>
    %205 = vector.extract_strided_slice %5 {offsets = [28, 0], sizes = [4, 1024], strides = [1, 1]} : vector<32x1024xf32> to vector<4x1024xf32>
    %cst_35 = arith.constant dense<0.000000e+00> : vector<4x1024xf32>
    %206 = tpu.matmul %204, %6, %cst_35 {dimension_numbers = #tpu.dot_dimension_numbers<[1], [0], [0], [1], [0, 0, 1, 1], [], []>} : vector<4x256xf32>, vector<256x1024xf32>, vector<4x1024xf32> -> vector<4x1024xf32>
    %207 = arith.addf %205, %206 : vector<4x1024xf32>
    %208 = vector.extract_strided_slice %207 {offsets = [0, 0], sizes = [4, 256], strides = [1, 1]} : vector<4x1024xf32> to vector<4x256xf32>
    %209 = arith.negf %208 : vector<4x256xf32>
    %210 = math.exp %209 : vector<4x256xf32>
    %cst_36 = arith.constant 1.000000e+00 : f32
    %211 = vector.broadcast %cst_36 : f32 to vector<4x256xf32>
    %212 = arith.addf %211, %210 : vector<4x256xf32>
    %213 = arith.divf %211, %212 : vector<4x256xf32>
    %214 = vector.extract_strided_slice %207 {offsets = [0, 256], sizes = [4, 256], strides = [1, 1]} : vector<4x1024xf32> to vector<4x256xf32>
    %215 = arith.negf %214 : vector<4x256xf32>
    %216 = math.exp %215 : vector<4x256xf32>
    %cst_37 = arith.constant 1.000000e+00 : f32
    %217 = vector.broadcast %cst_37 : f32 to vector<4x256xf32>
    %218 = arith.addf %217, %216 : vector<4x256xf32>
    %219 = arith.divf %217, %218 : vector<4x256xf32>
    %220 = vector.extract_strided_slice %207 {offsets = [0, 512], sizes = [4, 256], strides = [1, 1]} : vector<4x1024xf32> to vector<4x256xf32>
    %221 = math.tanh %220 : vector<4x256xf32>
    %222 = vector.extract_strided_slice %207 {offsets = [0, 768], sizes = [4, 256], strides = [1, 1]} : vector<4x1024xf32> to vector<4x256xf32>
    %223 = arith.negf %222 : vector<4x256xf32>
    %224 = math.exp %223 : vector<4x256xf32>
    %cst_38 = arith.constant 1.000000e+00 : f32
    %225 = vector.broadcast %cst_38 : f32 to vector<4x256xf32>
    %226 = arith.addf %225, %224 : vector<4x256xf32>
    %227 = arith.divf %225, %226 : vector<4x256xf32>
    %228 = arith.mulf %219, %202 : vector<4x256xf32>
    %229 = arith.mulf %213, %221 : vector<4x256xf32>
    %230 = arith.addf %228, %229 : vector<4x256xf32>
    %231 = math.tanh %230 : vector<4x256xf32>
    %232 = arith.mulf %227, %231 : vector<4x256xf32>
    %c0_39 = arith.constant 0 : index
    %c0_40 = arith.constant 0 : index
    %233 = vector.load %arg4[%c0_39, %c0_40] : memref<586x256xf32, #tpu.memory_space<vmem>>, vector<70x256xf32>
    %c584 = arith.constant 584 : index
    %c0_41 = arith.constant 0 : index
    %234 = vector.load %arg4[%c584, %c0_41] : memref<586x256xf32, #tpu.memory_space<vmem>>, vector<1x256xf32>
    %c72 = arith.constant 72 : index
    %c0_42 = arith.constant 0 : index
    %235 = vector.load %arg4[%c72, %c0_42] : memref<586x256xf32, #tpu.memory_space<vmem>>, vector<512x256xf32>
    %c585 = arith.constant 585 : index
    %c0_43 = arith.constant 0 : index
    %236 = vector.load %arg4[%c585, %c0_43] : memref<586x256xf32, #tpu.memory_space<vmem>>, vector<1x256xf32>
    %c0_44 = arith.constant 0 : index
    %c0_45 = arith.constant 0 : index
    %237 = vector.load %arg0[%c0_44, %c0_45] : memref<4x70xf32, #tpu.memory_space<vmem>>, vector<4x70xf32>
    %cst_46 = arith.constant dense<0.000000e+00> : vector<4x256xf32>
    %238 = tpu.matmul %237, %233, %cst_46 {dimension_numbers = #tpu.dot_dimension_numbers<[1], [0], [0], [1], [0, 0, 1, 1], [], []>} : vector<4x70xf32>, vector<70x256xf32>, vector<4x256xf32> -> vector<4x256xf32>
    %239 = vector.broadcast %234 : vector<1x256xf32> to vector<4x256xf32>
    %240 = arith.addf %238, %239 : vector<4x256xf32>
    %cst_47 = arith.constant 0.000000e+00 : f32
    %241 = vector.broadcast %cst_47 : f32 to vector<4x256xf32>
    %242 = arith.maximumf %240, %241 : vector<4x256xf32>
    %243 = tpu.concatenate %242, %232 in 1 : vector<4x256xf32>, vector<4x256xf32> -> vector<4x512xf32>
    %cst_48 = arith.constant dense<0.000000e+00> : vector<4x256xf32>
    %244 = tpu.matmul %243, %235, %cst_48 {dimension_numbers = #tpu.dot_dimension_numbers<[1], [0], [0], [1], [0, 0, 1, 1], [], []>} : vector<4x512xf32>, vector<512x256xf32>, vector<4x256xf32> -> vector<4x256xf32>
    %245 = vector.broadcast %236 : vector<1x256xf32> to vector<4x256xf32>
    %246 = arith.addf %244, %245 : vector<4x256xf32>
    %cst_49 = arith.constant 0.000000e+00 : f32
    %247 = vector.broadcast %cst_49 : f32 to vector<4x256xf32>
    %248 = arith.maximumf %246, %247 : vector<4x256xf32>
    %c0_50 = arith.constant 0 : index
    %c0_51 = arith.constant 0 : index
    %249 = vector.load %arg5[%c0_50, %c0_51] : memref<257x128xf32, #tpu.memory_space<vmem>>, vector<256x128xf32>
    %c256 = arith.constant 256 : index
    %c0_52 = arith.constant 0 : index
    %250 = vector.load %arg5[%c256, %c0_52] : memref<257x128xf32, #tpu.memory_space<vmem>>, vector<1x128xf32>
    %cst_53 = arith.constant dense<0.000000e+00> : vector<4x128xf32>
    %251 = tpu.matmul %248, %249, %cst_53 {dimension_numbers = #tpu.dot_dimension_numbers<[1], [0], [0], [1], [0, 0, 1, 1], [], []>} : vector<4x256xf32>, vector<256x128xf32>, vector<4x128xf32> -> vector<4x128xf32>
    %252 = vector.broadcast %250 : vector<1x128xf32> to vector<4x128xf32>
    %253 = arith.addf %251, %252 : vector<4x128xf32>
    %c0_54 = arith.constant 0 : index
    %c0_55 = arith.constant 0 : index
    %254 = vector.load %arg2[%c0_54, %c0_55] : memref<4x128xf32, #tpu.memory_space<vmem>>, vector<4x128xf32>
    %cst_56 = arith.constant 0.000000e+00 : f32
    %255 = vector.broadcast %cst_56 : f32 to vector<4x128xf32>
    %256 = arith.cmpf oeq, %254, %255 : vector<4x128xf32>
    %cst_57 = arith.constant -1.000000e+09 : f32
    %257 = vector.broadcast %cst_57 : f32 to vector<4x128xf32>
    %258 = arith.select %256, %257, %253 : vector<4x128xi1>, vector<4x128xf32>
    %cst_58 = arith.constant dense<0xFF800000> : vector<4xf32>
    %259 = vector.multi_reduction <maximumf>, %258, %cst_58 [1] : vector<4x128xf32> to vector<4xf32>
    %260 = vector.shape_cast %259 : vector<4xf32> to vector<4x1xf32>
    %261 = vector.broadcast %260 : vector<4x1xf32> to vector<4x128xf32>
    %262 = arith.subf %258, %261 : vector<4x128xf32>
    %263 = math.exp %262 : vector<4x128xf32>
    %cst_59 = arith.constant dense<0.000000e+00> : vector<4xf32>
    %264 = vector.multi_reduction <add>, %263, %cst_59 [1] : vector<4x128xf32> to vector<4xf32>
    %265 = vector.shape_cast %264 : vector<4xf32> to vector<4x1xf32>
    %266 = tpu.reciprocal %265 {approx = true} : vector<4x1xf32> -> vector<4x1xf32>
    %267 = arith.mulf %265, %266 : vector<4x1xf32>
    %cst_60 = arith.constant 2.000000e+00 : f32
    %268 = vector.broadcast %cst_60 : f32 to vector<4x1xf32>
    %269 = arith.subf %268, %267 : vector<4x1xf32>
    %270 = arith.mulf %266, %269 : vector<4x1xf32>
    %271 = vector.broadcast %270 : vector<4x1xf32> to vector<4x128xf32>
    %272 = arith.mulf %263, %271 : vector<4x128xf32>
    %273 = tpu.iota {dimensions = array<i32: 1>} : vector<4x128xi32>
    %c64_i32 = arith.constant 64 : i32
    %274 = vector.broadcast %c64_i32 : i32 to vector<4x128xi32>
    %275 = arith.cmpi eq, %273, %274 : vector<4x128xi32>
    %276 = arith.select %275, %253, %272 : vector<4x128xi1>, vector<4x128xf32>
    %c0_61 = arith.constant 0 : index
    %c0_62 = arith.constant 0 : index
    %277 = vector.load %arg6[%c0_61, %c0_62] : memref<4x128xf32, #tpu.memory_space<vmem>>, vector<4x128xf32>
    tpu.vector_store %arg6[%c0_61, %c0_62], %276 {strides = array<i32>} : memref<4x128xf32, #tpu.memory_space<vmem>>, vector<4x128xf32>,
    return
  }
}

</mosaic_0001>

<bundles_post_ra>
// kernel: actor_critic_forward.1
= control target key start
LH: loop header
LB: loop body
LE: loop exit
PB: predicated region body
PF: predicated region fallthrough
CT: control target
= control target key end

     0   :  { %11 = vsyncpa [#allocation3], 0  ;;  %s9837_s0 = inlined_call_operand.hbm [shape: f32[4,70], index: 0, kind: input, shape index: {}]   ;;  %s9838_s1 = inlined_call_operand.hbm [shape: f32[32,16], index: 1, kind: input, shape index: {}]   ;;  %s9839_s2 = inlined_call_operand.vmem [shape: f32[4,128], index: 2, kind: input, shape index: {}]   ;;  %s9840_s3 = inlined_call_operand.hbm [shape: f32[273,1024], index: 3, kind: input, shape index: {}]   ;;  %s9841_s4 = inlined_call_operand.hbm [shape: f32[586,256], index: 4, kind: input, shape index: {}]   ;;  %s9842_s5 = inlined_call_operand.hbm [shape: f32[257,128], index: 5, kind: input, shape index: {}]   ;;  %s9843_s6 = inlined_call_operand.vmem [shape: f32[4,128], index: 6, kind: output, shape index: {}]  }
   0x1   :  { %12 = vsyncpa [#allocation5], 0 }
   0x2   :  { %13 = vsyncpa [#allocation8], 0  ;;  %s5508_s21 = smov [#allocation4]  }
   0x3   :  { %s29_s22 = sshll.u32 %s5508_s21, 4  ;;  %s30_s22 = int_to_ptr.vmem [resolvable:$true] %s29_s22 }
   0x4   :  { %s5410_s23 = scalar_lea.vmem %s30_s22, 512  ;;  %p5415_p1 = scmp.lt.s32.totalorder %s30_s22, %s30_s22 }
   0x5   :  { %p5411_p0 = scmp.ne.s32.totalorder %s30_s22, %s5410_s23  ;;  %p5416_p2 = scmp.lt.s32.totalorder %s5410_s23, %s5410_s23 }
   0x7   :  { %p5417_p3 = por %p5416_p2, %p5415_p1 }
   0x9   :  { %p5418_p4 = pnand %p5417_p3, %p5411_p0 }
   0xb   :  { %5421 = shalt.err (!%p5418_p4)
}
   0xc   :  { %s5509_s24 = smov 128   ;;  %s5510_s25 = smov 8  }
   0xd   :  { %35 = dma.hbm_to_vmem [thread:$0]  %s9838_s1, 512, %s30_s22, [#allocation5], %s5509_s24, %s5509_s24, %s5510_s25  }
   0xe   :  { %s5511_s28 = smov [#allocation7]  }
   0xf   :  { %s55_s29 = sshll.u32 %s5511_s28, 4  ;;  %s56_s29 = int_to_ptr.vmem [resolvable:$true] %s55_s29 }
  0x10   :  { %s5430_s30 = scalar_lea.vmem %s56_s29, 18944  ;;  %p5435_p6 = scmp.lt.s32.totalorder %s56_s29, %s56_s29 }
  0x11   :  { %p5431_p5 = scmp.ne.s32.totalorder %s56_s29, %s5430_s30  ;;  %p5436_p7 = scmp.lt.s32.totalorder %s5430_s30, %s5430_s30 }
  0x13   :  { %p5437_p8 = por %p5436_p7, %p5435_p6 }
  0x15   :  { %p5438_p9 = pnand %p5437_p8, %p5431_p5 }
  0x17   :  { %5441 = shalt.err (!%p5438_p9)
}
  0x18   :  { %s5512_s7 = smov 256   ;;  %s5513_s8 = smov 16  }
  0x19   :  { %61 = dma.hbm_to_vmem [thread:$0]  %s9841_s4, 18944, %s56_s29, [#allocation8], %s5512_s7, %s5512_s7, %s5513_s8  }
  0x1a   :  { %s5514_s11 = smov [#allocation2]   ;;  %s5515_s13 = smov [#allocation6]  }
  0x1b   :  { %s20_s12 = sshll.u32 %s5514_s11, 4  ;;  %s43_s1 = sshll.u32 %s5515_s13, 4  ;;  %s21_s12 = int_to_ptr.vmem [resolvable:$true] %s20_s12  ;;  %s44_s1 = int_to_ptr.vmem [resolvable:$true] %s43_s1 }
  0x1c   :  { %s5450_s14 = scalar_lea.vmem %s21_s12, 64  ;;  %p5455_p11 = scmp.lt.s32.totalorder %s21_s12, %s21_s12 }
  0x1d   :  { %p5451_p10 = scmp.ne.s32.totalorder %s21_s12, %s5450_s14  ;;  %p5456_p12 = scmp.lt.s32.totalorder %s5450_s14, %s5450_s14 }
  0x1f   :  { %p5457_p13 = por %p5456_p12, %p5455_p11 }
  0x21   :  { %p5458_p0 = pnand %p5457_p13, %p5451_p10 }
  0x23   :  { %5461 = shalt.err (!%p5458_p0)
}
  0x24   :  { %23 = dma.hbm_to_vmem [thread:$0]  %s9837_s0, 64, %s21_s12, [#allocation3]  }
  0x25   :  { %s5470_s17 = scalar_lea.vmem %s44_s1, 35840  ;;  %p5475_p2 = scmp.lt.s32.totalorder %s44_s1, %s44_s1 }
  0x26   :  { %p5471_p1 = scmp.ne.s32.totalorder %s44_s1, %s5470_s17  ;;  %p5476_p3 = scmp.lt.s32.totalorder %s5470_s17, %s5470_s17 }
  0x28   :  { %p5477_p4 = por %p5476_p3, %p5475_p2 }
  0x2a   :  { %p5478_p5 = pnand %p5477_p4, %p5471_p1 }
  0x2c   :  { %5481 = shalt.err (!%p5478_p5)
}
  0x2d   :  { %s5516_s4 = smov 1024   ;;  %s5517_s18 = smov 64  }
  0x2e   :  { %49 = dma.hbm_to_vmem [thread:$0]  %s9840_s3, 35840, %s44_s1, [#allocation5], %s5516_s4, %s5516_s4, %s5517_s18  }
  0x2f   :  { %s5518_s21 = smov [#allocation9]  }
  0x30   :  { %s67_s22 = sshll.u32 %s5518_s21, 4  ;;  %s68_s22 = int_to_ptr.vmem [resolvable:$true] %s67_s22 }
  0x31   :  { %s5490_s23 = scalar_lea.vmem %s68_s22, 4224  ;;  %p5495_p7 = scmp.lt.s32.totalorder %s68_s22, %s68_s22 }
  0x32   :  { %p5491_p6 = scmp.ne.s32.totalorder %s68_s22, %s5490_s23  ;;  %p5496_p8 = scmp.lt.s32.totalorder %s5490_s23, %s5490_s23 }
  0x34   :  { %p5497_p9 = por %p5496_p8, %p5495_p7 }
  0x36   :  { %p5498_p10 = pnand %p5497_p9, %p5491_p6 }
  0x38   :  { %5501 = shalt.err (!%p5498_p10)
}
  0x39   :  { %73 = dma.hbm_to_vmem [thread:$0]  %s9842_s5, 4224, %s68_s22, [#allocation8], %s5509_s24, %s5509_s24, %s5510_s25  }
  0x3a   :  { %5502 = dma.done.wait [#allocation3], 64  }
  0x3b   :  { %5503 = vsyncadd [#allocation3], 4294967232 }
  0x3c   :  { %5504 = dma.done.wait [#allocation5], 36352  }
  0x3d   :  { %5505 = vsyncadd [#allocation5], 4294930944 }
  0x3e   :  { %5506 = dma.done.wait [#allocation8], 23168  }
  0x3f   :  { %5507 = vsyncadd [#allocation8], 4294944128  ;;  %v9844_v0 = vmov 0.0   ;;  %v98_v1 = vld [vmem:[#allocation6 + $0x48] sm:$0xff]  ;;  %v100_v2 = vld [vmem:[#allocation6 + $0x58] sm:$0xff]  ;;  %vm154_vm0 = vcmask 130048  }
  0x40   :  { %231 = vmatprep.mubr.f32.mxu0 %v9844_v0  ;;  %326 = vmatprep.mubr.f32.mxu1 %v9844_v0  ;;  %v97_v3 = vld [vmem:[#allocation6 + $0x40] sm:$0xff]  ;;  %v99_v4 = vld [vmem:[#allocation6 + $0x50] sm:$0xff]  ;;  %v90_v5 = vld [vmem:[#allocation6 + $0x8] sm:$0xff]  ;;  %vm3821_vm1 = vcmask 1045504   ;;  %vm3817_vm2 = vcmask 572416   ;;  %vm4172_vm4 = vcmask 1043456  }
  0x41   :  { %195 = vmatprep.subr.mxu0 %v98_v1  ;;  %4302 = vmatprep.subr.mxu1 %v100_v2  ;;  %v92_v6 = vld [vmem:[#allocation6 + $0x18] sm:$0xff]  ;;  %v89_v7 = vld [vmem:[#allocation6] sm:$0xff]  ;;  %v91_v8 = vld [vmem:[#allocation6 + $0x10] sm:$0xff] }
  0x42   :  { %196 = vmatpush1.msra.mxu0 %v97_v3  ;;  %4304 = vmatpush1.msra.mxu1 %v99_v4  ;;  %v5578_v9 = vld [vmem:[#allocation4] sm:$0xff]  ;;  %v5580_v10 = vld [vmem:[#allocation4 + $0x8] sm:$0xff]  ;;  %v104_v11 = vld [vmem:[#allocation6 + $0x78] sm:$0xff] }
  0x43   :  { %197 = vmatprep.subr.mxu0 %v90_v5  ;;  %4303 = vmatprep.subr.mxu1 %v92_v6  ;;  %v103_v12 = vld [vmem:[#allocation6 + $0x70] sm:$0xff]  ;;  %v96_v14 = vld [vmem:[#allocation6 + $0x38] sm:$0xff]  ;;  %v102_v15 = vld [vmem:[#allocation6 + $0x68] sm:$0xff] }
  0x44   :  { %198 = vmatpush1.msra.mxu0 %v89_v7  ;;  %4305 = vmatpush1.msra.mxu1 %v91_v8  ;;  %v5588_v13 = vld [vmem:[#allocation4 + $0x10] sm:$0xff]  ;;  %v5596_v17 = vld [vmem:[#allocation4 + $0x18] sm:$0xff]  ;;  %v101_v23 = vld [vmem:[#allocation6 + $0x60] sm:$0xff] }
  0x45   :  { %4199 = vmatmul.mubr.msk.f32.vlgmr.msra.gmra.mxu0 %vm154_vm0, %v5578_v9  ;;  %284 = vmatprep.subr.mxu0 %v100_v2  ;;  %v95_v16 = vld [vmem:[#allocation6 + $0x30] sm:$0xff]  ;;  %v646_v18 = vld [vmem:[#allocation6 + $0x458] sm:$0xff]  ;;  %v94_v25 = vld [vmem:[#allocation6 + $0x28] sm:$0xff] }
  0x46   :  { %4204 = vmatmul.mubr.msk.f32.vlgmr.msra.gmra.mxu1 %vm154_vm0, %v5580_v10  ;;  %285 = vmatpush1.msra.mxu0 %v99_v4  ;;  %v645_v19 = vld [vmem:[#allocation6 + $0x450] sm:$0xff]  ;;  %v638_v20 = vld [vmem:[#allocation6 + $0x418] sm:$0xff]  ;;  %v93_v27 = vld [vmem:[#allocation6 + $0x20] sm:$0xff] }
  0x47   :  { %237 = vmatprep.mubr.f32.mxu0 %v9844_v0  ;;  %332 = vmatprep.mubr.f32.mxu1 %v9844_v0  ;;  %v637_v21 = vld [vmem:[#allocation6 + $0x410] sm:$0xff]  ;;  %v630_v22 = vld [vmem:[#allocation6 + $0x3d8] sm:$0xff]  ;;  %v644_v29 = vld [vmem:[#allocation6 + $0x448] sm:$0xff] }
  0x48   :  { %462 = vmatprep.subr.mxu1 %v104_v11  ;;  %286 = vmatprep.subr.mxu0 %v92_v6  ;;  %v629_v24 = vld [vmem:[#allocation6 + $0x3d0] sm:$0xff]  ;;  %v622_v26 = vld [vmem:[#allocation6 + $0x398] sm:$0xff]  ;;  %v643_v32 = vld [vmem:[#allocation6 + $0x440] sm:$0xff] }
  0x49   :  { %4200 = vmatmul.mubr.msk.f32.gmra.mxu0 %vm154_vm0, %v5580_v10  ;;  %463 = vmatpush1.msra.mxu1 %v103_v12  ;;  %v621_v28 = vld [vmem:[#allocation6 + $0x390] sm:$0xff]  ;;  %v614_v30 = vld [vmem:[#allocation6 + $0x358] sm:$0xff]  ;;  %v636_v34 = vld [vmem:[#allocation6 + $0x408] sm:$0xff] }
  0x4a   :  { %4205 = vmatmul.mubr.msk.f32.gmra.mxu1 %vm154_vm0, %v5588_v13  ;;  %243 = vmatprep.mubr.f32.mxu0 %v9844_v0  ;;  %v613_v31 = vld [vmem:[#allocation6 + $0x350] sm:$0xff]  ;;  %v606_v33 = vld [vmem:[#allocation6 + $0x318] sm:$0xff]  ;;  %v635_v36 = vld [vmem:[#allocation6 + $0x400] sm:$0xff] }
  0x4b   :  { %338 = vmatprep.mubr.f32.mxu1 %v9844_v0  ;;  %287 = vmatpush1.msra.mxu0 %v91_v8  ;;  %v605_v35 = vld [vmem:[#allocation6 + $0x310] sm:$0xff]  ;;  %v598_v37 = vld [vmem:[#allocation6 + $0x2d8] sm:$0xff]  ;;  %v628_v38 = vld [vmem:[#allocation6 + $0x3c8] sm:$0xff] }
  0x4c   :  { %464 = vmatprep.subr.mxu1 %v96_v14  ;;  %373 = vmatprep.subr.mxu0 %v102_v15  ;;  %v597_v39 = vld [vmem:[#allocation6 + $0x2d0] sm:$0xff]  ;;  %v5615_v40 = vld [vmem:[#allocation6 + $0x3c0] sm:$0xff]  ;;  %v590_v41 = vld [vmem:[#allocation6 + $0x298] sm:$0xff] }
  0x4d   :  { %4201 = vmatmul.mubr.msk.f32.gmra.mxu0 %vm154_vm0, %v5588_v13  ;;  %465 = vmatpush1.msra.mxu1 %v95_v16  ;;  %v5617_v42 = vld [vmem:[#allocation6 + $0x388] sm:$0xff]  ;;  %v589_v43 = vld [vmem:[#allocation6 + $0x290] sm:$0xff]  ;;  %v5619_v44 = vld [vmem:[#allocation6 + $0x380] sm:$0xff] }
  0x4e   :  { %4206 = vmatmul.mubr.msk.f32.gmra.mxu1 %vm154_vm0, %v5596_v17  ;;  %249 = vmatprep.mubr.f32.mxu0 %v9844_v0  ;;  %v582_v45 = vld [vmem:[#allocation6 + $0x258] sm:$0xff]  ;;  %v5622_v46 = vld [vmem:[#allocation6 + $0x348] sm:$0xff]  ;;  %v581_v47 = vld [vmem:[#allocation6 + $0x250] sm:$0xff] }
  0x4f   :  { %498 = vmatprep.mubr.f32.mxu1 %v9844_v0  ;;  %850 = vmatprep.subr.mxu1 %v646_v18  ;;  %v5625_v48 = vld [vmem:[#allocation6 + $0x340] sm:$0xff]  ;;  %v574_v49 = vld [vmem:[#allocation6 + $0x218] sm:$0xff]  ;;  %v5628_v50 = vld [vmem:[#allocation6 + $0x308] sm:$0xff] }
  0x50   :  { %v5630_v51 = vld [vmem:[#allocation6 + $0x210] sm:$0xff]  ;;  %v5633_v52 = vld [vmem:[#allocation6 + $0x300] sm:$0xff]  ;;  %v5635_v53 = vld [vmem:[#allocation6 + $0x1d8] sm:$0xff] }
  0x51   :  { %4202 = vmatmul.mubr.msk.f32.gmra.mxu0 %vm154_vm0, %v5596_v17  ;;  %v5638_v54 = vld [vmem:[#allocation6 + $0x2c8] sm:$0xff]  ;;  %v5640_v55 = vld [vmem:[#allocation6 + $0x1d0] sm:$0xff]  ;;  %v5644_v56 = vld [vmem:[#allocation6 + $0x2c0] sm:$0xff] }
  0x52   :  { %4211 = vmatmul.mubr.msk.f32.vlgmr.msra.gmra.mxu1 %vm154_vm0, %v5578_v9  ;;  %320 = vmatprep.mubr.f32.mxu0 %v9844_v0  ;;  %v5646_v57 = vld [vmem:[#allocation6 + $0x198] sm:$0xff]  ;;  %v5650_v58 = vld [vmem:[#allocation6 + $0x288] sm:$0xff]  ;;  %v5652_v59 = vld [vmem:[#allocation6 + $0x190] sm:$0xff] }
  0x53   :  { %851 = vmatpush1.msra.mxu1 %v645_v19  ;;  %504 = vmatprep.mubr.f32.mxu1 %v9844_v0  ;;  %v5656_v60 = vld [vmem:[#allocation6 + $0x280] sm:$0xff]  ;;  %v5658_v61 = vld [vmem:[#allocation6 + $0x158] sm:$0xff]  ;;  %v5662_v62 = vld [vmem:[#allocation6 + $0x248] sm:$0xff] }
  0x54   :  { %852 = vmatprep.subr.mxu1 %v638_v20  ;;  %v5664_v63 = vld [vmem:[#allocation6 + $0x150] sm:$0xff]  ;;  %v5668_v1 = vld [vmem:[#allocation6 + $0x240] sm:$0xff]  ;;  %v5670_v2 = vld [vmem:[#allocation6 + $0x118] sm:$0xff] }
  0x55   :  { %853 = vmatpush1.msra.mxu1 %v637_v21  ;;  %4203 = vmatmul.mubr.msk.f32.vlgmr.msra.gmra.mxu0 %vm154_vm0, %v5578_v9  ;;  %v5674_v3 = vld [vmem:[#allocation6 + $0x208] sm:$0xff]  ;;  %v5676_v4 = vld [vmem:[#allocation6 + $0x110] sm:$0xff]  ;;  %v5680_v5 = vld [vmem:[#allocation6 + $0x200] sm:$0xff] }
  0x56   :  { %854 = vmatprep.subr.mxu1 %v630_v22  ;;  %374 = vmatpush1.msra.mxu0 %v101_v23  ;;  %v5682_v6 = vld [vmem:[#allocation6 + $0xd8] sm:$0xff]  ;;  %v5686_v7 = vld [vmem:[#allocation6 + $0x1c8] sm:$0xff]  ;;  %v5688_v8 = vld [vmem:[#allocation6 + $0xd0] sm:$0xff] }
  0x57   :  { %855 = vmatpush1.msra.mxu1 %v629_v24  ;;  %375 = vmatprep.subr.mxu0 %v94_v25  ;;  %v5694_v11 = vld [vmem:[#allocation6 + $0x98] sm:$0xff]  ;;  %v5698_v12 = vld [vmem:[#allocation6 + $0x188] sm:$0xff]  ;;  %v5700_v14 = vld [vmem:[#allocation6 + $0x90] sm:$0xff] }
  0x58   :  { %856 = vmatprep.subr.mxu1 %v622_v26  ;;  %376 = vmatpush1.msra.mxu0 %v93_v27  ;;  %v5704_v15 = vld [vmem:[#allocation6 + $0x180] sm:$0xff]  ;;  %v5706_v16 = vld [vmem:[#allocation6 + $0x858] sm:$0xff]  ;;  %v5710_v18 = vld [vmem:[#allocation6 + $0x148] sm:$0xff] }
  0x59   :  { %857 = vmatpush1.msra.mxu1 %v621_v28  ;;  %409 = vmatprep.mubr.f32.mxu0 %v9844_v0  ;;  %v5712_v19 = vld [vmem:[#allocation6 + $0x850] sm:$0xff]  ;;  %v5716_v20 = vld [vmem:[#allocation6 + $0x140] sm:$0xff]  ;;  %v5718_v21 = vld [vmem:[#allocation6 + $0x818] sm:$0xff] }
  0x5a   :  { %779 = vmatprep.subr.mxu0 %v644_v29  ;;  %858 = vmatprep.subr.mxu1 %v614_v30  ;;  %v5722_v22 = vld [vmem:[#allocation6 + $0x108] sm:$0xff]  ;;  %v5724_v23 = vld [vmem:[#allocation6 + $0x810] sm:$0xff]  ;;  %v5728_v24 = vld [vmem:[#allocation6 + $0x100] sm:$0xff] }
  0x5b   :  { %4207 = vmatmul.mubr.msk.f32.vlgmr.msra.gmra.mxu0 %vm154_vm0, %v5578_v9  ;;  %859 = vmatpush1.msra.mxu1 %v613_v31  ;;  %v5692_v9 = vld [vmem:[#allocation6 + $0x1c0] sm:$0xff]  ;;  %v5730_v25 = vld [vmem:[#allocation6 + $0x7d8] sm:$0xff]  ;;  %v5734_v26 = vld [vmem:[#allocation6 + $0xc8] sm:$0xff] }
  0x5c   :  { %780 = vmatpush1.msra.mxu0 %v643_v32  ;;  %860 = vmatprep.subr.mxu1 %v606_v33  ;;  %v5736_v27 = vld [vmem:[#allocation6 + $0x7d0] sm:$0xff]  ;;  %v5740_v28 = vld [vmem:[#allocation6 + $0xc0] sm:$0xff]  ;;  %v5742_v29 = vld [vmem:[#allocation6 + $0x798] sm:$0xff] }
  0x5d   :  { %781 = vmatprep.subr.mxu0 %v636_v34  ;;  %861 = vmatpush1.msra.mxu1 %v605_v35  ;;  %10539 = vst [vmem:[#allocation13_spill] sm:$0xff] %v5736_v27  ;;  %10540 = vst [vmem:[#allocation14_spill] sm:$0xff] %v5742_v29  ;;  %v5746_v30 = vld [vmem:[#allocation6 + $0x88] sm:$0xff]  ;;  %v5748_v31 = vld [vmem:[#allocation6 + $0x790] sm:$0xff] }
  0x5e   :  { %782 = vmatpush1.msra.mxu0 %v635_v36  ;;  %862 = vmatprep.subr.mxu1 %v598_v37  ;;  %10541 = vst [vmem:[#allocation15_spill] sm:$0xff] %v5748_v31  ;;  %v5752_v32 = vld [vmem:[#allocation6 + $0x80] sm:$0xff]  ;;  %v5754_v33 = vld [vmem:[#allocation6 + $0x758] sm:$0xff]  ;;  %v5758_v34 = vld [vmem:[#allocation6 + $0x848] sm:$0xff] }
  0x5f   :  { %783 = vmatprep.subr.mxu0 %v628_v38  ;;  %863 = vmatpush1.msra.mxu1 %v597_v39  ;;  %10542 = vst [vmem:[#allocation16_spill] sm:$0xff] %v5754_v33  ;;  %v5760_v35 = vld [vmem:[#allocation6 + $0x750] sm:$0xff]  ;;  %v5764_v36 = vld [vmem:[#allocation6 + $0x840] sm:$0xff]  ;;  %v5766_v37 = vld [vmem:[#allocation6 + $0x718] sm:$0xff] }
  0x60   :  { %784 = vmatpush1.msra.mxu0 %v5615_v40  ;;  %864 = vmatprep.subr.mxu1 %v590_v41  ;;  %10543 = vst [vmem:[#allocation17_spill] sm:$0xff] %v5760_v35  ;;  %10544 = vst [vmem:[#allocation18_spill] sm:$0xff] %v5766_v37  ;;  %v5770_v38 = vld [vmem:[#allocation6 + $0x808] sm:$0xff]  ;;  %v5772_v39 = vld [vmem:[#allocation6 + $0x710] sm:$0xff] }
  0x61   :  { %785 = vmatprep.subr.mxu0 %v5617_v42  ;;  %865 = vmatpush1.msra.mxu1 %v589_v43  ;;  %10545 = vst [vmem:[#allocation19_spill] sm:$0xff] %v5770_v38  ;;  %10546 = vst [vmem:[#allocation20_spill] sm:$0xff] %v5772_v39  ;;  %v5776_v41 = vld [vmem:[#allocation6 + $0x800] sm:$0xff]  ;;  %v5778_v43 = vld [vmem:[#allocation6 + $0x6d8] sm:$0xff] }
  0x62   :  { %786 = vmatpush1.msra.mxu0 %v5619_v44  ;;  %866 = vmatprep.subr.mxu1 %v582_v45  ;;  %10547 = vst [vmem:[#allocation21_spill] sm:$0xff] %v5776_v41  ;;  %10548 = vst [vmem:[#allocation22_spill] sm:$0xff] %v5778_v43  ;;  %v5782_v45 = vld [vmem:[#allocation6 + $0x7c8] sm:$0xff]  ;;  %v5790_v0 = vld [vmem:[#allocation6 + $0x698] sm:$0xff] }
  0x63   :  { %787 = vmatprep.subr.mxu0 %v5622_v46  ;;  %867 = vmatpush1.msra.mxu1 %v581_v47  ;;  %10549 = vst [vmem:[#allocation23_spill] sm:$0xff] %v5782_v45  ;;  %v5784_v47 = vld [vmem:[#allocation6 + $0x6d0] sm:$0xff]  ;;  %10552 = vst [vmem:[#allocation26_spill] sm:$0xff] %v5790_v0 }
  0x64   :  { %788 = vmatpush1.msra.mxu0 %v5625_v48  ;;  %868 = vmatprep.subr.mxu1 %v574_v49  ;;  %10550 = vst [vmem:[#allocation24_spill] sm:$0xff] %v5784_v47  ;;  %v5788_v49 = vld [vmem:[#allocation6 + $0x7c0] sm:$0xff] }
  0x65   :  { %789 = vmatprep.subr.mxu0 %v5628_v50  ;;  %869 = vmatpush1.msra.mxu1 %v5630_v51  ;;  %10551 = vst [vmem:[#allocation25_spill] sm:$0xff] %v5788_v49 }
  0x66   :  { %790 = vmatpush1.msra.mxu0 %v5633_v52  ;;  %870 = vmatprep.subr.mxu1 %v5635_v53 }
  0x67   :  { %791 = vmatprep.subr.mxu0 %v5638_v54  ;;  %871 = vmatpush1.msra.mxu1 %v5640_v55 }
  0x68   :  { %792 = vmatpush1.msra.mxu0 %v5644_v56  ;;  %872 = vmatprep.subr.mxu1 %v5646_v57 }
  0x69   :  { %793 = vmatprep.subr.mxu0 %v5650_v58  ;;  %873 = vmatpush1.msra.mxu1 %v5652_v59 }
  0x6a   :  { %794 = vmatpush1.msra.mxu0 %v5656_v60  ;;  %874 = vmatprep.subr.mxu1 %v5658_v61 }
  0x6b   :  { %795 = vmatprep.subr.mxu0 %v5662_v62  ;;  %875 = vmatpush1.msra.mxu1 %v5664_v63 }
  0x6c   :  { %796 = vmatpush1.msra.mxu0 %v5668_v1  ;;  %876 = vmatprep.subr.mxu1 %v5670_v2 }
  0x6d   :  { %797 = vmatprep.subr.mxu0 %v5674_v3  ;;  %877 = vmatpush1.msra.mxu1 %v5676_v4 }
  0x6e   :  { %798 = vmatpush1.msra.mxu0 %v5680_v5  ;;  %878 = vmatprep.subr.mxu1 %v5682_v6 }
  0x6f   :  { %799 = vmatprep.subr.mxu0 %v5686_v7  ;;  %879 = vmatpush1.msra.mxu1 %v5688_v8 }
  0x70   :  { %800 = vmatpush1.msra.mxu0 %v5692_v9  ;;  %880 = vmatprep.subr.mxu1 %v5694_v11 }
  0x71   :  { %801 = vmatprep.subr.mxu0 %v5698_v12  ;;  %881 = vmatpush1.msra.mxu1 %v5700_v14 }
  0x72   :  { %802 = vmatpush1.msra.mxu0 %v5704_v15  ;;  %882 = vmatprep.subr.mxu1 %v5706_v16 }
  0x73   :  { %803 = vmatprep.subr.mxu0 %v5710_v18  ;;  %883 = vmatpush2.msra.mxu1 %v5712_v19 }
  0x74   :  { %804 = vmatpush1.msra.mxu0 %v5716_v20  ;;  %884 = vmatprep.subr.mxu1 %v5718_v21 }
  0x75   :  { %805 = vmatprep.subr.mxu0 %v5722_v22  ;;  %885 = vmatpush2.msra.mxu1 %v5724_v23 }
  0x76   :  { %806 = vmatpush1.msra.mxu0 %v5728_v24  ;;  %886 = vmatprep.subr.mxu1 %v5730_v25 }
  0x77   :  { %807 = vmatprep.subr.mxu0 %v5734_v26  ;;  %887 = vmatpush2.msra.mxu1 %v5736_v27  ;;  %v593_v27 = vld [vmem:[#allocation6 + $0x2b0] sm:$0xff] }
  0x78   :  { %808 = vmatpush1.msra.mxu0 %v5740_v28  ;;  %888 = vmatprep.subr.mxu1 %v5742_v29  ;;  %v594_v29 = vld [vmem:[#allocation6 + $0x2b8] sm:$0xff] }
  0x79   :  { %809 = vmatprep.subr.mxu0 %v5746_v30  ;;  %889 = vmatpush2.msra.mxu1 %v5748_v31  ;;  %v5802_v31 = vld [vmem:[#allocation6 + $0x658] sm:$0xff] }
  0x7a   :  { %810 = vmatpush1.msra.mxu0 %v5752_v32  ;;  %890 = vmatprep.subr.mxu1 %v5754_v33  ;;  %v5796_v33 = vld [vmem:[#allocation6 + $0x690] sm:$0xff]  ;;  %10556 = vst [vmem:[#allocation30_spill] sm:$0xff] %v5802_v31 }
  0x7b   :  { %811 = vmatprep.subr.mxu0 %v5758_v34  ;;  %891 = vmatpush2.msra.mxu1 %v5760_v35  ;;  %v5794_v35 = vld [vmem:[#allocation6 + $0x788] sm:$0xff]  ;;  %10554 = vst [vmem:[#allocation28_spill] sm:$0xff] %v5796_v33 }
  0x7c   :  { %812 = vmatpush2.msra.mxu0 %v5764_v36  ;;  %892 = vmatprep.subr.mxu1 %v5766_v37  ;;  %10553 = vst [vmem:[#allocation27_spill] sm:$0xff] %v5794_v35  ;;  %v5800_v37 = vld [vmem:[#allocation6 + $0x780] sm:$0xff] }
  0x7d   :  { %813 = vmatprep.subr.mxu0 %v5770_v38  ;;  %893 = vmatpush2.msra.mxu1 %v5772_v39  ;;  %10555 = vst [vmem:[#allocation29_spill] sm:$0xff] %v5800_v37  ;;  %v5806_v39 = vld [vmem:[#allocation6 + $0x748] sm:$0xff]  ;;  %v623_v38 = vld [vmem:[#allocation6 + $0x3a0] sm:$0xff] }
  0x7e   :  { %814 = vmatpush2.msra.mxu0 %v5776_v41  ;;  %894 = vmatprep.subr.mxu1 %v5778_v43  ;;  %10557 = vst [vmem:[#allocation31_spill] sm:$0xff] %v5806_v39  ;;  %v5808_v41 = vld [vmem:[#allocation6 + $0x650] sm:$0xff]  ;;  %v5812_v43 = vld [vmem:[#allocation6 + $0x740] sm:$0xff] }
  0x7f   :  { %815 = vmatprep.subr.mxu0 %v5782_v45  ;;  %895 = vmatpush2.msra.mxu1 %v5784_v47  ;;  %10558 = vst [vmem:[#allocation32_spill] sm:$0xff] %v5808_v41  ;;  %10559 = vst [vmem:[#allocation33_spill] sm:$0xff] %v5812_v43  ;;  %v5814_v45 = vld [vmem:[#allocation6 + $0x618] sm:$0xff]  ;;  %v5818_v47 = vld [vmem:[#allocation6 + $0x708] sm:$0xff] }
  0x80   :  { %816 = vmatpush2.msra.mxu0 %v5788_v49  ;;  %896 = vmatprep.subr.mxu1 %v5790_v0  ;;  %10560 = vst [vmem:[#allocation34_spill] sm:$0xff] %v5814_v45  ;;  %10561 = vst [vmem:[#allocation35_spill] sm:$0xff] %v5818_v47  ;;  %v5820_v49 = vld [vmem:[#allocation6 + $0x610] sm:$0xff]  ;;  %v5824_v0 = vld [vmem:[#allocation6 + $0x700] sm:$0xff] }
  0x81   :  { %817 = vmatprep.subr.mxu0 %v5794_v35  ;;  %897 = vmatpush2.msra.mxu1 %v5796_v33  ;;  %10562 = vst [vmem:[#allocation36_spill] sm:$0xff] %v5820_v49  ;;  %10563 = vst [vmem:[#allocation37_spill] sm:$0xff] %v5824_v0  ;;  %v5828_v33 = vld [vmem:[#allocation6 + $0x6c8] sm:$0xff]  ;;  %v5830_v35 = vld [vmem:[#allocation6 + $0x5d8] sm:$0xff] }
  0x82   :  { %818 = vmatpush2.msra.mxu0 %v5800_v37  ;;  %898 = vmatprep.subr.mxu1 %v5802_v31  ;;  %10564 = vst [vmem:[#allocation38_spill] sm:$0xff] %v5828_v33  ;;  %10565 = vst [vmem:[#allocation39_spill] sm:$0xff] %v5830_v35  ;;  %v5834_v31 = vld [vmem:[#allocation6 + $0x6c0] sm:$0xff]  ;;  %v5836_v37 = vld [vmem:[#allocation6 + $0x5d0] sm:$0xff] }
  0x83   :  { %819 = vmatprep.subr.mxu0 %v5806_v39  ;;  %899 = vmatpush2.msra.mxu1 %v5808_v41  ;;  %10566 = vst [vmem:[#allocation40_spill] sm:$0xff] %v5834_v31  ;;  %10567 = vst [vmem:[#allocation41_spill] sm:$0xff] %v5836_v37  ;;  %v5841_v41 = vld [vmem:[#allocation6 + $0x688] sm:$0xff]  ;;  %v10574_v39 = vmov 0.0  }
  0x84   :  { %820 = vmatpush2.msra.mxu0 %v5812_v43  ;;  %900 = vmatprep.subr.mxu1 %v5814_v45  ;;  %10568 = vst [vmem:[#allocation42_spill] sm:$0xff] %v5841_v41  ;;  %v5843_v45 = vld [vmem:[#allocation6 + $0x598] sm:$0xff] }
  0x85   :  { %821 = vmatprep.subr.mxu0 %v5818_v47  ;;  %901 = vmatpush2.msra.mxu1 %v5820_v49  ;;  %10569 = vst [vmem:[#allocation43_spill] sm:$0xff] %v5843_v45  ;;  %v5847_v47 = vld [vmem:[#allocation6 + $0x680] sm:$0xff]  ;;  %v5851_v49 = vld [vmem:[#allocation6 + $0x590] sm:$0xff]  ;;  %v5857_v43 = vld [vmem:[#allocation6 + $0x558] sm:$0xff] }
  0x86   :  { %822 = vmatpush2.msra.mxu0 %v5824_v0  ;;  %4212 = vmatmul.mubr.msk.f32.gmra.mxu1 %vm154_vm0, %v5580_v10  ;;  %10570 = vst [vmem:[#allocation44_spill] sm:$0xff] %v5847_v47  ;;  %10571 = vst [vmem:[#allocation45_spill] sm:$0xff] %v5851_v49  ;;  %v5853_v0 = vld [vmem:[#allocation6 + $0x648] sm:$0xff] }
  0x87   :  { %823 = vmatprep.subr.mxu0 %v5828_v33  ;;  %902 = vmatprep.subr.mxu1 %v5830_v35  ;;  %10572 = vst [vmem:[#allocation46_spill] sm:$0xff] %v5853_v0  ;;  %10573 = vst [vmem:[#allocation47_spill] sm:$0xff] %v5857_v43  ;;  %v5861_v35 = vld [vmem:[#allocation6 + $0x640] sm:$0xff]  ;;  %v5863_v33 = vld [vmem:[#allocation6 + $0x550] sm:$0xff] }
  0x88   :  { %824 = vmatpush2.msra.mxu0 %v5834_v31  ;;  %903 = vmatpush2.msra.mxu1 %v5836_v37  ;;  %10575 = vst [vmem:[#allocation48_spill] sm:$0xff] %v5861_v35  ;;  %10576 = vst [vmem:[#allocation49_spill] sm:$0xff] %v5863_v33  ;;  %v5867_v37 = vld [vmem:[#allocation6 + $0x608] sm:$0xff]  ;;  %v5869_v31 = vld [vmem:[#allocation6 + $0x518] sm:$0xff] }
  0x89   :  { %825 = vmatprep.subr.mxu0 %v5841_v41  ;;  %904 = vmatprep.subr.mxu1 %v5843_v45  ;;  %10577 = vst [vmem:[#allocation50_spill] sm:$0xff] %v5867_v37  ;;  %10578 = vst [vmem:[#allocation51_spill] sm:$0xff] %v5869_v31  ;;  %v5876_v45 = vld [vmem:[#allocation6 + $0x600] sm:$0xff]  ;;  %v601_v41 = vld [vmem:[#allocation6 + $0x2f0] sm:$0xff] }
  0x8a   :  { %510 = vmatprep.mubr.f32.mxu1 %v10574_v39  ;;  %826 = vmatpush2.msra.mxu0 %v5847_v47  ;;  %10579 = vst [vmem:[#allocation52_spill] sm:$0xff] %v5876_v45  ;;  %v5878_v47 = vld [vmem:[#allocation6 + $0x510] sm:$0xff] }
  0x8b   :  { %905 = vmatpush2.msra.mxu1 %v5851_v49  ;;  %827 = vmatprep.subr.mxu0 %v5853_v0  ;;  %10580 = vst [vmem:[#allocation53_spill] sm:$0xff] %v5878_v47  ;;  %v5884_v49 = vld [vmem:[#allocation6 + $0x5c8] sm:$0xff]  ;;  %v5886_v0 = vld [vmem:[#allocation6 + $0x4d8] sm:$0xff] }
  0x8c   :  { %4213 = vmatmul.mubr.msk.f32.gmra.mxu1 %vm154_vm0, %v5588_v13  ;;  %906 = vmatprep.subr.mxu1 %v5857_v43  ;;  %10581 = vst [vmem:[#allocation54_spill] sm:$0xff] %v5884_v49  ;;  %10582 = vst [vmem:[#allocation55_spill] sm:$0xff] %v5886_v0  ;;  %v5892_v43 = vld [vmem:[#allocation6 + $0x4d0] sm:$0xff] }
  0x8d   :  { %828 = vmatpush2.msra.mxu0 %v5861_v35  ;;  %907 = vmatpush2.msra.mxu1 %v5863_v33  ;;  %v5890_v33 = vld [vmem:[#allocation6 + $0x5c0] sm:$0xff]  ;;  %10584 = vst [vmem:[#allocation57_spill] sm:$0xff] %v5892_v43  ;;  %v633_v35 = vld [vmem:[#allocation6 + $0x3f0] sm:$0xff] }
  0x8e   :  { %829 = vmatprep.subr.mxu0 %v5867_v37  ;;  %908 = vmatprep.subr.mxu1 %v5869_v31  ;;  %10583 = vst [vmem:[#allocation56_spill] sm:$0xff] %v5890_v33  ;;  %v5898_v31 = vld [vmem:[#allocation6 + $0x588] sm:$0xff]  ;;  %v5900_v37 = vld [vmem:[#allocation6 + $0x498] sm:$0xff] }
  0x8f   :  { %415 = vmatprep.mubr.f32.mxu0 %v10574_v39  ;;  %516 = vmatprep.mubr.f32.mxu1 %v10574_v39  ;;  %10585 = vst [vmem:[#allocation58_spill] sm:$0xff] %v5898_v31  ;;  %10586 = vst [vmem:[#allocation59_spill] sm:$0xff] %v5900_v37 }
  0x90   :  { %830 = vmatpush2.msra.mxu0 %v5876_v45  ;;  %909 = vmatpush2.msra.mxu1 %v5878_v47  ;;  %v5904_v45 = vld [vmem:[#allocation6 + $0x580] sm:$0xff]  ;;  %v5908_v47 = vld [vmem:[#allocation6 + $0x490] sm:$0xff] }
  0x91   :  { %4208 = vmatmul.mubr.msk.f32.gmra.mxu0 %vm154_vm0, %v5580_v10  ;;  %4214 = vmatmul.mubr.msk.f32.gmra.mxu1 %vm154_vm0, %v5596_v17  ;;  %10587 = vst [vmem:[#allocation60_spill] sm:$0xff] %v5904_v45  ;;  %10588 = vst [vmem:[#allocation61_spill] sm:$0xff] %v5908_v47  ;;  %v5912_v10 = vld [vmem:[#allocation6 + $0x548] sm:$0xff] }
  0x92   :  { %831 = vmatprep.subr.mxu0 %v5884_v49  ;;  %910 = vmatprep.subr.mxu1 %v5886_v0  ;;  %10589 = vst [vmem:[#allocation62_spill] sm:$0xff] %v5912_v10  ;;  %v5916_v49 = vld [vmem:[#allocation6 + $0x478] sm:$0xff]  ;;  %v5920_v0 = vld [vmem:[#allocation6 + $0x540] sm:$0xff] }
  0x93   :  { %832 = vmatpush2.msra.mxu0 %v5890_v33  ;;  %911 = vmatpush2.msra.mxu1 %v5892_v43  ;;  %10590 = vst [vmem:[#allocation63_spill] sm:$0xff] %v5916_v49  ;;  %10591 = vst [vmem:[#allocation64_spill] sm:$0xff] %v5920_v0  ;;  %v649_v43 = vld [vmem:[#allocation6 + $0x470] sm:$0xff]  ;;  %v5933_v33 = vld [vmem:[#allocation6 + $0x4c8] sm:$0xff] }
  0x94   :  { %833 = vmatprep.subr.mxu0 %v5898_v31  ;;  %912 = vmatprep.subr.mxu1 %v5900_v37  ;;  %v5925_v37 = vld [vmem:[#allocation6 + $0x508] sm:$0xff]  ;;  %v642_v31 = vld [vmem:[#allocation6 + $0x438] sm:$0xff]  ;;  %10594 = vst [vmem:[#allocation67_spill] sm:$0xff] %v5933_v33 }
  0x95   :  { %421 = vmatprep.mubr.f32.mxu0 %v10574_v39  ;;  %834 = vmatpush2.msra.mxu0 %v5904_v45  ;;  %10592 = vst [vmem:[#allocation65_spill] sm:$0xff] %v5925_v37  ;;  %v5929_v45 = vld [vmem:[#allocation6 + $0x500] sm:$0xff] }
  0x96   :  { %913 = vmatpush2.msra.mxu1 %v5908_v47  ;;  %914 = vmatprep.mubr.f32.mxu1 %v10574_v39  ;;  %10593 = vst [vmem:[#allocation66_spill] sm:$0xff] %v5929_v45  ;;  %v641_v47 = vld [vmem:[#allocation6 + $0x430] sm:$0xff] }
  0x97   :  { %4209 = vmatmul.mubr.msk.f32.gmra.mxu0 %vm154_vm0, %v5588_v13  ;;  %835 = vmatprep.subr.mxu0 %v5912_v10  ;;  %v634_v13 = vld [vmem:[#allocation6 + $0x3f8] sm:$0xff]  ;;  %v5937_v10 = vld [vmem:[#allocation6 + $0x4c0] sm:$0xff] }
  0x98   :  { %915 = vmatmul.mubr.f32.vlgmr.msra.gmra.mxu1 %v10574_v39  ;;  %992 = vmatprep.subr.mxu1 %v5916_v49  ;;  %10595 = vst [vmem:[#allocation68_spill] sm:$0xff] %v5937_v10  ;;  %v5941_v49 = vld [vmem:[#allocation6 + $0x488] sm:$0xff] }
  0x99   :  { %836 = vmatpush2.msra.mxu0 %v5920_v0  ;;  %993 = vmatpush1.msra.mxu1 %v649_v43  ;;  %10596 = vst [vmem:[#allocation69_spill] sm:$0xff] %v5941_v49  ;;  %v626_v43 = vld [vmem:[#allocation6 + $0x3b8] sm:$0xff]  ;;  %v617_v0 = vld [vmem:[#allocation6 + $0x370] sm:$0xff] }
  0x9a   :  { %837 = vmatprep.subr.mxu0 %v5925_v37  ;;  %994 = vmatprep.subr.mxu1 %v642_v31  ;;  %v5944_v31 = vld [vmem:[#allocation6 + $0x480] sm:$0xff]  ;;  %v625_v37 = vld [vmem:[#allocation6 + $0x3b0] sm:$0xff] }
  0x9b   :  { %427 = vmatprep.mubr.f32.mxu0 %v10574_v39  ;;  %838 = vmatpush2.msra.mxu0 %v5929_v45  ;;  %10597 = vst [vmem:[#allocation70_spill] sm:$0xff] %v5944_v31  ;;  %v5948_v45 = vld [vmem:[#allocation6 + $0x468] sm:$0xff] }
  0x9c   :  { %995 = vmatpush1.msra.mxu1 %v641_v47  ;;  %4210 = vmatmul.mubr.msk.f32.gmra.mxu0 %vm154_vm0, %v5596_v17  ;;  %10598 = vst [vmem:[#allocation71_spill] sm:$0xff] %v5948_v45  ;;  %v618_v47 = vld [vmem:[#allocation6 + $0x378] sm:$0xff]  ;;  %v647_v17 = vld [vmem:[#allocation6 + $0x460] sm:$0xff] }
  0x9d   :  { %839 = vmatprep.subr.mxu0 %v5933_v33  ;;  %996 = vmatprep.subr.mxu1 %v634_v13  ;;  %v640_v13 = vld [vmem:[#allocation6 + $0x428] sm:$0xff]  ;;  %v610_v33 = vld [vmem:[#allocation6 + $0x338] sm:$0xff] }
  0x9e   :  { %840 = vmatpush2.msra.mxu0 %v5937_v10  ;;  %997 = vmatpush1.msra.mxu1 %v633_v35  ;;  %v639_v35 = vld [vmem:[#allocation6 + $0x420] sm:$0xff]  ;;  %v602_v10 = vld [vmem:[#allocation6 + $0x2f8] sm:$0xff] }
  0x9f   :  { %841 = vmatprep.subr.mxu0 %v5941_v49  ;;  %998 = vmatprep.subr.mxu1 %v626_v43  ;;  %v609_v49 = vld [vmem:[#allocation6 + $0x330] sm:$0xff]  ;;  %v632_v43 = vld [vmem:[#allocation6 + $0x3e8] sm:$0xff] }
  0xa0   :  { %842 = vmatpush2.msra.mxu0 %v5944_v31  ;;  %843 = vmatprep.mubr.f32.mxu0 %v10574_v39  ;;  %v631_v31 = vld [vmem:[#allocation6 + $0x3e0] sm:$0xff] }
  0xa1   :  { %999 = vmatpush1.msra.mxu1 %v625_v37  ;;  %844 = vmatmul.mubr.f32.vlgmr.msra.gmra.mxu0 %v10574_v39  ;;  %v624_v37 = vld [vmem:[#allocation6 + $0x3a8] sm:$0xff] }
  0xa2   :  { %921 = vmatprep.subr.mxu0 %v5948_v45  ;;  %1000 = vmatprep.subr.mxu1 %v618_v47  ;;  %v616_v47 = vld [vmem:[#allocation6 + $0x368] sm:$0xff]  ;;  %v586_v45 = vld [vmem:[#allocation6 + $0x278] sm:$0xff] }
  0xa3   :  { %922 = vmatpush1.msra.mxu0 %v647_v17  ;;  %1001 = vmatpush1.msra.mxu1 %v617_v0  ;;  %v5954_v0 = vld [vmem:[#allocation6 + $0x360] sm:$0xff]  ;;  %v585_v17 = vld [vmem:[#allocation6 + $0x270] sm:$0xff] }
  0xa4   :  { %923 = vmatprep.subr.mxu0 %v640_v13  ;;  %1002 = vmatprep.subr.mxu1 %v610_v33  ;;  %v5956_v33 = vld [vmem:[#allocation6 + $0x328] sm:$0xff]  ;;  %v5958_v13 = vld [vmem:[#allocation6 + $0x320] sm:$0xff] }
  0xa5   :  { %924 = vmatpush1.msra.mxu0 %v639_v35  ;;  %1003 = vmatpush1.msra.mxu1 %v609_v49  ;;  %v578_v49 = vld [vmem:[#allocation6 + $0x238] sm:$0xff]  ;;  %v5970_v35 = vld [vmem:[#allocation6 + $0x2a0] sm:$0xff] }
  0xa6   :  { %925 = vmatprep.subr.mxu0 %v632_v43  ;;  %1004 = vmatprep.subr.mxu1 %v602_v10  ;;  %v577_v10 = vld [vmem:[#allocation6 + $0x230] sm:$0xff] }
  0xa7   :  { %926 = vmatpush1.msra.mxu0 %v631_v31  ;;  %1005 = vmatpush1.msra.mxu1 %v601_v41  ;;  %v5961_v41 = vld [vmem:[#allocation6 + $0x2e8] sm:$0xff]  ;;  %v570_v31 = vld [vmem:[#allocation6 + $0x1f8] sm:$0xff]  ;;  %v561_v43 = vld [vmem:[#allocation6 + $0x1b0] sm:$0xff] }
  0xa8   :  { %927 = vmatprep.subr.mxu0 %v624_v37  ;;  %1006 = vmatprep.subr.mxu1 %v594_v29  ;;  %v5964_v29 = vld [vmem:[#allocation6 + $0x2e0] sm:$0xff]  ;;  %v5973_v37 = vld [vmem:[#allocation6 + $0x268] sm:$0xff] }
  0xa9   :  { %928 = vmatpush1.msra.mxu0 %v623_v38  ;;  %1007 = vmatpush1.msra.mxu1 %v593_v27  ;;  %10599 = vst [vmem:[#allocation72_spill] sm:$0xff] %v5964_v29  ;;  %v569_v27 = vld [vmem:[#allocation6 + $0x1f0] sm:$0xff]  ;;  %v5967_v38 = vld [vmem:[#allocation6 + $0x2a8] sm:$0xff]  ;;  %10601 = vst [vmem:[#allocation74_spill] sm:$0xff] %v5973_v37 }
  0xaa   :  { %929 = vmatprep.subr.mxu0 %v616_v47  ;;  %1008 = vmatprep.subr.mxu1 %v586_v45  ;;  %10600 = vst [vmem:[#allocation73_spill] sm:$0xff] %v5967_v38  ;;  %v562_v45 = vld [vmem:[#allocation6 + $0x1b8] sm:$0xff] }
  0xab   :  { %930 = vmatpush1.msra.mxu0 %v5954_v0  ;;  %1009 = vmatpush1.msra.mxu1 %v585_v17  ;;  %v554_v47 = vld [vmem:[#allocation6 + $0x178] sm:$0xff]  ;;  %v5976_v17 = vld [vmem:[#allocation6 + $0x260] sm:$0xff] }
  0xac   :  { %931 = vmatprep.subr.mxu0 %v5956_v33  ;;  %1010 = vmatprep.subr.mxu1 %v578_v49  ;;  %10602 = vst [vmem:[#allocation75_spill] sm:$0xff] %v5976_v17  ;;  %v5978_v49 = vld [vmem:[#allocation6 + $0x170] sm:$0xff] }
  0xad   :  { %932 = vmatpush1.msra.mxu0 %v5958_v13  ;;  %1011 = vmatpush1.msra.mxu1 %v577_v10  ;;  %10603 = vst [vmem:[#allocation76_spill] sm:$0xff] %v5978_v49  ;;  %v5981_v10 = vld [vmem:[#allocation6 + $0x228] sm:$0xff] }
  0xae   :  { %933 = vmatprep.subr.mxu0 %v5961_v41  ;;  %1012 = vmatprep.subr.mxu1 %v570_v31  ;;  %10604 = vst [vmem:[#allocation77_spill] sm:$0xff] %v5981_v10  ;;  %v5983_v31 = vld [vmem:[#allocation6 + $0x138] sm:$0xff] }
  0xaf   :  { %934 = vmatpush1.msra.mxu0 %v5964_v29  ;;  %1013 = vmatpush1.msra.mxu1 %v569_v27  ;;  %10605 = vst [vmem:[#allocation78_spill] sm:$0xff] %v5983_v31  ;;  %v5986_v27 = vld [vmem:[#allocation6 + $0x220] sm:$0xff]  ;;  %v5988_v29 = vld [vmem:[#allocation6 + $0x130] sm:$0xff] }
  0xb0   :  { %935 = vmatprep.subr.mxu0 %v5967_v38  ;;  %1014 = vmatprep.subr.mxu1 %v562_v45  ;;  %10606 = vst [vmem:[#allocation79_spill] sm:$0xff] %v5986_v27  ;;  %10607 = vst [vmem:[#allocation80_spill] sm:$0xff] %v5988_v29  ;;  %v5992_v45 = vld [vmem:[#allocation6 + $0x1e8] sm:$0xff]  ;;  %v5994_v38 = vld [vmem:[#allocation6 + $0xf8] sm:$0xff] }
  0xb1   :  { %936 = vmatpush1.msra.mxu0 %v5970_v35  ;;  %1015 = vmatpush1.msra.mxu1 %v561_v43  ;;  %10608 = vst [vmem:[#allocation81_spill] sm:$0xff] %v5992_v45  ;;  %10609 = vst [vmem:[#allocation82_spill] sm:$0xff] %v5994_v38  ;;  %v5998_v43 = vld [vmem:[#allocation6 + $0x1e0] sm:$0xff] }
  0xb2   :  { %937 = vmatprep.subr.mxu0 %v5973_v37  ;;  %1016 = vmatprep.subr.mxu1 %v554_v47  ;;  %10610 = vst [vmem:[#allocation83_spill] sm:$0xff] %v5998_v43  ;;  %v6000_v37 = vld [vmem:[#allocation6 + $0xf0] sm:$0xff]  ;;  %v6004_v47 = vld [vmem:[#allocation6 + $0x1a8] sm:$0xff] }
  0xb3   :  { %938 = vmatpush1.msra.mxu0 %v5976_v17  ;;  %1017 = vmatpush1.msra.mxu1 %v5978_v49  ;;  %10611 = vst [vmem:[#allocation84_spill] sm:$0xff] %v6000_v37  ;;  %10612 = vst [vmem:[#allocation85_spill] sm:$0xff] %v6004_v47  ;;  %v6006_v17 = vld [vmem:[#allocation6 + $0xb8] sm:$0xff]  ;;  %v6010_v49 = vld [vmem:[#allocation6 + $0x1a0] sm:$0xff] }
  0xb4   :  { %939 = vmatprep.subr.mxu0 %v5981_v10  ;;  %1018 = vmatprep.subr.mxu1 %v5983_v31  ;;  %10613 = vst [vmem:[#allocation86_spill] sm:$0xff] %v6006_v17  ;;  %10614 = vst [vmem:[#allocation87_spill] sm:$0xff] %v6010_v49  ;;  %v6012_v10 = vld [vmem:[#allocation6 + $0xb0] sm:$0xff]  ;;  %v6016_v31 = vld [vmem:[#allocation6 + $0x168] sm:$0xff] }
  0xb5   :  { %940 = vmatpush1.msra.mxu0 %v5986_v27  ;;  %1019 = vmatpush1.msra.mxu1 %v5988_v29  ;;  %10615 = vst [vmem:[#allocation88_spill] sm:$0xff] %v6012_v10  ;;  %10616 = vst [vmem:[#allocation89_spill] sm:$0xff] %v6016_v31  ;;  %v6018_v27 = vld [vmem:[#allocation6 + $0x878] sm:$0xff]  ;;  %v6022_v29 = vld [vmem:[#allocation6 + $0x160] sm:$0xff] }
  0xb6   :  { %941 = vmatprep.subr.mxu0 %v5992_v45  ;;  %1020 = vmatprep.subr.mxu1 %v5994_v38  ;;  %10617 = vst [vmem:[#allocation90_spill] sm:$0xff] %v6018_v27  ;;  %10618 = vst [vmem:[#allocation91_spill] sm:$0xff] %v6022_v29  ;;  %v6024_v45 = vld [vmem:[#allocation6 + $0x870] sm:$0xff]  ;;  %v6028_v38 = vld [vmem:[#allocation6 + $0x128] sm:$0xff] }
  0xb7   :  { %942 = vmatpush1.msra.mxu0 %v5998_v43  ;;  %1021 = vmatpush1.msra.mxu1 %v6000_v37  ;;  %10619 = vst [vmem:[#allocation92_spill] sm:$0xff] %v6024_v45  ;;  %10620 = vst [vmem:[#allocation93_spill] sm:$0xff] %v6028_v38  ;;  %v6030_v43 = vld [vmem:[#allocation6 + $0x838] sm:$0xff]  ;;  %v6034_v37 = vld [vmem:[#allocation6 + $0x120] sm:$0xff] }
  0xb8   :  { %943 = vmatprep.subr.mxu0 %v6004_v47  ;;  %1022 = vmatprep.subr.mxu1 %v6006_v17  ;;  %10621 = vst [vmem:[#allocation94_spill] sm:$0xff] %v6030_v43  ;;  %10622 = vst [vmem:[#allocation95_spill] sm:$0xff] %v6034_v37  ;;  %v6036_v47 = vld [vmem:[#allocation6 + $0x830] sm:$0xff]  ;;  %v6040_v17 = vld [vmem:[#allocation6 + $0xe8] sm:$0xff] }
  0xb9   :  { %944 = vmatpush1.msra.mxu0 %v6010_v49  ;;  %1023 = vmatpush1.msra.mxu1 %v6012_v10  ;;  %10623 = vst [vmem:[#allocation96_spill] sm:$0xff] %v6036_v47  ;;  %10624 = vst [vmem:[#allocation97_spill] sm:$0xff] %v6040_v17  ;;  %v6042_v49 = vld [vmem:[#allocation6 + $0x7f8] sm:$0xff]  ;;  %v6046_v10 = vld [vmem:[#allocation6 + $0xe0] sm:$0xff] }
  0xba   :  { %945 = vmatprep.subr.mxu0 %v6016_v31  ;;  %1024 = vmatprep.subr.mxu1 %v6018_v27  ;;  %10625 = vst [vmem:[#allocation98_spill] sm:$0xff] %v6042_v49  ;;  %10626 = vst [vmem:[#allocation99_spill] sm:$0xff] %v6046_v10  ;;  %v6048_v31 = vld [vmem:[#allocation6 + $0x7f0] sm:$0xff]  ;;  %v6052_v27 = vld [vmem:[#allocation6 + $0xa8] sm:$0xff] }
  0xbb   :  { %946 = vmatpush1.msra.mxu0 %v6022_v29  ;;  %1025 = vmatpush2.msra.mxu1 %v6024_v45  ;;  %10627 = vst [vmem:[#allocation100_spill] sm:$0xff] %v6048_v31  ;;  %10628 = vst [vmem:[#allocation101_spill] sm:$0xff] %v6052_v27  ;;  %v6054_v29 = vld [vmem:[#allocation6 + $0x7b8] sm:$0xff]  ;;  %v6058_v45 = vld [vmem:[#allocation6 + $0xa0] sm:$0xff] }
  0xbc   :  { %947 = vmatprep.subr.mxu0 %v6028_v38  ;;  %1026 = vmatprep.subr.mxu1 %v6030_v43  ;;  %10629 = vst [vmem:[#allocation102_spill] sm:$0xff] %v6054_v29  ;;  %10630 = vst [vmem:[#allocation103_spill] sm:$0xff] %v6058_v45  ;;  %v6060_v38 = vld [vmem:[#allocation6 + $0x7b0] sm:$0xff]  ;;  %v6064_v43 = vld [vmem:[#allocation6 + $0x868] sm:$0xff] }
  0xbd   :  { %948 = vmatpush1.msra.mxu0 %v6034_v37  ;;  %1027 = vmatpush2.msra.mxu1 %v6036_v47  ;;  %10631 = vst [vmem:[#allocation104_spill] sm:$0xff] %v6060_v38  ;;  %10632 = vst [vmem:[#allocation105_spill] sm:$0xff] %v6064_v43  ;;  %v6066_v37 = vld [vmem:[#allocation6 + $0x778] sm:$0xff]  ;;  %v6070_v47 = vld [vmem:[#allocation6 + $0x860] sm:$0xff] }
  0xbe   :  { %949 = vmatprep.subr.mxu0 %v6040_v17  ;;  %1028 = vmatprep.subr.mxu1 %v6042_v49  ;;  %10633 = vst [vmem:[#allocation106_spill] sm:$0xff] %v6066_v37  ;;  %10634 = vst [vmem:[#allocation107_spill] sm:$0xff] %v6070_v47  ;;  %v6072_v17 = vld [vmem:[#allocation6 + $0x770] sm:$0xff]  ;;  %v6076_v49 = vld [vmem:[#allocation6 + $0x828] sm:$0xff] }
  0xbf   :  { %950 = vmatpush1.msra.mxu0 %v6046_v10  ;;  %1029 = vmatpush2.msra.mxu1 %v6048_v31  ;;  %10635 = vst [vmem:[#allocation108_spill] sm:$0xff] %v6072_v17  ;;  %10636 = vst [vmem:[#allocation109_spill] sm:$0xff] %v6076_v49  ;;  %v6078_v10 = vld [vmem:[#allocation6 + $0x738] sm:$0xff]  ;;  %v6082_v31 = vld [vmem:[#allocation6 + $0x820] sm:$0xff] }
  0xc0   :  { %951 = vmatprep.subr.mxu0 %v6052_v27  ;;  %1030 = vmatprep.subr.mxu1 %v6054_v29  ;;  %10637 = vst [vmem:[#allocation110_spill] sm:$0xff] %v6078_v10  ;;  %10638 = vst [vmem:[#allocation111_spill] sm:$0xff] %v6082_v31  ;;  %v6084_v27 = vld [vmem:[#allocation6 + $0x730] sm:$0xff]  ;;  %v6088_v29 = vld [vmem:[#allocation6 + $0x7e8] sm:$0xff] }
  0xc1   :  { %952 = vmatpush1.msra.mxu0 %v6058_v45  ;;  %1031 = vmatpush2.msra.mxu1 %v6060_v38  ;;  %10639 = vst [vmem:[#allocation112_spill] sm:$0xff] %v6084_v27  ;;  %10640 = vst [vmem:[#allocation113_spill] sm:$0xff] %v6088_v29  ;;  %v6090_v45 = vld [vmem:[#allocation6 + $0x6f8] sm:$0xff]  ;;  %v6094_v38 = vld [vmem:[#allocation6 + $0x7e0] sm:$0xff] }
  0xc2   :  { %953 = vmatprep.subr.mxu0 %v6064_v43  ;;  %1032 = vmatprep.subr.mxu1 %v6066_v37  ;;  %10641 = vst [vmem:[#allocation114_spill] sm:$0xff] %v6090_v45  ;;  %10642 = vst [vmem:[#allocation115_spill] sm:$0xff] %v6094_v38  ;;  %v6096_v43 = vld [vmem:[#allocation6 + $0x6f0] sm:$0xff]  ;;  %v6100_v37 = vld [vmem:[#allocation6 + $0x7a8] sm:$0xff] }
  0xc3   :  { %954 = vmatpush2.msra.mxu0 %v6070_v47  ;;  %1033 = vmatpush2.msra.mxu1 %v6072_v17  ;;  %10643 = vst [vmem:[#allocation116_spill] sm:$0xff] %v6096_v43  ;;  %10644 = vst [vmem:[#allocation117_spill] sm:$0xff] %v6100_v37  ;;  %v6102_v47 = vld [vmem:[#allocation6 + $0x6b8] sm:$0xff]  ;;  %v6106_v17 = vld [vmem:[#allocation6 + $0x7a0] sm:$0xff] }
  0xc4   :  { %955 = vmatprep.subr.mxu0 %v6076_v49  ;;  %1034 = vmatprep.subr.mxu1 %v6078_v10  ;;  %10645 = vst [vmem:[#allocation118_spill] sm:$0xff] %v6102_v47  ;;  %10646 = vst [vmem:[#allocation119_spill] sm:$0xff] %v6106_v17  ;;  %v6108_v49 = vld [vmem:[#allocation6 + $0x6b0] sm:$0xff]  ;;  %v6112_v10 = vld [vmem:[#allocation6 + $0x768] sm:$0xff] }
  0xc5   :  { %956 = vmatpush2.msra.mxu0 %v6082_v31  ;;  %1035 = vmatpush2.msra.mxu1 %v6084_v27  ;;  %10647 = vst [vmem:[#allocation120_spill] sm:$0xff] %v6108_v49  ;;  %10648 = vst [vmem:[#allocation121_spill] sm:$0xff] %v6112_v10  ;;  %v6114_v31 = vld [vmem:[#allocation6 + $0x678] sm:$0xff]  ;;  %v6118_v27 = vld [vmem:[#allocation6 + $0x760] sm:$0xff] }
  0xc6   :  { %957 = vmatprep.subr.mxu0 %v6088_v29  ;;  %1036 = vmatprep.subr.mxu1 %v6090_v45  ;;  %10649 = vst [vmem:[#allocation122_spill] sm:$0xff] %v6114_v31  ;;  %10650 = vst [vmem:[#allocation123_spill] sm:$0xff] %v6118_v27  ;;  %v6120_v29 = vld [vmem:[#allocation6 + $0x670] sm:$0xff]  ;;  %v6124_v45 = vld [vmem:[#allocation6 + $0x728] sm:$0xff] }
  0xc7   :  { %958 = vmatpush2.msra.mxu0 %v6094_v38  ;;  %1037 = vmatpush2.msra.mxu1 %v6096_v43  ;;  %10651 = vst [vmem:[#allocation124_spill] sm:$0xff] %v6120_v29  ;;  %10652 = vst [vmem:[#allocation125_spill] sm:$0xff] %v6124_v45  ;;  %v6126_v38 = vld [vmem:[#allocation6 + $0x638] sm:$0xff]  ;;  %v6130_v43 = vld [vmem:[#allocation6 + $0x720] sm:$0xff] }
  0xc8   :  { %959 = vmatprep.subr.mxu0 %v6100_v37  ;;  %1038 = vmatprep.subr.mxu1 %v6102_v47  ;;  %10653 = vst [vmem:[#allocation126_spill] sm:$0xff] %v6126_v38  ;;  %10654 = vst [vmem:[#allocation127_spill] sm:$0xff] %v6130_v43  ;;  %v6132_v37 = vld [vmem:[#allocation6 + $0x630] sm:$0xff]  ;;  %v6136_v47 = vld [vmem:[#allocation6 + $0x6e8] sm:$0xff] }
  0xc9   :  { %960 = vmatpush2.msra.mxu0 %v6106_v17  ;;  %1039 = vmatpush2.msra.mxu1 %v6108_v49  ;;  %10655 = vst [vmem:[#allocation128_spill] sm:$0xff] %v6132_v37  ;;  %10656 = vst [vmem:[#allocation129_spill] sm:$0xff] %v6136_v47  ;;  %v6138_v17 = vld [vmem:[#allocation6 + $0x5f8] sm:$0xff]  ;;  %v6142_v49 = vld [vmem:[#allocation6 + $0x6e0] sm:$0xff] }
  0xca   :  { %961 = vmatprep.subr.mxu0 %v6112_v10  ;;  %1040 = vmatprep.subr.mxu1 %v6114_v31  ;;  %10657 = vst [vmem:[#allocation130_spill] sm:$0xff] %v6138_v17  ;;  %10658 = vst [vmem:[#allocation131_spill] sm:$0xff] %v6142_v49  ;;  %v6144_v10 = vld [vmem:[#allocation6 + $0x5f0] sm:$0xff]  ;;  %v6148_v31 = vld [vmem:[#allocation6 + $0x6a8] sm:$0xff] }
  0xcb   :  { %962 = vmatpush2.msra.mxu0 %v6118_v27  ;;  %1041 = vmatpush2.msra.mxu1 %v6120_v29  ;;  %10659 = vst [vmem:[#allocation132_spill] sm:$0xff] %v6144_v10  ;;  %10660 = vst [vmem:[#allocation133_spill] sm:$0xff] %v6148_v31  ;;  %v6150_v27 = vld [vmem:[#allocation6 + $0x5b8] sm:$0xff]  ;;  %v6154_v29 = vld [vmem:[#allocation6 + $0x6a0] sm:$0xff] }
  0xcc   :  { %963 = vmatprep.subr.mxu0 %v6124_v45  ;;  %1042 = vmatprep.subr.mxu1 %v6126_v38  ;;  %10661 = vst [vmem:[#allocation134_spill] sm:$0xff] %v6150_v27  ;;  %10662 = vst [vmem:[#allocation135_spill] sm:$0xff] %v6154_v29  ;;  %v6156_v45 = vld [vmem:[#allocation6 + $0x5b0] sm:$0xff]  ;;  %v6160_v38 = vld [vmem:[#allocation6 + $0x668] sm:$0xff] }
  0xcd   :  { %964 = vmatpush2.msra.mxu0 %v6130_v43  ;;  %1043 = vmatpush2.msra.mxu1 %v6132_v37  ;;  %10663 = vst [vmem:[#allocation136_spill] sm:$0xff] %v6156_v45  ;;  %10664 = vst [vmem:[#allocation137_spill] sm:$0xff] %v6160_v38  ;;  %v6162_v43 = vld [vmem:[#allocation6 + $0x578] sm:$0xff]  ;;  %v6166_v37 = vld [vmem:[#allocation6 + $0x660] sm:$0xff] }
  0xce   :  { %965 = vmatprep.subr.mxu0 %v6136_v47  ;;  %1044 = vmatprep.subr.mxu1 %v6138_v17  ;;  %10665 = vst [vmem:[#allocation138_spill] sm:$0xff] %v6162_v43  ;;  %10666 = vst [vmem:[#allocation139_spill] sm:$0xff] %v6166_v37  ;;  %v6168_v47 = vld [vmem:[#allocation6 + $0x570] sm:$0xff]  ;;  %v6172_v17 = vld [vmem:[#allocation6 + $0x628] sm:$0xff] }
  0xcf   :  { %966 = vmatpush2.msra.mxu0 %v6142_v49  ;;  %1045 = vmatpush2.msra.mxu1 %v6144_v10  ;;  %10667 = vst [vmem:[#allocation140_spill] sm:$0xff] %v6168_v47  ;;  %10668 = vst [vmem:[#allocation141_spill] sm:$0xff] %v6172_v17  ;;  %v6174_v49 = vld [vmem:[#allocation6 + $0x538] sm:$0xff]  ;;  %v6178_v10 = vld [vmem:[#allocation6 + $0x620] sm:$0xff] }
  0xd0   :  { %967 = vmatprep.subr.mxu0 %v6148_v31  ;;  %1046 = vmatprep.subr.mxu1 %v6150_v27  ;;  %10669 = vst [vmem:[#allocation142_spill] sm:$0xff] %v6174_v49  ;;  %v6180_v31 = vld [vmem:[#allocation6 + $0x530] sm:$0xff]  ;;  %v6184_v27 = vld [vmem:[#allocation6 + $0x5e8] sm:$0xff] }
  0xd1   :  { %968 = vmatpush2.msra.mxu0 %v6154_v29  ;;  %1047 = vmatpush2.msra.mxu1 %v6156_v45  ;;  %10670 = vst [vmem:[#allocation143_spill] sm:$0xff] %v6180_v31  ;;  %v6186_v29 = vld [vmem:[#allocation6 + $0x4f8] sm:$0xff]  ;;  %v6190_v45 = vld [vmem:[#allocation6 + $0x5e0] sm:$0xff] }
  0xd2   :  { %969 = vmatprep.subr.mxu0 %v6160_v38  ;;  %1048 = vmatprep.subr.mxu1 %v6162_v43  ;;  %10671 = vst [vmem:[#allocation144_spill] sm:$0xff] %v6186_v29  ;;  %10672 = vst [vmem:[#allocation145_spill] sm:$0xff] %v6190_v45  ;;  %v6192_v38 = vld [vmem:[#allocation6 + $0x4f0] sm:$0xff]  ;;  %v6196_v43 = vld [vmem:[#allocation6 + $0x5a8] sm:$0xff] }
  0xd3   :  { %970 = vmatpush2.msra.mxu0 %v6166_v37  ;;  %1049 = vmatpush2.msra.mxu1 %v6168_v47  ;;  %10673 = vst [vmem:[#allocation146_spill] sm:$0xff] %v6192_v38  ;;  %v6198_v37 = vld [vmem:[#allocation6 + $0x4b8] sm:$0xff]  ;;  %v6202_v47 = vld [vmem:[#allocation6 + $0x5a0] sm:$0xff] }
  0xd4   :  { %971 = vmatprep.subr.mxu0 %v6172_v17  ;;  %1050 = vmatprep.subr.mxu1 %v6174_v49  ;;  %10674 = vst [vmem:[#allocation147_spill] sm:$0xff] %v6198_v37  ;;  %10675 = vst [vmem:[#allocation148_spill] sm:$0xff] %v6202_v47  ;;  %v6204_v17 = vld [vmem:[#allocation6 + $0x4b0] sm:$0xff]  ;;  %v6208_v49 = vld [vmem:[#allocation6 + $0x568] sm:$0xff] }
  0xd5   :  { %972 = vmatpush2.msra.mxu0 %v6178_v10  ;;  %1051 = vmatpush2.msra.mxu1 %v6180_v31  ;;  %10676 = vst [vmem:[#allocation149_spill] sm:$0xff] %v6204_v17  ;;  %10677 = vst [vmem:[#allocation150_spill] sm:$0xff] %v6208_v49  ;;  %v6212_v31 = vld [vmem:[#allocation6 + $0x560] sm:$0xff] }
  0xd6   :  { %973 = vmatprep.subr.mxu0 %v6184_v27  ;;  %1052 = vmatprep.subr.mxu1 %v6186_v29  ;;  %10678 = vst [vmem:[#allocation151_spill] sm:$0xff] %v6212_v31  ;;  %v6216_v29 = vld [vmem:[#allocation6 + $0x528] sm:$0xff] }
  0xd7   :  { %974 = vmatpush2.msra.mxu0 %v6190_v45  ;;  %1053 = vmatpush2.msra.mxu1 %v6192_v38  ;;  %10679 = vst [vmem:[#allocation152_spill] sm:$0xff] %v6216_v29  ;;  %v6220_v45 = vld [vmem:[#allocation6 + $0x520] sm:$0xff]  ;;  %v6224_v38 = vld [vmem:[#allocation6 + $0x4e8] sm:$0xff] }
  0xd8   :  { %975 = vmatprep.subr.mxu0 %v6196_v43  ;;  %1054 = vmatprep.subr.mxu1 %v6198_v37  ;;  %10680 = vst [vmem:[#allocation153_spill] sm:$0xff] %v6220_v45  ;;  %v6227_v37 = vld [vmem:[#allocation6 + $0x4e0] sm:$0xff] }
  0xd9   :  { %976 = vmatpush2.msra.mxu0 %v6202_v47  ;;  %1055 = vmatpush2.msra.mxu1 %v6204_v17  ;;  %10681 = vst [vmem:[#allocation154_spill] sm:$0xff] %v6227_v37  ;;  %v6231_v17 = vld [vmem:[#allocation6 + $0x4a8] sm:$0xff]  ;;  %v6233_v47 = vld [vmem:[#allocation6 + $0x458] sm:$0xff] }
  0xda   :  { %1056 = vmatprep.mubr.f32.mxu1 %v10574_v39  ;;  %977 = vmatprep.subr.mxu0 %v6208_v49  ;;  %10682 = vst [vmem:[#allocation155_spill] sm:$0xff] %v6233_v47  ;;  %v6237_v49 = vld [vmem:[#allocation6 + $0x4a0] sm:$0xff] }
  0xdb   :  { %1057 = vmatmul.mubr.f32.vlgmr.msra.gmra.mxu1 %v10574_v39  ;;  %978 = vmatpush2.msra.mxu0 %v6212_v31  ;;  %10683 = vst [vmem:[#allocation156_spill] sm:$0xff] %v6237_v49  ;;  %v6239_v31 = vld [vmem:[#allocation6 + $0x450] sm:$0xff] }
  0xdc   :  { %979 = vmatprep.subr.mxu0 %v6216_v29  ;;  %985 = vmatprep.mubr.f32.mxu0 %v10574_v39  ;;  %10684 = vst [vmem:[#allocation157_spill] sm:$0xff] %v6239_v31  ;;  %v6243_v29 = vld [vmem:[#allocation6 + $0x418] sm:$0xff] }
  0xdd   :  { %980 = vmatpush2.msra.mxu0 %v6220_v45  ;;  %1190 = vmatprep.subr.mxu1 %v6233_v47  ;;  %10685 = vst [vmem:[#allocation158_spill] sm:$0xff] %v6243_v29  ;;  %v6247_v45 = vld [vmem:[#allocation6 + $0x410] sm:$0xff]  ;;  %v6251_v47 = vld [vmem:[#allocation6 + $0x3d8] sm:$0xff] }
  0xde   :  { %981 = vmatprep.subr.mxu0 %v6224_v38  ;;  %1191 = vmatpush1.msra.mxu1 %v6239_v31  ;;  %10686 = vst [vmem:[#allocation159_spill] sm:$0xff] %v6247_v45  ;;  %10687 = vst [vmem:[#allocation160_spill] sm:$0xff] %v6251_v47  ;;  %v6255_v31 = vld [vmem:[#allocation6 + $0x448] sm:$0xff] }
  0xdf   :  { %982 = vmatpush2.msra.mxu0 %v6227_v37  ;;  %1192 = vmatprep.subr.mxu1 %v6243_v29  ;;  %v6258_v37 = vld [vmem:[#allocation6 + $0x440] sm:$0xff]  ;;  %v6261_v29 = vld [vmem:[#allocation6 + $0x3d0] sm:$0xff] }
  0xe0   :  { %983 = vmatprep.subr.mxu0 %v6231_v17  ;;  %1193 = vmatpush1.msra.mxu1 %v6247_v45  ;;  %10688 = vst [vmem:[#allocation161_spill] sm:$0xff] %v6258_v37  ;;  %10689 = vst [vmem:[#allocation162_spill] sm:$0xff] %v6261_v29  ;;  %v6264_v45 = vld [vmem:[#allocation6 + $0x408] sm:$0xff] }
  0xe1   :  { %984 = vmatpush2.msra.mxu0 %v6237_v49  ;;  %1194 = vmatprep.subr.mxu1 %v6251_v47  ;;  %10690 = vst [vmem:[#allocation163_spill] sm:$0xff] %v6264_v45  ;;  %v6267_v49 = vld [vmem:[#allocation6 + $0x398] sm:$0xff]  ;;  %v6273_v47 = vld [vmem:[#allocation6 + $0x390] sm:$0xff] }
  0xe2   :  { %986 = vmatmul.mubr.f32.vlgmr.msra.gmra.mxu0 %v10574_v39  ;;  %1119 = vmatprep.subr.mxu0 %v6255_v31  ;;  %10691 = vst [vmem:[#allocation164_spill] sm:$0xff] %v6267_v49  ;;  %v6270_v39 = vld [vmem:[#allocation6 + $0x400] sm:$0xff]  ;;  %10692 = vst [vmem:[#allocation165_spill] sm:$0xff] %v6273_v47 }
  0xe3   :  { %1120 = vmatpush1.msra.mxu0 %v6258_v37  ;;  %1195 = vmatpush1.msra.mxu1 %v6261_v29  ;;  %v6276_v37 = vld [vmem:[#allocation6 + $0x3c8] sm:$0xff]  ;;  %v6279_v29 = vld [vmem:[#allocation6 + $0x358] sm:$0xff] }
  0xe4   :  { %1121 = vmatprep.subr.mxu0 %v6264_v45  ;;  %1196 = vmatprep.subr.mxu1 %v6267_v49  ;;  %10693 = vst [vmem:[#allocation166_spill] sm:$0xff] %v6279_v29  ;;  %v6283_v45 = vld [vmem:[#allocation6 + $0x350] sm:$0xff]  ;;  %v6287_v49 = vld [vmem:[#allocation6 + $0x318] sm:$0xff] }
  0xe5   :  { %1122 = vmatpush1.msra.mxu0 %v6270_v39  ;;  %1197 = vmatpush1.msra.mxu1 %v6273_v47  ;;  %v6291_v47 = vld [vmem:[#allocation6 + $0x310] sm:$0xff] }
  0xe6   :  { %1123 = vmatprep.subr.mxu0 %v6276_v37  ;;  %1198 = vmatprep.subr.mxu1 %v6279_v29  ;;  %v6295_v29 = vld [vmem:[#allocation6 + $0x2d8] sm:$0xff] }
  0xe7   :  { %1124 = vmatpush1.msra.mxu0 %v5615_v40  ;;  %1199 = vmatpush1.msra.mxu1 %v6283_v45  ;;  %v6299_v40 = vld [vmem:[#allocation6 + $0x2d0] sm:$0xff] }
  0xe8   :  { %1125 = vmatprep.subr.mxu0 %v5617_v42  ;;  %1200 = vmatprep.subr.mxu1 %v6287_v49  ;;  %v6303_v42 = vld [vmem:[#allocation6 + $0x298] sm:$0xff] }
  0xe9   :  { %1126 = vmatpush1.msra.mxu0 %v5619_v44  ;;  %1201 = vmatpush1.msra.mxu1 %v6291_v47  ;;  %v6307_v44 = vld [vmem:[#allocation6 + $0x290] sm:$0xff] }
  0xea   :  { %1127 = vmatprep.subr.mxu0 %v5622_v46  ;;  %1202 = vmatprep.subr.mxu1 %v6295_v29  ;;  %v6311_v46 = vld [vmem:[#allocation6 + $0x258] sm:$0xff] }
  0xeb   :  { %1128 = vmatpush1.msra.mxu0 %v5625_v48  ;;  %1203 = vmatpush1.msra.mxu1 %v6299_v40  ;;  %v6315_v48 = vld [vmem:[#allocation6 + $0x250] sm:$0xff] }
  0xec   :  { %1129 = vmatprep.subr.mxu0 %v5628_v50  ;;  %1204 = vmatprep.subr.mxu1 %v6303_v42  ;;  %v6319_v50 = vld [vmem:[#allocation6 + $0x218] sm:$0xff] }
  0xed   :  { %1130 = vmatpush1.msra.mxu0 %v5633_v52  ;;  %1205 = vmatpush1.msra.mxu1 %v6307_v44 }
  0xee   :  { %1131 = vmatprep.subr.mxu0 %v5638_v54  ;;  %1206 = vmatprep.subr.mxu1 %v6311_v46  ;;  %v107_v54 = vld [vmem:[#allocation6 + $0x880] ss:$8 sm:$0xf0] }
  0xef   :  { %1132 = vmatpush1.msra.mxu0 %v5644_v56  ;;  %1207 = vmatpush1.msra.mxu1 %v6315_v48 }
  0xf0   :  { %1133 = vmatprep.subr.mxu0 %v5650_v58  ;;  %1208 = vmatprep.subr.mxu1 %v6319_v50 }
  0xf1   :  { %1134 = vmatpush1.msra.mxu0 %v5656_v60  ;;  %1209 = vmatpush1.msra.mxu1 %v5630_v51  ;;  %v10001_v51 = vlaneseq }
  0xf2   :  { %1135 = vmatprep.subr.mxu0 %v5662_v62  ;;  %1210 = vmatprep.subr.mxu1 %v5635_v53  ;;  %v106_v53 = vld [vmem:[#allocation6 + $0x880] ss:$8 sm:$0xf] }
  0xf3   :  { %1136 = vmatpush1.msra.mxu0 %v5668_v1  ;;  %1211 = vmatpush1.msra.mxu1 %v5640_v55  ;;  %v6347_v52 = vshrl.u32 %v10001_v51, 7  ;;  %v6358_v56 = vor.u32 %v107_v54, %v106_v53  ;;  %v10697_v62 = vld [vmem:[#allocation14_spill] sm:$0xff] }
  0xf4   :  { %1137 = vmatprep.subr.mxu0 %v5674_v3  ;;  %1212 = vmatprep.subr.mxu1 %v5646_v57  ;;  %v10699_v3 = vld [vmem:[#allocation15_spill] sm:$0xff] }
  0xf5   :  { %1138 = vmatpush1.msra.mxu0 %v5680_v5  ;;  %1213 = vmatpush1.msra.mxu1 %v5652_v59  ;;  %v124_v55 = vsub.s32 2, %v6347_v52  ;;  %v128_v57 = vsub.s32 3, %v6347_v52  ;;  %v10694_v59 = vld [vmem:[#allocation13_spill] sm:$0xff]  ;;  %v6371_v60 = vsub.s32 0, %v6347_v52 }
  0xf6   :  { %1139 = vmatprep.subr.mxu0 %v5686_v7  ;;  %1214 = vmatprep.subr.mxu1 %v5658_v61  ;;  %v10696_v61 = vld [vmem:[#allocation19_spill] sm:$0xff]  ;;  %v10702_v7 = vld [vmem:[#allocation16_spill] sm:$0xff] }
  0xf7   :  { %1140 = vmatpush1.msra.mxu0 %v5692_v9  ;;  %1215 = vmatpush1.msra.mxu1 %v5664_v63  ;;  %v6366_v58 = vrot.slane %v6358_v56, %v124_v55  ;;  %10695 = vst [vmem:[#allocation13_spill] sm:$0xff] %v6371_v60  ;;  %v6378_v1 = vrot.slane %v6358_v56, %v128_v57  ;;  %v10718_v55 = vld [vmem:[#allocation35_spill] sm:$0xff]  ;;  %v10719_v57 = vld [vmem:[#allocation26_spill] sm:$0xff] }
  0xf8   :  { %1141 = vmatprep.subr.mxu0 %v5698_v12  ;;  %1216 = vmatprep.subr.mxu1 %v5670_v2  ;;  %v10698_v2 = vld [vmem:[#allocation21_spill] sm:$0xff] }
  0xf9   :  { %1142 = vmatpush1.msra.mxu0 %v5704_v15  ;;  %1217 = vmatpush1.msra.mxu1 %v5676_v4  ;;  %v6383_v4 = vsub.s32 1, %v6347_v52  ;;  %v10705_v12 = vld [vmem:[#allocation17_spill] sm:$0xff] }
  0xfa   :  { %1143 = vmatprep.subr.mxu0 %v5710_v18  ;;  %1218 = vmatprep.subr.mxu1 %v5682_v6  ;;  %v10701_v6 = vld [vmem:[#allocation23_spill] sm:$0xff]  ;;  %v10707_v18 = vld [vmem:[#allocation18_spill] sm:$0xff] }
  0xfb   :  { %1144 = vmatpush1.msra.mxu0 %v5716_v20  ;;  %1219 = vmatpush1.msra.mxu1 %v5688_v8  ;;  %10700 = vst [vmem:[#allocation19_spill] sm:$0xff] %v6383_v4 }
  0xfc   :  { %1145 = vmatprep.subr.mxu0 %v5722_v22  ;;  %1220 = vmatprep.subr.mxu1 %v5694_v11  ;;  %v10704_v11 = vld [vmem:[#allocation25_spill] sm:$0xff]  ;;  %v10710_v22 = vld [vmem:[#allocation20_spill] sm:$0xff] }
  0xfd   :  { %1146 = vmatpush1.msra.mxu0 %v5728_v24  ;;  %1221 = vmatpush1.msra.mxu1 %v5700_v14  ;;  %v6396_v14 = vrot.slane %v6358_v56, %v6371_v60 }
  0xfe   :  { %1147 = vmatprep.subr.mxu0 %v5734_v26  ;;  %1222 = vmatprep.subr.mxu1 %v5706_v16  ;;  %v10706_v16 = vld [vmem:[#allocation27_spill] sm:$0xff] }
  0xff   :  { %1148 = vmatpush1.msra.mxu0 %v5740_v28  ;;  %1223 = vmatpush2.msra.mxu1 %v5712_v19  ;;  %v10712_v26 = vld [vmem:[#allocation31_spill] sm:$0xff]  ;;  %v10713_v28 = vld [vmem:[#allocation22_spill] sm:$0xff] }
 0x100   :  { %1149 = vmatprep.subr.mxu0 %v5746_v30  ;;  %1224 = vmatprep.subr.mxu1 %v5718_v21  ;;  %v10709_v21 = vld [vmem:[#allocation29_spill] sm:$0xff] }
 0x101   :  { %1150 = vmatpush1.msra.mxu0 %v5752_v32  ;;  %1225 = vmatpush2.msra.mxu1 %v5724_v23  ;;  %v6407_v23 = vrot.slane %v6358_v56, %v6383_v4 }
 0x102   :  { %1151 = vmatprep.subr.mxu0 %v5758_v34  ;;  %1226 = vmatprep.subr.mxu1 %v5730_v25  ;;  %v10715_v34 = vld [vmem:[#allocation33_spill] sm:$0xff] }
 0x103   :  { %1152 = vmatpush2.msra.mxu0 %v5764_v36  ;;  %1227 = vmatpush2.msra.mxu1 %v10694_v59  ;;  %v10716_v36 = vld [vmem:[#allocation24_spill] sm:$0xff] }
 0x104   :  { %1153 = vmatprep.subr.mxu0 %v10696_v61  ;;  %1228 = vmatprep.subr.mxu1 %v10697_v62  ;;  %v10721_v62 = vld [vmem:[#allocation37_spill] sm:$0xff] }
 0x105   :  { %v6375_v63 = vpop.f32.mrf.mxu0  ;;  %1154 = vmatpush2.msra.mxu0 %v10698_v2  ;;  %1229 = vmatpush2.msra.mxu1 %v10699_v3  ;;  %v10722_v2 = vld [vmem:[#allocation28_spill] sm:$0xff] }
 0x106   :  { %v328_v5 = vpop.f32.mrf.mxu1  ;;  %1155 = vmatprep.subr.mxu0 %v10701_v6  ;;  %1230 = vmatprep.subr.mxu1 %v10702_v7  ;;  %v10724_v6 = vld [vmem:[#allocation38_spill] sm:$0xff] }
 0x107   :  { %v6387_v8 = vpop.f32.mrf.mxu0  ;;  %v6390_v9 = vadd.f32 %v328_v5, %v6366_v58  ;;  %1156 = vmatpush2.msra.mxu0 %v10704_v11  ;;  %1231 = vmatpush2.msra.mxu1 %v10705_v12  ;;  %v10725_v7 = vld [vmem:[#allocation30_spill] sm:$0xff] }
 0x108   :  { %v330_v15 = vpop.f32.mrf.mxu1  ;;  %1157 = vmatprep.subr.mxu0 %v10706_v16  ;;  %1232 = vmatprep.subr.mxu1 %v10707_v18  ;;  %v10728_v16 = vld [vmem:[#allocation32_spill] sm:$0xff] }
 0x109   :  { %10703 = vst [vmem:[#allocation14_spill] sm:$0xff] %v6390_v9  ;;  %v239_v19 = vpop.f32.mrf.mxu0  ;;  %v6401_v20 = vadd.f32 %v330_v15, %v6378_v1  ;;  %1158 = vmatpush2.msra.mxu0 %v10709_v21  ;;  %1233 = vmatpush2.msra.mxu1 %v10710_v22  ;;  %v10727_v15 = vld [vmem:[#allocation40_spill] sm:$0xff]  ;;  %v10730_v21 = vld [vmem:[#allocation42_spill] sm:$0xff]  ;;  %v6664_v9 = vld [vmem:[#allocation6 + $0x1b8] sm:$0xff] }
 0x10a   :  { %v6410_v24 = vadd.f32 %v239_v19, %v6396_v14  ;;  %v334_v25 = vpop.f32.mrf.mxu1  ;;  %1159 = vmatprep.subr.mxu0 %v10712_v26  ;;  %1234 = vmatprep.subr.mxu1 %v10713_v28  ;;  %v10731_v22 = vld [vmem:[#allocation34_spill] sm:$0xff]  ;;  %v10733_v28 = vld [vmem:[#allocation44_spill] sm:$0xff] }
 0x10b   :  { %10708 = vst [vmem:[#allocation21_spill] sm:$0xff] %v6401_v20  ;;  %v241_v30 = vpop.f32.mrf.mxu0  ;;  %v6415_v32 = vadd.f32 %v334_v25, %v6366_v58  ;;  %1160 = vmatpush2.msra.mxu0 %v10715_v34  ;;  %1235 = vmatpush2.msra.mxu1 %v10716_v36  ;;  %v10736_v36 = vld [vmem:[#allocation46_spill] sm:$0xff]  ;;  %v6656_v20 = vld [vmem:[#allocation6 + $0x1f8] sm:$0xff] }
 0x10c   :  { %10711 = vst [vmem:[#allocation15_spill] sm:$0xff] %v6410_v24  ;;  %v6420_v53 = vadd.f32 %v241_v30, %v6407_v23  ;;  %v336_v54 = vpop.f32.mrf.mxu1  ;;  %1161 = vmatprep.subr.mxu0 %v10718_v55  ;;  %1236 = vmatprep.subr.mxu1 %v10719_v57  ;;  %v10734_v30 = vld [vmem:[#allocation36_spill] sm:$0xff]  ;;  %v6668_v24 = vld [vmem:[#allocation6 + $0x1b0] sm:$0xff] }
 0x10d   :  { %10714 = vst [vmem:[#allocation23_spill] sm:$0xff] %v6415_v32  ;;  %v245_v59 = vpop.f32.mrf.mxu0  ;;  %v6425_v61 = vadd.f32 %v336_v54, %v6378_v1  ;;  %1162 = vmatpush2.msra.mxu0 %v10721_v62  ;;  %1237 = vmatpush2.msra.mxu1 %v10722_v2  ;;  %v10737_v54 = vld [vmem:[#allocation39_spill] sm:$0xff]  ;;  %v10738_v57 = vld [vmem:[#allocation48_spill] sm:$0xff]  ;;  %v10741_v2 = vld [vmem:[#allocation50_spill] sm:$0xff] }
 0x10e   :  { %10717 = vst [vmem:[#allocation16_spill] sm:$0xff] %v6420_v53  ;;  %v6430_v3 = vadd.f32 %v245_v59, %v6396_v14  ;;  %v340_v5 = vpop.f32.mrf.mxu1  ;;  %1163 = vmatprep.subr.mxu0 %v10724_v6  ;;  %1238 = vmatprep.subr.mxu1 %v10725_v7  ;;  %v10739_v59 = vld [vmem:[#allocation41_spill] sm:$0xff]  ;;  %v10743_v6 = vld [vmem:[#allocation52_spill] sm:$0xff]  ;;  %v6620_v32 = vld [vmem:[#allocation6 + $0x330] sm:$0xff] }
 0x10f   :  { %10720 = vst [vmem:[#allocation25_spill] sm:$0xff] %v6425_v61  ;;  %v247_v11 = vpop.f32.mrf.mxu0  ;;  %v6435_v12 = vadd.f32 %v340_v5, %v6366_v58  ;;  %1164 = vmatpush2.msra.mxu0 %v10727_v15  ;;  %1239 = vmatpush2.msra.mxu1 %v10728_v16  ;;  %v10742_v5 = vld [vmem:[#allocation43_spill] sm:$0xff]  ;;  %v10744_v7 = vld [vmem:[#allocation45_spill] sm:$0xff]  ;;  %v10747_v16 = vld [vmem:[#allocation56_spill] sm:$0xff] }
 0x110   :  { %10723 = vst [vmem:[#allocation17_spill] sm:$0xff] %v6430_v3  ;;  %v6440_v18 = vadd.f32 %v247_v11, %v6407_v23  ;;  %v342_v19 = vpop.f32.mrf.mxu1  ;;  %1165 = vmatprep.subr.mxu0 %v10730_v21  ;;  %1240 = vmatprep.subr.mxu1 %v10731_v22  ;;  %v10745_v11 = vld [vmem:[#allocation54_spill] sm:$0xff]  ;;  %v10746_v15 = vld [vmem:[#allocation47_spill] sm:$0xff]  ;;  %10791 = vst [vmem:[#allocation48_spill] sm:$0xff] %v6656_v20 }
 0x111   :  { %10726 = vst [vmem:[#allocation27_spill] sm:$0xff] %v6435_v12  ;;  %v251_v25 = vpop.f32.mrf.mxu0  ;;  %v6445_v26 = vadd.f32 %v342_v19, %v6378_v1  ;;  %1166 = vmatpush2.msra.mxu0 %v10733_v28  ;;  %1241 = vmatpush2.msra.mxu1 %v10734_v30  ;;  %v10748_v19 = vld [vmem:[#allocation49_spill] sm:$0xff]  ;;  %v10749_v21 = vld [vmem:[#allocation58_spill] sm:$0xff]  ;;  %v10750_v22 = vld [vmem:[#allocation51_spill] sm:$0xff]  ;;  %v6521_v12 = vadd.f32 %v6375_v63, %v6396_v14 }
 0x112   :  { %10729 = vst [vmem:[#allocation18_spill] sm:$0xff] %v6440_v18  ;;  %v6450_v34 = vadd.f32 %v251_v25, %v6396_v14  ;;  %1167 = vmatprep.subr.mxu0 %v10736_v36  ;;  %1242 = vmatprep.subr.mxu1 %v10737_v54  ;;  %v10751_v25 = vld [vmem:[#allocation60_spill] sm:$0xff]  ;;  %v10752_v28 = vld [vmem:[#allocation53_spill] sm:$0xff]  ;;  %v10753_v30 = vld [vmem:[#allocation62_spill] sm:$0xff]  ;;  %v132_v14 = vsub.s32 4, %v6347_v52 }
 0x113   :  { %10732 = vst [vmem:[#allocation29_spill] sm:$0xff] %v6445_v26  ;;  %v253_v55 = vpop.f32.mrf.mxu0  ;;  %1168 = vmatpush2.msra.mxu0 %v10738_v57  ;;  %1243 = vmatpush2.msra.mxu1 %v10739_v59  ;;  %v10754_v36 = vld [vmem:[#allocation55_spill] sm:$0xff]  ;;  %v10755_v54 = vld [vmem:[#allocation64_spill] sm:$0xff]  ;;  %v10757_v57 = vld [vmem:[#allocation65_spill] sm:$0xff] }
 0x114   :  { %10735 = vst [vmem:[#allocation20_spill] sm:$0xff] %v6450_v34  ;;  %v6457_v62 = vadd.f32 %v253_v55, %v6407_v23  ;;  %1169 = vmatprep.subr.mxu0 %v10741_v2  ;;  %1244 = vmatprep.subr.mxu1 %v10742_v5  ;;  %v10756_v55 = vld [vmem:[#allocation57_spill] sm:$0xff]  ;;  %v10758_v59 = vld [vmem:[#allocation59_spill] sm:$0xff]  ;;  %v10759_v2 = vld [vmem:[#allocation66_spill] sm:$0xff] }
 0x115   :  { %1170 = vmatpush2.msra.mxu0 %v10743_v6  ;;  %1245 = vmatpush2.msra.mxu1 %v10744_v7  ;;  %v10760_v5 = vld [vmem:[#allocation61_spill] sm:$0xff]  ;;  %v10761_v6 = vld [vmem:[#allocation67_spill] sm:$0xff]  ;;  %v6612_v61 = vld [vmem:[#allocation6 + $0x370] sm:$0xff]  ;;  %10795 = vst [vmem:[#allocation50_spill] sm:$0xff] %v6664_v9 }
 0x116   :  { %10740 = vst [vmem:[#allocation31_spill] sm:$0xff] %v6457_v62  ;;  %1171 = vmatprep.subr.mxu0 %v10745_v11  ;;  %1246 = vmatprep.subr.mxu1 %v10746_v15  ;;  %v10762_v7 = vld [vmem:[#allocation63_spill] sm:$0xff]  ;;  %v10763_v11 = vld [vmem:[#allocation68_spill] sm:$0xff]  ;;  %v10764_v15 = vld [vmem:[#allocation69_spill] sm:$0xff] }
 0x117   :  { %1172 = vmatpush2.msra.mxu0 %v10747_v16  ;;  %1247 = vmatpush2.msra.mxu1 %v10748_v19  ;;  %v10765_v16 = vld [vmem:[#allocation70_spill] sm:$0xff]  ;;  %v10766_v19 = vld [vmem:[#allocation71_spill] sm:$0xff]  ;;  %10797 = vst [vmem:[#allocation43_spill] sm:$0xff] %v6668_v24 }
 0x118   :  { %1173 = vmatprep.subr.mxu0 %v10749_v21  ;;  %1248 = vmatprep.subr.mxu1 %v10750_v22  ;;  %v500_v21 = vpop.f32.mrf.mxu1  ;;  %v140_v22 = vsub.s32 6, %v6347_v52  ;;  %v6616_v18 = vld [vmem:[#allocation6 + $0x338] sm:$0xff]  ;;  %v6660_v53 = vld [vmem:[#allocation6 + $0x1f0] sm:$0xff] }
 0x119   :  { %1174 = vmatpush2.msra.mxu0 %v10751_v25  ;;  %1249 = vmatpush2.msra.mxu1 %v10752_v28  ;;  %v144_v25 = vsub.s32 7, %v6347_v52  ;;  %v6624_v3 = vld [vmem:[#allocation6 + $0x2f8] sm:$0xff]  ;;  %10793 = vst [vmem:[#allocation41_spill] sm:$0xff] %v6660_v53 }
 0x11a   :  { %1175 = vmatprep.subr.mxu0 %v10753_v30  ;;  %1250 = vmatprep.subr.mxu1 %v10754_v36  ;;  %v502_v28 = vpop.f32.mrf.mxu1  ;;  %v141_v30 = vrot.slane %v6358_v56, %v140_v22  ;;  %v322_v22 = vpop.f32.mrf.mxu0 }
 0x11b   :  { %1176 = vmatpush2.msra.mxu0 %v10755_v54  ;;  %1251 = vmatpush2.msra.mxu1 %v10756_v55  ;;  %v145_v54 = vrot.slane %v6358_v56, %v144_v25 }
 0x11c   :  { %1177 = vmatprep.subr.mxu0 %v10757_v57  ;;  %1252 = vmatprep.subr.mxu1 %v10758_v59  ;;  %v324_v51 = vpop.f32.mrf.mxu0 }
 0x11d   :  { %1178 = vmatpush2.msra.mxu0 %v10759_v2  ;;  %1253 = vmatpush2.msra.mxu1 %v10760_v5  ;;  %v6517_v62 = vadd.f32 %v324_v51, %v6378_v1 }
 0x11e   :  { %1179 = vmatprep.subr.mxu0 %v10761_v6  ;;  %1332 = vmatprep.subr.mxu1 %v10762_v7  ;;  %v411_v25 = vpop.f32.mrf.mxu0 }
 0x11f   :  { %1180 = vmatpush2.msra.mxu0 %v10763_v11 }
 0x120   :  { %1181 = vmatprep.subr.mxu0 %v10764_v15 }
 0x121   :  { %1182 = vmatpush2.msra.mxu0 %v10765_v16 }
 0x122   :  { %1261 = vmatprep.subr.mxu0 %v10766_v19 }
 0x146   :  { %v506_v36 = vpop.f32.mrf.mxu1 }
 0x147   :  { %v6489_v55 = vadd.f32 %v506_v36, %v141_v30  ;;  %v413_v36 = vpop.f32.mrf.mxu0 }
 0x148   :  { %v508_v57 = vpop.f32.mrf.mxu1 }
 0x149   :  { %10767 = vst [vmem:[#allocation22_spill] sm:$0xff] %v6489_v55  ;;  %v6491_v59 = vadd.f32 %v508_v57, %v145_v54  ;;  %v6632_v55 = vld [vmem:[#allocation6 + $0x2b8] sm:$0xff] }
 0x14b   :  { %10768 = vst [vmem:[#allocation33_spill] sm:$0xff] %v6491_v59  ;;  %v6628_v59 = vld [vmem:[#allocation6 + $0x2f0] sm:$0xff] }
 0x14c   :  { %v512_v2 = vpop.f32.mrf.mxu1 }
 0x14d   :  { %v6493_v5 = vadd.f32 %v512_v2, %v141_v30 }
 0x14e   :  { %v514_v6 = vpop.f32.mrf.mxu1 }
 0x14f   :  { %10769 = vst [vmem:[#allocation24_spill] sm:$0xff] %v6493_v5  ;;  %v6495_v7 = vadd.f32 %v514_v6, %v145_v54 }
 0x151   :  { %10770 = vst [vmem:[#allocation35_spill] sm:$0xff] %v6495_v7  ;;  %v518_v11 = vpop.f32.mrf.mxu1  ;;  %v6501_v4 = vpop.f32.mrf.mxu0 }
 0x152   :  { %v6497_v15 = vadd.f32 %v518_v11, %v141_v30  ;;  %10773 = vst [vmem:[#allocation28_spill] sm:$0xff] %v6501_v4  ;;  %v6648_v4 = vld [vmem:[#allocation6 + $0x238] sm:$0xff] }
 0x153   :  { %v520_v16 = vpop.f32.mrf.mxu1  ;;  %v6503_v57 = vpop.f32.mrf.mxu0  ;;  %10787 = vst [vmem:[#allocation46_spill] sm:$0xff] %v6648_v4 }
 0x154   :  { %10771 = vst [vmem:[#allocation26_spill] sm:$0xff] %v6497_v15  ;;  %v6499_v19 = vadd.f32 %v520_v16, %v145_v54  ;;  %10774 = vst [vmem:[#allocation38_spill] sm:$0xff] %v6503_v57  ;;  %v6514_v16 = vadd.f32 %v322_v22, %v6366_v58  ;;  %v6640_v57 = vld [vmem:[#allocation6 + $0x278] sm:$0xff] }
 0x156   :  { %10772 = vst [vmem:[#allocation37_spill] sm:$0xff] %v6499_v19 }
 0x157   :  { %v6505_v60 = vpop.f32.mrf.mxu0 }
 0x158   :  { %10775 = vst [vmem:[#allocation30_spill] sm:$0xff] %v6505_v60  ;;  %v916_v11 = vpop.f32.mrf.mxu1  ;;  %v6533_v60 = vadd.f32 %v500_v21, %v141_v30 }
 0x159   :  { %v6507_v2 = vpop.f32.mrf.mxu0  ;;  %v1065_v34 = vadd.f32 %v916_v11, %v6514_v16 }
 0x15a   :  { %10776 = vst [vmem:[#allocation40_spill] sm:$0xff] %v6507_v2  ;;  %v918_v19 = vpop.f32.mrf.mxu1 }
 0x15b   :  { %v1066_v7 = vadd.f32 %v918_v19, %v6517_v62  ;;  %v4217_v22 = vmul.f32 -1.442695, %v1065_v34  ;;  %v6535_v34 = vadd.f32 %v502_v28, %v145_v54 }
 0x15c   :  { %v6509_v6 = vpop.f32.mrf.mxu0 }
 0x15d   :  { %10777 = vst [vmem:[#allocation32_spill] sm:$0xff] %v6509_v6  ;;  %v4218_v51 = vmul.f32 -1.442695, %v1066_v7  ;;  %4318 = vpow2.f32 %v4217_v22 }
 0x15e   :  { %v6511_v26 = vpop.f32.mrf.mxu0 }
 0x15f   :  { %10778 = vst [vmem:[#allocation42_spill] sm:$0xff] %v6511_v26  ;;  %v6527_v26 = vadd.f32 %v6387_v8, %v6407_v23  ;;  %4320 = vpow2.f32 %v4218_v51  ;;  %v136_v8 = vsub.s32 5, %v6347_v52 }
 0x161   :  { %v845_v15 = vpop.f32.mrf.mxu0 }
 0x162   :  { %v1063_v58 = vadd.f32 %v845_v15, %v6521_v12 }
 0x163   :  { %v847_v6 = vpop.f32.mrf.mxu0 }
 0x164   :  { %v1064_v5 = vadd.f32 %v847_v6, %v6527_v26  ;;  %v4215_v1 = vmul.f32 -1.442695, %v1063_v58  ;;  %v6538_v6 = vrot.slane %v6358_v56, %v132_v14 }
 0x166   :  { %v4216_v2 = vmul.f32 -1.442695, %v1064_v5  ;;  %4322 = vpow2.f32 %v4215_v1  ;;  %10779 = vst [vmem:[#allocation34_spill] sm:$0xff] %v6538_v6  ;;  %v6543_v1 = vrot.slane %v6358_v56, %v136_v8  ;;  %v6546_v28 = vadd.f32 %v411_v25, %v6538_v6  ;;  %v6652_v6 = vld [vmem:[#allocation6 + $0x230] sm:$0xff] }
 0x167   :  { %10789 = vst [vmem:[#allocation39_spill] sm:$0xff] %v6652_v6 }
 0x168   :  { %4324 = vpow2.f32 %v4216_v2  ;;  %10780 = vst [vmem:[#allocation44_spill] sm:$0xff] %v6543_v1 }
 0x16a   :  { %v4319_v63 = vpop.eup %4318 }
 0x16b   :  { %v1089_v15 = vadd.f32 1.0, %v4319_v63  ;;  %v6549_v63 = vadd.f32 %v413_v36, %v6543_v1  ;;  %v6644_v1 = vld [vmem:[#allocation6 + $0x270] sm:$0xff] }
 0x16c   :  { %v4321_v19 = vpop.eup %4320  ;;  %10785 = vst [vmem:[#allocation36_spill] sm:$0xff] %v6644_v1 }
 0x16d   :  { %v1090_v5 = vadd.f32 1.0, %v4321_v19  ;;  %4326 = vrcp.f32 %v1089_v15 }
 0x16f   :  { %4328 = vrcp.f32 %v1090_v5 }
 0x173   :  { %v4323_v11 = vpop.eup %4322 }
 0x174   :  { %v1077_v2 = vadd.f32 1.0, %v4323_v11 }
 0x175   :  { %v4325_v7 = vpop.eup %4324 }
 0x176   :  { %v1078_v52 = vadd.f32 1.0, %v4325_v7  ;;  %4330 = vrcp.f32 %v1077_v2 }
 0x17a   :  { %v4327_v11 = vpop.eup %4326 }
 0x17c   :  { %v4329_v25 = vpop.eup %4328 }
 0x183   :  { %v4331_v8 = vpop.eup %4330 }
 0x19b   :  { %v1058_v23 = vpop.f32.mrf.mxu1 }
 0x19c   :  { %v1069_v22 = vadd.f32 %v1058_v23, %v6533_v60 }
 0x19d   :  { %v1060_v58 = vpop.f32.mrf.mxu1 }
 0x19e   :  { %v1070_v51 = vadd.f32 %v1060_v58, %v6535_v34  ;;  %v4219_v30 = vmul.f32 -1.442695, %v1069_v22  ;;  %v1109_v58 = vmul.f32 0.0, %v4327_v11 }
 0x1a0   :  { %v4220_v21 = vmul.f32 -1.442695, %v1070_v51  ;;  %v1110_v51 = vmul.f32 0.0, %v4329_v25  ;;  %v6563_v25 = vld [vmem:[#allocation6 + $0x460] sm:$0xff] }
 0x1a2   :  { %v987_v54 = vpop.f32.mrf.mxu0  ;;  %4332 = vpow2.f32 %v4220_v21 }
 0x1a3   :  { %v1067_v14 = vadd.f32 %v987_v54, %v6546_v28  ;;  %4334 = vrcp.f32 %v1078_v52 }
 0x1a4   :  { %v989_v19 = vpop.f32.mrf.mxu0 }
 0x1a5   :  { %4336 = vtanh.f32 %v1067_v14  ;;  %v1068_v56 = vadd.f32 %v989_v19, %v6549_v63 }
 0x1a6   :  { %4338 = vpow2.f32 %v4219_v30 }
 0x1a7   :  { %4340 = vtanh.f32 %v1068_v56 }
 0x1af   :  { %v4333_v23 = vpop.eup %4332 }
 0x1b0   :  { %v4335_v15 = vpop.eup %4334  ;;  %v1104_v36 = vadd.f32 1.0, %v4333_v23 }
 0x1b2   :  { %v4337_v7 = vpop.eup %4336  ;;  %4342 = vrcp.f32 %v1104_v36  ;;  %v6578_v36 = vld [vmem:[#allocation6 + $0x430] sm:$0xff] }
 0x1b3   :  { %v4339_v5 = vpop.eup %4338  ;;  %v1111_v2 = vmul.f32 %v4337_v7, %v4331_v8  ;;  %v6569_v7 = vld [vmem:[#allocation6 + $0x428] sm:$0xff] }
 0x1b4   :  { %v4341_v22 = vpop.eup %4340  ;;  %v1103_v54 = vadd.f32 1.0, %v4339_v5  ;;  %v6572_v5 = vld [vmem:[#allocation6 + $0x438] sm:$0xff] }
 0x1b5   :  { %v6553_v21 = vadd.f32 %v1111_v2, %v1109_v58  ;;  %v1112_v52 = vmul.f32 %v4341_v22, %v4335_v15  ;;  %v6566_v15 = vld [vmem:[#allocation6 + $0x470] sm:$0xff]  ;;  %v6575_v58 = vld [vmem:[#allocation6 + $0x420] sm:$0xff]  ;;  %v6581_v2 = vld [vmem:[#allocation6 + $0x3e8] sm:$0xff] }
 0x1b6   :  { %v6584_v22 = vld [vmem:[#allocation6 + $0x3f8] sm:$0xff] }
 0x1b7   :  { %v6555_v14 = vadd.f32 %v1112_v52, %v1110_v51  ;;  %4344 = vtanh.f32 %v6553_v21  ;;  %v6587_v51 = vld [vmem:[#allocation6 + $0x3e0] sm:$0xff]  ;;  %v6590_v52 = vld [vmem:[#allocation6 + $0x3f0] sm:$0xff] }
 0x1b9   :  { %4346 = vtanh.f32 %v6555_v14 }
 0x1ba   :  { %4348 = vrcp.f32 %v1103_v54  ;;  %v6593_v54 = vld [vmem:[#allocation6 + $0x3a8] sm:$0xff] }
 0x1bf   :  { %v4343_v30 = vpop.eup %4342 }
 0x1c4   :  { %v4345_v19 = vpop.eup %4344 }
 0x1c6   :  { %v4347_v56 = vpop.eup %4346 }
 0x1c7   :  { %v4349_v11 = vpop.eup %4348  ;;  %v1118_v23 = vmul.f32 %v4347_v56, %v4343_v30  ;;  %v6596_v30 = vld [vmem:[#allocation6 + $0x3b8] sm:$0xff]  ;;  %v6602_v56 = vld [vmem:[#allocation6 + $0x3b0] sm:$0xff] }
 0x1c8   :  { %v6559_v8 = vmul.f32 %v4349_v11, %v4345_v19  ;;  %v6599_v19 = vld [vmem:[#allocation6 + $0x3a0] sm:$0xff]  ;;  %v6605_v11 = vld [vmem:[#allocation6 + $0x368] sm:$0xff] }
 0x1c9   :  { %1183 = vmatprep.mubr.f32.mxu0 %v1118_v23  ;;  %1254 = vmatprep.mubr.f32.mxu1 %v1118_v23 }
 0x1ca   :  { %1184 = vmatmul.mubr.f32.vlgmr.msra.gmra.mxu0 %v6559_v8  ;;  %1255 = vmatmul.mubr.f32.vlgmr.msra.gmra.mxu1 %v6559_v8 }
 0x1cb   :  { %1262 = vmatpush1.msra.mxu0 %v6563_v25  ;;  %1333 = vmatpush1.msra.mxu1 %v6566_v15 }
 0x1cc   :  { %1263 = vmatprep.subr.mxu0 %v6569_v7  ;;  %1325 = vmatprep.mubr.f32.mxu0 %v1118_v23 }
 0x1cd   :  { %1334 = vmatprep.subr.mxu1 %v6572_v5  ;;  %1396 = vmatprep.mubr.f32.mxu1 %v1118_v23  ;;  %v6608_v23 = vld [vmem:[#allocation6 + $0x378] sm:$0xff] }
 0x1ce   :  { %1264 = vmatpush1.msra.mxu0 %v6575_v58  ;;  %1335 = vmatpush1.msra.mxu1 %v6578_v36 }
 0x1cf   :  { %1265 = vmatprep.subr.mxu0 %v6581_v2  ;;  %1336 = vmatprep.subr.mxu1 %v6584_v22 }
 0x1d0   :  { %1266 = vmatpush1.msra.mxu0 %v6587_v51  ;;  %1337 = vmatpush1.msra.mxu1 %v6590_v52 }
 0x1d1   :  { %1267 = vmatprep.subr.mxu0 %v6593_v54  ;;  %1338 = vmatprep.subr.mxu1 %v6596_v30 }
 0x1d2   :  { %1268 = vmatpush1.msra.mxu0 %v6599_v19  ;;  %1339 = vmatpush1.msra.mxu1 %v6602_v56 }
 0x1d3   :  { %1269 = vmatprep.subr.mxu0 %v6605_v11  ;;  %1340 = vmatprep.subr.mxu1 %v6608_v23 }
 0x1d4   :  { %1270 = vmatpush1.msra.mxu0 %v5954_v0  ;;  %1341 = vmatpush1.msra.mxu1 %v6612_v61  ;;  %v10781_v0 = vld [vmem:[#allocation72_spill] sm:$0xff] }
 0x1d5   :  { %1271 = vmatprep.subr.mxu0 %v5956_v33  ;;  %1342 = vmatprep.subr.mxu1 %v6616_v18  ;;  %v10782_v33 = vld [vmem:[#allocation73_spill] sm:$0xff] }
 0x1d6   :  { %1272 = vmatpush1.msra.mxu0 %v5958_v13  ;;  %1343 = vmatpush1.msra.mxu1 %v6620_v32  ;;  %v6636_v13 = vld [vmem:[#allocation6 + $0x2b0] sm:$0xff] }
 0x1d7   :  { %1273 = vmatprep.subr.mxu0 %v5961_v41  ;;  %1344 = vmatprep.subr.mxu1 %v6624_v3  ;;  %v10783_v41 = vld [vmem:[#allocation74_spill] sm:$0xff] }
 0x1d8   :  { %1274 = vmatpush1.msra.mxu0 %v10781_v0  ;;  %1345 = vmatpush1.msra.mxu1 %v6628_v59  ;;  %v10784_v0 = vld [vmem:[#allocation75_spill] sm:$0xff] }
 0x1d9   :  { %1275 = vmatprep.subr.mxu0 %v10782_v33  ;;  %1346 = vmatprep.subr.mxu1 %v6632_v55  ;;  %v10786_v33 = vld [vmem:[#allocation77_spill] sm:$0xff] }
 0x1da   :  { %1276 = vmatpush1.msra.mxu0 %v5970_v35  ;;  %1347 = vmatpush1.msra.mxu1 %v6636_v13  ;;  %v10788_v35 = vld [vmem:[#allocation79_spill] sm:$0xff] }
 0x1db   :  { %1277 = vmatprep.subr.mxu0 %v10783_v41  ;;  %1348 = vmatprep.subr.mxu1 %v6640_v57  ;;  %v10790_v41 = vld [vmem:[#allocation81_spill] sm:$0xff] }
 0x1dc   :  { %1278 = vmatpush1.msra.mxu0 %v10784_v0  ;;  %1349 = vmatpush1.msra.mxu1 %v6644_v1  ;;  %v10792_v0 = vld [vmem:[#allocation83_spill] sm:$0xff]  ;;  %v10809_v1 = vld [vmem:[#allocation84_spill] sm:$0xff] }
 0x1dd   :  { %1279 = vmatprep.subr.mxu0 %v10786_v33  ;;  %1350 = vmatprep.subr.mxu1 %v6648_v4  ;;  %v10794_v33 = vld [vmem:[#allocation85_spill] sm:$0xff] }
 0x1de   :  { %1280 = vmatpush1.msra.mxu0 %v10788_v35  ;;  %1351 = vmatpush1.msra.mxu1 %v6652_v6  ;;  %v10796_v35 = vld [vmem:[#allocation87_spill] sm:$0xff]  ;;  %v10803_v6 = vld [vmem:[#allocation78_spill] sm:$0xff]  ;;  %v10806_v4 = vld [vmem:[#allocation97_spill] sm:$0xff] }
 0x1df   :  { %1281 = vmatprep.subr.mxu0 %v10790_v41  ;;  %1352 = vmatprep.subr.mxu1 %v6656_v20  ;;  %v10798_v41 = vld [vmem:[#allocation89_spill] sm:$0xff]  ;;  %v6672_v20 = vld [vmem:[#allocation6 + $0x178] sm:$0xff] }
 0x1e0   :  { %1282 = vmatpush1.msra.mxu0 %v10792_v0  ;;  %1353 = vmatpush1.msra.mxu1 %v6660_v53  ;;  %10799 = vst [vmem:[#allocation52_spill] sm:$0xff] %v6672_v20  ;;  %v10800_v0 = vld [vmem:[#allocation91_spill] sm:$0xff]  ;;  %v10801_v53 = vld [vmem:[#allocation76_spill] sm:$0xff] }
 0x1e1   :  { %1283 = vmatprep.subr.mxu0 %v10794_v33  ;;  %1354 = vmatprep.subr.mxu1 %v6664_v9  ;;  %v10802_v33 = vld [vmem:[#allocation93_spill] sm:$0xff]  ;;  %v10804_v9 = vld [vmem:[#allocation95_spill] sm:$0xff] }
 0x1e2   :  { %1284 = vmatpush1.msra.mxu0 %v10796_v35  ;;  %1355 = vmatpush1.msra.mxu1 %v6668_v24  ;;  %v10805_v35 = vld [vmem:[#allocation80_spill] sm:$0xff]  ;;  %v10807_v24 = vld [vmem:[#allocation82_spill] sm:$0xff] }
 0x1e3   :  { %1285 = vmatprep.subr.mxu0 %v10798_v41  ;;  %1356 = vmatprep.subr.mxu1 %v6672_v20  ;;  %v10808_v41 = vld [vmem:[#allocation99_spill] sm:$0xff]  ;;  %v10810_v20 = vld [vmem:[#allocation101_spill] sm:$0xff] }
 0x1e4   :  { %1286 = vmatpush1.msra.mxu0 %v10800_v0  ;;  %1357 = vmatpush1.msra.mxu1 %v10801_v53  ;;  %v10811_v0 = vld [vmem:[#allocation86_spill] sm:$0xff]  ;;  %v10812_v53 = vld [vmem:[#allocation103_spill] sm:$0xff] }
 0x1e5   :  { %1287 = vmatprep.subr.mxu0 %v10802_v33  ;;  %1358 = vmatprep.subr.mxu1 %v10803_v6  ;;  %v10813_v33 = vld [vmem:[#allocation88_spill] sm:$0xff]  ;;  %v10814_v6 = vld [vmem:[#allocation105_spill] sm:$0xff] }
 0x1e6   :  { %1288 = vmatpush1.msra.mxu0 %v10804_v9  ;;  %1359 = vmatpush1.msra.mxu1 %v10805_v35  ;;  %v10815_v9 = vld [vmem:[#allocation90_spill] sm:$0xff]  ;;  %v10816_v35 = vld [vmem:[#allocation107_spill] sm:$0xff] }
 0x1e7   :  { %1289 = vmatprep.subr.mxu0 %v10806_v4  ;;  %1360 = vmatprep.subr.mxu1 %v10807_v24  ;;  %v10817_v4 = vld [vmem:[#allocation92_spill] sm:$0xff]  ;;  %v10818_v24 = vld [vmem:[#allocation109_spill] sm:$0xff] }
 0x1e8   :  { %1290 = vmatpush1.msra.mxu0 %v10808_v41  ;;  %1361 = vmatpush1.msra.mxu1 %v10809_v1  ;;  %v10819_v41 = vld [vmem:[#allocation94_spill] sm:$0xff]  ;;  %v10820_v1 = vld [vmem:[#allocation111_spill] sm:$0xff] }
 0x1e9   :  { %1291 = vmatprep.subr.mxu0 %v10810_v20  ;;  %1362 = vmatprep.subr.mxu1 %v10811_v0  ;;  %v10821_v20 = vld [vmem:[#allocation96_spill] sm:$0xff]  ;;  %v10822_v0 = vld [vmem:[#allocation113_spill] sm:$0xff] }
 0x1ea   :  { %1292 = vmatpush1.msra.mxu0 %v10812_v53  ;;  %1363 = vmatpush1.msra.mxu1 %v10813_v33  ;;  %v10823_v53 = vld [vmem:[#allocation98_spill] sm:$0xff]  ;;  %v10824_v33 = vld [vmem:[#allocation115_spill] sm:$0xff] }
 0x1eb   :  { %1293 = vmatprep.subr.mxu0 %v10814_v6  ;;  %1364 = vmatprep.subr.mxu1 %v10815_v9  ;;  %v10825_v6 = vld [vmem:[#allocation100_spill] sm:$0xff]  ;;  %v10826_v9 = vld [vmem:[#allocation117_spill] sm:$0xff] }
 0x1ec   :  { %1294 = vmatpush2.msra.mxu0 %v10816_v35  ;;  %1365 = vmatpush2.msra.mxu1 %v10817_v4  ;;  %v10827_v35 = vld [vmem:[#allocation102_spill] sm:$0xff]  ;;  %v10828_v4 = vld [vmem:[#allocation119_spill] sm:$0xff] }
 0x1ed   :  { %1295 = vmatprep.subr.mxu0 %v10818_v24  ;;  %1366 = vmatprep.subr.mxu1 %v10819_v41  ;;  %v10829_v24 = vld [vmem:[#allocation104_spill] sm:$0xff]  ;;  %v10830_v41 = vld [vmem:[#allocation121_spill] sm:$0xff] }
 0x1ee   :  { %1296 = vmatpush2.msra.mxu0 %v10820_v1  ;;  %1367 = vmatpush2.msra.mxu1 %v10821_v20  ;;  %v10831_v1 = vld [vmem:[#allocation106_spill] sm:$0xff]  ;;  %v10832_v20 = vld [vmem:[#allocation123_spill] sm:$0xff] }
 0x1ef   :  { %1297 = vmatprep.subr.mxu0 %v10822_v0  ;;  %1368 = vmatprep.subr.mxu1 %v10823_v53  ;;  %v10833_v0 = vld [vmem:[#allocation108_spill] sm:$0xff]  ;;  %v10834_v53 = vld [vmem:[#allocation125_spill] sm:$0xff] }
 0x1f0   :  { %1298 = vmatpush2.msra.mxu0 %v10824_v33  ;;  %1369 = vmatpush2.msra.mxu1 %v10825_v6  ;;  %v10835_v33 = vld [vmem:[#allocation110_spill] sm:$0xff]  ;;  %v10836_v6 = vld [vmem:[#allocation127_spill] sm:$0xff] }
 0x1f1   :  { %1299 = vmatprep.subr.mxu0 %v10826_v9  ;;  %1370 = vmatprep.subr.mxu1 %v10827_v35  ;;  %v10837_v9 = vld [vmem:[#allocation112_spill] sm:$0xff]  ;;  %v10838_v35 = vld [vmem:[#allocation129_spill] sm:$0xff] }
 0x1f2   :  { %1300 = vmatpush2.msra.mxu0 %v10828_v4  ;;  %1371 = vmatpush2.msra.mxu1 %v10829_v24  ;;  %v10839_v4 = vld [vmem:[#allocation114_spill] sm:$0xff]  ;;  %v10840_v24 = vld [vmem:[#allocation131_spill] sm:$0xff] }
 0x1f3   :  { %1301 = vmatprep.subr.mxu0 %v10830_v41  ;;  %1372 = vmatprep.subr.mxu1 %v10831_v1  ;;  %v10841_v41 = vld [vmem:[#allocation116_spill] sm:$0xff]  ;;  %v10842_v1 = vld [vmem:[#allocation133_spill] sm:$0xff] }
 0x1f4   :  { %1302 = vmatpush2.msra.mxu0 %v10832_v20  ;;  %1373 = vmatpush2.msra.mxu1 %v10833_v0  ;;  %v10843_v20 = vld [vmem:[#allocation118_spill] sm:$0xff]  ;;  %v10844_v0 = vld [vmem:[#allocation135_spill] sm:$0xff] }
 0x1f5   :  { %1303 = vmatprep.subr.mxu0 %v10834_v53  ;;  %1374 = vmatprep.subr.mxu1 %v10835_v33  ;;  %v10845_v53 = vld [vmem:[#allocation120_spill] sm:$0xff]  ;;  %v10846_v33 = vld [vmem:[#allocation137_spill] sm:$0xff] }
 0x1f6   :  { %1304 = vmatpush2.msra.mxu0 %v10836_v6  ;;  %1375 = vmatpush2.msra.mxu1 %v10837_v9  ;;  %v10847_v6 = vld [vmem:[#allocation122_spill] sm:$0xff]  ;;  %v10848_v9 = vld [vmem:[#allocation139_spill] sm:$0xff] }
 0x1f7   :  { %1305 = vmatprep.subr.mxu0 %v10838_v35  ;;  %1376 = vmatprep.subr.mxu1 %v10839_v4  ;;  %v10849_v35 = vld [vmem:[#allocation124_spill] sm:$0xff]  ;;  %v10850_v4 = vld [vmem:[#allocation141_spill] sm:$0xff] }
 0x1f8   :  { %1306 = vmatpush2.msra.mxu0 %v10840_v24  ;;  %1377 = vmatpush2.msra.mxu1 %v10841_v41  ;;  %v10851_v24 = vld [vmem:[#allocation126_spill] sm:$0xff]  ;;  %v10852_v41 = vld [vmem:[#allocation128_spill] sm:$0xff] }
 0x1f9   :  { %1307 = vmatprep.subr.mxu0 %v10842_v1  ;;  %1378 = vmatprep.subr.mxu1 %v10843_v20  ;;  %v10853_v1 = vld [vmem:[#allocation130_spill] sm:$0xff]  ;;  %v10854_v20 = vld [vmem:[#allocation145_spill] sm:$0xff] }
 0x1fa   :  { %1308 = vmatpush2.msra.mxu0 %v10844_v0  ;;  %1379 = vmatpush2.msra.mxu1 %v10845_v53  ;;  %v10855_v0 = vld [vmem:[#allocation132_spill] sm:$0xff]  ;;  %v10856_v53 = vld [vmem:[#allocation134_spill] sm:$0xff] }
 0x1fb   :  { %1309 = vmatprep.subr.mxu0 %v10846_v33  ;;  %1380 = vmatprep.subr.mxu1 %v10847_v6  ;;  %v10857_v33 = vld [vmem:[#allocation148_spill] sm:$0xff] }
 0x1fc   :  { %1310 = vmatpush2.msra.mxu0 %v10848_v9  ;;  %1381 = vmatpush2.msra.mxu1 %v10849_v35  ;;  %v10858_v6 = vld [vmem:[#allocation136_spill] sm:$0xff]  ;;  %v10859_v9 = vld [vmem:[#allocation150_spill] sm:$0xff]  ;;  %v10861_v35 = vld [vmem:[#allocation151_spill] sm:$0xff] }
 0x1fd   :  { %1311 = vmatprep.subr.mxu0 %v10850_v4  ;;  %1382 = vmatprep.subr.mxu1 %v10851_v24  ;;  %v10863_v4 = vld [vmem:[#allocation152_spill] sm:$0xff]  ;;  %v10864_v24 = vld [vmem:[#allocation142_spill] sm:$0xff] }
 0x1fe   :  { %1312 = vmatpush2.msra.mxu0 %v6178_v10  ;;  %1383 = vmatpush2.msra.mxu1 %v10852_v41  ;;  %v10860_v10 = vld [vmem:[#allocation138_spill] sm:$0xff]  ;;  %v10865_v41 = vld [vmem:[#allocation153_spill] sm:$0xff] }
 0x1ff   :  { %1313 = vmatprep.subr.mxu0 %v6184_v27  ;;  %1384 = vmatprep.subr.mxu1 %v10853_v1  ;;  %v10862_v27 = vld [vmem:[#allocation140_spill] sm:$0xff] }
 0x200   :  { %1314 = vmatpush2.msra.mxu0 %v10854_v20  ;;  %1385 = vmatpush2.msra.mxu1 %v10855_v0  ;;  %v10867_v1 = vld [vmem:[#allocation144_spill] sm:$0xff]  ;;  %v10868_v20 = vld [vmem:[#allocation154_spill] sm:$0xff] }
 0x201   :  { %1315 = vmatprep.subr.mxu0 %v6196_v43  ;;  %1386 = vmatprep.subr.mxu1 %v10856_v53  ;;  %v10866_v43 = vld [vmem:[#allocation143_spill] sm:$0xff]  ;;  %v10869_v0 = vld [vmem:[#allocation146_spill] sm:$0xff] }
 0x202   :  { %1316 = vmatpush2.msra.mxu0 %v10857_v33  ;;  %1387 = vmatpush2.msra.mxu1 %v10858_v6  ;;  %v10870_v53 = vld [vmem:[#allocation147_spill] sm:$0xff]  ;;  %v10871_v33 = vld [vmem:[#allocation156_spill] sm:$0xff]  ;;  %v10872_v6 = vld [vmem:[#allocation149_spill] sm:$0xff] }
 0x203   :  { %1317 = vmatprep.subr.mxu0 %v10859_v9  ;;  %1388 = vmatprep.subr.mxu1 %v10860_v10  ;;  %v10874_v9 = vld [vmem:[#allocation161_spill] sm:$0xff] }
 0x204   :  { %1318 = vmatpush2.msra.mxu0 %v10861_v35  ;;  %1389 = vmatpush2.msra.mxu1 %v10862_v27  ;;  %v10875_v10 = vld [vmem:[#allocation157_spill] sm:$0xff]  ;;  %v10876_v35 = vld [vmem:[#allocation163_spill] sm:$0xff] }
 0x205   :  { %1319 = vmatprep.subr.mxu0 %v10863_v4  ;;  %1390 = vmatprep.subr.mxu1 %v10864_v24  ;;  %v10878_v27 = vld [vmem:[#allocation159_spill] sm:$0xff]  ;;  %v10879_v4 = vld [vmem:[#allocation160_spill] sm:$0xff]  ;;  %v6769_v24 = vld [vmem:[#allocation6 + $0x388] sm:$0xff] }
 0x206   :  { %1320 = vmatpush2.msra.mxu0 %v10865_v41  ;;  %1391 = vmatpush2.msra.mxu1 %v10866_v43  ;;  %v10881_v41 = vld [vmem:[#allocation164_spill] sm:$0xff] }
 0x207   :  { %1321 = vmatprep.subr.mxu0 %v6224_v38  ;;  %1392 = vmatprep.subr.mxu1 %v10867_v1  ;;  %v10873_v38 = vld [vmem:[#allocation155_spill] sm:$0xff]  ;;  %v6773_v43 = vld [vmem:[#allocation6 + $0x380] sm:$0xff]  ;;  %v10883_v1 = vld [vmem:[#allocation166_spill] sm:$0xff] }
 0x208   :  { %1322 = vmatpush2.msra.mxu0 %v10868_v20  ;;  %1393 = vmatpush2.msra.mxu1 %v10869_v0  ;;  %v6781_v20 = vld [vmem:[#allocation6 + $0x340] sm:$0xff]  ;;  %v6785_v0 = vld [vmem:[#allocation6 + $0x308] sm:$0xff] }
 0x209   :  { %1323 = vmatprep.subr.mxu0 %v6231_v17  ;;  %1394 = vmatprep.subr.mxu1 %v10870_v53  ;;  %v10877_v17 = vld [vmem:[#allocation158_spill] sm:$0xff]  ;;  %v6789_v53 = vld [vmem:[#allocation6 + $0x300] sm:$0xff] }
 0x20a   :  { %1324 = vmatpush2.msra.mxu0 %v10871_v33  ;;  %1395 = vmatpush2.msra.mxu1 %v10872_v6  ;;  %v6793_v33 = vld [vmem:[#allocation6 + $0x2c8] sm:$0xff]  ;;  %v6797_v6 = vld [vmem:[#allocation6 + $0x2c0] sm:$0xff] }
 0x20b   :  { %1326 = vmatmul.mubr.f32.vlgmr.msra.gmra.mxu0 %v6559_v8  ;;  %1397 = vmatmul.mubr.f32.vlgmr.msra.gmra.mxu1 %v6559_v8  ;;  %v6765_v8 = vld [vmem:[#allocation6 + $0x3c0] sm:$0xff] }
 0x20c   :  { %1495 = vmatprep.subr.mxu0 %v6255_v31  ;;  %1566 = vmatprep.subr.mxu1 %v10873_v38  ;;  %v10880_v31 = vld [vmem:[#allocation162_spill] sm:$0xff]  ;;  %v6830_v38 = vld [vmem:[#allocation6 + $0x1d8] sm:$0xff] }
 0x20d   :  { %1496 = vmatpush1.msra.mxu0 %v10874_v9  ;;  %1567 = vmatpush1.msra.mxu1 %v10875_v10  ;;  %10888 = vst [vmem:[#allocation49_spill] sm:$0xff] %v6830_v38  ;;  %v6839_v9 = vld [vmem:[#allocation6 + $0x188] sm:$0xff]  ;;  %v6842_v10 = vld [vmem:[#allocation6 + $0x198] sm:$0xff] }
 0x20e   :  { %1497 = vmatprep.subr.mxu0 %v10876_v35  ;;  %1568 = vmatprep.subr.mxu1 %v10877_v17  ;;  %10891 = vst [vmem:[#allocation60_spill] sm:$0xff] %v6839_v9  ;;  %10892 = vst [vmem:[#allocation53_spill] sm:$0xff] %v6842_v10  ;;  %v6845_v35 = vld [vmem:[#allocation6 + $0x180] sm:$0xff]  ;;  %v6848_v17 = vld [vmem:[#allocation6 + $0x190] sm:$0xff] }
 0x20f   :  { %1498 = vmatpush1.msra.mxu0 %v6270_v39  ;;  %1569 = vmatpush1.msra.mxu1 %v10878_v27  ;;  %v10882_v39 = vld [vmem:[#allocation165_spill] sm:$0xff]  ;;  %10893 = vst [vmem:[#allocation62_spill] sm:$0xff] %v6845_v35  ;;  %10894 = vst [vmem:[#allocation55_spill] sm:$0xff] %v6848_v17 }
 0x210   :  { %1499 = vmatprep.subr.mxu0 %v6276_v37  ;;  %1570 = vmatprep.subr.mxu1 %v10879_v4  ;;  %v6777_v37 = vld [vmem:[#allocation6 + $0x348] sm:$0xff]  ;;  %v6854_v4 = vld [vmem:[#allocation6 + $0x158] sm:$0xff] }
 0x211   :  { %1500 = vmatpush1.msra.mxu0 %v6765_v8  ;;  %1571 = vmatpush1.msra.mxu1 %v10880_v31  ;;  %v6851_v27 = vld [vmem:[#allocation6 + $0x148] sm:$0xff]  ;;  %10896 = vst [vmem:[#allocation57_spill] sm:$0xff] %v6854_v4  ;;  %v6857_v31 = vld [vmem:[#allocation6 + $0x140] sm:$0xff] }
 0x212   :  { %1501 = vmatprep.subr.mxu0 %v6769_v24  ;;  %1572 = vmatprep.subr.mxu1 %v10881_v41  ;;  %10895 = vst [vmem:[#allocation64_spill] sm:$0xff] %v6851_v27  ;;  %10897 = vst [vmem:[#allocation65_spill] sm:$0xff] %v6857_v31  ;;  %v6860_v41 = vld [vmem:[#allocation6 + $0x150] sm:$0xff] }
 0x213   :  { %1502 = vmatpush1.msra.mxu0 %v6773_v43  ;;  %1573 = vmatpush1.msra.mxu1 %v10882_v39  ;;  %10898 = vst [vmem:[#allocation59_spill] sm:$0xff] %v6860_v41  ;;  %v6863_v39 = vld [vmem:[#allocation6 + $0x108] sm:$0xff] }
 0x214   :  { %1503 = vmatprep.subr.mxu0 %v6777_v37  ;;  %1574 = vmatprep.subr.mxu1 %v10883_v1  ;;  %10899 = vst [vmem:[#allocation66_spill] sm:$0xff] %v6863_v39  ;;  %v6866_v1 = vld [vmem:[#allocation6 + $0x118] sm:$0xff] }
 0x215   :  { %1504 = vmatpush1.msra.mxu0 %v6781_v20  ;;  %1575 = vmatpush1.msra.mxu1 %v6283_v45  ;;  %v6801_v45 = vld [vmem:[#allocation6 + $0x288] sm:$0xff]  ;;  %10900 = vst [vmem:[#allocation61_spill] sm:$0xff] %v6866_v1 }
 0x216   :  { %1505 = vmatprep.subr.mxu0 %v6785_v0  ;;  %1576 = vmatprep.subr.mxu1 %v6287_v49  ;;  %v6805_v49 = vld [vmem:[#allocation6 + $0x280] sm:$0xff] }
 0x217   :  { %1506 = vmatpush1.msra.mxu0 %v6789_v53  ;;  %1577 = vmatpush1.msra.mxu1 %v6291_v47  ;;  %v6809_v47 = vld [vmem:[#allocation6 + $0x248] sm:$0xff] }
 0x218   :  { %1507 = vmatprep.subr.mxu0 %v6793_v33  ;;  %1578 = vmatprep.subr.mxu1 %v6295_v29  ;;  %v6813_v29 = vld [vmem:[#allocation6 + $0x240] sm:$0xff] }
 0x219   :  { %1508 = vmatpush1.msra.mxu0 %v6797_v6  ;;  %1579 = vmatpush1.msra.mxu1 %v6299_v40  ;;  %v6817_v40 = vld [vmem:[#allocation6 + $0x208] sm:$0xff] }
 0x21a   :  { %1509 = vmatprep.subr.mxu0 %v6801_v45  ;;  %1580 = vmatprep.subr.mxu1 %v6303_v42  ;;  %10884 = vst [vmem:[#allocation45_spill] sm:$0xff] %v6817_v40  ;;  %v6821_v42 = vld [vmem:[#allocation6 + $0x200] sm:$0xff] }
 0x21b   :  { %1510 = vmatpush1.msra.mxu0 %v6805_v49  ;;  %1581 = vmatpush1.msra.mxu1 %v6307_v44  ;;  %10885 = vst [vmem:[#allocation54_spill] sm:$0xff] %v6821_v42  ;;  %v6824_v44 = vld [vmem:[#allocation6 + $0x210] sm:$0xff] }
 0x21c   :  { %1511 = vmatprep.subr.mxu0 %v6809_v47  ;;  %1582 = vmatprep.subr.mxu1 %v6311_v46  ;;  %10886 = vst [vmem:[#allocation47_spill] sm:$0xff] %v6824_v44  ;;  %v6827_v46 = vld [vmem:[#allocation6 + $0x1c8] sm:$0xff] }
 0x21d   :  { %1512 = vmatpush1.msra.mxu0 %v6813_v29  ;;  %1583 = vmatpush1.msra.mxu1 %v6315_v48  ;;  %10887 = vst [vmem:[#allocation56_spill] sm:$0xff] %v6827_v46  ;;  %v6833_v48 = vld [vmem:[#allocation6 + $0x1c0] sm:$0xff] }
 0x21e   :  { %1513 = vmatprep.subr.mxu0 %v6817_v40  ;;  %1584 = vmatprep.subr.mxu1 %v6319_v50  ;;  %10889 = vst [vmem:[#allocation58_spill] sm:$0xff] %v6833_v48  ;;  %v6836_v50 = vld [vmem:[#allocation6 + $0x1d0] sm:$0xff] }
 0x21f   :  { %1514 = vmatpush1.msra.mxu0 %v6821_v42  ;;  %1585 = vmatpush1.msra.mxu1 %v6824_v44  ;;  %10890 = vst [vmem:[#allocation51_spill] sm:$0xff] %v6836_v50 }
 0x220   :  { %1515 = vmatprep.subr.mxu0 %v6827_v46  ;;  %1586 = vmatprep.subr.mxu1 %v6830_v38 }
 0x221   :  { %1516 = vmatpush1.msra.mxu0 %v6833_v48  ;;  %1587 = vmatpush1.msra.mxu1 %v6836_v50 }
 0x222   :  { %1517 = vmatprep.subr.mxu0 %v6839_v9  ;;  %1588 = vmatprep.subr.mxu1 %v6842_v10 }
 0x223   :  { %1518 = vmatpush1.msra.mxu0 %v6845_v35  ;;  %1589 = vmatpush1.msra.mxu1 %v6848_v17 }
 0x224   :  { %1519 = vmatprep.subr.mxu0 %v6851_v27  ;;  %1590 = vmatprep.subr.mxu1 %v6854_v4  ;;  %v6869_v27 = vld [vmem:[#allocation6 + $0x100] sm:$0xff]  ;;  %v6872_v4 = vld [vmem:[#allocation6 + $0x110] sm:$0xff] }
 0x225   :  { %1520 = vmatpush1.msra.mxu0 %v6857_v31  ;;  %1591 = vmatpush1.msra.mxu1 %v6860_v41  ;;  %10901 = vst [vmem:[#allocation67_spill] sm:$0xff] %v6869_v27  ;;  %10902 = vst [vmem:[#allocation63_spill] sm:$0xff] %v6872_v4  ;;  %v6875_v31 = vld [vmem:[#allocation6 + $0xc8] sm:$0xff]  ;;  %v6878_v41 = vld [vmem:[#allocation6 + $0xd8] sm:$0xff] }
 0x226   :  { %1521 = vmatprep.subr.mxu0 %v6863_v39  ;;  %1592 = vmatprep.subr.mxu1 %v6866_v1  ;;  %10903 = vst [vmem:[#allocation68_spill] sm:$0xff] %v6875_v31  ;;  %10904 = vst [vmem:[#allocation69_spill] sm:$0xff] %v6878_v41  ;;  %v6881_v39 = vld [vmem:[#allocation6 + $0xc0] sm:$0xff]  ;;  %v6884_v1 = vld [vmem:[#allocation6 + $0xd0] sm:$0xff] }
 0x227   :  { %1522 = vmatpush1.msra.mxu0 %v6869_v27  ;;  %1593 = vmatpush1.msra.mxu1 %v6872_v4  ;;  %10905 = vst [vmem:[#allocation70_spill] sm:$0xff] %v6881_v39  ;;  %10906 = vst [vmem:[#allocation71_spill] sm:$0xff] %v6884_v1  ;;  %v6887_v27 = vld [vmem:[#allocation6 + $0x88] sm:$0xff]  ;;  %v6890_v4 = vld [vmem:[#allocation6 + $0x98] sm:$0xff] }
 0x228   :  { %1523 = vmatprep.subr.mxu0 %v6875_v31  ;;  %1594 = vmatprep.subr.mxu1 %v6878_v41  ;;  %10907 = vst [vmem:[#allocation72_spill] sm:$0xff] %v6887_v27  ;;  %10908 = vst [vmem:[#allocation73_spill] sm:$0xff] %v6890_v4  ;;  %v6893_v31 = vld [vmem:[#allocation6 + $0x80] sm:$0xff]  ;;  %v6896_v41 = vld [vmem:[#allocation6 + $0x90] sm:$0xff] }
 0x229   :  { %1524 = vmatpush1.msra.mxu0 %v6881_v39  ;;  %1595 = vmatpush1.msra.mxu1 %v6884_v1  ;;  %10909 = vst [vmem:[#allocation74_spill] sm:$0xff] %v6893_v31  ;;  %10910 = vst [vmem:[#allocation75_spill] sm:$0xff] %v6896_v41  ;;  %v6899_v39 = vld [vmem:[#allocation6 + $0x848] sm:$0xff]  ;;  %v6902_v1 = vld [vmem:[#allocation6 + $0x858] sm:$0xff] }
 0x22a   :  { %1525 = vmatprep.subr.mxu0 %v6887_v27  ;;  %1596 = vmatprep.subr.mxu1 %v6890_v4  ;;  %10911 = vst [vmem:[#allocation77_spill] sm:$0xff] %v6899_v39  ;;  %10912 = vst [vmem:[#allocation79_spill] sm:$0xff] %v6902_v1  ;;  %v6905_v27 = vld [vmem:[#allocation6 + $0x840] sm:$0xff]  ;;  %v6908_v4 = vld [vmem:[#allocation6 + $0x850] sm:$0xff] }
 0x22b   :  { %1526 = vmatpush1.msra.mxu0 %v6893_v31  ;;  %1597 = vmatpush1.msra.mxu1 %v6896_v41  ;;  %10913 = vst [vmem:[#allocation81_spill] sm:$0xff] %v6905_v27  ;;  %10914 = vst [vmem:[#allocation83_spill] sm:$0xff] %v6908_v4  ;;  %v6911_v31 = vld [vmem:[#allocation6 + $0x808] sm:$0xff]  ;;  %v6914_v41 = vld [vmem:[#allocation6 + $0x818] sm:$0xff] }
 0x22c   :  { %1527 = vmatprep.subr.mxu0 %v6899_v39  ;;  %1598 = vmatprep.subr.mxu1 %v6902_v1  ;;  %10915 = vst [vmem:[#allocation85_spill] sm:$0xff] %v6911_v31  ;;  %10916 = vst [vmem:[#allocation87_spill] sm:$0xff] %v6914_v41  ;;  %v6917_v39 = vld [vmem:[#allocation6 + $0x800] sm:$0xff]  ;;  %v6920_v1 = vld [vmem:[#allocation6 + $0x810] sm:$0xff] }
 0x22d   :  { %1528 = vmatpush2.msra.mxu0 %v6905_v27  ;;  %1599 = vmatpush2.msra.mxu1 %v6908_v4  ;;  %10917 = vst [vmem:[#allocation89_spill] sm:$0xff] %v6917_v39  ;;  %10918 = vst [vmem:[#allocation91_spill] sm:$0xff] %v6920_v1  ;;  %v6923_v27 = vld [vmem:[#allocation6 + $0x7c8] sm:$0xff]  ;;  %v6926_v4 = vld [vmem:[#allocation6 + $0x7d8] sm:$0xff] }
 0x22e   :  { %1529 = vmatprep.subr.mxu0 %v6911_v31  ;;  %1600 = vmatprep.subr.mxu1 %v6914_v41  ;;  %10919 = vst [vmem:[#allocation76_spill] sm:$0xff] %v6923_v27  ;;  %10920 = vst [vmem:[#allocation93_spill] sm:$0xff] %v6926_v4  ;;  %v6929_v31 = vld [vmem:[#allocation6 + $0x7c0] sm:$0xff]  ;;  %v6932_v41 = vld [vmem:[#allocation6 + $0x7d0] sm:$0xff] }
 0x22f   :  { %1530 = vmatpush2.msra.mxu0 %v6917_v39  ;;  %1601 = vmatpush2.msra.mxu1 %v6920_v1  ;;  %10921 = vst [vmem:[#allocation78_spill] sm:$0xff] %v6929_v31  ;;  %10922 = vst [vmem:[#allocation95_spill] sm:$0xff] %v6932_v41  ;;  %v6935_v39 = vld [vmem:[#allocation6 + $0x788] sm:$0xff]  ;;  %v6938_v1 = vld [vmem:[#allocation6 + $0x798] sm:$0xff] }
 0x230   :  { %1531 = vmatprep.subr.mxu0 %v6923_v27  ;;  %1602 = vmatprep.subr.mxu1 %v6926_v4  ;;  %10923 = vst [vmem:[#allocation80_spill] sm:$0xff] %v6935_v39  ;;  %10924 = vst [vmem:[#allocation97_spill] sm:$0xff] %v6938_v1  ;;  %v6941_v27 = vld [vmem:[#allocation6 + $0x780] sm:$0xff]  ;;  %v6944_v4 = vld [vmem:[#allocation6 + $0x790] sm:$0xff] }
 0x231   :  { %1532 = vmatpush2.msra.mxu0 %v6929_v31  ;;  %1603 = vmatpush2.msra.mxu1 %v6932_v41  ;;  %10925 = vst [vmem:[#allocation82_spill] sm:$0xff] %v6941_v27  ;;  %10926 = vst [vmem:[#allocation99_spill] sm:$0xff] %v6944_v4  ;;  %v6947_v31 = vld [vmem:[#allocation6 + $0x748] sm:$0xff]  ;;  %v6950_v41 = vld [vmem:[#allocation6 + $0x758] sm:$0xff] }
 0x232   :  { %1533 = vmatprep.subr.mxu0 %v6935_v39  ;;  %1604 = vmatprep.subr.mxu1 %v6938_v1  ;;  %10927 = vst [vmem:[#allocation84_spill] sm:$0xff] %v6947_v31  ;;  %10928 = vst [vmem:[#allocation101_spill] sm:$0xff] %v6950_v41  ;;  %v6953_v39 = vld [vmem:[#allocation6 + $0x740] sm:$0xff]  ;;  %v6956_v1 = vld [vmem:[#allocation6 + $0x750] sm:$0xff] }
 0x233   :  { %1534 = vmatpush2.msra.mxu0 %v6941_v27  ;;  %1605 = vmatpush2.msra.mxu1 %v6944_v4  ;;  %10929 = vst [vmem:[#allocation86_spill] sm:$0xff] %v6953_v39  ;;  %10930 = vst [vmem:[#allocation103_spill] sm:$0xff] %v6956_v1  ;;  %v6959_v27 = vld [vmem:[#allocation6 + $0x708] sm:$0xff]  ;;  %v6962_v4 = vld [vmem:[#allocation6 + $0x718] sm:$0xff] }
 0x234   :  { %1535 = vmatprep.subr.mxu0 %v6947_v31  ;;  %1606 = vmatprep.subr.mxu1 %v6950_v41  ;;  %10931 = vst [vmem:[#allocation88_spill] sm:$0xff] %v6959_v27  ;;  %10932 = vst [vmem:[#allocation105_spill] sm:$0xff] %v6962_v4  ;;  %v6965_v31 = vld [vmem:[#allocation6 + $0x700] sm:$0xff]  ;;  %v6968_v41 = vld [vmem:[#allocation6 + $0x710] sm:$0xff] }
 0x235   :  { %1536 = vmatpush2.msra.mxu0 %v6953_v39  ;;  %1607 = vmatpush2.msra.mxu1 %v6956_v1  ;;  %10933 = vst [vmem:[#allocation90_spill] sm:$0xff] %v6965_v31  ;;  %10934 = vst [vmem:[#allocation107_spill] sm:$0xff] %v6968_v41  ;;  %v6971_v39 = vld [vmem:[#allocation6 + $0x6c8] sm:$0xff]  ;;  %v6974_v1 = vld [vmem:[#allocation6 + $0x6d8] sm:$0xff] }
 0x236   :  { %1537 = vmatprep.subr.mxu0 %v6959_v27  ;;  %1608 = vmatprep.subr.mxu1 %v6962_v4  ;;  %10935 = vst [vmem:[#allocation92_spill] sm:$0xff] %v6971_v39  ;;  %10936 = vst [vmem:[#allocation109_spill] sm:$0xff] %v6974_v1  ;;  %v6977_v27 = vld [vmem:[#allocation6 + $0x6c0] sm:$0xff]  ;;  %v6980_v4 = vld [vmem:[#allocation6 + $0x6d0] sm:$0xff] }
 0x237   :  { %1538 = vmatpush2.msra.mxu0 %v6965_v31  ;;  %1609 = vmatpush2.msra.mxu1 %v6968_v41  ;;  %10937 = vst [vmem:[#allocation94_spill] sm:$0xff] %v6977_v27  ;;  %10938 = vst [vmem:[#allocation111_spill] sm:$0xff] %v6980_v4  ;;  %v6983_v31 = vld [vmem:[#allocation6 + $0x688] sm:$0xff]  ;;  %v6986_v41 = vld [vmem:[#allocation6 + $0x698] sm:$0xff] }
 0x238   :  { %1539 = vmatprep.subr.mxu0 %v6971_v39  ;;  %1610 = vmatprep.subr.mxu1 %v6974_v1  ;;  %10939 = vst [vmem:[#allocation96_spill] sm:$0xff] %v6983_v31  ;;  %10940 = vst [vmem:[#allocation113_spill] sm:$0xff] %v6986_v41  ;;  %v6989_v39 = vld [vmem:[#allocation6 + $0x680] sm:$0xff]  ;;  %v6992_v1 = vld [vmem:[#allocation6 + $0x690] sm:$0xff] }
 0x239   :  { %1540 = vmatpush2.msra.mxu0 %v6977_v27  ;;  %1611 = vmatpush2.msra.mxu1 %v6980_v4  ;;  %10941 = vst [vmem:[#allocation98_spill] sm:$0xff] %v6989_v39  ;;  %10942 = vst [vmem:[#allocation115_spill] sm:$0xff] %v6992_v1  ;;  %v6995_v27 = vld [vmem:[#allocation6 + $0x648] sm:$0xff]  ;;  %v6998_v4 = vld [vmem:[#allocation6 + $0x658] sm:$0xff] }
 0x23a   :  { %1541 = vmatprep.subr.mxu0 %v6983_v31  ;;  %1612 = vmatprep.subr.mxu1 %v6986_v41  ;;  %10943 = vst [vmem:[#allocation100_spill] sm:$0xff] %v6995_v27  ;;  %10944 = vst [vmem:[#allocation117_spill] sm:$0xff] %v6998_v4  ;;  %v7001_v31 = vld [vmem:[#allocation6 + $0x640] sm:$0xff]  ;;  %v7004_v41 = vld [vmem:[#allocation6 + $0x650] sm:$0xff] }
 0x23b   :  { %1542 = vmatpush2.msra.mxu0 %v6989_v39  ;;  %1613 = vmatpush2.msra.mxu1 %v6992_v1  ;;  %10945 = vst [vmem:[#allocation102_spill] sm:$0xff] %v7001_v31  ;;  %10946 = vst [vmem:[#allocation119_spill] sm:$0xff] %v7004_v41  ;;  %v7007_v39 = vld [vmem:[#allocation6 + $0x608] sm:$0xff]  ;;  %v7010_v1 = vld [vmem:[#allocation6 + $0x618] sm:$0xff] }
 0x23c   :  { %1543 = vmatprep.subr.mxu0 %v6995_v27  ;;  %1614 = vmatprep.subr.mxu1 %v6998_v4  ;;  %10947 = vst [vmem:[#allocation104_spill] sm:$0xff] %v7007_v39  ;;  %10948 = vst [vmem:[#allocation121_spill] sm:$0xff] %v7010_v1  ;;  %v7013_v27 = vld [vmem:[#allocation6 + $0x600] sm:$0xff]  ;;  %v7016_v4 = vld [vmem:[#allocation6 + $0x610] sm:$0xff] }
 0x23d   :  { %1544 = vmatpush2.msra.mxu0 %v7001_v31  ;;  %1615 = vmatpush2.msra.mxu1 %v7004_v41  ;;  %10949 = vst [vmem:[#allocation106_spill] sm:$0xff] %v7013_v27  ;;  %10950 = vst [vmem:[#allocation123_spill] sm:$0xff] %v7016_v4  ;;  %v7019_v31 = vld [vmem:[#allocation6 + $0x5c8] sm:$0xff]  ;;  %v7022_v41 = vld [vmem:[#allocation6 + $0x5d8] sm:$0xff] }
 0x23e   :  { %1545 = vmatprep.subr.mxu0 %v7007_v39  ;;  %1616 = vmatprep.subr.mxu1 %v7010_v1  ;;  %10951 = vst [vmem:[#allocation108_spill] sm:$0xff] %v7019_v31  ;;  %10952 = vst [vmem:[#allocation125_spill] sm:$0xff] %v7022_v41  ;;  %v7025_v39 = vld [vmem:[#allocation6 + $0x5c0] sm:$0xff]  ;;  %v7028_v1 = vld [vmem:[#allocation6 + $0x5d0] sm:$0xff] }
 0x23f   :  { %1546 = vmatpush2.msra.mxu0 %v7013_v27  ;;  %1617 = vmatpush2.msra.mxu1 %v7016_v4  ;;  %10953 = vst [vmem:[#allocation110_spill] sm:$0xff] %v7025_v39  ;;  %10954 = vst [vmem:[#allocation127_spill] sm:$0xff] %v7028_v1  ;;  %v7031_v27 = vld [vmem:[#allocation6 + $0x588] sm:$0xff]  ;;  %v7034_v4 = vld [vmem:[#allocation6 + $0x598] sm:$0xff] }
 0x240   :  { %1547 = vmatprep.subr.mxu0 %v7019_v31  ;;  %1618 = vmatprep.subr.mxu1 %v7022_v41  ;;  %10955 = vst [vmem:[#allocation112_spill] sm:$0xff] %v7031_v27  ;;  %10956 = vst [vmem:[#allocation129_spill] sm:$0xff] %v7034_v4  ;;  %v7037_v31 = vld [vmem:[#allocation6 + $0x580] sm:$0xff]  ;;  %v7040_v41 = vld [vmem:[#allocation6 + $0x590] sm:$0xff] }
 0x241   :  { %1548 = vmatpush2.msra.mxu0 %v7025_v39  ;;  %1619 = vmatpush2.msra.mxu1 %v7028_v1  ;;  %10957 = vst [vmem:[#allocation114_spill] sm:$0xff] %v7037_v31  ;;  %10958 = vst [vmem:[#allocation131_spill] sm:$0xff] %v7040_v41  ;;  %v7043_v39 = vld [vmem:[#allocation6 + $0x548] sm:$0xff]  ;;  %v7046_v1 = vld [vmem:[#allocation6 + $0x558] sm:$0xff] }
 0x242   :  { %1549 = vmatprep.subr.mxu0 %v7031_v27  ;;  %1620 = vmatprep.subr.mxu1 %v7034_v4  ;;  %10959 = vst [vmem:[#allocation116_spill] sm:$0xff] %v7043_v39  ;;  %10960 = vst [vmem:[#allocation133_spill] sm:$0xff] %v7046_v1  ;;  %v7049_v27 = vld [vmem:[#allocation6 + $0x540] sm:$0xff]  ;;  %v7052_v4 = vld [vmem:[#allocation6 + $0x550] sm:$0xff] }
 0x243   :  { %1550 = vmatpush2.msra.mxu0 %v7037_v31  ;;  %1621 = vmatpush2.msra.mxu1 %v7040_v41  ;;  %10961 = vst [vmem:[#allocation118_spill] sm:$0xff] %v7049_v27  ;;  %10962 = vst [vmem:[#allocation135_spill] sm:$0xff] %v7052_v4  ;;  %v7055_v31 = vld [vmem:[#allocation6 + $0x508] sm:$0xff]  ;;  %v7058_v41 = vld [vmem:[#allocation6 + $0x518] sm:$0xff] }
 0x244   :  { %1551 = vmatprep.subr.mxu0 %v7043_v39  ;;  %1622 = vmatprep.subr.mxu1 %v7046_v1  ;;  %10963 = vst [vmem:[#allocation120_spill] sm:$0xff] %v7055_v31  ;;  %10964 = vst [vmem:[#allocation137_spill] sm:$0xff] %v7058_v41  ;;  %v7061_v39 = vld [vmem:[#allocation6 + $0x500] sm:$0xff]  ;;  %v7064_v1 = vld [vmem:[#allocation6 + $0x510] sm:$0xff] }
 0x245   :  { %1552 = vmatpush2.msra.mxu0 %v7049_v27  ;;  %1623 = vmatpush2.msra.mxu1 %v7052_v4  ;;  %10965 = vst [vmem:[#allocation122_spill] sm:$0xff] %v7061_v39  ;;  %10966 = vst [vmem:[#allocation139_spill] sm:$0xff] %v7064_v1  ;;  %v7067_v27 = vld [vmem:[#allocation6 + $0x4c8] sm:$0xff]  ;;  %v7070_v4 = vld [vmem:[#allocation6 + $0x4d8] sm:$0xff] }
 0x246   :  { %1553 = vmatprep.subr.mxu0 %v7055_v31  ;;  %1624 = vmatprep.subr.mxu1 %v7058_v41  ;;  %10967 = vst [vmem:[#allocation124_spill] sm:$0xff] %v7067_v27  ;;  %10968 = vst [vmem:[#allocation141_spill] sm:$0xff] %v7070_v4  ;;  %v7073_v31 = vld [vmem:[#allocation6 + $0x4c0] sm:$0xff]  ;;  %v7076_v41 = vld [vmem:[#allocation6 + $0x4d0] sm:$0xff] }
 0x247   :  { %1554 = vmatpush2.msra.mxu0 %v7061_v39  ;;  %1625 = vmatpush2.msra.mxu1 %v7064_v1  ;;  %10969 = vst [vmem:[#allocation126_spill] sm:$0xff] %v7073_v31  ;;  %10970 = vst [vmem:[#allocation128_spill] sm:$0xff] %v7076_v41  ;;  %v7079_v39 = vld [vmem:[#allocation6 + $0x488] sm:$0xff]  ;;  %v7082_v1 = vld [vmem:[#allocation6 + $0x498] sm:$0xff] }
 0x248   :  { %1555 = vmatprep.subr.mxu0 %v7067_v27  ;;  %1626 = vmatprep.subr.mxu1 %v7070_v4  ;;  %10971 = vst [vmem:[#allocation130_spill] sm:$0xff] %v7079_v39  ;;  %10972 = vst [vmem:[#allocation145_spill] sm:$0xff] %v7082_v1  ;;  %v7085_v27 = vld [vmem:[#allocation6 + $0x480] sm:$0xff]  ;;  %v7088_v4 = vld [vmem:[#allocation6 + $0x490] sm:$0xff] }
 0x249   :  { %1556 = vmatpush2.msra.mxu0 %v7073_v31  ;;  %1627 = vmatpush2.msra.mxu1 %v7076_v41  ;;  %10973 = vst [vmem:[#allocation132_spill] sm:$0xff] %v7085_v27  ;;  %10974 = vst [vmem:[#allocation134_spill] sm:$0xff] %v7088_v4  ;;  %v7091_v31 = vld [vmem:[#allocation6 + $0x468] sm:$0xff]  ;;  %v7094_v41 = vld [vmem:[#allocation6 + $0x478] sm:$0xff] }
 0x24a   :  { %1557 = vmatprep.subr.mxu0 %v7079_v39  ;;  %1628 = vmatprep.subr.mxu1 %v7082_v1  ;;  %10975 = vst [vmem:[#allocation148_spill] sm:$0xff] %v7091_v31  ;;  %10976 = vst [vmem:[#allocation136_spill] sm:$0xff] %v7094_v41 }
 0x24b   :  { %1558 = vmatpush2.msra.mxu0 %v7085_v27  ;;  %1629 = vmatpush2.msra.mxu1 %v7088_v4 }
 0x24c   :  { %1637 = vmatprep.subr.mxu0 %v7091_v31  ;;  %1708 = vmatprep.subr.mxu1 %v7094_v41 }
 0x28a   :  { %v1185_v39 = vpop.f32.mrf.mxu0  ;;  %v1256_v17 = vpop.f32.mrf.mxu1 }
 0x28b   :  { %v1411_v35 = vrot.slane %v1185_v39, 4  ;;  %v1413_v10 = vrot.slane %v1256_v17, 4 }
 0x28c   :  { %v1187_v1 = vpop.f32.mrf.mxu0  ;;  %v1258_v9 = vpop.f32.mrf.mxu1 }
 0x28d   :  { %v1412_v50 = vrot.slane %v1187_v1, 4  ;;  %v1427_v27 = vadd.f32 %v1411_v35, %v6521_v12  ;;  %v1429_v48 = vadd.f32 %v1413_v10, %v6514_v16  ;;  %v1414_v4 = vrot.slane %v1258_v9, 4 }
 0x28f   :  { %v1428_v38 = vadd.f32 %v1412_v50, %v6527_v26  ;;  %v4221_v46 = vmul.f32 -1.442695, %v1427_v27  ;;  %v4223_v31 = vmul.f32 -1.442695, %v1429_v48  ;;  %v1430_v44 = vadd.f32 %v1414_v4, %v6517_v62 }
 0x291   :  { %v4222_v42 = vmul.f32 -1.442695, %v1428_v38  ;;  %4350 = vpow2.f32 %v4221_v46  ;;  %v4224_v41 = vmul.f32 -1.442695, %v1430_v44 }
 0x292   :  { %4352 = vpow2.f32 %v4223_v31 }
 0x293   :  { %4354 = vpow2.f32 %v4222_v42 }
 0x294   :  { %4356 = vpow2.f32 %v4224_v41 }
 0x29e   :  { %v4351_v17 = vpop.eup %4350 }
 0x29f   :  { %v4353_v39 = vpop.eup %4352  ;;  %v1441_v40 = vadd.f32 1.0, %v4351_v17 }
 0x2a0   :  { %v4355_v1 = vpop.eup %4354  ;;  %v1453_v12 = vadd.f32 1.0, %v4353_v39 }
 0x2a1   :  { %v4357_v35 = vpop.eup %4356  ;;  %v1442_v16 = vadd.f32 1.0, %v4355_v1  ;;  %4358 = vrcp.f32 %v1441_v40 }
 0x2a2   :  { %4360 = vrcp.f32 %v1453_v12  ;;  %v1454_v62 = vadd.f32 1.0, %v4357_v35 }
 0x2a3   :  { %4362 = vrcp.f32 %v1442_v16 }
 0x2ae   :  { %v4359_v17 = vpop.eup %4358 }
 0x2af   :  { %v4361_v39 = vpop.eup %4360 }
 0x2b0   :  { %v4363_v1 = vpop.eup %4362 }
 0x2cb   :  { %v1327_v9 = vpop.f32.mrf.mxu0  ;;  %v1398_v10 = vpop.f32.mrf.mxu1 }
 0x2cc   :  { %v1415_v26 = vrot.slane %v1327_v9, 4  ;;  %v1417_v48 = vrot.slane %v1398_v10, 4  ;;  %v1476_v10 = vrot.slane %v6555_v14, 4 }
 0x2cd   :  { %v1329_v38 = vpop.f32.mrf.mxu0  ;;  %v1400_v46 = vpop.f32.mrf.mxu1 }
 0x2ce   :  { %v1431_v44 = vadd.f32 %v1415_v26, %v6546_v28  ;;  %v1433_v42 = vadd.f32 %v1417_v48, %v6533_v60  ;;  %v1416_v50 = vrot.slane %v1329_v38, 4  ;;  %v1418_v27 = vrot.slane %v1400_v46, 4 }
 0x2cf   :  { %v1475_v28 = vrot.slane %v6553_v21, 4 }
 0x2d0   :  { %4364 = vtanh.f32 %v1431_v44  ;;  %v4225_v4 = vmul.f32 -1.442695, %v1433_v42  ;;  %v1432_v31 = vadd.f32 %v1416_v50, %v6549_v63  ;;  %v1434_v41 = vadd.f32 %v1418_v27, %v6535_v34 }
 0x2d1   :  { %4366 = vrcp.f32 %v1454_v62  ;;  %v1479_v35 = vmul.f32 %v4361_v39, %v1475_v28  ;;  %v7203_v39 = vld [vmem:[#allocation6 + $0x128] sm:$0xff]  ;;  %v7209_v28 = vld [vmem:[#allocation6 + $0x120] sm:$0xff] }
 0x2d2   :  { %4368 = vpow2.f32 %v4225_v4  ;;  %v4226_v40 = vmul.f32 -1.442695, %v1434_v41 }
 0x2d3   :  { %4370 = vtanh.f32 %v1432_v31 }
 0x2d4   :  { %4372 = vpow2.f32 %v4226_v40  ;;  %v7197_v40 = vld [vmem:[#allocation6 + $0x160] sm:$0xff] }
 0x2dd   :  { %v4365_v60 = vpop.eup %4364 }
 0x2de   :  { %v4367_v12 = vpop.eup %4366  ;;  %v1481_v16 = vmul.f32 %v4365_v60, %v4359_v17  ;;  %v7200_v17 = vld [vmem:[#allocation6 + $0x170] sm:$0xff] }
 0x2df   :  { %v4369_v9 = vpop.eup %4368  ;;  %v1480_v62 = vmul.f32 %v4367_v12, %v1476_v10  ;;  %v7212_v60 = vld [vmem:[#allocation6 + $0x130] sm:$0xff]  ;;  %v7215_v12 = vld [vmem:[#allocation6 + $0xe8] sm:$0xff] }
 0x2e0   :  { %v4371_v63 = vpop.eup %4370  ;;  %v7107_v26 = vadd.f32 %v1481_v16, %v1479_v35  ;;  %v1467_v34 = vadd.f32 1.0, %v4369_v9  ;;  %v7218_v35 = vld [vmem:[#allocation6 + $0xf8] sm:$0xff]  ;;  %v7221_v16 = vld [vmem:[#allocation6 + $0xe0] sm:$0xff]  ;;  %v7224_v9 = vld [vmem:[#allocation6 + $0xf0] sm:$0xff] }
 0x2e1   :  { %v4373_v48 = vpop.eup %4372  ;;  %v1482_v38 = vmul.f32 %v4371_v63, %v4363_v1  ;;  %v7206_v1 = vld [vmem:[#allocation6 + $0x138] sm:$0xff]  ;;  %v7227_v10 = vld [vmem:[#allocation6 + $0xa8] sm:$0xff] }
 0x2e2   :  { %4374 = vtanh.f32 %v7107_v26  ;;  %v1468_v46 = vadd.f32 1.0, %v4373_v48  ;;  %v7230_v63 = vld [vmem:[#allocation6 + $0xb8] sm:$0xff]  ;;  %v7236_v48 = vld [vmem:[#allocation6 + $0xb0] sm:$0xff] }
 0x2e3   :  { %4376 = vrcp.f32 %v1467_v34  ;;  %v7110_v44 = vadd.f32 %v1482_v38, %v1480_v62  ;;  %v7233_v34 = vld [vmem:[#allocation6 + $0xa0] sm:$0xff]  ;;  %v7239_v62 = vld [vmem:[#allocation6 + $0x868] sm:$0xff]  ;;  %v7242_v38 = vld [vmem:[#allocation6 + $0x878] sm:$0xff] }
 0x2e4   :  { %4378 = vrcp.f32 %v1468_v46  ;;  %v7245_v46 = vld [vmem:[#allocation6 + $0x860] sm:$0xff] }
 0x2e5   :  { %4380 = vtanh.f32 %v7110_v44 }
 0x2ef   :  { %v4375_v21 = vpop.eup %4374 }
 0x2f0   :  { %v4377_v42 = vpop.eup %4376 }
 0x2f1   :  { %v4379_v50 = vpop.eup %4378  ;;  %v1487_v27 = vmul.f32 %v4377_v42, %v4375_v21  ;;  %v7248_v21 = vld [vmem:[#allocation6 + $0x870] sm:$0xff]  ;;  %v7251_v42 = vld [vmem:[#allocation6 + $0x828] sm:$0xff] }
 0x2f2   :  { %v4381_v14 = vpop.eup %4380 }
 0x2f3   :  { %v1488_v4 = vmul.f32 %v4381_v14, %v4379_v50  ;;  %v7113_v41 = vrot.slane %v1487_v27, 4  ;;  %v7254_v50 = vld [vmem:[#allocation6 + $0x838] sm:$0xff]  ;;  %v7257_v14 = vld [vmem:[#allocation6 + $0x820] sm:$0xff]  ;;  %v7260_v27 = vld [vmem:[#allocation6 + $0x830] sm:$0xff] }
 0x2f5   :  { %v1492_v31 = vrot.slane %v1488_v4, 4  ;;  %v7263_v4 = vld [vmem:[#allocation6 + $0x7e8] sm:$0xff] }
 0x2f7   :  { %1559 = vmatprep.mubr.f32.mxu0 %v1492_v31  ;;  %1630 = vmatprep.mubr.f32.mxu1 %v1492_v31 }
 0x2f8   :  { %1560 = vmatmul.mubr.f32.vlgmr.msra.gmra.mxu0 %v7113_v41  ;;  %1631 = vmatmul.mubr.f32.vlgmr.msra.gmra.mxu1 %v7113_v41 }
 0x2f9   :  { %1638 = vmatpush1.msra.mxu0 %v6563_v25  ;;  %1709 = vmatpush1.msra.mxu1 %v6566_v15  ;;  %v7133_v25 = vld [vmem:[#allocation6 + $0x360] sm:$0xff]  ;;  %v7137_v15 = vld [vmem:[#allocation6 + $0x328] sm:$0xff] }
 0x2fa   :  { %1639 = vmatprep.subr.mxu0 %v6569_v7  ;;  %1701 = vmatprep.mubr.f32.mxu0 %v1492_v31  ;;  %v7141_v7 = vld [vmem:[#allocation6 + $0x320] sm:$0xff] }
 0x2fb   :  { %1710 = vmatprep.subr.mxu1 %v6572_v5  ;;  %1772 = vmatprep.mubr.f32.mxu1 %v1492_v31  ;;  %v7145_v5 = vld [vmem:[#allocation6 + $0x2e8] sm:$0xff]  ;;  %v7266_v31 = vld [vmem:[#allocation6 + $0x7f8] sm:$0xff] }
 0x2fc   :  { %1640 = vmatpush1.msra.mxu0 %v6575_v58  ;;  %1711 = vmatpush1.msra.mxu1 %v6578_v36  ;;  %v7149_v58 = vld [vmem:[#allocation6 + $0x2e0] sm:$0xff]  ;;  %v7169_v36 = vld [vmem:[#allocation6 + $0x228] sm:$0xff] }
 0x2fd   :  { %1641 = vmatprep.subr.mxu0 %v6581_v2  ;;  %1712 = vmatprep.subr.mxu1 %v6584_v22  ;;  %v7173_v2 = vld [vmem:[#allocation6 + $0x220] sm:$0xff]  ;;  %v10979_v22 = vld [vmem:[#allocation39_spill] sm:$0xff] }
 0x2fe   :  { %1642 = vmatpush1.msra.mxu0 %v6587_v51  ;;  %1713 = vmatpush1.msra.mxu1 %v6590_v52  ;;  %v7177_v51 = vld [vmem:[#allocation6 + $0x1e8] sm:$0xff]  ;;  %v7181_v52 = vld [vmem:[#allocation6 + $0x1e0] sm:$0xff] }
 0x2ff   :  { %1643 = vmatprep.subr.mxu0 %v6593_v54  ;;  %1714 = vmatprep.subr.mxu1 %v6596_v30  ;;  %v10981_v54 = vld [vmem:[#allocation41_spill] sm:$0xff] }
 0x300   :  { %1644 = vmatpush1.msra.mxu0 %v6599_v19  ;;  %1715 = vmatpush1.msra.mxu1 %v6602_v56  ;;  %v7185_v30 = vld [vmem:[#allocation6 + $0x1a8] sm:$0xff]  ;;  %v10982_v19 = vld [vmem:[#allocation50_spill] sm:$0xff]  ;;  %v7189_v56 = vld [vmem:[#allocation6 + $0x1a0] sm:$0xff] }
 0x301   :  { %1645 = vmatprep.subr.mxu0 %v6605_v11  ;;  %1716 = vmatprep.subr.mxu1 %v6608_v23  ;;  %v10983_v11 = vld [vmem:[#allocation43_spill] sm:$0xff]  ;;  %v7193_v23 = vld [vmem:[#allocation6 + $0x168] sm:$0xff] }
 0x302   :  { %1646 = vmatpush1.msra.mxu0 %v7133_v25  ;;  %1717 = vmatpush1.msra.mxu1 %v6612_v61  ;;  %v7153_v61 = vld [vmem:[#allocation6 + $0x2a8] sm:$0xff] }
 0x303   :  { %1647 = vmatprep.subr.mxu0 %v7137_v15  ;;  %1718 = vmatprep.subr.mxu1 %v6616_v18  ;;  %v7157_v18 = vld [vmem:[#allocation6 + $0x2a0] sm:$0xff] }
 0x304   :  { %1648 = vmatpush1.msra.mxu0 %v7141_v7  ;;  %1719 = vmatpush1.msra.mxu1 %v6620_v32  ;;  %v7161_v32 = vld [vmem:[#allocation6 + $0x268] sm:$0xff] }
 0x305   :  { %1649 = vmatprep.subr.mxu0 %v7145_v5  ;;  %1720 = vmatprep.subr.mxu1 %v6624_v3  ;;  %v7165_v3 = vld [vmem:[#allocation6 + $0x260] sm:$0xff] }
 0x306   :  { %1650 = vmatpush1.msra.mxu0 %v7149_v58  ;;  %1721 = vmatpush1.msra.mxu1 %v6628_v59  ;;  %v10977_v59 = vld [vmem:[#allocation36_spill] sm:$0xff] }
 0x307   :  { %1651 = vmatprep.subr.mxu0 %v7153_v61  ;;  %1722 = vmatprep.subr.mxu1 %v6632_v55  ;;  %v10978_v55 = vld [vmem:[#allocation46_spill] sm:$0xff] }
 0x308   :  { %1652 = vmatpush1.msra.mxu0 %v7157_v18  ;;  %1723 = vmatpush1.msra.mxu1 %v6636_v13  ;;  %v10984_v13 = vld [vmem:[#allocation52_spill] sm:$0xff] }
 0x309   :  { %1653 = vmatprep.subr.mxu0 %v7161_v32  ;;  %1724 = vmatprep.subr.mxu1 %v6640_v57  ;;  %v10980_v57 = vld [vmem:[#allocation48_spill] sm:$0xff] }
 0x30a   :  { %1654 = vmatpush1.msra.mxu0 %v7165_v3  ;;  %1725 = vmatpush1.msra.mxu1 %v10977_v59  ;;  %v7269_v59 = vld [vmem:[#allocation6 + $0x7e0] sm:$0xff] }
 0x30b   :  { %1655 = vmatprep.subr.mxu0 %v7169_v36  ;;  %1726 = vmatprep.subr.mxu1 %v10978_v55  ;;  %v7272_v55 = vld [vmem:[#allocation6 + $0x7f0] sm:$0xff] }
 0x30c   :  { %1656 = vmatpush1.msra.mxu0 %v7173_v2  ;;  %1727 = vmatpush1.msra.mxu1 %v10979_v22  ;;  %10985 = vst [vmem:[#allocation150_spill] sm:$0xff] %v7272_v55  ;;  %v7275_v22 = vld [vmem:[#allocation6 + $0x7a8] sm:$0xff] }
 0x30d   :  { %1657 = vmatprep.subr.mxu0 %v7177_v51  ;;  %1728 = vmatprep.subr.mxu1 %v10980_v57  ;;  %10986 = vst [vmem:[#allocation138_spill] sm:$0xff] %v7275_v22  ;;  %v7278_v57 = vld [vmem:[#allocation6 + $0x7b8] sm:$0xff] }
 0x30e   :  { %1658 = vmatpush1.msra.mxu0 %v7181_v52  ;;  %1729 = vmatpush1.msra.mxu1 %v10981_v54  ;;  %10987 = vst [vmem:[#allocation151_spill] sm:$0xff] %v7278_v57  ;;  %v7281_v54 = vld [vmem:[#allocation6 + $0x7a0] sm:$0xff] }
 0x30f   :  { %1659 = vmatprep.subr.mxu0 %v7185_v30  ;;  %1730 = vmatprep.subr.mxu1 %v10982_v19  ;;  %10988 = vst [vmem:[#allocation140_spill] sm:$0xff] %v7281_v54  ;;  %v7284_v19 = vld [vmem:[#allocation6 + $0x7b0] sm:$0xff] }
 0x310   :  { %1660 = vmatpush1.msra.mxu0 %v7189_v56  ;;  %1731 = vmatpush1.msra.mxu1 %v10983_v11  ;;  %10989 = vst [vmem:[#allocation152_spill] sm:$0xff] %v7284_v19  ;;  %v7287_v11 = vld [vmem:[#allocation6 + $0x768] sm:$0xff] }
 0x311   :  { %1661 = vmatprep.subr.mxu0 %v7193_v23  ;;  %1732 = vmatprep.subr.mxu1 %v10984_v13  ;;  %10990 = vst [vmem:[#allocation142_spill] sm:$0xff] %v7287_v11  ;;  %v7290_v13 = vld [vmem:[#allocation6 + $0x778] sm:$0xff] }
 0x312   :  { %1662 = vmatpush1.msra.mxu0 %v7197_v40  ;;  %1733 = vmatpush1.msra.mxu1 %v7200_v17  ;;  %10991 = vst [vmem:[#allocation153_spill] sm:$0xff] %v7290_v13 }
 0x313   :  { %1663 = vmatprep.subr.mxu0 %v7203_v39  ;;  %1734 = vmatprep.subr.mxu1 %v7206_v1 }
 0x314   :  { %1664 = vmatpush1.msra.mxu0 %v7209_v28  ;;  %1735 = vmatpush1.msra.mxu1 %v7212_v60 }
 0x315   :  { %1665 = vmatprep.subr.mxu0 %v7215_v12  ;;  %1736 = vmatprep.subr.mxu1 %v7218_v35 }
 0x316   :  { %1666 = vmatpush1.msra.mxu0 %v7221_v16  ;;  %1737 = vmatpush1.msra.mxu1 %v7224_v9 }
 0x317   :  { %1667 = vmatprep.subr.mxu0 %v7227_v10  ;;  %1738 = vmatprep.subr.mxu1 %v7230_v63 }
 0x318   :  { %1668 = vmatpush1.msra.mxu0 %v7233_v34  ;;  %1739 = vmatpush1.msra.mxu1 %v7236_v48 }
 0x319   :  { %1669 = vmatprep.subr.mxu0 %v7239_v62  ;;  %1740 = vmatprep.subr.mxu1 %v7242_v38 }
 0x31a   :  { %1670 = vmatpush2.msra.mxu0 %v7245_v46  ;;  %1741 = vmatpush2.msra.mxu1 %v7248_v21 }
 0x31b   :  { %1671 = vmatprep.subr.mxu0 %v7251_v42  ;;  %1742 = vmatprep.subr.mxu1 %v7254_v50 }
 0x31c   :  { %1672 = vmatpush2.msra.mxu0 %v7257_v14  ;;  %1743 = vmatpush2.msra.mxu1 %v7260_v27 }
 0x31d   :  { %1673 = vmatprep.subr.mxu0 %v7263_v4  ;;  %1744 = vmatprep.subr.mxu1 %v7266_v31 }
 0x31e   :  { %1674 = vmatpush2.msra.mxu0 %v7269_v59  ;;  %1745 = vmatpush2.msra.mxu1 %v7272_v55  ;;  %v11160_v55 = vld [vmem:[#allocation28_spill] sm:$0xff] }
 0x31f   :  { %1675 = vmatprep.subr.mxu0 %v7275_v22  ;;  %1746 = vmatprep.subr.mxu1 %v7278_v57  ;;  %v7293_v22 = vld [vmem:[#allocation6 + $0x760] sm:$0xff]  ;;  %v7296_v57 = vld [vmem:[#allocation6 + $0x770] sm:$0xff] }
 0x320   :  { %1676 = vmatpush2.msra.mxu0 %v7281_v54  ;;  %1747 = vmatpush2.msra.mxu1 %v7284_v19  ;;  %10992 = vst [vmem:[#allocation143_spill] sm:$0xff] %v7293_v22  ;;  %10993 = vst [vmem:[#allocation144_spill] sm:$0xff] %v7296_v57  ;;  %v7299_v54 = vld [vmem:[#allocation6 + $0x728] sm:$0xff]  ;;  %v7302_v19 = vld [vmem:[#allocation6 + $0x738] sm:$0xff] }
 0x321   :  { %1677 = vmatprep.subr.mxu0 %v7287_v11  ;;  %1748 = vmatprep.subr.mxu1 %v7290_v13  ;;  %10994 = vst [vmem:[#allocation154_spill] sm:$0xff] %v7299_v54  ;;  %10995 = vst [vmem:[#allocation146_spill] sm:$0xff] %v7302_v19  ;;  %v7305_v11 = vld [vmem:[#allocation6 + $0x720] sm:$0xff]  ;;  %v7308_v13 = vld [vmem:[#allocation6 + $0x730] sm:$0xff] }
 0x322   :  { %1678 = vmatpush2.msra.mxu0 %v7293_v22  ;;  %1749 = vmatpush2.msra.mxu1 %v7296_v57  ;;  %10996 = vst [vmem:[#allocation147_spill] sm:$0xff] %v7305_v11  ;;  %10997 = vst [vmem:[#allocation156_spill] sm:$0xff] %v7308_v13  ;;  %v7311_v22 = vld [vmem:[#allocation6 + $0x6e8] sm:$0xff]  ;;  %v7314_v57 = vld [vmem:[#allocation6 + $0x6f8] sm:$0xff] }
 0x323   :  { %1679 = vmatprep.subr.mxu0 %v7299_v54  ;;  %1750 = vmatprep.subr.mxu1 %v7302_v19  ;;  %10998 = vst [vmem:[#allocation149_spill] sm:$0xff] %v7311_v22  ;;  %10999 = vst [vmem:[#allocation155_spill] sm:$0xff] %v7314_v57  ;;  %v7317_v54 = vld [vmem:[#allocation6 + $0x6e0] sm:$0xff]  ;;  %v7320_v19 = vld [vmem:[#allocation6 + $0x6f0] sm:$0xff] }
 0x324   :  { %1680 = vmatpush2.msra.mxu0 %v7305_v11  ;;  %1751 = vmatpush2.msra.mxu1 %v7308_v13  ;;  %11000 = vst [vmem:[#allocation161_spill] sm:$0xff] %v7317_v54  ;;  %11001 = vst [vmem:[#allocation157_spill] sm:$0xff] %v7320_v19  ;;  %v7323_v11 = vld [vmem:[#allocation6 + $0x6a8] sm:$0xff]  ;;  %v7326_v13 = vld [vmem:[#allocation6 + $0x6b8] sm:$0xff] }
 0x325   :  { %1681 = vmatprep.subr.mxu0 %v7311_v22  ;;  %1752 = vmatprep.subr.mxu1 %v7314_v57  ;;  %11002 = vst [vmem:[#allocation163_spill] sm:$0xff] %v7323_v11  ;;  %11003 = vst [vmem:[#allocation158_spill] sm:$0xff] %v7326_v13  ;;  %v7329_v22 = vld [vmem:[#allocation6 + $0x6a0] sm:$0xff]  ;;  %v7332_v57 = vld [vmem:[#allocation6 + $0x6b0] sm:$0xff] }
 0x326   :  { %1682 = vmatpush2.msra.mxu0 %v7317_v54  ;;  %1753 = vmatpush2.msra.mxu1 %v7320_v19  ;;  %11004 = vst [vmem:[#allocation159_spill] sm:$0xff] %v7329_v22  ;;  %11005 = vst [vmem:[#allocation160_spill] sm:$0xff] %v7332_v57  ;;  %v7335_v54 = vld [vmem:[#allocation6 + $0x668] sm:$0xff]  ;;  %v7338_v19 = vld [vmem:[#allocation6 + $0x678] sm:$0xff] }
 0x327   :  { %1683 = vmatprep.subr.mxu0 %v7323_v11  ;;  %1754 = vmatprep.subr.mxu1 %v7326_v13  ;;  %11006 = vst [vmem:[#allocation162_spill] sm:$0xff] %v7335_v54  ;;  %11007 = vst [vmem:[#allocation164_spill] sm:$0xff] %v7338_v19  ;;  %v7341_v11 = vld [vmem:[#allocation6 + $0x660] sm:$0xff]  ;;  %v7344_v13 = vld [vmem:[#allocation6 + $0x670] sm:$0xff] }
 0x328   :  { %1684 = vmatpush2.msra.mxu0 %v7329_v22  ;;  %1755 = vmatpush2.msra.mxu1 %v7332_v57  ;;  %11008 = vst [vmem:[#allocation165_spill] sm:$0xff] %v7341_v11  ;;  %11009 = vst [vmem:[#allocation166_spill] sm:$0xff] %v7344_v13  ;;  %v7347_v22 = vld [vmem:[#allocation6 + $0x628] sm:$0xff]  ;;  %v7350_v57 = vld [vmem:[#allocation6 + $0x638] sm:$0xff] }
 0x329   :  { %1685 = vmatprep.subr.mxu0 %v7335_v54  ;;  %1756 = vmatprep.subr.mxu1 %v7338_v19  ;;  %11010 = vst [vmem:[#allocation36_spill] sm:$0xff] %v7347_v22  ;;  %11011 = vst [vmem:[#allocation46_spill] sm:$0xff] %v7350_v57  ;;  %v7353_v54 = vld [vmem:[#allocation6 + $0x620] sm:$0xff]  ;;  %v7356_v19 = vld [vmem:[#allocation6 + $0x630] sm:$0xff] }
 0x32a   :  { %1686 = vmatpush2.msra.mxu0 %v7341_v11  ;;  %1757 = vmatpush2.msra.mxu1 %v7344_v13  ;;  %11012 = vst [vmem:[#allocation39_spill] sm:$0xff] %v7353_v54  ;;  %11013 = vst [vmem:[#allocation48_spill] sm:$0xff] %v7356_v19  ;;  %v7359_v11 = vld [vmem:[#allocation6 + $0x5e8] sm:$0xff]  ;;  %v7362_v13 = vld [vmem:[#allocation6 + $0x5f8] sm:$0xff] }
 0x32b   :  { %1687 = vmatprep.subr.mxu0 %v7347_v22  ;;  %1758 = vmatprep.subr.mxu1 %v7350_v57  ;;  %11014 = vst [vmem:[#allocation41_spill] sm:$0xff] %v7359_v11  ;;  %11015 = vst [vmem:[#allocation50_spill] sm:$0xff] %v7362_v13  ;;  %v7365_v22 = vld [vmem:[#allocation6 + $0x5e0] sm:$0xff]  ;;  %v7368_v57 = vld [vmem:[#allocation6 + $0x5f0] sm:$0xff] }
 0x32c   :  { %1688 = vmatpush2.msra.mxu0 %v7353_v54  ;;  %1759 = vmatpush2.msra.mxu1 %v7356_v19  ;;  %11016 = vst [vmem:[#allocation43_spill] sm:$0xff] %v7365_v22  ;;  %11017 = vst [vmem:[#allocation52_spill] sm:$0xff] %v7368_v57  ;;  %v7371_v54 = vld [vmem:[#allocation6 + $0x5a8] sm:$0xff]  ;;  %v7374_v19 = vld [vmem:[#allocation6 + $0x5b8] sm:$0xff] }
 0x32d   :  { %1689 = vmatprep.subr.mxu0 %v7359_v11  ;;  %1760 = vmatprep.subr.mxu1 %v7362_v13  ;;  %11018 = vst [vmem:[#allocation167_spill] sm:$0xff] %v7371_v54  ;;  %11019 = vst [vmem:[#allocation168_spill] sm:$0xff] %v7374_v19  ;;  %v7377_v11 = vld [vmem:[#allocation6 + $0x5a0] sm:$0xff]  ;;  %v7380_v13 = vld [vmem:[#allocation6 + $0x5b0] sm:$0xff] }
 0x32e   :  { %1690 = vmatpush2.msra.mxu0 %v7365_v22  ;;  %1761 = vmatpush2.msra.mxu1 %v7368_v57  ;;  %11020 = vst [vmem:[#allocation169_spill] sm:$0xff] %v7377_v11  ;;  %11021 = vst [vmem:[#allocation170_spill] sm:$0xff] %v7380_v13  ;;  %v7383_v22 = vld [vmem:[#allocation6 + $0x568] sm:$0xff]  ;;  %v7386_v57 = vld [vmem:[#allocation6 + $0x578] sm:$0xff] }
 0x32f   :  { %1691 = vmatprep.subr.mxu0 %v7371_v54  ;;  %1762 = vmatprep.subr.mxu1 %v7374_v19  ;;  %11022 = vst [vmem:[#allocation171_spill] sm:$0xff] %v7383_v22  ;;  %11023 = vst [vmem:[#allocation172_spill] sm:$0xff] %v7386_v57  ;;  %v7389_v54 = vld [vmem:[#allocation6 + $0x560] sm:$0xff]  ;;  %v7392_v19 = vld [vmem:[#allocation6 + $0x570] sm:$0xff] }
 0x330   :  { %1692 = vmatpush2.msra.mxu0 %v7377_v11  ;;  %1763 = vmatpush2.msra.mxu1 %v7380_v13  ;;  %11024 = vst [vmem:[#allocation173_spill] sm:$0xff] %v7389_v54  ;;  %11025 = vst [vmem:[#allocation174_spill] sm:$0xff] %v7392_v19  ;;  %v7395_v11 = vld [vmem:[#allocation6 + $0x528] sm:$0xff]  ;;  %v7398_v13 = vld [vmem:[#allocation6 + $0x538] sm:$0xff] }
 0x331   :  { %1693 = vmatprep.subr.mxu0 %v7383_v22  ;;  %1764 = vmatprep.subr.mxu1 %v7386_v57  ;;  %11026 = vst [vmem:[#allocation175_spill] sm:$0xff] %v7395_v11  ;;  %11027 = vst [vmem:[#allocation176_spill] sm:$0xff] %v7398_v13  ;;  %v7401_v22 = vld [vmem:[#allocation6 + $0x520] sm:$0xff]  ;;  %v7404_v57 = vld [vmem:[#allocation6 + $0x530] sm:$0xff] }
 0x332   :  { %1694 = vmatpush2.msra.mxu0 %v7389_v54  ;;  %1765 = vmatpush2.msra.mxu1 %v7392_v19  ;;  %11028 = vst [vmem:[#allocation177_spill] sm:$0xff] %v7401_v22  ;;  %11029 = vst [vmem:[#allocation178_spill] sm:$0xff] %v7404_v57  ;;  %v7407_v54 = vld [vmem:[#allocation6 + $0x4e8] sm:$0xff]  ;;  %v7410_v19 = vld [vmem:[#allocation6 + $0x4f8] sm:$0xff] }
 0x333   :  { %1695 = vmatprep.subr.mxu0 %v7395_v11  ;;  %1766 = vmatprep.subr.mxu1 %v7398_v13  ;;  %11030 = vst [vmem:[#allocation179_spill] sm:$0xff] %v7407_v54  ;;  %11031 = vst [vmem:[#allocation180_spill] sm:$0xff] %v7410_v19  ;;  %v7413_v11 = vld [vmem:[#allocation6 + $0x4e0] sm:$0xff]  ;;  %v7416_v13 = vld [vmem:[#allocation6 + $0x4f0] sm:$0xff] }
 0x334   :  { %1696 = vmatpush2.msra.mxu0 %v7401_v22  ;;  %1767 = vmatpush2.msra.mxu1 %v7404_v57  ;;  %11032 = vst [vmem:[#allocation181_spill] sm:$0xff] %v7413_v11  ;;  %11033 = vst [vmem:[#allocation182_spill] sm:$0xff] %v7416_v13  ;;  %v7419_v22 = vld [vmem:[#allocation6 + $0x4a8] sm:$0xff]  ;;  %v7422_v57 = vld [vmem:[#allocation6 + $0x4b8] sm:$0xff] }
 0x335   :  { %1697 = vmatprep.subr.mxu0 %v7407_v54  ;;  %1768 = vmatprep.subr.mxu1 %v7410_v19  ;;  %11034 = vst [vmem:[#allocation183_spill] sm:$0xff] %v7419_v22  ;;  %11035 = vst [vmem:[#allocation184_spill] sm:$0xff] %v7422_v57  ;;  %v7425_v54 = vld [vmem:[#allocation6 + $0x4a0] sm:$0xff]  ;;  %v7428_v19 = vld [vmem:[#allocation6 + $0x4b0] sm:$0xff] }
 0x336   :  { %1698 = vmatpush2.msra.mxu0 %v7413_v11  ;;  %1769 = vmatpush2.msra.mxu1 %v7416_v13  ;;  %11036 = vst [vmem:[#allocation185_spill] sm:$0xff] %v7425_v54  ;;  %11037 = vst [vmem:[#allocation186_spill] sm:$0xff] %v7428_v19  ;;  %v7433_v13 = vld [vmem:[#allocation6 + $0x448] sm:$0xff] }
 0x337   :  { %1699 = vmatprep.subr.mxu0 %v7419_v22  ;;  %1770 = vmatprep.subr.mxu1 %v7422_v57  ;;  %11038 = vst [vmem:[#allocation187_spill] sm:$0xff] %v7433_v13  ;;  %v7436_v22 = vld [vmem:[#allocation6 + $0x458] sm:$0xff]  ;;  %v7439_v57 = vld [vmem:[#allocation6 + $0x440] sm:$0xff] }
 0x338   :  { %1700 = vmatpush2.msra.mxu0 %v7425_v54  ;;  %1771 = vmatpush2.msra.mxu1 %v7428_v19  ;;  %11039 = vst [vmem:[#allocation188_spill] sm:$0xff] %v7436_v22  ;;  %11040 = vst [vmem:[#allocation189_spill] sm:$0xff] %v7439_v57  ;;  %v7442_v54 = vld [vmem:[#allocation6 + $0x450] sm:$0xff]  ;;  %v7445_v19 = vld [vmem:[#allocation6 + $0x408] sm:$0xff] }
 0x339   :  { %1702 = vmatmul.mubr.f32.vlgmr.msra.gmra.mxu0 %v7113_v41  ;;  %1773 = vmatmul.mubr.f32.vlgmr.msra.gmra.mxu1 %v7113_v41  ;;  %11041 = vst [vmem:[#allocation190_spill] sm:$0xff] %v7442_v54  ;;  %11042 = vst [vmem:[#allocation191_spill] sm:$0xff] %v7445_v19  ;;  %v7448_v41 = vld [vmem:[#allocation6 + $0x418] sm:$0xff] }
 0x33a   :  { %1841 = vmatprep.subr.mxu0 %v7433_v13  ;;  %1912 = vmatprep.subr.mxu1 %v7436_v22  ;;  %11043 = vst [vmem:[#allocation192_spill] sm:$0xff] %v7448_v41  ;;  %v7451_v13 = vld [vmem:[#allocation6 + $0x400] sm:$0xff]  ;;  %v7454_v22 = vld [vmem:[#allocation6 + $0x410] sm:$0xff] }
 0x33b   :  { %1842 = vmatpush1.msra.mxu0 %v7439_v57  ;;  %1913 = vmatpush1.msra.mxu1 %v7442_v54  ;;  %11044 = vst [vmem:[#allocation193_spill] sm:$0xff] %v7451_v13  ;;  %11045 = vst [vmem:[#allocation194_spill] sm:$0xff] %v7454_v22  ;;  %v7457_v57 = vld [vmem:[#allocation6 + $0x3c8] sm:$0xff]  ;;  %v7460_v54 = vld [vmem:[#allocation6 + $0x3d8] sm:$0xff] }
 0x33c   :  { %1843 = vmatprep.subr.mxu0 %v7445_v19  ;;  %1914 = vmatprep.subr.mxu1 %v7448_v41  ;;  %11046 = vst [vmem:[#allocation195_spill] sm:$0xff] %v7457_v57  ;;  %11047 = vst [vmem:[#allocation196_spill] sm:$0xff] %v7460_v54  ;;  %v7464_v19 = vld [vmem:[#allocation6 + $0x3d0] sm:$0xff] }
 0x33d   :  { %1844 = vmatpush1.msra.mxu0 %v7451_v13  ;;  %1915 = vmatpush1.msra.mxu1 %v7454_v22  ;;  %11048 = vst [vmem:[#allocation197_spill] sm:$0xff] %v7464_v19  ;;  %v7468_v13 = vld [vmem:[#allocation6 + $0x398] sm:$0xff]  ;;  %v7472_v22 = vld [vmem:[#allocation6 + $0x390] sm:$0xff] }
 0x33e   :  { %1845 = vmatprep.subr.mxu0 %v7457_v57  ;;  %1916 = vmatprep.subr.mxu1 %v7460_v54  ;;  %11049 = vst [vmem:[#allocation198_spill] sm:$0xff] %v7468_v13  ;;  %11050 = vst [vmem:[#allocation199_spill] sm:$0xff] %v7472_v22  ;;  %v7476_v54 = vld [vmem:[#allocation6 + $0x358] sm:$0xff] }
 0x33f   :  { %1846 = vmatpush1.msra.mxu0 %v6765_v8  ;;  %1917 = vmatpush1.msra.mxu1 %v7464_v19  ;;  %11051 = vst [vmem:[#allocation200_spill] sm:$0xff] %v7476_v54  ;;  %v7480_v8 = vld [vmem:[#allocation6 + $0x350] sm:$0xff] }
 0x340   :  { %1847 = vmatprep.subr.mxu0 %v6769_v24  ;;  %1918 = vmatprep.subr.mxu1 %v7468_v13  ;;  %11052 = vst [vmem:[#allocation201_spill] sm:$0xff] %v7480_v8  ;;  %v7484_v24 = vld [vmem:[#allocation6 + $0x318] sm:$0xff] }
 0x341   :  { %1848 = vmatpush1.msra.mxu0 %v6773_v43  ;;  %1919 = vmatpush1.msra.mxu1 %v7472_v22  ;;  %11053 = vst [vmem:[#allocation202_spill] sm:$0xff] %v7484_v24  ;;  %v7488_v43 = vld [vmem:[#allocation6 + $0x310] sm:$0xff]  ;;  %v11157_v22 = vld [vmem:[#allocation16_spill] sm:$0xff] }
 0x342   :  { %1849 = vmatprep.subr.mxu0 %v6777_v37  ;;  %1920 = vmatprep.subr.mxu1 %v7476_v54  ;;  %11054 = vst [vmem:[#allocation203_spill] sm:$0xff] %v7488_v43  ;;  %v7492_v37 = vld [vmem:[#allocation6 + $0x2d8] sm:$0xff] }
 0x343   :  { %1850 = vmatpush1.msra.mxu0 %v6781_v20  ;;  %1921 = vmatpush1.msra.mxu1 %v7480_v8  ;;  %11055 = vst [vmem:[#allocation204_spill] sm:$0xff] %v7492_v37  ;;  %v7496_v20 = vld [vmem:[#allocation6 + $0x2d0] sm:$0xff] }
 0x344   :  { %1851 = vmatprep.subr.mxu0 %v6785_v0  ;;  %1922 = vmatprep.subr.mxu1 %v7484_v24  ;;  %11056 = vst [vmem:[#allocation205_spill] sm:$0xff] %v7496_v20  ;;  %v7500_v0 = vld [vmem:[#allocation6 + $0x298] sm:$0xff] }
 0x345   :  { %1852 = vmatpush1.msra.mxu0 %v6789_v53  ;;  %1923 = vmatpush1.msra.mxu1 %v7488_v43  ;;  %11057 = vst [vmem:[#allocation206_spill] sm:$0xff] %v7500_v0  ;;  %v7504_v53 = vld [vmem:[#allocation6 + $0x290] sm:$0xff]  ;;  %v11072_v43 = vld [vmem:[#allocation55_spill] sm:$0xff] }
 0x346   :  { %1853 = vmatprep.subr.mxu0 %v6793_v33  ;;  %1924 = vmatprep.subr.mxu1 %v7492_v37  ;;  %11058 = vst [vmem:[#allocation207_spill] sm:$0xff] %v7504_v53  ;;  %v7508_v33 = vld [vmem:[#allocation6 + $0x258] sm:$0xff]  ;;  %v11069_v37 = vld [vmem:[#allocation60_spill] sm:$0xff] }
 0x347   :  { %1854 = vmatpush1.msra.mxu0 %v6797_v6  ;;  %1925 = vmatpush1.msra.mxu1 %v7496_v20  ;;  %11059 = vst [vmem:[#allocation208_spill] sm:$0xff] %v7508_v33  ;;  %v7512_v6 = vld [vmem:[#allocation6 + $0x250] sm:$0xff]  ;;  %v11066_v20 = vld [vmem:[#allocation49_spill] sm:$0xff] }
 0x348   :  { %1855 = vmatprep.subr.mxu0 %v6801_v45  ;;  %1926 = vmatprep.subr.mxu1 %v7500_v0  ;;  %11060 = vst [vmem:[#allocation209_spill] sm:$0xff] %v7512_v6  ;;  %v11061_v45 = vld [vmem:[#allocation45_spill] sm:$0xff]  ;;  %v7516_v0 = vld [vmem:[#allocation6 + $0x218] sm:$0xff] }
 0x349   :  { %1856 = vmatpush1.msra.mxu0 %v6805_v49  ;;  %1927 = vmatpush1.msra.mxu1 %v7504_v53  ;;  %11062 = vst [vmem:[#allocation45_spill] sm:$0xff] %v7516_v0  ;;  %v11063_v49 = vld [vmem:[#allocation54_spill] sm:$0xff]  ;;  %v11064_v53 = vld [vmem:[#allocation47_spill] sm:$0xff] }
 0x34a   :  { %1857 = vmatprep.subr.mxu0 %v6809_v47  ;;  %1928 = vmatprep.subr.mxu1 %v7508_v33  ;;  %v11065_v47 = vld [vmem:[#allocation56_spill] sm:$0xff]  ;;  %v11067_v33 = vld [vmem:[#allocation58_spill] sm:$0xff] }
 0x34b   :  { %1858 = vmatpush1.msra.mxu0 %v6813_v29  ;;  %1929 = vmatpush1.msra.mxu1 %v7512_v6  ;;  %v11068_v29 = vld [vmem:[#allocation51_spill] sm:$0xff]  ;;  %v11070_v6 = vld [vmem:[#allocation53_spill] sm:$0xff] }
 0x34c   :  { %1859 = vmatprep.subr.mxu0 %v11061_v45  ;;  %1930 = vmatprep.subr.mxu1 %v7516_v0  ;;  %v11071_v45 = vld [vmem:[#allocation62_spill] sm:$0xff]  ;;  %v11073_v0 = vld [vmem:[#allocation64_spill] sm:$0xff] }
 0x34d   :  { %1860 = vmatpush1.msra.mxu0 %v11063_v49  ;;  %1931 = vmatpush1.msra.mxu1 %v11064_v53  ;;  %v11074_v49 = vld [vmem:[#allocation57_spill] sm:$0xff] }
 0x34e   :  { %1861 = vmatprep.subr.mxu0 %v11065_v47  ;;  %1932 = vmatprep.subr.mxu1 %v11066_v20  ;;  %v11075_v53 = vld [vmem:[#allocation65_spill] sm:$0xff]  ;;  %v11076_v47 = vld [vmem:[#allocation59_spill] sm:$0xff]  ;;  %v11077_v20 = vld [vmem:[#allocation66_spill] sm:$0xff] }
 0x34f   :  { %1862 = vmatpush1.msra.mxu0 %v11067_v33  ;;  %1933 = vmatpush1.msra.mxu1 %v11068_v29  ;;  %v11078_v33 = vld [vmem:[#allocation61_spill] sm:$0xff]  ;;  %v11079_v29 = vld [vmem:[#allocation67_spill] sm:$0xff] }
 0x350   :  { %1863 = vmatprep.subr.mxu0 %v11069_v37  ;;  %1934 = vmatprep.subr.mxu1 %v11070_v6  ;;  %v11080_v37 = vld [vmem:[#allocation63_spill] sm:$0xff]  ;;  %v11081_v6 = vld [vmem:[#allocation68_spill] sm:$0xff] }
 0x351   :  { %1864 = vmatpush1.msra.mxu0 %v11071_v45  ;;  %1935 = vmatpush1.msra.mxu1 %v11072_v43  ;;  %v11082_v45 = vld [vmem:[#allocation69_spill] sm:$0xff]  ;;  %v11083_v43 = vld [vmem:[#allocation70_spill] sm:$0xff] }
 0x352   :  { %1865 = vmatprep.subr.mxu0 %v11073_v0  ;;  %1936 = vmatprep.subr.mxu1 %v11074_v49  ;;  %v11084_v0 = vld [vmem:[#allocation71_spill] sm:$0xff]  ;;  %v11085_v49 = vld [vmem:[#allocation72_spill] sm:$0xff] }
 0x353   :  { %1866 = vmatpush1.msra.mxu0 %v11075_v53  ;;  %1937 = vmatpush1.msra.mxu1 %v11076_v47  ;;  %v11086_v53 = vld [vmem:[#allocation73_spill] sm:$0xff]  ;;  %v11087_v47 = vld [vmem:[#allocation74_spill] sm:$0xff] }
 0x354   :  { %1867 = vmatprep.subr.mxu0 %v11077_v20  ;;  %1938 = vmatprep.subr.mxu1 %v11078_v33  ;;  %v11088_v20 = vld [vmem:[#allocation75_spill] sm:$0xff]  ;;  %v11089_v33 = vld [vmem:[#allocation77_spill] sm:$0xff] }
 0x355   :  { %1868 = vmatpush1.msra.mxu0 %v11079_v29  ;;  %1939 = vmatpush1.msra.mxu1 %v11080_v37  ;;  %v11090_v29 = vld [vmem:[#allocation79_spill] sm:$0xff]  ;;  %v11091_v37 = vld [vmem:[#allocation81_spill] sm:$0xff] }
 0x356   :  { %1869 = vmatprep.subr.mxu0 %v11081_v6  ;;  %1940 = vmatprep.subr.mxu1 %v11082_v45  ;;  %v11092_v6 = vld [vmem:[#allocation83_spill] sm:$0xff]  ;;  %v11093_v45 = vld [vmem:[#allocation85_spill] sm:$0xff] }
 0x357   :  { %1870 = vmatpush1.msra.mxu0 %v11083_v43  ;;  %1941 = vmatpush1.msra.mxu1 %v11084_v0  ;;  %v11094_v43 = vld [vmem:[#allocation87_spill] sm:$0xff]  ;;  %v11095_v0 = vld [vmem:[#allocation89_spill] sm:$0xff] }
 0x358   :  { %1871 = vmatprep.subr.mxu0 %v11085_v49  ;;  %1942 = vmatprep.subr.mxu1 %v11086_v53  ;;  %v11096_v49 = vld [vmem:[#allocation91_spill] sm:$0xff]  ;;  %v11097_v53 = vld [vmem:[#allocation76_spill] sm:$0xff] }
 0x359   :  { %1872 = vmatpush1.msra.mxu0 %v11087_v47  ;;  %1943 = vmatpush1.msra.mxu1 %v11088_v20  ;;  %v11098_v47 = vld [vmem:[#allocation93_spill] sm:$0xff]  ;;  %v11099_v20 = vld [vmem:[#allocation78_spill] sm:$0xff] }
 0x35a   :  { %1873 = vmatprep.subr.mxu0 %v11089_v33  ;;  %1944 = vmatprep.subr.mxu1 %v11090_v29  ;;  %v11100_v33 = vld [vmem:[#allocation95_spill] sm:$0xff]  ;;  %v11101_v29 = vld [vmem:[#allocation80_spill] sm:$0xff] }
 0x35b   :  { %1874 = vmatpush2.msra.mxu0 %v11091_v37  ;;  %1945 = vmatpush2.msra.mxu1 %v11092_v6  ;;  %v11102_v37 = vld [vmem:[#allocation97_spill] sm:$0xff]  ;;  %v11103_v6 = vld [vmem:[#allocation82_spill] sm:$0xff] }
 0x35c   :  { %1875 = vmatprep.subr.mxu0 %v11093_v45  ;;  %1946 = vmatprep.subr.mxu1 %v11094_v43  ;;  %v11104_v45 = vld [vmem:[#allocation99_spill] sm:$0xff]  ;;  %v11105_v43 = vld [vmem:[#allocation84_spill] sm:$0xff] }
 0x35d   :  { %1876 = vmatpush2.msra.mxu0 %v11095_v0  ;;  %1947 = vmatpush2.msra.mxu1 %v11096_v49  ;;  %v11106_v0 = vld [vmem:[#allocation101_spill] sm:$0xff]  ;;  %v11107_v49 = vld [vmem:[#allocation86_spill] sm:$0xff] }
 0x35e   :  { %1877 = vmatprep.subr.mxu0 %v11097_v53  ;;  %1948 = vmatprep.subr.mxu1 %v11098_v47  ;;  %v11108_v53 = vld [vmem:[#allocation103_spill] sm:$0xff]  ;;  %v11109_v47 = vld [vmem:[#allocation88_spill] sm:$0xff] }
 0x35f   :  { %1878 = vmatpush2.msra.mxu0 %v11099_v20  ;;  %1949 = vmatpush2.msra.mxu1 %v11100_v33  ;;  %v11110_v20 = vld [vmem:[#allocation105_spill] sm:$0xff]  ;;  %v11111_v33 = vld [vmem:[#allocation90_spill] sm:$0xff] }
 0x360   :  { %1879 = vmatprep.subr.mxu0 %v11101_v29  ;;  %1950 = vmatprep.subr.mxu1 %v11102_v37  ;;  %v11112_v29 = vld [vmem:[#allocation107_spill] sm:$0xff]  ;;  %v11113_v37 = vld [vmem:[#allocation92_spill] sm:$0xff] }
 0x361   :  { %1880 = vmatpush2.msra.mxu0 %v11103_v6  ;;  %1951 = vmatpush2.msra.mxu1 %v11104_v45  ;;  %v11114_v6 = vld [vmem:[#allocation109_spill] sm:$0xff]  ;;  %v11115_v45 = vld [vmem:[#allocation94_spill] sm:$0xff] }
 0x362   :  { %1881 = vmatprep.subr.mxu0 %v11105_v43  ;;  %1952 = vmatprep.subr.mxu1 %v11106_v0  ;;  %v11116_v43 = vld [vmem:[#allocation111_spill] sm:$0xff]  ;;  %v11117_v0 = vld [vmem:[#allocation96_spill] sm:$0xff] }
 0x363   :  { %1882 = vmatpush2.msra.mxu0 %v11107_v49  ;;  %1953 = vmatpush2.msra.mxu1 %v11108_v53  ;;  %v11118_v49 = vld [vmem:[#allocation113_spill] sm:$0xff]  ;;  %v11119_v53 = vld [vmem:[#allocation98_spill] sm:$0xff] }
 0x364   :  { %1883 = vmatprep.subr.mxu0 %v11109_v47  ;;  %1954 = vmatprep.subr.mxu1 %v11110_v20  ;;  %v11120_v47 = vld [vmem:[#allocation115_spill] sm:$0xff]  ;;  %v11121_v20 = vld [vmem:[#allocation100_spill] sm:$0xff] }
 0x365   :  { %1884 = vmatpush2.msra.mxu0 %v11111_v33  ;;  %1955 = vmatpush2.msra.mxu1 %v11112_v29  ;;  %v11122_v33 = vld [vmem:[#allocation117_spill] sm:$0xff]  ;;  %v11123_v29 = vld [vmem:[#allocation102_spill] sm:$0xff] }
 0x366   :  { %1885 = vmatprep.subr.mxu0 %v11113_v37  ;;  %1956 = vmatprep.subr.mxu1 %v11114_v6  ;;  %v11124_v37 = vld [vmem:[#allocation119_spill] sm:$0xff]  ;;  %v11125_v6 = vld [vmem:[#allocation104_spill] sm:$0xff] }
 0x367   :  { %1886 = vmatpush2.msra.mxu0 %v11115_v45  ;;  %1957 = vmatpush2.msra.mxu1 %v11116_v43  ;;  %v11126_v45 = vld [vmem:[#allocation121_spill] sm:$0xff]  ;;  %v11127_v43 = vld [vmem:[#allocation106_spill] sm:$0xff] }
 0x368   :  { %1887 = vmatprep.subr.mxu0 %v11117_v0  ;;  %1958 = vmatprep.subr.mxu1 %v11118_v49  ;;  %v11128_v0 = vld [vmem:[#allocation123_spill] sm:$0xff]  ;;  %v11129_v49 = vld [vmem:[#allocation108_spill] sm:$0xff] }
 0x369   :  { %1888 = vmatpush2.msra.mxu0 %v11119_v53  ;;  %1959 = vmatpush2.msra.mxu1 %v11120_v47  ;;  %v11130_v53 = vld [vmem:[#allocation125_spill] sm:$0xff]  ;;  %v11131_v47 = vld [vmem:[#allocation110_spill] sm:$0xff] }
 0x36a   :  { %1889 = vmatprep.subr.mxu0 %v11121_v20  ;;  %1960 = vmatprep.subr.mxu1 %v11122_v33  ;;  %v11132_v20 = vld [vmem:[#allocation127_spill] sm:$0xff]  ;;  %v11133_v33 = vld [vmem:[#allocation112_spill] sm:$0xff] }
 0x36b   :  { %1890 = vmatpush2.msra.mxu0 %v11123_v29  ;;  %1961 = vmatpush2.msra.mxu1 %v11124_v37  ;;  %v11134_v29 = vld [vmem:[#allocation129_spill] sm:$0xff]  ;;  %v11135_v37 = vld [vmem:[#allocation114_spill] sm:$0xff] }
 0x36c   :  { %1891 = vmatprep.subr.mxu0 %v11125_v6  ;;  %1962 = vmatprep.subr.mxu1 %v11126_v45  ;;  %v11136_v6 = vld [vmem:[#allocation131_spill] sm:$0xff]  ;;  %v11137_v45 = vld [vmem:[#allocation116_spill] sm:$0xff] }
 0x36d   :  { %1892 = vmatpush2.msra.mxu0 %v11127_v43  ;;  %1963 = vmatpush2.msra.mxu1 %v11128_v0  ;;  %v11138_v43 = vld [vmem:[#allocation133_spill] sm:$0xff]  ;;  %v11139_v0 = vld [vmem:[#allocation118_spill] sm:$0xff] }
 0x36e   :  { %1893 = vmatprep.subr.mxu0 %v11129_v49  ;;  %1964 = vmatprep.subr.mxu1 %v11130_v53  ;;  %v11140_v49 = vld [vmem:[#allocation135_spill] sm:$0xff]  ;;  %v11141_v53 = vld [vmem:[#allocation120_spill] sm:$0xff] }
 0x36f   :  { %1894 = vmatpush2.msra.mxu0 %v11131_v47  ;;  %1965 = vmatpush2.msra.mxu1 %v11132_v20  ;;  %v11142_v47 = vld [vmem:[#allocation137_spill] sm:$0xff]  ;;  %v11143_v20 = vld [vmem:[#allocation122_spill] sm:$0xff] }
 0x370   :  { %1895 = vmatprep.subr.mxu0 %v11133_v33  ;;  %1966 = vmatprep.subr.mxu1 %v11134_v29  ;;  %v11144_v33 = vld [vmem:[#allocation139_spill] sm:$0xff]  ;;  %v11145_v29 = vld [vmem:[#allocation124_spill] sm:$0xff] }
 0x371   :  { %1896 = vmatpush2.msra.mxu0 %v11135_v37  ;;  %1967 = vmatpush2.msra.mxu1 %v11136_v6  ;;  %v11146_v37 = vld [vmem:[#allocation141_spill] sm:$0xff]  ;;  %v11147_v6 = vld [vmem:[#allocation126_spill] sm:$0xff] }
 0x372   :  { %1897 = vmatprep.subr.mxu0 %v11137_v45  ;;  %1968 = vmatprep.subr.mxu1 %v11138_v43  ;;  %v11148_v45 = vld [vmem:[#allocation128_spill] sm:$0xff]  ;;  %v11149_v43 = vld [vmem:[#allocation130_spill] sm:$0xff] }
 0x373   :  { %1898 = vmatpush2.msra.mxu0 %v11139_v0  ;;  %1969 = vmatpush2.msra.mxu1 %v11140_v49  ;;  %v11150_v0 = vld [vmem:[#allocation145_spill] sm:$0xff]  ;;  %v11151_v49 = vld [vmem:[#allocation132_spill] sm:$0xff] }
 0x374   :  { %1899 = vmatprep.subr.mxu0 %v11141_v53  ;;  %1970 = vmatprep.subr.mxu1 %v11142_v47  ;;  %v11152_v53 = vld [vmem:[#allocation134_spill] sm:$0xff]  ;;  %v11153_v47 = vld [vmem:[#allocation148_spill] sm:$0xff] }
 0x375   :  { %1900 = vmatpush2.msra.mxu0 %v11143_v20  ;;  %1971 = vmatpush2.msra.mxu1 %v11144_v33  ;;  %v11154_v20 = vld [vmem:[#allocation136_spill] sm:$0xff] }
 0x376   :  { %1901 = vmatprep.subr.mxu0 %v11145_v29  ;;  %1972 = vmatprep.subr.mxu1 %v11146_v37  ;;  %v11155_v37 = vld [vmem:[#allocation15_spill] sm:$0xff] }
 0x377   :  { %1902 = vmatpush2.msra.mxu0 %v11147_v6  ;;  %1973 = vmatpush2.msra.mxu1 %v11148_v45  ;;  %v11156_v6 = vld [vmem:[#allocation14_spill] sm:$0xff] }
 0x378   :  { %1903 = vmatprep.subr.mxu0 %v11149_v43  ;;  %1974 = vmatprep.subr.mxu1 %v11150_v0  ;;  %v11158_v0 = vld [vmem:[#allocation21_spill] sm:$0xff] }
 0x379   :  { %1904 = vmatpush2.msra.mxu0 %v11151_v49  ;;  %1975 = vmatpush2.msra.mxu1 %v11152_v53 }
 0x37a   :  { %1983 = vmatprep.subr.mxu0 %v11153_v47  ;;  %2054 = vmatprep.subr.mxu1 %v11154_v20 }
 0x3b8   :  { %v1561_v33 = vpop.f32.mrf.mxu0  ;;  %v1632_v29 = vpop.f32.mrf.mxu1 }
 0x3b9   :  { %v1779_v8 = vadd.f32 %v1561_v33, %v11155_v37  ;;  %v1781_v54 = vadd.f32 %v1632_v29, %v11156_v6  ;;  %v11159_v6 = vld [vmem:[#allocation34_spill] sm:$0xff] }
 0x3ba   :  { %v1563_v24 = vpop.f32.mrf.mxu0  ;;  %v1634_v45 = vpop.f32.mrf.mxu1 }
 0x3bb   :  { %v1780_v43 = vadd.f32 %v1563_v24, %v11157_v22  ;;  %v4227_v13 = vmul.f32 -1.442695, %v1779_v8  ;;  %v1782_v19 = vadd.f32 %v1634_v45, %v11158_v0  ;;  %v4229_v49 = vmul.f32 -1.442695, %v1781_v54 }
 0x3bc   :  { %v7617_v24 = vadd.f32 %v11160_v55, %v11159_v6 }
 0x3bd   :  { %v4228_v57 = vmul.f32 -1.442695, %v1780_v43  ;;  %4382 = vpow2.f32 %v4227_v13  ;;  %v4230_v53 = vmul.f32 -1.442695, %v1782_v19  ;;  %v11162_v13 = vld [vmem:[#allocation44_spill] sm:$0xff]  ;;  %v11163_v19 = vld [vmem:[#allocation38_spill] sm:$0xff] }
 0x3be   :  { %4384 = vpow2.f32 %v4229_v49  ;;  %11161 = vst [vmem:[#allocation54_spill] sm:$0xff] %v7617_v24  ;;  %v7621_v43 = vadd.f32 %v11163_v19, %v11162_v13  ;;  %v11165_v49 = vld [vmem:[#allocation22_spill] sm:$0xff] }
 0x3bf   :  { %4386 = vpow2.f32 %v4228_v57 }
 0x3c0   :  { %4388 = vpow2.f32 %v4230_v53  ;;  %11164 = vst [vmem:[#allocation47_spill] sm:$0xff] %v7621_v43 }
 0x3ca   :  { %v4383_v47 = vpop.eup %4382 }
 0x3cb   :  { %v4385_v20 = vpop.eup %4384  ;;  %v1793_v11 = vadd.f32 1.0, %v4383_v47 }
 0x3cc   :  { %v4387_v41 = vpop.eup %4386  ;;  %v1805_v37 = vadd.f32 1.0, %v4385_v20 }
 0x3cd   :  { %v4389_v33 = vpop.eup %4388  ;;  %v1794_v29 = vadd.f32 1.0, %v4387_v41  ;;  %4390 = vrcp.f32 %v1793_v11  ;;  %v11166_v11 = vld [vmem:[#allocation33_spill] sm:$0xff] }
 0x3ce   :  { %v1806_v8 = vadd.f32 1.0, %v4389_v33  ;;  %4392 = vrcp.f32 %v1805_v37 }
 0x3cf   :  { %4394 = vrcp.f32 %v1794_v29 }
 0x3da   :  { %v4391_v19 = vpop.eup %4390 }
 0x3db   :  { %v4393_v37 = vpop.eup %4392 }
 0x3dc   :  { %v4395_v13 = vpop.eup %4394 }
 0x3f9   :  { %v1703_v54 = vpop.f32.mrf.mxu0  ;;  %v1774_v45 = vpop.f32.mrf.mxu1 }
 0x3fa   :  { %v1783_v57 = vadd.f32 %v1703_v54, %v7617_v24  ;;  %v1785_v53 = vadd.f32 %v1774_v45, %v11165_v49  ;;  %v1827_v54 = vrot.slane %v7107_v26, 4 }
 0x3fb   :  { %v1705_v47 = vpop.f32.mrf.mxu0  ;;  %v1776_v41 = vpop.f32.mrf.mxu1 }
 0x3fc   :  { %4396 = vtanh.f32 %v1783_v57  ;;  %v4231_v20 = vmul.f32 -1.442695, %v1785_v53  ;;  %v1784_v55 = vadd.f32 %v1705_v47, %v7621_v43  ;;  %v1786_v33 = vadd.f32 %v1776_v41, %v11166_v11 }
 0x3fd   :  { %4398 = vrcp.f32 %v1806_v8  ;;  %v1831_v49 = vmul.f32 %v4393_v37, %v1827_v54  ;;  %v1828_v53 = vrot.slane %v7110_v44, 4 }
 0x3fe   :  { %4400 = vpow2.f32 %v4231_v20  ;;  %v4232_v6 = vmul.f32 -1.442695, %v1786_v33 }
 0x3ff   :  { %4402 = vtanh.f32 %v1784_v55 }
 0x400   :  { %4404 = vpow2.f32 %v4232_v6 }
 0x409   :  { %v4397_v45 = vpop.eup %4396 }
 0x40a   :  { %v4399_v29 = vpop.eup %4398  ;;  %v1833_v24 = vmul.f32 %v4397_v45, %v4391_v19  ;;  %v7645_v45 = vld [vmem:[#allocation6 + $0x428] sm:$0xff] }
 0x40b   :  { %v4401_v57 = vpop.eup %4400  ;;  %v1832_v20 = vmul.f32 %v4399_v29, %v1828_v53  ;;  %v7648_v29 = vld [vmem:[#allocation6 + $0x438] sm:$0xff]  ;;  %v7654_v53 = vld [vmem:[#allocation6 + $0x430] sm:$0xff] }
 0x40c   :  { %v4403_v47 = vpop.eup %4402  ;;  %v7629_v43 = vadd.f32 %v1833_v24, %v1831_v49  ;;  %v1819_v8 = vadd.f32 1.0, %v4401_v57  ;;  %v7642_v49 = vld [vmem:[#allocation6 + $0x470] sm:$0xff]  ;;  %v7651_v57 = vld [vmem:[#allocation6 + $0x420] sm:$0xff] }
 0x40d   :  { %v4405_v41 = vpop.eup %4404  ;;  %v1834_v55 = vmul.f32 %v4403_v47, %v4395_v13  ;;  %v7639_v13 = vld [vmem:[#allocation6 + $0x460] sm:$0xff]  ;;  %v7657_v47 = vld [vmem:[#allocation6 + $0x3e8] sm:$0xff] }
 0x40e   :  { %4406 = vtanh.f32 %v7629_v43  ;;  %v1820_v6 = vadd.f32 1.0, %v4405_v41  ;;  %v7663_v41 = vld [vmem:[#allocation6 + $0x3e0] sm:$0xff] }
 0x40f   :  { %4408 = vrcp.f32 %v1819_v8  ;;  %v7632_v33 = vadd.f32 %v1834_v55, %v1832_v20  ;;  %v7660_v8 = vld [vmem:[#allocation6 + $0x3f8] sm:$0xff]  ;;  %v7666_v20 = vld [vmem:[#allocation6 + $0x3f0] sm:$0xff]  ;;  %v7669_v55 = vld [vmem:[#allocation6 + $0x3a8] sm:$0xff] }
 0x410   :  { %4410 = vrcp.f32 %v1820_v6  ;;  %v7672_v6 = vld [vmem:[#allocation6 + $0x3b8] sm:$0xff] }
 0x411   :  { %4412 = vtanh.f32 %v7632_v33 }
 0x41b   :  { %v4407_v26 = vpop.eup %4406 }
 0x41c   :  { %v4409_v19 = vpop.eup %4408 }
 0x41d   :  { %v4411_v37 = vpop.eup %4410  ;;  %v7635_v24 = vmul.f32 %v4409_v19, %v4407_v26  ;;  %v7675_v26 = vld [vmem:[#allocation6 + $0x3a0] sm:$0xff]  ;;  %v7678_v19 = vld [vmem:[#allocation6 + $0x3b0] sm:$0xff] }
 0x41e   :  { %v4413_v44 = vpop.eup %4412  ;;  %11167 = vst [vmem:[#allocation56_spill] sm:$0xff] %v7675_v26  ;;  %11168 = vst [vmem:[#allocation49_spill] sm:$0xff] %v7678_v19 }
 0x41f   :  { %v1840_v54 = vmul.f32 %v4413_v44, %v4411_v37  ;;  %v7681_v37 = vld [vmem:[#allocation6 + $0x368] sm:$0xff]  ;;  %v7684_v44 = vld [vmem:[#allocation6 + $0x378] sm:$0xff] }
 0x420   :  { %11169 = vst [vmem:[#allocation58_spill] sm:$0xff] %v7684_v44 }
 0x421   :  { %1905 = vmatprep.mubr.f32.mxu0 %v1840_v54  ;;  %1976 = vmatprep.mubr.f32.mxu1 %v1840_v54 }
 0x422   :  { %1906 = vmatmul.mubr.f32.vlgmr.msra.gmra.mxu0 %v7635_v24  ;;  %1977 = vmatmul.mubr.f32.vlgmr.msra.gmra.mxu1 %v7635_v24 }
 0x423   :  { %1984 = vmatpush1.msra.mxu0 %v7639_v13  ;;  %2055 = vmatpush1.msra.mxu1 %v7642_v49 }
 0x424   :  { %1985 = vmatprep.subr.mxu0 %v7645_v45  ;;  %2047 = vmatprep.mubr.f32.mxu0 %v1840_v54 }
 0x425   :  { %2056 = vmatprep.subr.mxu1 %v7648_v29  ;;  %2118 = vmatprep.mubr.f32.mxu1 %v1840_v54  ;;  %v7688_v54 = vld [vmem:[#allocation6 + $0x370] sm:$0xff] }
 0x426   :  { %1986 = vmatpush1.msra.mxu0 %v7651_v57  ;;  %2057 = vmatpush1.msra.mxu1 %v7654_v53 }
 0x427   :  { %1987 = vmatprep.subr.mxu0 %v7657_v47  ;;  %2058 = vmatprep.subr.mxu1 %v7660_v8 }
 0x428   :  { %1988 = vmatpush1.msra.mxu0 %v7663_v41  ;;  %2059 = vmatpush1.msra.mxu1 %v7666_v20 }
 0x429   :  { %1989 = vmatprep.subr.mxu0 %v7669_v55  ;;  %2060 = vmatprep.subr.mxu1 %v7672_v6 }
 0x42a   :  { %1990 = vmatpush1.msra.mxu0 %v7675_v26  ;;  %2061 = vmatpush1.msra.mxu1 %v7678_v19  ;;  %v7692_v26 = vld [vmem:[#allocation6 + $0x338] sm:$0xff]  ;;  %v7696_v19 = vld [vmem:[#allocation6 + $0x330] sm:$0xff] }
 0x42b   :  { %1991 = vmatprep.subr.mxu0 %v7681_v37  ;;  %2062 = vmatprep.subr.mxu1 %v7684_v44  ;;  %v7700_v44 = vld [vmem:[#allocation6 + $0x2f8] sm:$0xff] }
 0x42c   :  { %1992 = vmatpush1.msra.mxu0 %v7133_v25  ;;  %2063 = vmatpush1.msra.mxu1 %v7688_v54  ;;  %v7704_v25 = vld [vmem:[#allocation6 + $0x2f0] sm:$0xff] }
 0x42d   :  { %1993 = vmatprep.subr.mxu0 %v7137_v15  ;;  %2064 = vmatprep.subr.mxu1 %v7692_v26  ;;  %v7708_v15 = vld [vmem:[#allocation6 + $0x2b8] sm:$0xff] }
 0x42e   :  { %1994 = vmatpush1.msra.mxu0 %v7141_v7  ;;  %2065 = vmatpush1.msra.mxu1 %v7696_v19  ;;  %v7712_v7 = vld [vmem:[#allocation6 + $0x2b0] sm:$0xff] }
 0x42f   :  { %1995 = vmatprep.subr.mxu0 %v7145_v5  ;;  %2066 = vmatprep.subr.mxu1 %v7700_v44  ;;  %v7716_v5 = vld [vmem:[#allocation6 + $0x278] sm:$0xff] }
 0x430   :  { %1996 = vmatpush1.msra.mxu0 %v7149_v58  ;;  %2067 = vmatpush1.msra.mxu1 %v7704_v25  ;;  %v7720_v58 = vld [vmem:[#allocation6 + $0x270] sm:$0xff] }
 0x431   :  { %1997 = vmatprep.subr.mxu0 %v7153_v61  ;;  %2068 = vmatprep.subr.mxu1 %v7708_v15  ;;  %v7724_v61 = vld [vmem:[#allocation6 + $0x238] sm:$0xff] }
 0x432   :  { %1998 = vmatpush1.msra.mxu0 %v7157_v18  ;;  %2069 = vmatpush1.msra.mxu1 %v7712_v7  ;;  %v7728_v18 = vld [vmem:[#allocation6 + $0x230] sm:$0xff] }
 0x433   :  { %1999 = vmatprep.subr.mxu0 %v7161_v32  ;;  %2070 = vmatprep.subr.mxu1 %v7716_v5  ;;  %v7732_v32 = vld [vmem:[#allocation6 + $0x1f8] sm:$0xff] }
 0x434   :  { %2000 = vmatpush1.msra.mxu0 %v7165_v3  ;;  %2071 = vmatpush1.msra.mxu1 %v7720_v58  ;;  %v7736_v3 = vld [vmem:[#allocation6 + $0x1f0] sm:$0xff] }
 0x435   :  { %2001 = vmatprep.subr.mxu0 %v7169_v36  ;;  %2072 = vmatprep.subr.mxu1 %v7724_v61  ;;  %v7740_v36 = vld [vmem:[#allocation6 + $0x1b8] sm:$0xff] }
 0x436   :  { %2002 = vmatpush1.msra.mxu0 %v7173_v2  ;;  %2073 = vmatpush1.msra.mxu1 %v7728_v18  ;;  %v7744_v2 = vld [vmem:[#allocation6 + $0x1b0] sm:$0xff] }
 0x437   :  { %2003 = vmatprep.subr.mxu0 %v7177_v51  ;;  %2074 = vmatprep.subr.mxu1 %v7732_v32  ;;  %v7748_v51 = vld [vmem:[#allocation6 + $0x178] sm:$0xff] }
 0x438   :  { %2004 = vmatpush1.msra.mxu0 %v7181_v52  ;;  %2075 = vmatpush1.msra.mxu1 %v7736_v3  ;;  %v11170_v52 = vld [vmem:[#allocation150_spill] sm:$0xff] }
 0x439   :  { %2005 = vmatprep.subr.mxu0 %v7185_v30  ;;  %2076 = vmatprep.subr.mxu1 %v7740_v36  ;;  %v11171_v30 = vld [vmem:[#allocation138_spill] sm:$0xff] }
 0x43a   :  { %2006 = vmatpush1.msra.mxu0 %v7189_v56  ;;  %2077 = vmatpush1.msra.mxu1 %v7744_v2  ;;  %v11172_v56 = vld [vmem:[#allocation151_spill] sm:$0xff] }
 0x43b   :  { %2007 = vmatprep.subr.mxu0 %v7193_v23  ;;  %2078 = vmatprep.subr.mxu1 %v7748_v51  ;;  %v11173_v23 = vld [vmem:[#allocation140_spill] sm:$0xff] }
 0x43c   :  { %2008 = vmatpush1.msra.mxu0 %v7197_v40  ;;  %2079 = vmatpush1.msra.mxu1 %v7200_v17  ;;  %v11174_v40 = vld [vmem:[#allocation152_spill] sm:$0xff]  ;;  %v11175_v17 = vld [vmem:[#allocation142_spill] sm:$0xff] }
 0x43d   :  { %2009 = vmatprep.subr.mxu0 %v7203_v39  ;;  %2080 = vmatprep.subr.mxu1 %v7206_v1  ;;  %v11176_v39 = vld [vmem:[#allocation153_spill] sm:$0xff]  ;;  %v11177_v1 = vld [vmem:[#allocation143_spill] sm:$0xff] }
 0x43e   :  { %2010 = vmatpush1.msra.mxu0 %v7209_v28  ;;  %2081 = vmatpush1.msra.mxu1 %v7212_v60  ;;  %v11178_v28 = vld [vmem:[#allocation144_spill] sm:$0xff]  ;;  %v11179_v60 = vld [vmem:[#allocation154_spill] sm:$0xff] }
 0x43f   :  { %2011 = vmatprep.subr.mxu0 %v7215_v12  ;;  %2082 = vmatprep.subr.mxu1 %v7218_v35  ;;  %v11180_v12 = vld [vmem:[#allocation146_spill] sm:$0xff]  ;;  %v11181_v35 = vld [vmem:[#allocation147_spill] sm:$0xff] }
 0x440   :  { %2012 = vmatpush1.msra.mxu0 %v7221_v16  ;;  %2083 = vmatpush1.msra.mxu1 %v7224_v9  ;;  %v11182_v16 = vld [vmem:[#allocation156_spill] sm:$0xff]  ;;  %v11183_v9 = vld [vmem:[#allocation149_spill] sm:$0xff] }
 0x441   :  { %2013 = vmatprep.subr.mxu0 %v7227_v10  ;;  %2084 = vmatprep.subr.mxu1 %v7230_v63  ;;  %v11184_v10 = vld [vmem:[#allocation155_spill] sm:$0xff]  ;;  %v11185_v63 = vld [vmem:[#allocation161_spill] sm:$0xff] }
 0x442   :  { %2014 = vmatpush1.msra.mxu0 %v7233_v34  ;;  %2085 = vmatpush1.msra.mxu1 %v7236_v48  ;;  %v11186_v34 = vld [vmem:[#allocation157_spill] sm:$0xff]  ;;  %v11187_v48 = vld [vmem:[#allocation163_spill] sm:$0xff] }
 0x443   :  { %2015 = vmatprep.subr.mxu0 %v7239_v62  ;;  %2086 = vmatprep.subr.mxu1 %v7242_v38  ;;  %v11188_v62 = vld [vmem:[#allocation158_spill] sm:$0xff]  ;;  %v11189_v38 = vld [vmem:[#allocation159_spill] sm:$0xff] }
 0x444   :  { %2016 = vmatpush2.msra.mxu0 %v7245_v46  ;;  %2087 = vmatpush2.msra.mxu1 %v7248_v21  ;;  %v11190_v46 = vld [vmem:[#allocation160_spill] sm:$0xff]  ;;  %v11191_v21 = vld [vmem:[#allocation162_spill] sm:$0xff] }
 0x445   :  { %2017 = vmatprep.subr.mxu0 %v7251_v42  ;;  %2088 = vmatprep.subr.mxu1 %v7254_v50  ;;  %v11192_v42 = vld [vmem:[#allocation164_spill] sm:$0xff]  ;;  %v11193_v50 = vld [vmem:[#allocation165_spill] sm:$0xff] }
 0x446   :  { %2018 = vmatpush2.msra.mxu0 %v7257_v14  ;;  %2089 = vmatpush2.msra.mxu1 %v7260_v27  ;;  %v11194_v14 = vld [vmem:[#allocation166_spill] sm:$0xff]  ;;  %v11195_v27 = vld [vmem:[#allocation36_spill] sm:$0xff] }
 0x447   :  { %2019 = vmatprep.subr.mxu0 %v7263_v4  ;;  %2090 = vmatprep.subr.mxu1 %v7266_v31  ;;  %v11196_v4 = vld [vmem:[#allocation46_spill] sm:$0xff]  ;;  %v11197_v31 = vld [vmem:[#allocation39_spill] sm:$0xff] }
 0x448   :  { %2020 = vmatpush2.msra.mxu0 %v7269_v59  ;;  %2091 = vmatpush2.msra.mxu1 %v11170_v52  ;;  %v11198_v59 = vld [vmem:[#allocation48_spill] sm:$0xff]  ;;  %v11199_v52 = vld [vmem:[#allocation41_spill] sm:$0xff] }
 0x449   :  { %2021 = vmatprep.subr.mxu0 %v11171_v30  ;;  %2092 = vmatprep.subr.mxu1 %v11172_v56  ;;  %v11200_v30 = vld [vmem:[#allocation50_spill] sm:$0xff]  ;;  %v11201_v56 = vld [vmem:[#allocation43_spill] sm:$0xff] }
 0x44a   :  { %2022 = vmatpush2.msra.mxu0 %v11173_v23  ;;  %2093 = vmatpush2.msra.mxu1 %v11174_v40  ;;  %v11202_v23 = vld [vmem:[#allocation52_spill] sm:$0xff]  ;;  %v11203_v40 = vld [vmem:[#allocation167_spill] sm:$0xff] }
 0x44b   :  { %2023 = vmatprep.subr.mxu0 %v11175_v17  ;;  %2094 = vmatprep.subr.mxu1 %v11176_v39  ;;  %v11204_v17 = vld [vmem:[#allocation168_spill] sm:$0xff]  ;;  %v11205_v39 = vld [vmem:[#allocation169_spill] sm:$0xff] }
 0x44c   :  { %2024 = vmatpush2.msra.mxu0 %v11177_v1  ;;  %2095 = vmatpush2.msra.mxu1 %v11178_v28  ;;  %v11206_v1 = vld [vmem:[#allocation170_spill] sm:$0xff]  ;;  %v11207_v28 = vld [vmem:[#allocation171_spill] sm:$0xff] }
 0x44d   :  { %2025 = vmatprep.subr.mxu0 %v11179_v60  ;;  %2096 = vmatprep.subr.mxu1 %v11180_v12  ;;  %v11208_v60 = vld [vmem:[#allocation172_spill] sm:$0xff]  ;;  %v11209_v12 = vld [vmem:[#allocation173_spill] sm:$0xff] }
 0x44e   :  { %2026 = vmatpush2.msra.mxu0 %v11181_v35  ;;  %2097 = vmatpush2.msra.mxu1 %v11182_v16  ;;  %v11210_v35 = vld [vmem:[#allocation174_spill] sm:$0xff]  ;;  %v11211_v16 = vld [vmem:[#allocation175_spill] sm:$0xff] }
 0x44f   :  { %2027 = vmatprep.subr.mxu0 %v11183_v9  ;;  %2098 = vmatprep.subr.mxu1 %v11184_v10  ;;  %v11212_v9 = vld [vmem:[#allocation176_spill] sm:$0xff]  ;;  %v11213_v10 = vld [vmem:[#allocation177_spill] sm:$0xff] }
 0x450   :  { %2028 = vmatpush2.msra.mxu0 %v11185_v63  ;;  %2099 = vmatpush2.msra.mxu1 %v11186_v34  ;;  %v11214_v63 = vld [vmem:[#allocation178_spill] sm:$0xff]  ;;  %v11215_v34 = vld [vmem:[#allocation179_spill] sm:$0xff] }
 0x451   :  { %2029 = vmatprep.subr.mxu0 %v11187_v48  ;;  %2100 = vmatprep.subr.mxu1 %v11188_v62  ;;  %v11216_v48 = vld [vmem:[#allocation180_spill] sm:$0xff]  ;;  %v11217_v62 = vld [vmem:[#allocation181_spill] sm:$0xff] }
 0x452   :  { %2030 = vmatpush2.msra.mxu0 %v11189_v38  ;;  %2101 = vmatpush2.msra.mxu1 %v11190_v46  ;;  %v11218_v38 = vld [vmem:[#allocation182_spill] sm:$0xff]  ;;  %v11219_v46 = vld [vmem:[#allocation183_spill] sm:$0xff] }
 0x453   :  { %2031 = vmatprep.subr.mxu0 %v11191_v21  ;;  %2102 = vmatprep.subr.mxu1 %v11192_v42  ;;  %v11220_v21 = vld [vmem:[#allocation184_spill] sm:$0xff]  ;;  %v11221_v42 = vld [vmem:[#allocation185_spill] sm:$0xff] }
 0x454   :  { %2032 = vmatpush2.msra.mxu0 %v11193_v50  ;;  %2103 = vmatpush2.msra.mxu1 %v11194_v14  ;;  %v11222_v50 = vld [vmem:[#allocation186_spill] sm:$0xff]  ;;  %v11223_v14 = vld [vmem:[#allocation187_spill] sm:$0xff] }
 0x455   :  { %2033 = vmatprep.subr.mxu0 %v11195_v27  ;;  %2104 = vmatprep.subr.mxu1 %v11196_v4  ;;  %v11224_v27 = vld [vmem:[#allocation188_spill] sm:$0xff]  ;;  %v11225_v4 = vld [vmem:[#allocation189_spill] sm:$0xff] }
 0x456   :  { %2034 = vmatpush2.msra.mxu0 %v11197_v31  ;;  %2105 = vmatpush2.msra.mxu1 %v11198_v59  ;;  %v11226_v31 = vld [vmem:[#allocation190_spill] sm:$0xff]  ;;  %v11227_v59 = vld [vmem:[#allocation191_spill] sm:$0xff] }
 0x457   :  { %2035 = vmatprep.subr.mxu0 %v11199_v52  ;;  %2106 = vmatprep.subr.mxu1 %v11200_v30  ;;  %v11228_v52 = vld [vmem:[#allocation192_spill] sm:$0xff]  ;;  %v11229_v30 = vld [vmem:[#allocation193_spill] sm:$0xff] }
 0x458   :  { %2036 = vmatpush2.msra.mxu0 %v11201_v56  ;;  %2107 = vmatpush2.msra.mxu1 %v11202_v23  ;;  %v11230_v56 = vld [vmem:[#allocation194_spill] sm:$0xff]  ;;  %v11231_v23 = vld [vmem:[#allocation195_spill] sm:$0xff] }
 0x459   :  { %2037 = vmatprep.subr.mxu0 %v11203_v40  ;;  %2108 = vmatprep.subr.mxu1 %v11204_v17  ;;  %v11232_v40 = vld [vmem:[#allocation196_spill] sm:$0xff]  ;;  %v11233_v17 = vld [vmem:[#allocation197_spill] sm:$0xff] }
 0x45a   :  { %2038 = vmatpush2.msra.mxu0 %v11205_v39  ;;  %2109 = vmatpush2.msra.mxu1 %v11206_v1  ;;  %v7845_v39 = vld [vmem:[#allocation6 + $0x388] sm:$0xff]  ;;  %v11234_v1 = vld [vmem:[#allocation198_spill] sm:$0xff] }
 0x45b   :  { %2039 = vmatprep.subr.mxu0 %v11207_v28  ;;  %2110 = vmatprep.subr.mxu1 %v11208_v60  ;;  %v7849_v28 = vld [vmem:[#allocation6 + $0x380] sm:$0xff]  ;;  %v11235_v60 = vld [vmem:[#allocation199_spill] sm:$0xff] }
 0x45c   :  { %2040 = vmatpush2.msra.mxu0 %v11209_v12  ;;  %2111 = vmatpush2.msra.mxu1 %v11210_v35  ;;  %v7853_v12 = vld [vmem:[#allocation6 + $0x348] sm:$0xff]  ;;  %v11236_v35 = vld [vmem:[#allocation200_spill] sm:$0xff] }
 0x45d   :  { %2041 = vmatprep.subr.mxu0 %v11211_v16  ;;  %2112 = vmatprep.subr.mxu1 %v11212_v9  ;;  %v7857_v16 = vld [vmem:[#allocation6 + $0x340] sm:$0xff]  ;;  %v11237_v9 = vld [vmem:[#allocation201_spill] sm:$0xff] }
 0x45e   :  { %2042 = vmatpush2.msra.mxu0 %v11213_v10  ;;  %2113 = vmatpush2.msra.mxu1 %v11214_v63  ;;  %v7861_v10 = vld [vmem:[#allocation6 + $0x308] sm:$0xff]  ;;  %v11238_v63 = vld [vmem:[#allocation202_spill] sm:$0xff] }
 0x45f   :  { %2043 = vmatprep.subr.mxu0 %v11215_v34  ;;  %2114 = vmatprep.subr.mxu1 %v11216_v48  ;;  %v7865_v34 = vld [vmem:[#allocation6 + $0x300] sm:$0xff]  ;;  %v11239_v48 = vld [vmem:[#allocation203_spill] sm:$0xff] }
 0x460   :  { %2044 = vmatpush2.msra.mxu0 %v11217_v62  ;;  %2115 = vmatpush2.msra.mxu1 %v11218_v38  ;;  %v7869_v62 = vld [vmem:[#allocation6 + $0x2c8] sm:$0xff]  ;;  %v11240_v38 = vld [vmem:[#allocation204_spill] sm:$0xff] }
 0x461   :  { %2045 = vmatprep.subr.mxu0 %v11219_v46  ;;  %2116 = vmatprep.subr.mxu1 %v11220_v21  ;;  %v7873_v46 = vld [vmem:[#allocation6 + $0x2c0] sm:$0xff]  ;;  %v11241_v21 = vld [vmem:[#allocation205_spill] sm:$0xff] }
 0x462   :  { %2046 = vmatpush2.msra.mxu0 %v11221_v42  ;;  %2117 = vmatpush2.msra.mxu1 %v11222_v50  ;;  %v7877_v42 = vld [vmem:[#allocation6 + $0x288] sm:$0xff]  ;;  %v11242_v50 = vld [vmem:[#allocation206_spill] sm:$0xff] }
 0x463   :  { %2048 = vmatmul.mubr.f32.vlgmr.msra.gmra.mxu0 %v7635_v24  ;;  %2119 = vmatmul.mubr.f32.vlgmr.msra.gmra.mxu1 %v7635_v24  ;;  %v7841_v24 = vld [vmem:[#allocation6 + $0x3c0] sm:$0xff] }
 0x464   :  { %2217 = vmatprep.subr.mxu0 %v11223_v14  ;;  %2288 = vmatprep.subr.mxu1 %v11224_v27  ;;  %v7881_v14 = vld [vmem:[#allocation6 + $0x280] sm:$0xff]  ;;  %v11243_v27 = vld [vmem:[#allocation207_spill] sm:$0xff] }
 0x465   :  { %2218 = vmatpush1.msra.mxu0 %v11225_v4  ;;  %2289 = vmatpush1.msra.mxu1 %v11226_v31  ;;  %v7885_v4 = vld [vmem:[#allocation6 + $0x248] sm:$0xff]  ;;  %v11245_v31 = vld [vmem:[#allocation208_spill] sm:$0xff] }
 0x466   :  { %2219 = vmatprep.subr.mxu0 %v11227_v59  ;;  %2290 = vmatprep.subr.mxu1 %v11228_v52  ;;  %11244 = vst [vmem:[#allocation51_spill] sm:$0xff] %v7885_v4  ;;  %v7889_v59 = vld [vmem:[#allocation6 + $0x240] sm:$0xff]  ;;  %v11247_v52 = vld [vmem:[#allocation209_spill] sm:$0xff] }
 0x467   :  { %2220 = vmatpush1.msra.mxu0 %v11229_v30  ;;  %2291 = vmatpush1.msra.mxu1 %v11230_v56  ;;  %11246 = vst [vmem:[#allocation60_spill] sm:$0xff] %v7889_v59  ;;  %v7893_v30 = vld [vmem:[#allocation6 + $0x208] sm:$0xff] }
 0x468   :  { %2221 = vmatprep.subr.mxu0 %v11231_v23  ;;  %2292 = vmatprep.subr.mxu1 %v11232_v40  ;;  %11248 = vst [vmem:[#allocation53_spill] sm:$0xff] %v7893_v30  ;;  %v11249_v56 = vld [vmem:[#allocation45_spill] sm:$0xff]  ;;  %v7897_v23 = vld [vmem:[#allocation6 + $0x200] sm:$0xff]  ;;  %v7900_v40 = vld [vmem:[#allocation6 + $0x210] sm:$0xff] }
 0x469   :  { %2222 = vmatpush1.msra.mxu0 %v7841_v24  ;;  %2293 = vmatpush1.msra.mxu1 %v11233_v17  ;;  %11250 = vst [vmem:[#allocation62_spill] sm:$0xff] %v7897_v23  ;;  %11251 = vst [vmem:[#allocation55_spill] sm:$0xff] %v7900_v40  ;;  %v7903_v17 = vld [vmem:[#allocation6 + $0x1c8] sm:$0xff] }
 0x46a   :  { %2223 = vmatprep.subr.mxu0 %v7845_v39  ;;  %2294 = vmatprep.subr.mxu1 %v11234_v1  ;;  %11252 = vst [vmem:[#allocation64_spill] sm:$0xff] %v7903_v17  ;;  %v7906_v1 = vld [vmem:[#allocation6 + $0x1d8] sm:$0xff] }
 0x46b   :  { %2224 = vmatpush1.msra.mxu0 %v7849_v28  ;;  %2295 = vmatpush1.msra.mxu1 %v11235_v60  ;;  %11253 = vst [vmem:[#allocation57_spill] sm:$0xff] %v7906_v1  ;;  %v7909_v60 = vld [vmem:[#allocation6 + $0x1c0] sm:$0xff] }
 0x46c   :  { %2225 = vmatprep.subr.mxu0 %v7853_v12  ;;  %2296 = vmatprep.subr.mxu1 %v11236_v35  ;;  %11254 = vst [vmem:[#allocation65_spill] sm:$0xff] %v7909_v60  ;;  %v7912_v35 = vld [vmem:[#allocation6 + $0x1d0] sm:$0xff] }
 0x46d   :  { %2226 = vmatpush1.msra.mxu0 %v7857_v16  ;;  %2297 = vmatpush1.msra.mxu1 %v11237_v9  ;;  %11255 = vst [vmem:[#allocation59_spill] sm:$0xff] %v7912_v35  ;;  %v7915_v9 = vld [vmem:[#allocation6 + $0x188] sm:$0xff] }
 0x46e   :  { %2227 = vmatprep.subr.mxu0 %v7861_v10  ;;  %2298 = vmatprep.subr.mxu1 %v11238_v63  ;;  %11256 = vst [vmem:[#allocation66_spill] sm:$0xff] %v7915_v9  ;;  %v7918_v63 = vld [vmem:[#allocation6 + $0x198] sm:$0xff] }
 0x46f   :  { %2228 = vmatpush1.msra.mxu0 %v7865_v34  ;;  %2299 = vmatpush1.msra.mxu1 %v11239_v48  ;;  %11257 = vst [vmem:[#allocation61_spill] sm:$0xff] %v7918_v63  ;;  %v7921_v48 = vld [vmem:[#allocation6 + $0x180] sm:$0xff] }
 0x470   :  { %2229 = vmatprep.subr.mxu0 %v7869_v62  ;;  %2300 = vmatprep.subr.mxu1 %v11240_v38  ;;  %11258 = vst [vmem:[#allocation67_spill] sm:$0xff] %v7921_v48  ;;  %v7924_v38 = vld [vmem:[#allocation6 + $0x190] sm:$0xff] }
 0x471   :  { %2230 = vmatpush1.msra.mxu0 %v7873_v46  ;;  %2301 = vmatpush1.msra.mxu1 %v11241_v21  ;;  %11259 = vst [vmem:[#allocation63_spill] sm:$0xff] %v7924_v38  ;;  %v7927_v21 = vld [vmem:[#allocation6 + $0x148] sm:$0xff] }
 0x472   :  { %2231 = vmatprep.subr.mxu0 %v7877_v42  ;;  %2302 = vmatprep.subr.mxu1 %v11242_v50  ;;  %11260 = vst [vmem:[#allocation68_spill] sm:$0xff] %v7927_v21  ;;  %v7930_v50 = vld [vmem:[#allocation6 + $0x158] sm:$0xff] }
 0x473   :  { %2232 = vmatpush1.msra.mxu0 %v7881_v14  ;;  %2303 = vmatpush1.msra.mxu1 %v11243_v27  ;;  %11261 = vst [vmem:[#allocation69_spill] sm:$0xff] %v7930_v50  ;;  %v7933_v27 = vld [vmem:[#allocation6 + $0x140] sm:$0xff] }
 0x474   :  { %2233 = vmatprep.subr.mxu0 %v7885_v4  ;;  %2304 = vmatprep.subr.mxu1 %v11245_v31  ;;  %11262 = vst [vmem:[#allocation70_spill] sm:$0xff] %v7933_v27  ;;  %v7936_v31 = vld [vmem:[#allocation6 + $0x150] sm:$0xff] }
 0x475   :  { %2234 = vmatpush1.msra.mxu0 %v7889_v59  ;;  %2305 = vmatpush1.msra.mxu1 %v11247_v52  ;;  %11263 = vst [vmem:[#allocation71_spill] sm:$0xff] %v7936_v31  ;;  %v7939_v52 = vld [vmem:[#allocation6 + $0x108] sm:$0xff] }
 0x476   :  { %2235 = vmatprep.subr.mxu0 %v7893_v30  ;;  %2306 = vmatprep.subr.mxu1 %v11249_v56  ;;  %11264 = vst [vmem:[#allocation72_spill] sm:$0xff] %v7939_v52  ;;  %v7942_v56 = vld [vmem:[#allocation6 + $0x118] sm:$0xff] }
 0x477   :  { %2236 = vmatpush1.msra.mxu0 %v7897_v23  ;;  %2307 = vmatpush1.msra.mxu1 %v7900_v40  ;;  %11265 = vst [vmem:[#allocation73_spill] sm:$0xff] %v7942_v56 }
 0x478   :  { %2237 = vmatprep.subr.mxu0 %v7903_v17  ;;  %2308 = vmatprep.subr.mxu1 %v7906_v1  ;;  %v11343_v1 = vld [vmem:[#allocation14_spill] sm:$0xff] }
 0x479   :  { %2238 = vmatpush1.msra.mxu0 %v7909_v60  ;;  %2309 = vmatpush1.msra.mxu1 %v7912_v35 }
 0x47a   :  { %2239 = vmatprep.subr.mxu0 %v7915_v9  ;;  %2310 = vmatprep.subr.mxu1 %v7918_v63 }
 0x47b   :  { %2240 = vmatpush1.msra.mxu0 %v7921_v48  ;;  %2311 = vmatpush1.msra.mxu1 %v7924_v38 }
 0x47c   :  { %2241 = vmatprep.subr.mxu0 %v7927_v21  ;;  %2312 = vmatprep.subr.mxu1 %v7930_v50  ;;  %v7945_v21 = vld [vmem:[#allocation6 + $0x100] sm:$0xff]  ;;  %v7948_v50 = vld [vmem:[#allocation6 + $0x110] sm:$0xff] }
 0x47d   :  { %2242 = vmatpush1.msra.mxu0 %v7933_v27  ;;  %2313 = vmatpush1.msra.mxu1 %v7936_v31  ;;  %11266 = vst [vmem:[#allocation74_spill] sm:$0xff] %v7945_v21  ;;  %11267 = vst [vmem:[#allocation75_spill] sm:$0xff] %v7948_v50  ;;  %v7951_v27 = vld [vmem:[#allocation6 + $0xc8] sm:$0xff]  ;;  %v7954_v31 = vld [vmem:[#allocation6 + $0xd8] sm:$0xff] }
 0x47e   :  { %2243 = vmatprep.subr.mxu0 %v7939_v52  ;;  %2314 = vmatprep.subr.mxu1 %v7942_v56  ;;  %11268 = vst [vmem:[#allocation77_spill] sm:$0xff] %v7951_v27  ;;  %11269 = vst [vmem:[#allocation79_spill] sm:$0xff] %v7954_v31  ;;  %v7957_v52 = vld [vmem:[#allocation6 + $0xc0] sm:$0xff]  ;;  %v7960_v56 = vld [vmem:[#allocation6 + $0xd0] sm:$0xff] }
 0x47f   :  { %2244 = vmatpush1.msra.mxu0 %v7945_v21  ;;  %2315 = vmatpush1.msra.mxu1 %v7948_v50  ;;  %11270 = vst [vmem:[#allocation81_spill] sm:$0xff] %v7957_v52  ;;  %11271 = vst [vmem:[#allocation83_spill] sm:$0xff] %v7960_v56  ;;  %v7963_v21 = vld [vmem:[#allocation6 + $0x88] sm:$0xff]  ;;  %v7966_v50 = vld [vmem:[#allocation6 + $0x98] sm:$0xff] }
 0x480   :  { %2245 = vmatprep.subr.mxu0 %v7951_v27  ;;  %2316 = vmatprep.subr.mxu1 %v7954_v31  ;;  %11272 = vst [vmem:[#allocation85_spill] sm:$0xff] %v7963_v21  ;;  %11273 = vst [vmem:[#allocation87_spill] sm:$0xff] %v7966_v50  ;;  %v7969_v27 = vld [vmem:[#allocation6 + $0x80] sm:$0xff]  ;;  %v7972_v31 = vld [vmem:[#allocation6 + $0x90] sm:$0xff] }
 0x481   :  { %2246 = vmatpush1.msra.mxu0 %v7957_v52  ;;  %2317 = vmatpush1.msra.mxu1 %v7960_v56  ;;  %11274 = vst [vmem:[#allocation89_spill] sm:$0xff] %v7969_v27  ;;  %11275 = vst [vmem:[#allocation91_spill] sm:$0xff] %v7972_v31  ;;  %v7975_v52 = vld [vmem:[#allocation6 + $0x848] sm:$0xff]  ;;  %v7978_v56 = vld [vmem:[#allocation6 + $0x858] sm:$0xff] }
 0x482   :  { %2247 = vmatprep.subr.mxu0 %v7963_v21  ;;  %2318 = vmatprep.subr.mxu1 %v7966_v50  ;;  %11276 = vst [vmem:[#allocation76_spill] sm:$0xff] %v7975_v52  ;;  %11277 = vst [vmem:[#allocation93_spill] sm:$0xff] %v7978_v56  ;;  %v7981_v21 = vld [vmem:[#allocation6 + $0x840] sm:$0xff]  ;;  %v7984_v50 = vld [vmem:[#allocation6 + $0x850] sm:$0xff] }
 0x483   :  { %2248 = vmatpush1.msra.mxu0 %v7969_v27  ;;  %2319 = vmatpush1.msra.mxu1 %v7972_v31  ;;  %11278 = vst [vmem:[#allocation78_spill] sm:$0xff] %v7981_v21  ;;  %11279 = vst [vmem:[#allocation95_spill] sm:$0xff] %v7984_v50  ;;  %v7987_v27 = vld [vmem:[#allocation6 + $0x808] sm:$0xff]  ;;  %v7990_v31 = vld [vmem:[#allocation6 + $0x818] sm:$0xff] }
 0x484   :  { %2249 = vmatprep.subr.mxu0 %v7975_v52  ;;  %2320 = vmatprep.subr.mxu1 %v7978_v56  ;;  %11280 = vst [vmem:[#allocation80_spill] sm:$0xff] %v7987_v27  ;;  %11281 = vst [vmem:[#allocation97_spill] sm:$0xff] %v7990_v31  ;;  %v7993_v52 = vld [vmem:[#allocation6 + $0x800] sm:$0xff]  ;;  %v7996_v56 = vld [vmem:[#allocation6 + $0x810] sm:$0xff] }
 0x485   :  { %2250 = vmatpush2.msra.mxu0 %v7981_v21  ;;  %2321 = vmatpush2.msra.mxu1 %v7984_v50  ;;  %11282 = vst [vmem:[#allocation82_spill] sm:$0xff] %v7993_v52  ;;  %11283 = vst [vmem:[#allocation99_spill] sm:$0xff] %v7996_v56  ;;  %v7999_v21 = vld [vmem:[#allocation6 + $0x7c8] sm:$0xff]  ;;  %v8002_v50 = vld [vmem:[#allocation6 + $0x7d8] sm:$0xff] }
 0x486   :  { %2251 = vmatprep.subr.mxu0 %v7987_v27  ;;  %2322 = vmatprep.subr.mxu1 %v7990_v31  ;;  %11284 = vst [vmem:[#allocation84_spill] sm:$0xff] %v7999_v21  ;;  %11285 = vst [vmem:[#allocation101_spill] sm:$0xff] %v8002_v50  ;;  %v8005_v27 = vld [vmem:[#allocation6 + $0x7c0] sm:$0xff]  ;;  %v8008_v31 = vld [vmem:[#allocation6 + $0x7d0] sm:$0xff] }
 0x487   :  { %2252 = vmatpush2.msra.mxu0 %v7993_v52  ;;  %2323 = vmatpush2.msra.mxu1 %v7996_v56  ;;  %11286 = vst [vmem:[#allocation86_spill] sm:$0xff] %v8005_v27  ;;  %11287 = vst [vmem:[#allocation103_spill] sm:$0xff] %v8008_v31  ;;  %v8011_v52 = vld [vmem:[#allocation6 + $0x788] sm:$0xff]  ;;  %v8014_v56 = vld [vmem:[#allocation6 + $0x798] sm:$0xff] }
 0x488   :  { %2253 = vmatprep.subr.mxu0 %v7999_v21  ;;  %2324 = vmatprep.subr.mxu1 %v8002_v50  ;;  %11288 = vst [vmem:[#allocation88_spill] sm:$0xff] %v8011_v52  ;;  %11289 = vst [vmem:[#allocation105_spill] sm:$0xff] %v8014_v56  ;;  %v8017_v21 = vld [vmem:[#allocation6 + $0x780] sm:$0xff]  ;;  %v8020_v50 = vld [vmem:[#allocation6 + $0x790] sm:$0xff] }
 0x489   :  { %2254 = vmatpush2.msra.mxu0 %v8005_v27  ;;  %2325 = vmatpush2.msra.mxu1 %v8008_v31  ;;  %11290 = vst [vmem:[#allocation90_spill] sm:$0xff] %v8017_v21  ;;  %11291 = vst [vmem:[#allocation107_spill] sm:$0xff] %v8020_v50  ;;  %v8023_v27 = vld [vmem:[#allocation6 + $0x748] sm:$0xff]  ;;  %v8026_v31 = vld [vmem:[#allocation6 + $0x758] sm:$0xff] }
 0x48a   :  { %2255 = vmatprep.subr.mxu0 %v8011_v52  ;;  %2326 = vmatprep.subr.mxu1 %v8014_v56  ;;  %11292 = vst [vmem:[#allocation92_spill] sm:$0xff] %v8023_v27  ;;  %11293 = vst [vmem:[#allocation109_spill] sm:$0xff] %v8026_v31  ;;  %v8029_v52 = vld [vmem:[#allocation6 + $0x740] sm:$0xff]  ;;  %v8032_v56 = vld [vmem:[#allocation6 + $0x750] sm:$0xff] }
 0x48b   :  { %2256 = vmatpush2.msra.mxu0 %v8017_v21  ;;  %2327 = vmatpush2.msra.mxu1 %v8020_v50  ;;  %11294 = vst [vmem:[#allocation94_spill] sm:$0xff] %v8029_v52  ;;  %11295 = vst [vmem:[#allocation111_spill] sm:$0xff] %v8032_v56  ;;  %v8035_v21 = vld [vmem:[#allocation6 + $0x708] sm:$0xff]  ;;  %v8038_v50 = vld [vmem:[#allocation6 + $0x718] sm:$0xff] }
 0x48c   :  { %2257 = vmatprep.subr.mxu0 %v8023_v27  ;;  %2328 = vmatprep.subr.mxu1 %v8026_v31  ;;  %11296 = vst [vmem:[#allocation96_spill] sm:$0xff] %v8035_v21  ;;  %11297 = vst [vmem:[#allocation113_spill] sm:$0xff] %v8038_v50  ;;  %v8041_v27 = vld [vmem:[#allocation6 + $0x700] sm:$0xff]  ;;  %v8044_v31 = vld [vmem:[#allocation6 + $0x710] sm:$0xff] }
 0x48d   :  { %2258 = vmatpush2.msra.mxu0 %v8029_v52  ;;  %2329 = vmatpush2.msra.mxu1 %v8032_v56  ;;  %11298 = vst [vmem:[#allocation98_spill] sm:$0xff] %v8041_v27  ;;  %11299 = vst [vmem:[#allocation115_spill] sm:$0xff] %v8044_v31  ;;  %v8047_v52 = vld [vmem:[#allocation6 + $0x6c8] sm:$0xff]  ;;  %v8050_v56 = vld [vmem:[#allocation6 + $0x6d8] sm:$0xff] }
 0x48e   :  { %2259 = vmatprep.subr.mxu0 %v8035_v21  ;;  %2330 = vmatprep.subr.mxu1 %v8038_v50  ;;  %11300 = vst [vmem:[#allocation100_spill] sm:$0xff] %v8047_v52  ;;  %11301 = vst [vmem:[#allocation117_spill] sm:$0xff] %v8050_v56  ;;  %v8053_v21 = vld [vmem:[#allocation6 + $0x6c0] sm:$0xff]  ;;  %v8056_v50 = vld [vmem:[#allocation6 + $0x6d0] sm:$0xff] }
 0x48f   :  { %2260 = vmatpush2.msra.mxu0 %v8041_v27  ;;  %2331 = vmatpush2.msra.mxu1 %v8044_v31  ;;  %11302 = vst [vmem:[#allocation102_spill] sm:$0xff] %v8053_v21  ;;  %11303 = vst [vmem:[#allocation119_spill] sm:$0xff] %v8056_v50  ;;  %v8059_v27 = vld [vmem:[#allocation6 + $0x688] sm:$0xff]  ;;  %v8062_v31 = vld [vmem:[#allocation6 + $0x698] sm:$0xff] }
 0x490   :  { %2261 = vmatprep.subr.mxu0 %v8047_v52  ;;  %2332 = vmatprep.subr.mxu1 %v8050_v56  ;;  %11304 = vst [vmem:[#allocation104_spill] sm:$0xff] %v8059_v27  ;;  %11305 = vst [vmem:[#allocation121_spill] sm:$0xff] %v8062_v31  ;;  %v8065_v52 = vld [vmem:[#allocation6 + $0x680] sm:$0xff]  ;;  %v8068_v56 = vld [vmem:[#allocation6 + $0x690] sm:$0xff] }
 0x491   :  { %2262 = vmatpush2.msra.mxu0 %v8053_v21  ;;  %2333 = vmatpush2.msra.mxu1 %v8056_v50  ;;  %11306 = vst [vmem:[#allocation106_spill] sm:$0xff] %v8065_v52  ;;  %11307 = vst [vmem:[#allocation123_spill] sm:$0xff] %v8068_v56  ;;  %v8071_v21 = vld [vmem:[#allocation6 + $0x648] sm:$0xff]  ;;  %v8074_v50 = vld [vmem:[#allocation6 + $0x658] sm:$0xff] }
 0x492   :  { %2263 = vmatprep.subr.mxu0 %v8059_v27  ;;  %2334 = vmatprep.subr.mxu1 %v8062_v31  ;;  %11308 = vst [vmem:[#allocation108_spill] sm:$0xff] %v8071_v21  ;;  %11309 = vst [vmem:[#allocation125_spill] sm:$0xff] %v8074_v50  ;;  %v8077_v27 = vld [vmem:[#allocation6 + $0x640] sm:$0xff]  ;;  %v8080_v31 = vld [vmem:[#allocation6 + $0x650] sm:$0xff] }
 0x493   :  { %2264 = vmatpush2.msra.mxu0 %v8065_v52  ;;  %2335 = vmatpush2.msra.mxu1 %v8068_v56  ;;  %11310 = vst [vmem:[#allocation110_spill] sm:$0xff] %v8077_v27  ;;  %11311 = vst [vmem:[#allocation127_spill] sm:$0xff] %v8080_v31  ;;  %v8083_v52 = vld [vmem:[#allocation6 + $0x608] sm:$0xff]  ;;  %v8086_v56 = vld [vmem:[#allocation6 + $0x618] sm:$0xff] }
 0x494   :  { %2265 = vmatprep.subr.mxu0 %v8071_v21  ;;  %2336 = vmatprep.subr.mxu1 %v8074_v50  ;;  %11312 = vst [vmem:[#allocation112_spill] sm:$0xff] %v8083_v52  ;;  %11313 = vst [vmem:[#allocation129_spill] sm:$0xff] %v8086_v56  ;;  %v8089_v21 = vld [vmem:[#allocation6 + $0x600] sm:$0xff]  ;;  %v8092_v50 = vld [vmem:[#allocation6 + $0x610] sm:$0xff] }
 0x495   :  { %2266 = vmatpush2.msra.mxu0 %v8077_v27  ;;  %2337 = vmatpush2.msra.mxu1 %v8080_v31  ;;  %11314 = vst [vmem:[#allocation114_spill] sm:$0xff] %v8089_v21  ;;  %11315 = vst [vmem:[#allocation131_spill] sm:$0xff] %v8092_v50  ;;  %v8095_v27 = vld [vmem:[#allocation6 + $0x5c8] sm:$0xff]  ;;  %v8098_v31 = vld [vmem:[#allocation6 + $0x5d8] sm:$0xff] }
 0x496   :  { %2267 = vmatprep.subr.mxu0 %v8083_v52  ;;  %2338 = vmatprep.subr.mxu1 %v8086_v56  ;;  %11316 = vst [vmem:[#allocation116_spill] sm:$0xff] %v8095_v27  ;;  %11317 = vst [vmem:[#allocation133_spill] sm:$0xff] %v8098_v31  ;;  %v8101_v52 = vld [vmem:[#allocation6 + $0x5c0] sm:$0xff]  ;;  %v8104_v56 = vld [vmem:[#allocation6 + $0x5d0] sm:$0xff] }
 0x497   :  { %2268 = vmatpush2.msra.mxu0 %v8089_v21  ;;  %2339 = vmatpush2.msra.mxu1 %v8092_v50  ;;  %11318 = vst [vmem:[#allocation118_spill] sm:$0xff] %v8101_v52  ;;  %11319 = vst [vmem:[#allocation135_spill] sm:$0xff] %v8104_v56  ;;  %v8107_v21 = vld [vmem:[#allocation6 + $0x588] sm:$0xff]  ;;  %v8110_v50 = vld [vmem:[#allocation6 + $0x598] sm:$0xff] }
 0x498   :  { %2269 = vmatprep.subr.mxu0 %v8095_v27  ;;  %2340 = vmatprep.subr.mxu1 %v8098_v31  ;;  %11320 = vst [vmem:[#allocation120_spill] sm:$0xff] %v8107_v21  ;;  %11321 = vst [vmem:[#allocation137_spill] sm:$0xff] %v8110_v50  ;;  %v8113_v27 = vld [vmem:[#allocation6 + $0x580] sm:$0xff]  ;;  %v8116_v31 = vld [vmem:[#allocation6 + $0x590] sm:$0xff] }
 0x499   :  { %2270 = vmatpush2.msra.mxu0 %v8101_v52  ;;  %2341 = vmatpush2.msra.mxu1 %v8104_v56  ;;  %11322 = vst [vmem:[#allocation122_spill] sm:$0xff] %v8113_v27  ;;  %11323 = vst [vmem:[#allocation139_spill] sm:$0xff] %v8116_v31  ;;  %v8119_v52 = vld [vmem:[#allocation6 + $0x548] sm:$0xff]  ;;  %v8122_v56 = vld [vmem:[#allocation6 + $0x558] sm:$0xff] }
 0x49a   :  { %2271 = vmatprep.subr.mxu0 %v8107_v21  ;;  %2342 = vmatprep.subr.mxu1 %v8110_v50  ;;  %11324 = vst [vmem:[#allocation124_spill] sm:$0xff] %v8119_v52  ;;  %11325 = vst [vmem:[#allocation141_spill] sm:$0xff] %v8122_v56  ;;  %v8125_v21 = vld [vmem:[#allocation6 + $0x540] sm:$0xff]  ;;  %v8128_v50 = vld [vmem:[#allocation6 + $0x550] sm:$0xff] }
 0x49b   :  { %2272 = vmatpush2.msra.mxu0 %v8113_v27  ;;  %2343 = vmatpush2.msra.mxu1 %v8116_v31  ;;  %11326 = vst [vmem:[#allocation126_spill] sm:$0xff] %v8125_v21  ;;  %11327 = vst [vmem:[#allocation128_spill] sm:$0xff] %v8128_v50  ;;  %v8131_v27 = vld [vmem:[#allocation6 + $0x508] sm:$0xff]  ;;  %v8134_v31 = vld [vmem:[#allocation6 + $0x518] sm:$0xff] }
 0x49c   :  { %2273 = vmatprep.subr.mxu0 %v8119_v52  ;;  %2344 = vmatprep.subr.mxu1 %v8122_v56  ;;  %11328 = vst [vmem:[#allocation130_spill] sm:$0xff] %v8131_v27  ;;  %11329 = vst [vmem:[#allocation145_spill] sm:$0xff] %v8134_v31  ;;  %v8137_v52 = vld [vmem:[#allocation6 + $0x500] sm:$0xff]  ;;  %v8140_v56 = vld [vmem:[#allocation6 + $0x510] sm:$0xff] }
 0x49d   :  { %2274 = vmatpush2.msra.mxu0 %v8125_v21  ;;  %2345 = vmatpush2.msra.mxu1 %v8128_v50  ;;  %11330 = vst [vmem:[#allocation132_spill] sm:$0xff] %v8137_v52  ;;  %11331 = vst [vmem:[#allocation134_spill] sm:$0xff] %v8140_v56  ;;  %v8143_v21 = vld [vmem:[#allocation6 + $0x4c8] sm:$0xff]  ;;  %v8146_v50 = vld [vmem:[#allocation6 + $0x4d8] sm:$0xff] }
 0x49e   :  { %2275 = vmatprep.subr.mxu0 %v8131_v27  ;;  %2346 = vmatprep.subr.mxu1 %v8134_v31  ;;  %11332 = vst [vmem:[#allocation148_spill] sm:$0xff] %v8143_v21  ;;  %11333 = vst [vmem:[#allocation136_spill] sm:$0xff] %v8146_v50  ;;  %v8149_v27 = vld [vmem:[#allocation6 + $0x4c0] sm:$0xff]  ;;  %v8152_v31 = vld [vmem:[#allocation6 + $0x4d0] sm:$0xff] }
 0x49f   :  { %2276 = vmatpush2.msra.mxu0 %v8137_v52  ;;  %2347 = vmatpush2.msra.mxu1 %v8140_v56  ;;  %11334 = vst [vmem:[#allocation16_spill] sm:$0xff] %v8149_v27  ;;  %11335 = vst [vmem:[#allocation21_spill] sm:$0xff] %v8152_v31  ;;  %v8155_v52 = vld [vmem:[#allocation6 + $0x488] sm:$0xff]  ;;  %v8158_v56 = vld [vmem:[#allocation6 + $0x498] sm:$0xff] }
 0x4a0   :  { %2277 = vmatprep.subr.mxu0 %v8143_v21  ;;  %2348 = vmatprep.subr.mxu1 %v8146_v50  ;;  %11336 = vst [vmem:[#allocation28_spill] sm:$0xff] %v8155_v52  ;;  %11337 = vst [vmem:[#allocation38_spill] sm:$0xff] %v8158_v56  ;;  %v8161_v21 = vld [vmem:[#allocation6 + $0x480] sm:$0xff]  ;;  %v8164_v50 = vld [vmem:[#allocation6 + $0x490] sm:$0xff] }
 0x4a1   :  { %2278 = vmatpush2.msra.mxu0 %v8149_v27  ;;  %2349 = vmatpush2.msra.mxu1 %v8152_v31  ;;  %11338 = vst [vmem:[#allocation33_spill] sm:$0xff] %v8161_v21  ;;  %11339 = vst [vmem:[#allocation150_spill] sm:$0xff] %v8164_v50  ;;  %v8167_v27 = vld [vmem:[#allocation6 + $0x468] sm:$0xff]  ;;  %v8170_v31 = vld [vmem:[#allocation6 + $0x478] sm:$0xff] }
 0x4a2   :  { %2279 = vmatprep.subr.mxu0 %v8155_v52  ;;  %2350 = vmatprep.subr.mxu1 %v8158_v56  ;;  %11340 = vst [vmem:[#allocation138_spill] sm:$0xff] %v8167_v27  ;;  %11341 = vst [vmem:[#allocation151_spill] sm:$0xff] %v8170_v31 }
 0x4a3   :  { %2280 = vmatpush2.msra.mxu0 %v8161_v21  ;;  %2351 = vmatpush2.msra.mxu1 %v8164_v50  ;;  %v11342_v21 = vld [vmem:[#allocation15_spill] sm:$0xff] }
 0x4a4   :  { %2359 = vmatprep.subr.mxu0 %v8167_v27  ;;  %2430 = vmatprep.subr.mxu1 %v8170_v31 }
 0x4e2   :  { %v1907_v52 = vpop.f32.mrf.mxu0  ;;  %v1978_v38 = vpop.f32.mrf.mxu1 }
 0x4e3   :  { %v2133_v48 = vrot.slane %v1907_v52, 4  ;;  %v2135_v63 = vrot.slane %v1978_v38, 4 }
 0x4e4   :  { %v1909_v56 = vpop.f32.mrf.mxu0  ;;  %v1980_v9 = vpop.f32.mrf.mxu1 }
 0x4e5   :  { %v2134_v35 = vrot.slane %v1909_v56, 4  ;;  %v2149_v60 = vadd.f32 %v2133_v48, %v11342_v21  ;;  %v2151_v17 = vadd.f32 %v2135_v63, %v11343_v1  ;;  %v2136_v50 = vrot.slane %v1980_v9, 4 }
 0x4e7   :  { %v2150_v40 = vadd.f32 %v2134_v35, %v11157_v22  ;;  %v4233_v23 = vmul.f32 -1.442695, %v2149_v60  ;;  %v4235_v27 = vmul.f32 -1.442695, %v2151_v17  ;;  %v2152_v30 = vadd.f32 %v2136_v50, %v11158_v0  ;;  %v11344_v60 = vld [vmem:[#allocation54_spill] sm:$0xff] }
 0x4e9   :  { %v4234_v59 = vmul.f32 -1.442695, %v2150_v40  ;;  %4414 = vpow2.f32 %v4233_v23  ;;  %v4236_v31 = vmul.f32 -1.442695, %v2152_v30 }
 0x4ea   :  { %4416 = vpow2.f32 %v4235_v27 }
 0x4eb   :  { %4418 = vpow2.f32 %v4234_v59  ;;  %v11345_v59 = vld [vmem:[#allocation22_spill] sm:$0xff] }
 0x4ec   :  { %4420 = vpow2.f32 %v4236_v31 }
 0x4f6   :  { %v4415_v38 = vpop.eup %4414 }
 0x4f7   :  { %v4417_v52 = vpop.eup %4416  ;;  %v2163_v4 = vadd.f32 1.0, %v4415_v38  ;;  %v11346_v38 = vld [vmem:[#allocation47_spill] sm:$0xff] }
 0x4f8   :  { %v4419_v56 = vpop.eup %4418  ;;  %v2175_v48 = vadd.f32 1.0, %v4417_v52 }
 0x4f9   :  { %v4421_v21 = vpop.eup %4420  ;;  %v2164_v1 = vadd.f32 1.0, %v4419_v56  ;;  %4422 = vrcp.f32 %v2163_v4 }
 0x4fa   :  { %4424 = vrcp.f32 %v2175_v48  ;;  %v2176_v0 = vadd.f32 1.0, %v4421_v21 }
 0x4fb   :  { %4426 = vrcp.f32 %v2164_v1 }
 0x506   :  { %v4423_v48 = vpop.eup %4422 }
 0x507   :  { %v4425_v21 = vpop.eup %4424 }
 0x523   :  { %v2049_v9 = vpop.f32.mrf.mxu0  ;;  %v2120_v63 = vpop.f32.mrf.mxu1 }
 0x524   :  { %v2137_v22 = vrot.slane %v2049_v9, 4  ;;  %v2139_v17 = vrot.slane %v2120_v63, 4  ;;  %v4427_v9 = vpop.eup %4426  ;;  %v2197_v63 = vrot.slane %v7629_v43, 4 }
 0x525   :  { %v2051_v40 = vpop.f32.mrf.mxu0  ;;  %v2122_v23 = vpop.f32.mrf.mxu1 }
 0x526   :  { %v2153_v30 = vadd.f32 %v2137_v22, %v11344_v60  ;;  %v2155_v35 = vadd.f32 %v2139_v17, %v11345_v59  ;;  %v2138_v50 = vrot.slane %v2051_v40, 4  ;;  %v2140_v27 = vrot.slane %v2122_v23, 4 }
 0x527   :  { %v2201_v40 = vmul.f32 %v4425_v21, %v2197_v63  ;;  %v2198_v60 = vrot.slane %v7632_v33, 4  ;;  %v8306_v63 = vld [vmem:[#allocation6 + $0xb8] sm:$0xff] }
 0x528   :  { %4428 = vtanh.f32 %v2153_v30  ;;  %v4237_v31 = vmul.f32 -1.442695, %v2155_v35  ;;  %v2154_v52 = vadd.f32 %v2138_v50, %v11346_v38  ;;  %v2156_v56 = vadd.f32 %v2140_v27, %v11166_v11 }
 0x529   :  { %4430 = vrcp.f32 %v2176_v0 }
 0x52a   :  { %4432 = vpow2.f32 %v4237_v31  ;;  %v4238_v4 = vmul.f32 -1.442695, %v2156_v56 }
 0x52b   :  { %4434 = vtanh.f32 %v2154_v52 }
 0x52c   :  { %4436 = vpow2.f32 %v4238_v4 }
 0x535   :  { %v4429_v22 = vpop.eup %4428 }
 0x536   :  { %v4431_v17 = vpop.eup %4430  ;;  %v2203_v1 = vmul.f32 %v4429_v22, %v4423_v48  ;;  %v8309_v22 = vld [vmem:[#allocation6 + $0xa0] sm:$0xff] }
 0x537   :  { %v4433_v23 = vpop.eup %4432  ;;  %v2202_v35 = vmul.f32 %v4431_v17, %v2198_v60  ;;  %v8312_v17 = vld [vmem:[#allocation6 + $0xb0] sm:$0xff] }
 0x538   :  { %v4435_v30 = vpop.eup %4434  ;;  %v8183_v59 = vadd.f32 %v2203_v1, %v2201_v40  ;;  %v2189_v11 = vadd.f32 1.0, %v4433_v23  ;;  %v8315_v40 = vld [vmem:[#allocation6 + $0x868] sm:$0xff]  ;;  %v8318_v1 = vld [vmem:[#allocation6 + $0x878] sm:$0xff]  ;;  %v8321_v23 = vld [vmem:[#allocation6 + $0x860] sm:$0xff] }
 0x539   :  { %v4437_v0 = vpop.eup %4436  ;;  %v2204_v50 = vmul.f32 %v4435_v30, %v4427_v9  ;;  %v8303_v9 = vld [vmem:[#allocation6 + $0xa8] sm:$0xff]  ;;  %v8324_v60 = vld [vmem:[#allocation6 + $0x870] sm:$0xff] }
 0x53a   :  { %4438 = vtanh.f32 %v8183_v59  ;;  %v2190_v27 = vadd.f32 1.0, %v4437_v0  ;;  %v8327_v30 = vld [vmem:[#allocation6 + $0x828] sm:$0xff]  ;;  %v8333_v0 = vld [vmem:[#allocation6 + $0x820] sm:$0xff] }
 0x53b   :  { %4440 = vrcp.f32 %v2189_v11  ;;  %v8186_v31 = vadd.f32 %v2204_v50, %v2202_v35  ;;  %v8330_v11 = vld [vmem:[#allocation6 + $0x838] sm:$0xff]  ;;  %v8336_v35 = vld [vmem:[#allocation6 + $0x830] sm:$0xff]  ;;  %v8339_v50 = vld [vmem:[#allocation6 + $0x7e8] sm:$0xff] }
 0x53c   :  { %4442 = vrcp.f32 %v2190_v27  ;;  %v8342_v27 = vld [vmem:[#allocation6 + $0x7f8] sm:$0xff] }
 0x53d   :  { %4444 = vtanh.f32 %v8186_v31 }
 0x547   :  { %v4439_v43 = vpop.eup %4438 }
 0x548   :  { %v4441_v38 = vpop.eup %4440 }
 0x549   :  { %v4443_v52 = vpop.eup %4442  ;;  %v2209_v56 = vmul.f32 %v4441_v38, %v4439_v43  ;;  %v8345_v43 = vld [vmem:[#allocation6 + $0x7e0] sm:$0xff]  ;;  %v8348_v38 = vld [vmem:[#allocation6 + $0x7f0] sm:$0xff] }
 0x54a   :  { %v4445_v33 = vpop.eup %4444  ;;  %11350 = vst [vmem:[#allocation140_spill] sm:$0xff] %v8348_v38 }
 0x54b   :  { %v2210_v4 = vmul.f32 %v4445_v33, %v4443_v52  ;;  %v8189_v21 = vrot.slane %v2209_v56, 4  ;;  %v8351_v52 = vld [vmem:[#allocation6 + $0x7a8] sm:$0xff]  ;;  %v8354_v33 = vld [vmem:[#allocation6 + $0x7b8] sm:$0xff]  ;;  %v8357_v56 = vld [vmem:[#allocation6 + $0x7a0] sm:$0xff] }
 0x54c   :  { %11351 = vst [vmem:[#allocation152_spill] sm:$0xff] %v8351_v52  ;;  %11352 = vst [vmem:[#allocation142_spill] sm:$0xff] %v8354_v33 }
 0x54d   :  { %v2214_v48 = vrot.slane %v2210_v4, 4  ;;  %11353 = vst [vmem:[#allocation153_spill] sm:$0xff] %v8357_v56  ;;  %v8360_v4 = vld [vmem:[#allocation6 + $0x7b0] sm:$0xff] }
 0x54e   :  { %11354 = vst [vmem:[#allocation143_spill] sm:$0xff] %v8360_v4 }
 0x54f   :  { %2281 = vmatprep.mubr.f32.mxu0 %v2214_v48  ;;  %2352 = vmatprep.mubr.f32.mxu1 %v2214_v48 }
 0x550   :  { %2282 = vmatmul.mubr.f32.vlgmr.msra.gmra.mxu0 %v8189_v21  ;;  %2353 = vmatmul.mubr.f32.vlgmr.msra.gmra.mxu1 %v8189_v21 }
 0x551   :  { %2360 = vmatpush1.msra.mxu0 %v7639_v13  ;;  %2431 = vmatpush1.msra.mxu1 %v7642_v49  ;;  %v11347_v13 = vld [vmem:[#allocation56_spill] sm:$0xff]  ;;  %v11348_v49 = vld [vmem:[#allocation49_spill] sm:$0xff] }
 0x552   :  { %2361 = vmatprep.subr.mxu0 %v7645_v45  ;;  %2423 = vmatprep.mubr.f32.mxu0 %v2214_v48  ;;  %v11349_v45 = vld [vmem:[#allocation58_spill] sm:$0xff] }
 0x553   :  { %2432 = vmatprep.subr.mxu1 %v7648_v29  ;;  %2494 = vmatprep.mubr.f32.mxu1 %v2214_v48  ;;  %v8209_v29 = vld [vmem:[#allocation6 + $0x360] sm:$0xff]  ;;  %v8363_v48 = vld [vmem:[#allocation6 + $0x768] sm:$0xff] }
 0x554   :  { %2362 = vmatpush1.msra.mxu0 %v7651_v57  ;;  %2433 = vmatpush1.msra.mxu1 %v7654_v53  ;;  %v8213_v57 = vld [vmem:[#allocation6 + $0x328] sm:$0xff]  ;;  %v8217_v53 = vld [vmem:[#allocation6 + $0x320] sm:$0xff]  ;;  %11355 = vst [vmem:[#allocation144_spill] sm:$0xff] %v8363_v48 }
 0x555   :  { %2363 = vmatprep.subr.mxu0 %v7657_v47  ;;  %2434 = vmatprep.subr.mxu1 %v7660_v8  ;;  %v8221_v47 = vld [vmem:[#allocation6 + $0x2e8] sm:$0xff]  ;;  %v8225_v8 = vld [vmem:[#allocation6 + $0x2e0] sm:$0xff] }
 0x556   :  { %2364 = vmatpush1.msra.mxu0 %v7663_v41  ;;  %2435 = vmatpush1.msra.mxu1 %v7666_v20  ;;  %v8229_v41 = vld [vmem:[#allocation6 + $0x2a8] sm:$0xff]  ;;  %v8233_v20 = vld [vmem:[#allocation6 + $0x2a0] sm:$0xff] }
 0x557   :  { %2365 = vmatprep.subr.mxu0 %v7669_v55  ;;  %2436 = vmatprep.subr.mxu1 %v7672_v6  ;;  %v8237_v55 = vld [vmem:[#allocation6 + $0x268] sm:$0xff]  ;;  %v8241_v6 = vld [vmem:[#allocation6 + $0x260] sm:$0xff] }
 0x558   :  { %2366 = vmatpush1.msra.mxu0 %v11347_v13  ;;  %2437 = vmatpush1.msra.mxu1 %v11348_v49  ;;  %v8366_v13 = vld [vmem:[#allocation6 + $0x778] sm:$0xff]  ;;  %v8369_v49 = vld [vmem:[#allocation6 + $0x760] sm:$0xff] }
 0x559   :  { %2367 = vmatprep.subr.mxu0 %v7681_v37  ;;  %2438 = vmatprep.subr.mxu1 %v11349_v45  ;;  %v8253_v37 = vld [vmem:[#allocation6 + $0x1e8] sm:$0xff]  ;;  %11356 = vst [vmem:[#allocation154_spill] sm:$0xff] %v8366_v13  ;;  %11357 = vst [vmem:[#allocation146_spill] sm:$0xff] %v8369_v49  ;;  %v8372_v45 = vld [vmem:[#allocation6 + $0x770] sm:$0xff] }
 0x55a   :  { %2368 = vmatpush1.msra.mxu0 %v8209_v29  ;;  %2439 = vmatpush1.msra.mxu1 %v7688_v54  ;;  %v8261_v54 = vld [vmem:[#allocation6 + $0x1a8] sm:$0xff]  ;;  %11358 = vst [vmem:[#allocation147_spill] sm:$0xff] %v8372_v45 }
 0x55b   :  { %2369 = vmatprep.subr.mxu0 %v8213_v57  ;;  %2440 = vmatprep.subr.mxu1 %v7692_v26  ;;  %v8245_v26 = vld [vmem:[#allocation6 + $0x228] sm:$0xff] }
 0x55c   :  { %2370 = vmatpush1.msra.mxu0 %v8217_v53  ;;  %2441 = vmatpush1.msra.mxu1 %v7696_v19  ;;  %v8249_v19 = vld [vmem:[#allocation6 + $0x220] sm:$0xff] }
 0x55d   :  { %2371 = vmatprep.subr.mxu0 %v8221_v47  ;;  %2442 = vmatprep.subr.mxu1 %v7700_v44  ;;  %v8257_v44 = vld [vmem:[#allocation6 + $0x1e0] sm:$0xff] }
 0x55e   :  { %2372 = vmatpush1.msra.mxu0 %v8225_v8  ;;  %2443 = vmatpush1.msra.mxu1 %v7704_v25  ;;  %v8265_v25 = vld [vmem:[#allocation6 + $0x1a0] sm:$0xff] }
 0x55f   :  { %2373 = vmatprep.subr.mxu0 %v8229_v41  ;;  %2444 = vmatprep.subr.mxu1 %v7708_v15  ;;  %v8269_v15 = vld [vmem:[#allocation6 + $0x168] sm:$0xff] }
 0x560   :  { %2374 = vmatpush1.msra.mxu0 %v8233_v20  ;;  %2445 = vmatpush1.msra.mxu1 %v7712_v7  ;;  %v8273_v7 = vld [vmem:[#allocation6 + $0x160] sm:$0xff] }
 0x561   :  { %2375 = vmatprep.subr.mxu0 %v8237_v55  ;;  %2446 = vmatprep.subr.mxu1 %v7716_v5  ;;  %v8276_v5 = vld [vmem:[#allocation6 + $0x170] sm:$0xff] }
 0x562   :  { %2376 = vmatpush1.msra.mxu0 %v8241_v6  ;;  %2447 = vmatpush1.msra.mxu1 %v7720_v58  ;;  %v8279_v58 = vld [vmem:[#allocation6 + $0x128] sm:$0xff] }
 0x563   :  { %2377 = vmatprep.subr.mxu0 %v8245_v26  ;;  %2448 = vmatprep.subr.mxu1 %v7724_v61  ;;  %v8282_v61 = vld [vmem:[#allocation6 + $0x138] sm:$0xff] }
 0x564   :  { %2378 = vmatpush1.msra.mxu0 %v8249_v19  ;;  %2449 = vmatpush1.msra.mxu1 %v7728_v18  ;;  %v8285_v18 = vld [vmem:[#allocation6 + $0x120] sm:$0xff] }
 0x565   :  { %2379 = vmatprep.subr.mxu0 %v8253_v37  ;;  %2450 = vmatprep.subr.mxu1 %v7732_v32  ;;  %v8288_v32 = vld [vmem:[#allocation6 + $0x130] sm:$0xff] }
 0x566   :  { %2380 = vmatpush1.msra.mxu0 %v8257_v44  ;;  %2451 = vmatpush1.msra.mxu1 %v7736_v3  ;;  %v8291_v3 = vld [vmem:[#allocation6 + $0xe8] sm:$0xff] }
 0x567   :  { %2381 = vmatprep.subr.mxu0 %v8261_v54  ;;  %2452 = vmatprep.subr.mxu1 %v7740_v36  ;;  %v8294_v36 = vld [vmem:[#allocation6 + $0xf8] sm:$0xff] }
 0x568   :  { %2382 = vmatpush1.msra.mxu0 %v8265_v25  ;;  %2453 = vmatpush1.msra.mxu1 %v7744_v2  ;;  %v8297_v2 = vld [vmem:[#allocation6 + $0xe0] sm:$0xff] }
 0x569   :  { %2383 = vmatprep.subr.mxu0 %v8269_v15  ;;  %2454 = vmatprep.subr.mxu1 %v7748_v51  ;;  %v8300_v51 = vld [vmem:[#allocation6 + $0xf0] sm:$0xff] }
 0x56a   :  { %2384 = vmatpush1.msra.mxu0 %v8273_v7  ;;  %2455 = vmatpush1.msra.mxu1 %v8276_v5 }
 0x56b   :  { %2385 = vmatprep.subr.mxu0 %v8279_v58  ;;  %2456 = vmatprep.subr.mxu1 %v8282_v61 }
 0x56c   :  { %2386 = vmatpush1.msra.mxu0 %v8285_v18  ;;  %2457 = vmatpush1.msra.mxu1 %v8288_v32 }
 0x56d   :  { %2387 = vmatprep.subr.mxu0 %v8291_v3  ;;  %2458 = vmatprep.subr.mxu1 %v8294_v36 }
 0x56e   :  { %2388 = vmatpush1.msra.mxu0 %v8297_v2  ;;  %2459 = vmatpush1.msra.mxu1 %v8300_v51 }
 0x56f   :  { %2389 = vmatprep.subr.mxu0 %v8303_v9  ;;  %2460 = vmatprep.subr.mxu1 %v8306_v63 }
 0x570   :  { %2390 = vmatpush1.msra.mxu0 %v8309_v22  ;;  %2461 = vmatpush1.msra.mxu1 %v8312_v17 }
 0x571   :  { %2391 = vmatprep.subr.mxu0 %v8315_v40  ;;  %2462 = vmatprep.subr.mxu1 %v8318_v1 }
 0x572   :  { %2392 = vmatpush2.msra.mxu0 %v8321_v23  ;;  %2463 = vmatpush2.msra.mxu1 %v8324_v60 }
 0x573   :  { %2393 = vmatprep.subr.mxu0 %v8327_v30  ;;  %2464 = vmatprep.subr.mxu1 %v8330_v11 }
 0x574   :  { %2394 = vmatpush2.msra.mxu0 %v8333_v0  ;;  %2465 = vmatpush2.msra.mxu1 %v8336_v35 }
 0x575   :  { %2395 = vmatprep.subr.mxu0 %v8339_v50  ;;  %2466 = vmatprep.subr.mxu1 %v8342_v27 }
 0x576   :  { %2396 = vmatpush2.msra.mxu0 %v8345_v43  ;;  %2467 = vmatpush2.msra.mxu1 %v8348_v38  ;;  %v11527_v38 = vld [vmem:[#allocation30_spill] sm:$0xff] }
 0x577   :  { %2397 = vmatprep.subr.mxu0 %v8351_v52  ;;  %2468 = vmatprep.subr.mxu1 %v8354_v33 }
 0x578   :  { %2398 = vmatpush2.msra.mxu0 %v8357_v56  ;;  %2469 = vmatpush2.msra.mxu1 %v8360_v4  ;;  %v8375_v56 = vld [vmem:[#allocation6 + $0x728] sm:$0xff]  ;;  %v8378_v4 = vld [vmem:[#allocation6 + $0x738] sm:$0xff] }
 0x579   :  { %2399 = vmatprep.subr.mxu0 %v8363_v48  ;;  %2470 = vmatprep.subr.mxu1 %v8366_v13  ;;  %11359 = vst [vmem:[#allocation156_spill] sm:$0xff] %v8375_v56  ;;  %11360 = vst [vmem:[#allocation149_spill] sm:$0xff] %v8378_v4  ;;  %v8381_v48 = vld [vmem:[#allocation6 + $0x720] sm:$0xff]  ;;  %v8384_v13 = vld [vmem:[#allocation6 + $0x730] sm:$0xff] }
 0x57a   :  { %2400 = vmatpush2.msra.mxu0 %v8369_v49  ;;  %2471 = vmatpush2.msra.mxu1 %v8372_v45  ;;  %11361 = vst [vmem:[#allocation155_spill] sm:$0xff] %v8381_v48  ;;  %11362 = vst [vmem:[#allocation161_spill] sm:$0xff] %v8384_v13  ;;  %v8387_v49 = vld [vmem:[#allocation6 + $0x6e8] sm:$0xff]  ;;  %v8390_v45 = vld [vmem:[#allocation6 + $0x6f8] sm:$0xff] }
 0x57b   :  { %2401 = vmatprep.subr.mxu0 %v8375_v56  ;;  %2472 = vmatprep.subr.mxu1 %v8378_v4  ;;  %11363 = vst [vmem:[#allocation157_spill] sm:$0xff] %v8387_v49  ;;  %11364 = vst [vmem:[#allocation163_spill] sm:$0xff] %v8390_v45  ;;  %v8393_v56 = vld [vmem:[#allocation6 + $0x6e0] sm:$0xff]  ;;  %v8396_v4 = vld [vmem:[#allocation6 + $0x6f0] sm:$0xff] }
 0x57c   :  { %2402 = vmatpush2.msra.mxu0 %v8381_v48  ;;  %2473 = vmatpush2.msra.mxu1 %v8384_v13  ;;  %11365 = vst [vmem:[#allocation158_spill] sm:$0xff] %v8393_v56  ;;  %11366 = vst [vmem:[#allocation159_spill] sm:$0xff] %v8396_v4  ;;  %v8399_v48 = vld [vmem:[#allocation6 + $0x6a8] sm:$0xff]  ;;  %v8402_v13 = vld [vmem:[#allocation6 + $0x6b8] sm:$0xff] }
 0x57d   :  { %2403 = vmatprep.subr.mxu0 %v8387_v49  ;;  %2474 = vmatprep.subr.mxu1 %v8390_v45  ;;  %11367 = vst [vmem:[#allocation160_spill] sm:$0xff] %v8399_v48  ;;  %11368 = vst [vmem:[#allocation162_spill] sm:$0xff] %v8402_v13  ;;  %v8405_v49 = vld [vmem:[#allocation6 + $0x6a0] sm:$0xff]  ;;  %v8408_v45 = vld [vmem:[#allocation6 + $0x6b0] sm:$0xff] }
 0x57e   :  { %2404 = vmatpush2.msra.mxu0 %v8393_v56  ;;  %2475 = vmatpush2.msra.mxu1 %v8396_v4  ;;  %11369 = vst [vmem:[#allocation164_spill] sm:$0xff] %v8405_v49  ;;  %11370 = vst [vmem:[#allocation165_spill] sm:$0xff] %v8408_v45  ;;  %v8411_v56 = vld [vmem:[#allocation6 + $0x668] sm:$0xff]  ;;  %v8414_v4 = vld [vmem:[#allocation6 + $0x678] sm:$0xff] }
 0x57f   :  { %2405 = vmatprep.subr.mxu0 %v8399_v48  ;;  %2476 = vmatprep.subr.mxu1 %v8402_v13  ;;  %11371 = vst [vmem:[#allocation166_spill] sm:$0xff] %v8411_v56  ;;  %11372 = vst [vmem:[#allocation36_spill] sm:$0xff] %v8414_v4  ;;  %v8417_v48 = vld [vmem:[#allocation6 + $0x660] sm:$0xff]  ;;  %v8420_v13 = vld [vmem:[#allocation6 + $0x670] sm:$0xff] }
 0x580   :  { %2406 = vmatpush2.msra.mxu0 %v8405_v49  ;;  %2477 = vmatpush2.msra.mxu1 %v8408_v45  ;;  %11373 = vst [vmem:[#allocation46_spill] sm:$0xff] %v8417_v48  ;;  %11374 = vst [vmem:[#allocation39_spill] sm:$0xff] %v8420_v13  ;;  %v8423_v49 = vld [vmem:[#allocation6 + $0x628] sm:$0xff]  ;;  %v8426_v45 = vld [vmem:[#allocation6 + $0x638] sm:$0xff] }
 0x581   :  { %2407 = vmatprep.subr.mxu0 %v8411_v56  ;;  %2478 = vmatprep.subr.mxu1 %v8414_v4  ;;  %11375 = vst [vmem:[#allocation48_spill] sm:$0xff] %v8423_v49  ;;  %11376 = vst [vmem:[#allocation41_spill] sm:$0xff] %v8426_v45  ;;  %v8429_v56 = vld [vmem:[#allocation6 + $0x620] sm:$0xff]  ;;  %v8432_v4 = vld [vmem:[#allocation6 + $0x630] sm:$0xff] }
 0x582   :  { %2408 = vmatpush2.msra.mxu0 %v8417_v48  ;;  %2479 = vmatpush2.msra.mxu1 %v8420_v13  ;;  %11377 = vst [vmem:[#allocation50_spill] sm:$0xff] %v8429_v56  ;;  %11378 = vst [vmem:[#allocation43_spill] sm:$0xff] %v8432_v4  ;;  %v8435_v48 = vld [vmem:[#allocation6 + $0x5e8] sm:$0xff]  ;;  %v8438_v13 = vld [vmem:[#allocation6 + $0x5f8] sm:$0xff] }
 0x583   :  { %2409 = vmatprep.subr.mxu0 %v8423_v49  ;;  %2480 = vmatprep.subr.mxu1 %v8426_v45  ;;  %11379 = vst [vmem:[#allocation52_spill] sm:$0xff] %v8435_v48  ;;  %11380 = vst [vmem:[#allocation167_spill] sm:$0xff] %v8438_v13  ;;  %v8441_v49 = vld [vmem:[#allocation6 + $0x5e0] sm:$0xff]  ;;  %v8444_v45 = vld [vmem:[#allocation6 + $0x5f0] sm:$0xff] }
 0x584   :  { %2410 = vmatpush2.msra.mxu0 %v8429_v56  ;;  %2481 = vmatpush2.msra.mxu1 %v8432_v4  ;;  %11381 = vst [vmem:[#allocation168_spill] sm:$0xff] %v8441_v49  ;;  %11382 = vst [vmem:[#allocation169_spill] sm:$0xff] %v8444_v45  ;;  %v8447_v56 = vld [vmem:[#allocation6 + $0x5a8] sm:$0xff]  ;;  %v8450_v4 = vld [vmem:[#allocation6 + $0x5b8] sm:$0xff] }
 0x585   :  { %2411 = vmatprep.subr.mxu0 %v8435_v48  ;;  %2482 = vmatprep.subr.mxu1 %v8438_v13  ;;  %11383 = vst [vmem:[#allocation170_spill] sm:$0xff] %v8447_v56  ;;  %11384 = vst [vmem:[#allocation171_spill] sm:$0xff] %v8450_v4  ;;  %v8453_v48 = vld [vmem:[#allocation6 + $0x5a0] sm:$0xff]  ;;  %v8456_v13 = vld [vmem:[#allocation6 + $0x5b0] sm:$0xff] }
 0x586   :  { %2412 = vmatpush2.msra.mxu0 %v8441_v49  ;;  %2483 = vmatpush2.msra.mxu1 %v8444_v45  ;;  %11385 = vst [vmem:[#allocation172_spill] sm:$0xff] %v8453_v48  ;;  %11386 = vst [vmem:[#allocation173_spill] sm:$0xff] %v8456_v13  ;;  %v8459_v49 = vld [vmem:[#allocation6 + $0x568] sm:$0xff]  ;;  %v8462_v45 = vld [vmem:[#allocation6 + $0x578] sm:$0xff] }
 0x587   :  { %2413 = vmatprep.subr.mxu0 %v8447_v56  ;;  %2484 = vmatprep.subr.mxu1 %v8450_v4  ;;  %11387 = vst [vmem:[#allocation174_spill] sm:$0xff] %v8459_v49  ;;  %11388 = vst [vmem:[#allocation175_spill] sm:$0xff] %v8462_v45  ;;  %v8465_v56 = vld [vmem:[#allocation6 + $0x560] sm:$0xff]  ;;  %v8468_v4 = vld [vmem:[#allocation6 + $0x570] sm:$0xff] }
 0x588   :  { %2414 = vmatpush2.msra.mxu0 %v8453_v48  ;;  %2485 = vmatpush2.msra.mxu1 %v8456_v13  ;;  %11389 = vst [vmem:[#allocation176_spill] sm:$0xff] %v8465_v56  ;;  %11390 = vst [vmem:[#allocation177_spill] sm:$0xff] %v8468_v4  ;;  %v8471_v48 = vld [vmem:[#allocation6 + $0x528] sm:$0xff]  ;;  %v8474_v13 = vld [vmem:[#allocation6 + $0x538] sm:$0xff] }
 0x589   :  { %2415 = vmatprep.subr.mxu0 %v8459_v49  ;;  %2486 = vmatprep.subr.mxu1 %v8462_v45  ;;  %11391 = vst [vmem:[#allocation178_spill] sm:$0xff] %v8471_v48  ;;  %11392 = vst [vmem:[#allocation179_spill] sm:$0xff] %v8474_v13  ;;  %v8477_v49 = vld [vmem:[#allocation6 + $0x520] sm:$0xff]  ;;  %v8480_v45 = vld [vmem:[#allocation6 + $0x530] sm:$0xff] }
 0x58a   :  { %2416 = vmatpush2.msra.mxu0 %v8465_v56  ;;  %2487 = vmatpush2.msra.mxu1 %v8468_v4  ;;  %11393 = vst [vmem:[#allocation180_spill] sm:$0xff] %v8477_v49  ;;  %11394 = vst [vmem:[#allocation181_spill] sm:$0xff] %v8480_v45  ;;  %v8483_v56 = vld [vmem:[#allocation6 + $0x4e8] sm:$0xff]  ;;  %v8486_v4 = vld [vmem:[#allocation6 + $0x4f8] sm:$0xff] }
 0x58b   :  { %2417 = vmatprep.subr.mxu0 %v8471_v48  ;;  %2488 = vmatprep.subr.mxu1 %v8474_v13  ;;  %11395 = vst [vmem:[#allocation182_spill] sm:$0xff] %v8483_v56  ;;  %11396 = vst [vmem:[#allocation183_spill] sm:$0xff] %v8486_v4  ;;  %v8489_v48 = vld [vmem:[#allocation6 + $0x4e0] sm:$0xff]  ;;  %v8492_v13 = vld [vmem:[#allocation6 + $0x4f0] sm:$0xff] }
 0x58c   :  { %2418 = vmatpush2.msra.mxu0 %v8477_v49  ;;  %2489 = vmatpush2.msra.mxu1 %v8480_v45  ;;  %11397 = vst [vmem:[#allocation184_spill] sm:$0xff] %v8489_v48  ;;  %11398 = vst [vmem:[#allocation185_spill] sm:$0xff] %v8492_v13  ;;  %v8495_v49 = vld [vmem:[#allocation6 + $0x4a8] sm:$0xff]  ;;  %v8498_v45 = vld [vmem:[#allocation6 + $0x4b8] sm:$0xff] }
 0x58d   :  { %2419 = vmatprep.subr.mxu0 %v8483_v56  ;;  %2490 = vmatprep.subr.mxu1 %v8486_v4  ;;  %11399 = vst [vmem:[#allocation186_spill] sm:$0xff] %v8495_v49  ;;  %11400 = vst [vmem:[#allocation187_spill] sm:$0xff] %v8498_v45  ;;  %v8501_v56 = vld [vmem:[#allocation6 + $0x4a0] sm:$0xff]  ;;  %v8504_v4 = vld [vmem:[#allocation6 + $0x4b0] sm:$0xff] }
 0x58e   :  { %2420 = vmatpush2.msra.mxu0 %v8489_v48  ;;  %2491 = vmatpush2.msra.mxu1 %v8492_v13  ;;  %11401 = vst [vmem:[#allocation188_spill] sm:$0xff] %v8501_v56  ;;  %11402 = vst [vmem:[#allocation189_spill] sm:$0xff] %v8504_v4  ;;  %v8509_v13 = vld [vmem:[#allocation6 + $0x448] sm:$0xff] }
 0x58f   :  { %2421 = vmatprep.subr.mxu0 %v8495_v49  ;;  %2492 = vmatprep.subr.mxu1 %v8498_v45  ;;  %11403 = vst [vmem:[#allocation190_spill] sm:$0xff] %v8509_v13  ;;  %v8512_v49 = vld [vmem:[#allocation6 + $0x458] sm:$0xff]  ;;  %v8515_v45 = vld [vmem:[#allocation6 + $0x440] sm:$0xff] }
 0x590   :  { %2422 = vmatpush2.msra.mxu0 %v8501_v56  ;;  %2493 = vmatpush2.msra.mxu1 %v8504_v4  ;;  %11404 = vst [vmem:[#allocation191_spill] sm:$0xff] %v8512_v49  ;;  %11405 = vst [vmem:[#allocation192_spill] sm:$0xff] %v8515_v45  ;;  %v8518_v56 = vld [vmem:[#allocation6 + $0x450] sm:$0xff]  ;;  %v8521_v4 = vld [vmem:[#allocation6 + $0x408] sm:$0xff] }
 0x591   :  { %2424 = vmatmul.mubr.f32.vlgmr.msra.gmra.mxu0 %v8189_v21  ;;  %2495 = vmatmul.mubr.f32.vlgmr.msra.gmra.mxu1 %v8189_v21  ;;  %11406 = vst [vmem:[#allocation193_spill] sm:$0xff] %v8518_v56  ;;  %11407 = vst [vmem:[#allocation194_spill] sm:$0xff] %v8521_v4  ;;  %v8524_v21 = vld [vmem:[#allocation6 + $0x418] sm:$0xff] }
 0x592   :  { %2563 = vmatprep.subr.mxu0 %v8509_v13  ;;  %2634 = vmatprep.subr.mxu1 %v8512_v49  ;;  %11408 = vst [vmem:[#allocation195_spill] sm:$0xff] %v8524_v21  ;;  %v8527_v13 = vld [vmem:[#allocation6 + $0x400] sm:$0xff]  ;;  %v8530_v49 = vld [vmem:[#allocation6 + $0x410] sm:$0xff] }
 0x593   :  { %2564 = vmatpush1.msra.mxu0 %v8515_v45  ;;  %2635 = vmatpush1.msra.mxu1 %v8518_v56  ;;  %11409 = vst [vmem:[#allocation196_spill] sm:$0xff] %v8527_v13  ;;  %11410 = vst [vmem:[#allocation197_spill] sm:$0xff] %v8530_v49  ;;  %v8533_v45 = vld [vmem:[#allocation6 + $0x3c8] sm:$0xff]  ;;  %v8536_v56 = vld [vmem:[#allocation6 + $0x3d8] sm:$0xff] }
 0x594   :  { %2565 = vmatprep.subr.mxu0 %v8521_v4  ;;  %2636 = vmatprep.subr.mxu1 %v8524_v21  ;;  %11411 = vst [vmem:[#allocation198_spill] sm:$0xff] %v8533_v45  ;;  %11412 = vst [vmem:[#allocation199_spill] sm:$0xff] %v8536_v56  ;;  %v8540_v4 = vld [vmem:[#allocation6 + $0x3d0] sm:$0xff] }
 0x595   :  { %2566 = vmatpush1.msra.mxu0 %v8527_v13  ;;  %2637 = vmatpush1.msra.mxu1 %v8530_v49  ;;  %11413 = vst [vmem:[#allocation200_spill] sm:$0xff] %v8540_v4  ;;  %v8544_v13 = vld [vmem:[#allocation6 + $0x398] sm:$0xff]  ;;  %v8548_v49 = vld [vmem:[#allocation6 + $0x390] sm:$0xff] }
 0x596   :  { %2567 = vmatprep.subr.mxu0 %v8533_v45  ;;  %2638 = vmatprep.subr.mxu1 %v8536_v56  ;;  %11414 = vst [vmem:[#allocation201_spill] sm:$0xff] %v8544_v13  ;;  %11415 = vst [vmem:[#allocation202_spill] sm:$0xff] %v8548_v49  ;;  %v8552_v56 = vld [vmem:[#allocation6 + $0x358] sm:$0xff] }
 0x597   :  { %2568 = vmatpush1.msra.mxu0 %v7841_v24  ;;  %2639 = vmatpush1.msra.mxu1 %v8540_v4  ;;  %11416 = vst [vmem:[#allocation203_spill] sm:$0xff] %v8552_v56  ;;  %v8556_v24 = vld [vmem:[#allocation6 + $0x350] sm:$0xff] }
 0x598   :  { %2569 = vmatprep.subr.mxu0 %v7845_v39  ;;  %2640 = vmatprep.subr.mxu1 %v8544_v13  ;;  %11417 = vst [vmem:[#allocation204_spill] sm:$0xff] %v8556_v24  ;;  %v8560_v39 = vld [vmem:[#allocation6 + $0x318] sm:$0xff]  ;;  %v11524_v4 = vld [vmem:[#allocation18_spill] sm:$0xff] }
 0x599   :  { %2570 = vmatpush1.msra.mxu0 %v7849_v28  ;;  %2641 = vmatpush1.msra.mxu1 %v8548_v49  ;;  %11418 = vst [vmem:[#allocation205_spill] sm:$0xff] %v8560_v39  ;;  %v8564_v28 = vld [vmem:[#allocation6 + $0x310] sm:$0xff] }
 0x59a   :  { %2571 = vmatprep.subr.mxu0 %v7853_v12  ;;  %2642 = vmatprep.subr.mxu1 %v8552_v56  ;;  %11419 = vst [vmem:[#allocation206_spill] sm:$0xff] %v8564_v28  ;;  %v8568_v12 = vld [vmem:[#allocation6 + $0x2d8] sm:$0xff] }
 0x59b   :  { %2572 = vmatpush1.msra.mxu0 %v7857_v16  ;;  %2643 = vmatpush1.msra.mxu1 %v8556_v24  ;;  %11420 = vst [vmem:[#allocation207_spill] sm:$0xff] %v8568_v12  ;;  %v8572_v16 = vld [vmem:[#allocation6 + $0x2d0] sm:$0xff]  ;;  %v11439_v24 = vld [vmem:[#allocation63_spill] sm:$0xff] }
 0x59c   :  { %2573 = vmatprep.subr.mxu0 %v7861_v10  ;;  %2644 = vmatprep.subr.mxu1 %v8560_v39  ;;  %11421 = vst [vmem:[#allocation208_spill] sm:$0xff] %v8572_v16  ;;  %v8576_v10 = vld [vmem:[#allocation6 + $0x298] sm:$0xff]  ;;  %v11436_v39 = vld [vmem:[#allocation66_spill] sm:$0xff] }
 0x59d   :  { %2574 = vmatpush1.msra.mxu0 %v7865_v34  ;;  %2645 = vmatpush1.msra.mxu1 %v8564_v28  ;;  %11422 = vst [vmem:[#allocation209_spill] sm:$0xff] %v8576_v10  ;;  %v8580_v34 = vld [vmem:[#allocation6 + $0x290] sm:$0xff]  ;;  %v11433_v28 = vld [vmem:[#allocation57_spill] sm:$0xff] }
 0x59e   :  { %2575 = vmatprep.subr.mxu0 %v7869_v62  ;;  %2646 = vmatprep.subr.mxu1 %v8568_v12  ;;  %11423 = vst [vmem:[#allocation45_spill] sm:$0xff] %v8580_v34  ;;  %v11424_v62 = vld [vmem:[#allocation51_spill] sm:$0xff] }
 0x59f   :  { %2576 = vmatpush1.msra.mxu0 %v7873_v46  ;;  %2647 = vmatpush1.msra.mxu1 %v8572_v16  ;;  %v8584_v12 = vld [vmem:[#allocation6 + $0x258] sm:$0xff]  ;;  %v11426_v46 = vld [vmem:[#allocation60_spill] sm:$0xff]  ;;  %v8588_v16 = vld [vmem:[#allocation6 + $0x250] sm:$0xff] }
 0x5a0   :  { %2577 = vmatprep.subr.mxu0 %v7877_v42  ;;  %2648 = vmatprep.subr.mxu1 %v8576_v10  ;;  %11425 = vst [vmem:[#allocation15_spill] sm:$0xff] %v8584_v12  ;;  %11427 = vst [vmem:[#allocation14_spill] sm:$0xff] %v8588_v16  ;;  %v11428_v42 = vld [vmem:[#allocation53_spill] sm:$0xff]  ;;  %v8592_v10 = vld [vmem:[#allocation6 + $0x218] sm:$0xff] }
 0x5a1   :  { %2578 = vmatpush1.msra.mxu0 %v7881_v14  ;;  %2649 = vmatpush1.msra.mxu1 %v8580_v34  ;;  %11429 = vst [vmem:[#allocation54_spill] sm:$0xff] %v8592_v10  ;;  %v11430_v14 = vld [vmem:[#allocation62_spill] sm:$0xff]  ;;  %v11431_v34 = vld [vmem:[#allocation55_spill] sm:$0xff] }
 0x5a2   :  { %2579 = vmatprep.subr.mxu0 %v11424_v62  ;;  %2650 = vmatprep.subr.mxu1 %v8584_v12  ;;  %v11432_v62 = vld [vmem:[#allocation64_spill] sm:$0xff]  ;;  %v11434_v12 = vld [vmem:[#allocation65_spill] sm:$0xff] }
 0x5a3   :  { %2580 = vmatpush1.msra.mxu0 %v11426_v46  ;;  %2651 = vmatpush1.msra.mxu1 %v8588_v16  ;;  %v11435_v46 = vld [vmem:[#allocation59_spill] sm:$0xff]  ;;  %v11437_v16 = vld [vmem:[#allocation61_spill] sm:$0xff] }
 0x5a4   :  { %2581 = vmatprep.subr.mxu0 %v11428_v42  ;;  %2652 = vmatprep.subr.mxu1 %v8592_v10  ;;  %v11438_v42 = vld [vmem:[#allocation67_spill] sm:$0xff]  ;;  %v11440_v10 = vld [vmem:[#allocation68_spill] sm:$0xff] }
 0x5a5   :  { %2582 = vmatpush1.msra.mxu0 %v11430_v14  ;;  %2653 = vmatpush1.msra.mxu1 %v11431_v34  ;;  %v11441_v14 = vld [vmem:[#allocation69_spill] sm:$0xff]  ;;  %v11442_v34 = vld [vmem:[#allocation70_spill] sm:$0xff] }
 0x5a6   :  { %2583 = vmatprep.subr.mxu0 %v11432_v62  ;;  %2654 = vmatprep.subr.mxu1 %v11433_v28  ;;  %v11443_v62 = vld [vmem:[#allocation71_spill] sm:$0xff]  ;;  %v11444_v28 = vld [vmem:[#allocation72_spill] sm:$0xff] }
 0x5a7   :  { %2584 = vmatpush1.msra.mxu0 %v11434_v12  ;;  %2655 = vmatpush1.msra.mxu1 %v11435_v46  ;;  %v11445_v12 = vld [vmem:[#allocation73_spill] sm:$0xff]  ;;  %v11446_v46 = vld [vmem:[#allocation74_spill] sm:$0xff] }
 0x5a8   :  { %2585 = vmatprep.subr.mxu0 %v11436_v39  ;;  %2656 = vmatprep.subr.mxu1 %v11437_v16  ;;  %v11447_v39 = vld [vmem:[#allocation75_spill] sm:$0xff]  ;;  %v11448_v16 = vld [vmem:[#allocation77_spill] sm:$0xff] }
 0x5a9   :  { %2586 = vmatpush1.msra.mxu0 %v11438_v42  ;;  %2657 = vmatpush1.msra.mxu1 %v11439_v24  ;;  %v11449_v42 = vld [vmem:[#allocation79_spill] sm:$0xff]  ;;  %v11450_v24 = vld [vmem:[#allocation81_spill] sm:$0xff] }
 0x5aa   :  { %2587 = vmatprep.subr.mxu0 %v11440_v10  ;;  %2658 = vmatprep.subr.mxu1 %v11441_v14  ;;  %v11451_v10 = vld [vmem:[#allocation83_spill] sm:$0xff]  ;;  %v11452_v14 = vld [vmem:[#allocation85_spill] sm:$0xff] }
 0x5ab   :  { %2588 = vmatpush1.msra.mxu0 %v11442_v34  ;;  %2659 = vmatpush1.msra.mxu1 %v11443_v62  ;;  %v11453_v34 = vld [vmem:[#allocation87_spill] sm:$0xff]  ;;  %v11454_v62 = vld [vmem:[#allocation89_spill] sm:$0xff] }
 0x5ac   :  { %2589 = vmatprep.subr.mxu0 %v11444_v28  ;;  %2660 = vmatprep.subr.mxu1 %v11445_v12  ;;  %v11455_v28 = vld [vmem:[#allocation91_spill] sm:$0xff]  ;;  %v11456_v12 = vld [vmem:[#allocation76_spill] sm:$0xff] }
 0x5ad   :  { %2590 = vmatpush1.msra.mxu0 %v11446_v46  ;;  %2661 = vmatpush1.msra.mxu1 %v11447_v39  ;;  %v11457_v46 = vld [vmem:[#allocation93_spill] sm:$0xff]  ;;  %v11458_v39 = vld [vmem:[#allocation78_spill] sm:$0xff] }
 0x5ae   :  { %2591 = vmatprep.subr.mxu0 %v11448_v16  ;;  %2662 = vmatprep.subr.mxu1 %v11449_v42  ;;  %v11459_v16 = vld [vmem:[#allocation95_spill] sm:$0xff]  ;;  %v11460_v42 = vld [vmem:[#allocation80_spill] sm:$0xff] }
 0x5af   :  { %2592 = vmatpush1.msra.mxu0 %v11450_v24  ;;  %2663 = vmatpush1.msra.mxu1 %v11451_v10  ;;  %v11461_v24 = vld [vmem:[#allocation97_spill] sm:$0xff]  ;;  %v11462_v10 = vld [vmem:[#allocation82_spill] sm:$0xff] }
 0x5b0   :  { %2593 = vmatprep.subr.mxu0 %v11452_v14  ;;  %2664 = vmatprep.subr.mxu1 %v11453_v34  ;;  %v11463_v14 = vld [vmem:[#allocation99_spill] sm:$0xff]  ;;  %v11464_v34 = vld [vmem:[#allocation84_spill] sm:$0xff] }
 0x5b1   :  { %2594 = vmatpush1.msra.mxu0 %v11454_v62  ;;  %2665 = vmatpush1.msra.mxu1 %v11455_v28  ;;  %v11465_v62 = vld [vmem:[#allocation101_spill] sm:$0xff]  ;;  %v11466_v28 = vld [vmem:[#allocation86_spill] sm:$0xff] }
 0x5b2   :  { %2595 = vmatprep.subr.mxu0 %v11456_v12  ;;  %2666 = vmatprep.subr.mxu1 %v11457_v46  ;;  %v11467_v12 = vld [vmem:[#allocation103_spill] sm:$0xff]  ;;  %v11468_v46 = vld [vmem:[#allocation88_spill] sm:$0xff] }
 0x5b3   :  { %2596 = vmatpush2.msra.mxu0 %v11458_v39  ;;  %2667 = vmatpush2.msra.mxu1 %v11459_v16  ;;  %v11469_v39 = vld [vmem:[#allocation105_spill] sm:$0xff]  ;;  %v11470_v16 = vld [vmem:[#allocation90_spill] sm:$0xff] }
 0x5b4   :  { %2597 = vmatprep.subr.mxu0 %v11460_v42  ;;  %2668 = vmatprep.subr.mxu1 %v11461_v24  ;;  %v11471_v42 = vld [vmem:[#allocation107_spill] sm:$0xff]  ;;  %v11472_v24 = vld [vmem:[#allocation92_spill] sm:$0xff] }
 0x5b5   :  { %2598 = vmatpush2.msra.mxu0 %v11462_v10  ;;  %2669 = vmatpush2.msra.mxu1 %v11463_v14  ;;  %v11473_v10 = vld [vmem:[#allocation109_spill] sm:$0xff]  ;;  %v11474_v14 = vld [vmem:[#allocation94_spill] sm:$0xff] }
 0x5b6   :  { %2599 = vmatprep.subr.mxu0 %v11464_v34  ;;  %2670 = vmatprep.subr.mxu1 %v11465_v62  ;;  %v11475_v34 = vld [vmem:[#allocation111_spill] sm:$0xff]  ;;  %v11476_v62 = vld [vmem:[#allocation96_spill] sm:$0xff] }
 0x5b7   :  { %2600 = vmatpush2.msra.mxu0 %v11466_v28  ;;  %2671 = vmatpush2.msra.mxu1 %v11467_v12  ;;  %v11477_v28 = vld [vmem:[#allocation113_spill] sm:$0xff]  ;;  %v11478_v12 = vld [vmem:[#allocation98_spill] sm:$0xff] }
 0x5b8   :  { %2601 = vmatprep.subr.mxu0 %v11468_v46  ;;  %2672 = vmatprep.subr.mxu1 %v11469_v39  ;;  %v11479_v46 = vld [vmem:[#allocation115_spill] sm:$0xff]  ;;  %v11480_v39 = vld [vmem:[#allocation100_spill] sm:$0xff] }
 0x5b9   :  { %2602 = vmatpush2.msra.mxu0 %v11470_v16  ;;  %2673 = vmatpush2.msra.mxu1 %v11471_v42  ;;  %v11481_v16 = vld [vmem:[#allocation117_spill] sm:$0xff]  ;;  %v11482_v42 = vld [vmem:[#allocation102_spill] sm:$0xff] }
 0x5ba   :  { %2603 = vmatprep.subr.mxu0 %v11472_v24  ;;  %2674 = vmatprep.subr.mxu1 %v11473_v10  ;;  %v11483_v24 = vld [vmem:[#allocation119_spill] sm:$0xff]  ;;  %v11484_v10 = vld [vmem:[#allocation104_spill] sm:$0xff] }
 0x5bb   :  { %2604 = vmatpush2.msra.mxu0 %v11474_v14  ;;  %2675 = vmatpush2.msra.mxu1 %v11475_v34  ;;  %v11485_v14 = vld [vmem:[#allocation121_spill] sm:$0xff]  ;;  %v11486_v34 = vld [vmem:[#allocation106_spill] sm:$0xff] }
 0x5bc   :  { %2605 = vmatprep.subr.mxu0 %v11476_v62  ;;  %2676 = vmatprep.subr.mxu1 %v11477_v28  ;;  %v11487_v62 = vld [vmem:[#allocation123_spill] sm:$0xff]  ;;  %v11488_v28 = vld [vmem:[#allocation108_spill] sm:$0xff] }
 0x5bd   :  { %2606 = vmatpush2.msra.mxu0 %v11478_v12  ;;  %2677 = vmatpush2.msra.mxu1 %v11479_v46  ;;  %v11489_v12 = vld [vmem:[#allocation125_spill] sm:$0xff]  ;;  %v11490_v46 = vld [vmem:[#allocation110_spill] sm:$0xff] }
 0x5be   :  { %2607 = vmatprep.subr.mxu0 %v11480_v39  ;;  %2678 = vmatprep.subr.mxu1 %v11481_v16  ;;  %v11491_v39 = vld [vmem:[#allocation127_spill] sm:$0xff]  ;;  %v11492_v16 = vld [vmem:[#allocation112_spill] sm:$0xff] }
 0x5bf   :  { %2608 = vmatpush2.msra.mxu0 %v11482_v42  ;;  %2679 = vmatpush2.msra.mxu1 %v11483_v24  ;;  %v11493_v42 = vld [vmem:[#allocation129_spill] sm:$0xff]  ;;  %v11494_v24 = vld [vmem:[#allocation114_spill] sm:$0xff] }
 0x5c0   :  { %2609 = vmatprep.subr.mxu0 %v11484_v10  ;;  %2680 = vmatprep.subr.mxu1 %v11485_v14  ;;  %v11495_v10 = vld [vmem:[#allocation131_spill] sm:$0xff]  ;;  %v11496_v14 = vld [vmem:[#allocation116_spill] sm:$0xff] }
 0x5c1   :  { %2610 = vmatpush2.msra.mxu0 %v11486_v34  ;;  %2681 = vmatpush2.msra.mxu1 %v11487_v62  ;;  %v11497_v34 = vld [vmem:[#allocation133_spill] sm:$0xff]  ;;  %v11498_v62 = vld [vmem:[#allocation118_spill] sm:$0xff] }
 0x5c2   :  { %2611 = vmatprep.subr.mxu0 %v11488_v28  ;;  %2682 = vmatprep.subr.mxu1 %v11489_v12  ;;  %v11499_v28 = vld [vmem:[#allocation135_spill] sm:$0xff]  ;;  %v11500_v12 = vld [vmem:[#allocation120_spill] sm:$0xff] }
 0x5c3   :  { %2612 = vmatpush2.msra.mxu0 %v11490_v46  ;;  %2683 = vmatpush2.msra.mxu1 %v11491_v39  ;;  %v11501_v46 = vld [vmem:[#allocation137_spill] sm:$0xff]  ;;  %v11502_v39 = vld [vmem:[#allocation122_spill] sm:$0xff] }
 0x5c4   :  { %2613 = vmatprep.subr.mxu0 %v11492_v16  ;;  %2684 = vmatprep.subr.mxu1 %v11493_v42  ;;  %v11503_v16 = vld [vmem:[#allocation139_spill] sm:$0xff]  ;;  %v11504_v42 = vld [vmem:[#allocation124_spill] sm:$0xff] }
 0x5c5   :  { %2614 = vmatpush2.msra.mxu0 %v11494_v24  ;;  %2685 = vmatpush2.msra.mxu1 %v11495_v10  ;;  %v11505_v24 = vld [vmem:[#allocation141_spill] sm:$0xff]  ;;  %v11506_v10 = vld [vmem:[#allocation126_spill] sm:$0xff] }
 0x5c6   :  { %2615 = vmatprep.subr.mxu0 %v11496_v14  ;;  %2686 = vmatprep.subr.mxu1 %v11497_v34  ;;  %v11507_v14 = vld [vmem:[#allocation128_spill] sm:$0xff]  ;;  %v11508_v34 = vld [vmem:[#allocation130_spill] sm:$0xff] }
 0x5c7   :  { %2616 = vmatpush2.msra.mxu0 %v11498_v62  ;;  %2687 = vmatpush2.msra.mxu1 %v11499_v28  ;;  %v11509_v62 = vld [vmem:[#allocation145_spill] sm:$0xff]  ;;  %v11510_v28 = vld [vmem:[#allocation132_spill] sm:$0xff] }
 0x5c8   :  { %2617 = vmatprep.subr.mxu0 %v11500_v12  ;;  %2688 = vmatprep.subr.mxu1 %v11501_v46  ;;  %v11511_v12 = vld [vmem:[#allocation134_spill] sm:$0xff]  ;;  %v11512_v46 = vld [vmem:[#allocation148_spill] sm:$0xff] }
 0x5c9   :  { %2618 = vmatpush2.msra.mxu0 %v11502_v39  ;;  %2689 = vmatpush2.msra.mxu1 %v11503_v16  ;;  %v11513_v39 = vld [vmem:[#allocation136_spill] sm:$0xff] }
 0x5ca   :  { %2619 = vmatprep.subr.mxu0 %v11504_v42  ;;  %2690 = vmatprep.subr.mxu1 %v11505_v24  ;;  %v11514_v16 = vld [vmem:[#allocation16_spill] sm:$0xff]  ;;  %v11515_v42 = vld [vmem:[#allocation21_spill] sm:$0xff] }
 0x5cb   :  { %2620 = vmatpush2.msra.mxu0 %v11506_v10  ;;  %2691 = vmatpush2.msra.mxu1 %v11507_v14  ;;  %v11516_v24 = vld [vmem:[#allocation28_spill] sm:$0xff]  ;;  %v11517_v10 = vld [vmem:[#allocation38_spill] sm:$0xff]  ;;  %v11518_v14 = vld [vmem:[#allocation33_spill] sm:$0xff] }
 0x5cc   :  { %2621 = vmatprep.subr.mxu0 %v11508_v34  ;;  %2692 = vmatprep.subr.mxu1 %v11509_v62  ;;  %v11519_v34 = vld [vmem:[#allocation150_spill] sm:$0xff] }
 0x5cd   :  { %2622 = vmatpush2.msra.mxu0 %v11510_v28  ;;  %2693 = vmatpush2.msra.mxu1 %v11511_v12  ;;  %v11520_v62 = vld [vmem:[#allocation138_spill] sm:$0xff]  ;;  %v11521_v28 = vld [vmem:[#allocation151_spill] sm:$0xff] }
 0x5ce   :  { %2623 = vmatprep.subr.mxu0 %v11512_v46  ;;  %2694 = vmatprep.subr.mxu1 %v11513_v39  ;;  %v11522_v39 = vld [vmem:[#allocation17_spill] sm:$0xff] }
 0x5cf   :  { %2624 = vmatpush2.msra.mxu0 %v11514_v16  ;;  %2695 = vmatpush2.msra.mxu1 %v11515_v42  ;;  %v11523_v16 = vld [vmem:[#allocation23_spill] sm:$0xff] }
 0x5d0   :  { %2625 = vmatprep.subr.mxu0 %v11516_v24  ;;  %2696 = vmatprep.subr.mxu1 %v11517_v10  ;;  %v11525_v10 = vld [vmem:[#allocation25_spill] sm:$0xff] }
 0x5d1   :  { %2626 = vmatpush2.msra.mxu0 %v11518_v14  ;;  %2697 = vmatpush2.msra.mxu1 %v11519_v34 }
 0x5d2   :  { %2705 = vmatprep.subr.mxu0 %v11520_v62  ;;  %2776 = vmatprep.subr.mxu1 %v11521_v28 }
 0x610   :  { %v2283_v12 = vpop.f32.mrf.mxu0  ;;  %v2354_v46 = vpop.f32.mrf.mxu1 }
 0x611   :  { %v2501_v49 = vadd.f32 %v2283_v12, %v11522_v39  ;;  %v2503_v13 = vadd.f32 %v2354_v46, %v11523_v16  ;;  %v11526_v16 = vld [vmem:[#allocation34_spill] sm:$0xff] }
 0x612   :  { %v2285_v56 = vpop.f32.mrf.mxu0  ;;  %v2356_v42 = vpop.f32.mrf.mxu1 }
 0x613   :  { %v2502_v24 = vadd.f32 %v2285_v56, %v11524_v4  ;;  %v4239_v45 = vmul.f32 -1.442695, %v2501_v49  ;;  %v2504_v21 = vadd.f32 %v2356_v42, %v11525_v10  ;;  %v4241_v14 = vmul.f32 -1.442695, %v2503_v13 }
 0x614   :  { %v8693_v56 = vadd.f32 %v11527_v38, %v11526_v16 }
 0x615   :  { %v4240_v48 = vmul.f32 -1.442695, %v2502_v24  ;;  %4446 = vpow2.f32 %v4239_v45  ;;  %v4242_v34 = vmul.f32 -1.442695, %v2504_v21  ;;  %v11529_v45 = vld [vmem:[#allocation44_spill] sm:$0xff] }
 0x616   :  { %4448 = vpow2.f32 %v4241_v14  ;;  %11528 = vst [vmem:[#allocation22_spill] sm:$0xff] %v8693_v56  ;;  %v11530_v21 = vld [vmem:[#allocation40_spill] sm:$0xff] }
 0x617   :  { %4450 = vpow2.f32 %v4240_v48  ;;  %v8697_v24 = vadd.f32 %v11530_v21, %v11529_v45  ;;  %v11532_v14 = vld [vmem:[#allocation24_spill] sm:$0xff] }
 0x618   :  { %4452 = vpow2.f32 %v4242_v34 }
 0x619   :  { %11531 = vst [vmem:[#allocation47_spill] sm:$0xff] %v8697_v24 }
 0x622   :  { %v4447_v62 = vpop.eup %4446 }
 0x623   :  { %v4449_v28 = vpop.eup %4448  ;;  %v2515_v52 = vadd.f32 1.0, %v4447_v62 }
 0x624   :  { %v4451_v33 = vpop.eup %4450  ;;  %v2527_v39 = vadd.f32 1.0, %v4449_v28 }
 0x625   :  { %v4453_v12 = vpop.eup %4452  ;;  %v2516_v46 = vadd.f32 1.0, %v4451_v33  ;;  %4454 = vrcp.f32 %v2515_v52  ;;  %v11533_v52 = vld [vmem:[#allocation35_spill] sm:$0xff] }
 0x626   :  { %v2528_v49 = vadd.f32 1.0, %v4453_v12  ;;  %4456 = vrcp.f32 %v2527_v39 }
 0x627   :  { %4458 = vrcp.f32 %v2516_v46 }
 0x632   :  { %v4455_v21 = vpop.eup %4454 }
 0x633   :  { %v4457_v39 = vpop.eup %4456 }
 0x634   :  { %v4459_v45 = vpop.eup %4458 }
 0x651   :  { %v2425_v13 = vpop.f32.mrf.mxu0  ;;  %v2496_v42 = vpop.f32.mrf.mxu1 }
 0x652   :  { %v2505_v48 = vadd.f32 %v2425_v13, %v8693_v56  ;;  %v2507_v34 = vadd.f32 %v2496_v42, %v11532_v14  ;;  %v2549_v13 = vrot.slane %v8183_v59, 4 }
 0x653   :  { %v2427_v62 = vpop.f32.mrf.mxu0  ;;  %v2498_v33 = vpop.f32.mrf.mxu1 }
 0x654   :  { %4460 = vtanh.f32 %v2505_v48  ;;  %v4243_v28 = vmul.f32 -1.442695, %v2507_v34  ;;  %v2506_v38 = vadd.f32 %v2427_v62, %v8697_v24  ;;  %v2508_v12 = vadd.f32 %v2498_v33, %v11533_v52 }
 0x655   :  { %4462 = vrcp.f32 %v2528_v49  ;;  %v2553_v14 = vmul.f32 %v4457_v39, %v2549_v13  ;;  %v2550_v34 = vrot.slane %v8186_v31, 4 }
 0x656   :  { %4464 = vpow2.f32 %v4243_v28  ;;  %v4244_v16 = vmul.f32 -1.442695, %v2508_v12 }
 0x657   :  { %4466 = vtanh.f32 %v2506_v38 }
 0x658   :  { %4468 = vpow2.f32 %v4244_v16 }
 0x661   :  { %v4461_v42 = vpop.eup %4460 }
 0x662   :  { %v4463_v46 = vpop.eup %4462  ;;  %v2555_v56 = vmul.f32 %v4461_v42, %v4455_v21  ;;  %v8721_v42 = vld [vmem:[#allocation6 + $0x428] sm:$0xff] }
 0x663   :  { %v4465_v48 = vpop.eup %4464  ;;  %v2554_v28 = vmul.f32 %v4463_v46, %v2550_v34  ;;  %v8724_v46 = vld [vmem:[#allocation6 + $0x438] sm:$0xff]  ;;  %v8730_v34 = vld [vmem:[#allocation6 + $0x430] sm:$0xff] }
 0x664   :  { %v4467_v62 = vpop.eup %4466  ;;  %v8705_v24 = vadd.f32 %v2555_v56, %v2553_v14  ;;  %v2541_v49 = vadd.f32 1.0, %v4465_v48  ;;  %v8718_v14 = vld [vmem:[#allocation6 + $0x470] sm:$0xff]  ;;  %v8727_v48 = vld [vmem:[#allocation6 + $0x420] sm:$0xff] }
 0x665   :  { %v4469_v33 = vpop.eup %4468  ;;  %v2556_v38 = vmul.f32 %v4467_v62, %v4459_v45  ;;  %v8715_v45 = vld [vmem:[#allocation6 + $0x460] sm:$0xff]  ;;  %v8733_v62 = vld [vmem:[#allocation6 + $0x3e8] sm:$0xff] }
 0x666   :  { %4470 = vtanh.f32 %v8705_v24  ;;  %v2542_v16 = vadd.f32 1.0, %v4469_v33  ;;  %v8739_v33 = vld [vmem:[#allocation6 + $0x3e0] sm:$0xff] }
 0x667   :  { %4472 = vrcp.f32 %v2541_v49  ;;  %v8708_v12 = vadd.f32 %v2556_v38, %v2554_v28  ;;  %v8736_v49 = vld [vmem:[#allocation6 + $0x3f8] sm:$0xff]  ;;  %v8742_v28 = vld [vmem:[#allocation6 + $0x3f0] sm:$0xff]  ;;  %v8745_v38 = vld [vmem:[#allocation6 + $0x3a8] sm:$0xff] }
 0x668   :  { %4474 = vrcp.f32 %v2542_v16  ;;  %v8748_v16 = vld [vmem:[#allocation6 + $0x3b8] sm:$0xff] }
 0x669   :  { %4476 = vtanh.f32 %v8708_v12 }
 0x673   :  { %v4471_v59 = vpop.eup %4470 }
 0x674   :  { %v4473_v21 = vpop.eup %4472 }
 0x675   :  { %v4475_v39 = vpop.eup %4474  ;;  %v8711_v56 = vmul.f32 %v4473_v21, %v4471_v59  ;;  %v8751_v59 = vld [vmem:[#allocation6 + $0x3a0] sm:$0xff]  ;;  %v8754_v21 = vld [vmem:[#allocation6 + $0x3b0] sm:$0xff] }
 0x676   :  { %v4477_v31 = vpop.eup %4476  ;;  %11534 = vst [vmem:[#allocation56_spill] sm:$0xff] %v8751_v59  ;;  %11535 = vst [vmem:[#allocation49_spill] sm:$0xff] %v8754_v21 }
 0x677   :  { %v2562_v13 = vmul.f32 %v4477_v31, %v4475_v39  ;;  %v8757_v39 = vld [vmem:[#allocation6 + $0x368] sm:$0xff]  ;;  %v8760_v31 = vld [vmem:[#allocation6 + $0x378] sm:$0xff] }
 0x678   :  { %11536 = vst [vmem:[#allocation58_spill] sm:$0xff] %v8760_v31 }
 0x679   :  { %2627 = vmatprep.mubr.f32.mxu0 %v2562_v13  ;;  %2698 = vmatprep.mubr.f32.mxu1 %v2562_v13 }
 0x67a   :  { %2628 = vmatmul.mubr.f32.vlgmr.msra.gmra.mxu0 %v8711_v56  ;;  %2699 = vmatmul.mubr.f32.vlgmr.msra.gmra.mxu1 %v8711_v56 }
 0x67b   :  { %2706 = vmatpush1.msra.mxu0 %v8715_v45  ;;  %2777 = vmatpush1.msra.mxu1 %v8718_v14 }
 0x67c   :  { %2707 = vmatprep.subr.mxu0 %v8721_v42  ;;  %2769 = vmatprep.mubr.f32.mxu0 %v2562_v13 }
 0x67d   :  { %2778 = vmatprep.subr.mxu1 %v8724_v46  ;;  %2840 = vmatprep.mubr.f32.mxu1 %v2562_v13  ;;  %v8764_v13 = vld [vmem:[#allocation6 + $0x370] sm:$0xff] }
 0x67e   :  { %2708 = vmatpush1.msra.mxu0 %v8727_v48  ;;  %2779 = vmatpush1.msra.mxu1 %v8730_v34 }
 0x67f   :  { %2709 = vmatprep.subr.mxu0 %v8733_v62  ;;  %2780 = vmatprep.subr.mxu1 %v8736_v49 }
 0x680   :  { %2710 = vmatpush1.msra.mxu0 %v8739_v33  ;;  %2781 = vmatpush1.msra.mxu1 %v8742_v28 }
 0x681   :  { %2711 = vmatprep.subr.mxu0 %v8745_v38  ;;  %2782 = vmatprep.subr.mxu1 %v8748_v16 }
 0x682   :  { %2712 = vmatpush1.msra.mxu0 %v8751_v59  ;;  %2783 = vmatpush1.msra.mxu1 %v8754_v21  ;;  %v8768_v59 = vld [vmem:[#allocation6 + $0x338] sm:$0xff]  ;;  %v8772_v21 = vld [vmem:[#allocation6 + $0x330] sm:$0xff] }
 0x683   :  { %2713 = vmatprep.subr.mxu0 %v8757_v39  ;;  %2784 = vmatprep.subr.mxu1 %v8760_v31  ;;  %v8776_v31 = vld [vmem:[#allocation6 + $0x2f8] sm:$0xff] }
 0x684   :  { %2714 = vmatpush1.msra.mxu0 %v8209_v29  ;;  %2785 = vmatpush1.msra.mxu1 %v8764_v13  ;;  %v8780_v29 = vld [vmem:[#allocation6 + $0x2f0] sm:$0xff] }
 0x685   :  { %2715 = vmatprep.subr.mxu0 %v8213_v57  ;;  %2786 = vmatprep.subr.mxu1 %v8768_v59  ;;  %v8784_v57 = vld [vmem:[#allocation6 + $0x2b8] sm:$0xff] }
 0x686   :  { %2716 = vmatpush1.msra.mxu0 %v8217_v53  ;;  %2787 = vmatpush1.msra.mxu1 %v8772_v21  ;;  %v8788_v53 = vld [vmem:[#allocation6 + $0x2b0] sm:$0xff] }
 0x687   :  { %2717 = vmatprep.subr.mxu0 %v8221_v47  ;;  %2788 = vmatprep.subr.mxu1 %v8776_v31  ;;  %v8792_v47 = vld [vmem:[#allocation6 + $0x278] sm:$0xff] }
 0x688   :  { %2718 = vmatpush1.msra.mxu0 %v8225_v8  ;;  %2789 = vmatpush1.msra.mxu1 %v8780_v29  ;;  %v8796_v8 = vld [vmem:[#allocation6 + $0x270] sm:$0xff] }
 0x689   :  { %2719 = vmatprep.subr.mxu0 %v8229_v41  ;;  %2790 = vmatprep.subr.mxu1 %v8784_v57  ;;  %v8800_v41 = vld [vmem:[#allocation6 + $0x238] sm:$0xff] }
 0x68a   :  { %2720 = vmatpush1.msra.mxu0 %v8233_v20  ;;  %2791 = vmatpush1.msra.mxu1 %v8788_v53  ;;  %v8804_v20 = vld [vmem:[#allocation6 + $0x230] sm:$0xff] }
 0x68b   :  { %2721 = vmatprep.subr.mxu0 %v8237_v55  ;;  %2792 = vmatprep.subr.mxu1 %v8792_v47  ;;  %v8808_v55 = vld [vmem:[#allocation6 + $0x1f8] sm:$0xff] }
 0x68c   :  { %2722 = vmatpush1.msra.mxu0 %v8241_v6  ;;  %2793 = vmatpush1.msra.mxu1 %v8796_v8  ;;  %v8812_v6 = vld [vmem:[#allocation6 + $0x1f0] sm:$0xff] }
 0x68d   :  { %2723 = vmatprep.subr.mxu0 %v8245_v26  ;;  %2794 = vmatprep.subr.mxu1 %v8800_v41  ;;  %v8816_v26 = vld [vmem:[#allocation6 + $0x1b8] sm:$0xff] }
 0x68e   :  { %2724 = vmatpush1.msra.mxu0 %v8249_v19  ;;  %2795 = vmatpush1.msra.mxu1 %v8804_v20  ;;  %v8820_v19 = vld [vmem:[#allocation6 + $0x1b0] sm:$0xff] }
 0x68f   :  { %2725 = vmatprep.subr.mxu0 %v8253_v37  ;;  %2796 = vmatprep.subr.mxu1 %v8808_v55  ;;  %v8824_v37 = vld [vmem:[#allocation6 + $0x178] sm:$0xff] }
 0x690   :  { %2726 = vmatpush1.msra.mxu0 %v8257_v44  ;;  %2797 = vmatpush1.msra.mxu1 %v8812_v6  ;;  %v11537_v44 = vld [vmem:[#allocation140_spill] sm:$0xff] }
 0x691   :  { %2727 = vmatprep.subr.mxu0 %v8261_v54  ;;  %2798 = vmatprep.subr.mxu1 %v8816_v26  ;;  %v11538_v54 = vld [vmem:[#allocation152_spill] sm:$0xff] }
 0x692   :  { %2728 = vmatpush1.msra.mxu0 %v8265_v25  ;;  %2799 = vmatpush1.msra.mxu1 %v8820_v19  ;;  %v11539_v25 = vld [vmem:[#allocation142_spill] sm:$0xff] }
 0x693   :  { %2729 = vmatprep.subr.mxu0 %v8269_v15  ;;  %2800 = vmatprep.subr.mxu1 %v8824_v37  ;;  %v11540_v15 = vld [vmem:[#allocation153_spill] sm:$0xff] }
 0x694   :  { %2730 = vmatpush1.msra.mxu0 %v8273_v7  ;;  %2801 = vmatpush1.msra.mxu1 %v8276_v5  ;;  %v11541_v7 = vld [vmem:[#allocation143_spill] sm:$0xff]  ;;  %v11542_v5 = vld [vmem:[#allocation144_spill] sm:$0xff] }
 0x695   :  { %2731 = vmatprep.subr.mxu0 %v8279_v58  ;;  %2802 = vmatprep.subr.mxu1 %v8282_v61  ;;  %v11543_v58 = vld [vmem:[#allocation154_spill] sm:$0xff] }
 0x696   :  { %2732 = vmatpush1.msra.mxu0 %v8285_v18  ;;  %2803 = vmatpush1.msra.mxu1 %v8288_v32  ;;  %v11544_v61 = vld [vmem:[#allocation146_spill] sm:$0xff]  ;;  %v11545_v18 = vld [vmem:[#allocation147_spill] sm:$0xff]  ;;  %v11546_v32 = vld [vmem:[#allocation156_spill] sm:$0xff] }
 0x697   :  { %2733 = vmatprep.subr.mxu0 %v8291_v3  ;;  %2804 = vmatprep.subr.mxu1 %v8294_v36  ;;  %v11547_v3 = vld [vmem:[#allocation149_spill] sm:$0xff]  ;;  %v11548_v36 = vld [vmem:[#allocation155_spill] sm:$0xff] }
 0x698   :  { %2734 = vmatpush1.msra.mxu0 %v8297_v2  ;;  %2805 = vmatpush1.msra.mxu1 %v8300_v51  ;;  %v11549_v2 = vld [vmem:[#allocation161_spill] sm:$0xff] }
 0x699   :  { %2735 = vmatprep.subr.mxu0 %v8303_v9  ;;  %2806 = vmatprep.subr.mxu1 %v8306_v63  ;;  %v11550_v51 = vld [vmem:[#allocation157_spill] sm:$0xff]  ;;  %v11551_v9 = vld [vmem:[#allocation163_spill] sm:$0xff]  ;;  %v11552_v63 = vld [vmem:[#allocation158_spill] sm:$0xff] }
 0x69a   :  { %2736 = vmatpush1.msra.mxu0 %v8309_v22  ;;  %2807 = vmatpush1.msra.mxu1 %v8312_v17  ;;  %v11553_v22 = vld [vmem:[#allocation159_spill] sm:$0xff]  ;;  %v11554_v17 = vld [vmem:[#allocation160_spill] sm:$0xff] }
 0x69b   :  { %2737 = vmatprep.subr.mxu0 %v8315_v40  ;;  %2808 = vmatprep.subr.mxu1 %v8318_v1  ;;  %v11555_v40 = vld [vmem:[#allocation162_spill] sm:$0xff]  ;;  %v11556_v1 = vld [vmem:[#allocation164_spill] sm:$0xff] }
 0x69c   :  { %2738 = vmatpush2.msra.mxu0 %v8321_v23  ;;  %2809 = vmatpush2.msra.mxu1 %v8324_v60  ;;  %v11557_v23 = vld [vmem:[#allocation165_spill] sm:$0xff]  ;;  %v11558_v60 = vld [vmem:[#allocation166_spill] sm:$0xff] }
 0x69d   :  { %2739 = vmatprep.subr.mxu0 %v8327_v30  ;;  %2810 = vmatprep.subr.mxu1 %v8330_v11  ;;  %v11559_v30 = vld [vmem:[#allocation36_spill] sm:$0xff]  ;;  %v11560_v11 = vld [vmem:[#allocation46_spill] sm:$0xff] }
 0x69e   :  { %2740 = vmatpush2.msra.mxu0 %v8333_v0  ;;  %2811 = vmatpush2.msra.mxu1 %v8336_v35  ;;  %v11561_v0 = vld [vmem:[#allocation39_spill] sm:$0xff]  ;;  %v11562_v35 = vld [vmem:[#allocation48_spill] sm:$0xff] }
 0x69f   :  { %2741 = vmatprep.subr.mxu0 %v8339_v50  ;;  %2812 = vmatprep.subr.mxu1 %v8342_v27  ;;  %v11563_v50 = vld [vmem:[#allocation41_spill] sm:$0xff]  ;;  %v11564_v27 = vld [vmem:[#allocation50_spill] sm:$0xff] }
 0x6a0   :  { %2742 = vmatpush2.msra.mxu0 %v8345_v43  ;;  %2813 = vmatpush2.msra.mxu1 %v11537_v44  ;;  %v11565_v43 = vld [vmem:[#allocation43_spill] sm:$0xff]  ;;  %v11566_v44 = vld [vmem:[#allocation52_spill] sm:$0xff] }
 0x6a1   :  { %2743 = vmatprep.subr.mxu0 %v11538_v54  ;;  %2814 = vmatprep.subr.mxu1 %v11539_v25  ;;  %v11567_v54 = vld [vmem:[#allocation167_spill] sm:$0xff]  ;;  %v11568_v25 = vld [vmem:[#allocation168_spill] sm:$0xff] }
 0x6a2   :  { %2744 = vmatpush2.msra.mxu0 %v11540_v15  ;;  %2815 = vmatpush2.msra.mxu1 %v11541_v7  ;;  %v11569_v15 = vld [vmem:[#allocation169_spill] sm:$0xff]  ;;  %v11570_v7 = vld [vmem:[#allocation170_spill] sm:$0xff] }
 0x6a3   :  { %2745 = vmatprep.subr.mxu0 %v11542_v5  ;;  %2816 = vmatprep.subr.mxu1 %v11543_v58  ;;  %v11571_v5 = vld [vmem:[#allocation171_spill] sm:$0xff]  ;;  %v11572_v58 = vld [vmem:[#allocation172_spill] sm:$0xff] }
 0x6a4   :  { %2746 = vmatpush2.msra.mxu0 %v11544_v61  ;;  %2817 = vmatpush2.msra.mxu1 %v11545_v18  ;;  %v11573_v61 = vld [vmem:[#allocation173_spill] sm:$0xff]  ;;  %v11574_v18 = vld [vmem:[#allocation174_spill] sm:$0xff] }
 0x6a5   :  { %2747 = vmatprep.subr.mxu0 %v11546_v32  ;;  %2818 = vmatprep.subr.mxu1 %v11547_v3  ;;  %v11575_v32 = vld [vmem:[#allocation175_spill] sm:$0xff]  ;;  %v11576_v3 = vld [vmem:[#allocation176_spill] sm:$0xff] }
 0x6a6   :  { %2748 = vmatpush2.msra.mxu0 %v11548_v36  ;;  %2819 = vmatpush2.msra.mxu1 %v11549_v2  ;;  %v11577_v36 = vld [vmem:[#allocation177_spill] sm:$0xff]  ;;  %v11578_v2 = vld [vmem:[#allocation178_spill] sm:$0xff] }
 0x6a7   :  { %2749 = vmatprep.subr.mxu0 %v11550_v51  ;;  %2820 = vmatprep.subr.mxu1 %v11551_v9  ;;  %v11579_v51 = vld [vmem:[#allocation179_spill] sm:$0xff]  ;;  %v11580_v9 = vld [vmem:[#allocation180_spill] sm:$0xff] }
 0x6a8   :  { %2750 = vmatpush2.msra.mxu0 %v11552_v63  ;;  %2821 = vmatpush2.msra.mxu1 %v11553_v22  ;;  %v11581_v63 = vld [vmem:[#allocation181_spill] sm:$0xff]  ;;  %v11582_v22 = vld [vmem:[#allocation182_spill] sm:$0xff] }
 0x6a9   :  { %2751 = vmatprep.subr.mxu0 %v11554_v17  ;;  %2822 = vmatprep.subr.mxu1 %v11555_v40  ;;  %v11583_v17 = vld [vmem:[#allocation183_spill] sm:$0xff]  ;;  %v11584_v40 = vld [vmem:[#allocation184_spill] sm:$0xff] }
 0x6aa   :  { %2752 = vmatpush2.msra.mxu0 %v11556_v1  ;;  %2823 = vmatpush2.msra.mxu1 %v11557_v23  ;;  %v11585_v1 = vld [vmem:[#allocation185_spill] sm:$0xff]  ;;  %v11586_v23 = vld [vmem:[#allocation186_spill] sm:$0xff] }
 0x6ab   :  { %2753 = vmatprep.subr.mxu0 %v11558_v60  ;;  %2824 = vmatprep.subr.mxu1 %v11559_v30  ;;  %v11587_v60 = vld [vmem:[#allocation187_spill] sm:$0xff]  ;;  %v11588_v30 = vld [vmem:[#allocation188_spill] sm:$0xff] }
 0x6ac   :  { %2754 = vmatpush2.msra.mxu0 %v11560_v11  ;;  %2825 = vmatpush2.msra.mxu1 %v11561_v0  ;;  %v11589_v11 = vld [vmem:[#allocation189_spill] sm:$0xff]  ;;  %v11590_v0 = vld [vmem:[#allocation190_spill] sm:$0xff] }
 0x6ad   :  { %2755 = vmatprep.subr.mxu0 %v11562_v35  ;;  %2826 = vmatprep.subr.mxu1 %v11563_v50  ;;  %v11591_v35 = vld [vmem:[#allocation191_spill] sm:$0xff]  ;;  %v11592_v50 = vld [vmem:[#allocation192_spill] sm:$0xff] }
 0x6ae   :  { %2756 = vmatpush2.msra.mxu0 %v11564_v27  ;;  %2827 = vmatpush2.msra.mxu1 %v11565_v43  ;;  %v11593_v27 = vld [vmem:[#allocation193_spill] sm:$0xff]  ;;  %v11594_v43 = vld [vmem:[#allocation194_spill] sm:$0xff] }
 0x6af   :  { %2757 = vmatprep.subr.mxu0 %v11566_v44  ;;  %2828 = vmatprep.subr.mxu1 %v11567_v54  ;;  %v11595_v44 = vld [vmem:[#allocation195_spill] sm:$0xff]  ;;  %v11596_v54 = vld [vmem:[#allocation196_spill] sm:$0xff] }
 0x6b0   :  { %2758 = vmatpush2.msra.mxu0 %v11568_v25  ;;  %2829 = vmatpush2.msra.mxu1 %v11569_v15  ;;  %v11597_v25 = vld [vmem:[#allocation197_spill] sm:$0xff]  ;;  %v11598_v15 = vld [vmem:[#allocation198_spill] sm:$0xff] }
 0x6b1   :  { %2759 = vmatprep.subr.mxu0 %v11570_v7  ;;  %2830 = vmatprep.subr.mxu1 %v11571_v5  ;;  %v11599_v7 = vld [vmem:[#allocation199_spill] sm:$0xff]  ;;  %v11600_v5 = vld [vmem:[#allocation200_spill] sm:$0xff] }
 0x6b2   :  { %2760 = vmatpush2.msra.mxu0 %v11572_v58  ;;  %2831 = vmatpush2.msra.mxu1 %v11573_v61  ;;  %v8921_v58 = vld [vmem:[#allocation6 + $0x388] sm:$0xff] }
 0x6b3   :  { %2761 = vmatprep.subr.mxu0 %v11574_v18  ;;  %2832 = vmatprep.subr.mxu1 %v11575_v32  ;;  %v11601_v61 = vld [vmem:[#allocation201_spill] sm:$0xff]  ;;  %v8925_v18 = vld [vmem:[#allocation6 + $0x380] sm:$0xff]  ;;  %v11602_v32 = vld [vmem:[#allocation202_spill] sm:$0xff] }
 0x6b4   :  { %2762 = vmatpush2.msra.mxu0 %v11576_v3  ;;  %2833 = vmatpush2.msra.mxu1 %v11577_v36  ;;  %v8929_v3 = vld [vmem:[#allocation6 + $0x348] sm:$0xff]  ;;  %v11603_v36 = vld [vmem:[#allocation203_spill] sm:$0xff] }
 0x6b5   :  { %2763 = vmatprep.subr.mxu0 %v11578_v2  ;;  %2834 = vmatprep.subr.mxu1 %v11579_v51  ;;  %v8933_v2 = vld [vmem:[#allocation6 + $0x340] sm:$0xff] }
 0x6b6   :  { %2764 = vmatpush2.msra.mxu0 %v11580_v9  ;;  %2835 = vmatpush2.msra.mxu1 %v11581_v63  ;;  %v11604_v51 = vld [vmem:[#allocation204_spill] sm:$0xff]  ;;  %v8937_v9 = vld [vmem:[#allocation6 + $0x308] sm:$0xff] }
 0x6b7   :  { %2765 = vmatprep.subr.mxu0 %v11582_v22  ;;  %2836 = vmatprep.subr.mxu1 %v11583_v17  ;;  %v11605_v63 = vld [vmem:[#allocation205_spill] sm:$0xff]  ;;  %v8941_v22 = vld [vmem:[#allocation6 + $0x300] sm:$0xff]  ;;  %v11606_v17 = vld [vmem:[#allocation206_spill] sm:$0xff] }
 0x6b8   :  { %2766 = vmatpush2.msra.mxu0 %v11584_v40  ;;  %2837 = vmatpush2.msra.mxu1 %v11585_v1  ;;  %v8945_v40 = vld [vmem:[#allocation6 + $0x2c8] sm:$0xff]  ;;  %v11607_v1 = vld [vmem:[#allocation207_spill] sm:$0xff] }
 0x6b9   :  { %2767 = vmatprep.subr.mxu0 %v11586_v23  ;;  %2838 = vmatprep.subr.mxu1 %v11587_v60  ;;  %v8949_v23 = vld [vmem:[#allocation6 + $0x2c0] sm:$0xff] }
 0x6ba   :  { %2768 = vmatpush2.msra.mxu0 %v11588_v30  ;;  %2839 = vmatpush2.msra.mxu1 %v11589_v11  ;;  %v11608_v60 = vld [vmem:[#allocation208_spill] sm:$0xff]  ;;  %v8953_v30 = vld [vmem:[#allocation6 + $0x288] sm:$0xff] }
 0x6bb   :  { %2770 = vmatmul.mubr.f32.vlgmr.msra.gmra.mxu0 %v8711_v56  ;;  %2841 = vmatmul.mubr.f32.vlgmr.msra.gmra.mxu1 %v8711_v56  ;;  %v8917_v56 = vld [vmem:[#allocation6 + $0x3c0] sm:$0xff]  ;;  %v11609_v11 = vld [vmem:[#allocation209_spill] sm:$0xff] }
 0x6bc   :  { %2939 = vmatprep.subr.mxu0 %v11590_v0  ;;  %3010 = vmatprep.subr.mxu1 %v11591_v35  ;;  %v8957_v0 = vld [vmem:[#allocation6 + $0x280] sm:$0xff]  ;;  %v11610_v35 = vld [vmem:[#allocation45_spill] sm:$0xff] }
 0x6bd   :  { %2940 = vmatpush1.msra.mxu0 %v11592_v50  ;;  %3011 = vmatpush1.msra.mxu1 %v11593_v27  ;;  %v8961_v50 = vld [vmem:[#allocation6 + $0x248] sm:$0xff]  ;;  %v11612_v27 = vld [vmem:[#allocation15_spill] sm:$0xff] }
 0x6be   :  { %2941 = vmatprep.subr.mxu0 %v11594_v43  ;;  %3012 = vmatprep.subr.mxu1 %v11595_v44  ;;  %11611 = vst [vmem:[#allocation51_spill] sm:$0xff] %v8961_v50  ;;  %v8965_v43 = vld [vmem:[#allocation6 + $0x240] sm:$0xff]  ;;  %v11614_v44 = vld [vmem:[#allocation14_spill] sm:$0xff] }
 0x6bf   :  { %2942 = vmatpush1.msra.mxu0 %v11596_v54  ;;  %3013 = vmatpush1.msra.mxu1 %v11597_v25  ;;  %11613 = vst [vmem:[#allocation60_spill] sm:$0xff] %v8965_v43  ;;  %v8969_v54 = vld [vmem:[#allocation6 + $0x208] sm:$0xff]  ;;  %v11616_v25 = vld [vmem:[#allocation54_spill] sm:$0xff] }
 0x6c0   :  { %2943 = vmatprep.subr.mxu0 %v11598_v15  ;;  %3014 = vmatprep.subr.mxu1 %v11599_v7  ;;  %11615 = vst [vmem:[#allocation53_spill] sm:$0xff] %v8969_v54  ;;  %v8973_v15 = vld [vmem:[#allocation6 + $0x200] sm:$0xff]  ;;  %v8976_v7 = vld [vmem:[#allocation6 + $0x210] sm:$0xff] }
 0x6c1   :  { %2944 = vmatpush1.msra.mxu0 %v8917_v56  ;;  %3015 = vmatpush1.msra.mxu1 %v11600_v5  ;;  %11617 = vst [vmem:[#allocation62_spill] sm:$0xff] %v8973_v15  ;;  %11618 = vst [vmem:[#allocation55_spill] sm:$0xff] %v8976_v7  ;;  %v8979_v5 = vld [vmem:[#allocation6 + $0x1c8] sm:$0xff] }
 0x6c2   :  { %2945 = vmatprep.subr.mxu0 %v8921_v58  ;;  %3016 = vmatprep.subr.mxu1 %v11601_v61  ;;  %11619 = vst [vmem:[#allocation64_spill] sm:$0xff] %v8979_v5  ;;  %v8982_v61 = vld [vmem:[#allocation6 + $0x1d8] sm:$0xff] }
 0x6c3   :  { %2946 = vmatpush1.msra.mxu0 %v8925_v18  ;;  %3017 = vmatpush1.msra.mxu1 %v11602_v32  ;;  %11620 = vst [vmem:[#allocation57_spill] sm:$0xff] %v8982_v61  ;;  %v8985_v32 = vld [vmem:[#allocation6 + $0x1c0] sm:$0xff] }
 0x6c4   :  { %2947 = vmatprep.subr.mxu0 %v8929_v3  ;;  %3018 = vmatprep.subr.mxu1 %v11603_v36  ;;  %11621 = vst [vmem:[#allocation65_spill] sm:$0xff] %v8985_v32  ;;  %v8988_v36 = vld [vmem:[#allocation6 + $0x1d0] sm:$0xff] }
 0x6c5   :  { %2948 = vmatpush1.msra.mxu0 %v8933_v2  ;;  %3019 = vmatpush1.msra.mxu1 %v11604_v51  ;;  %11622 = vst [vmem:[#allocation59_spill] sm:$0xff] %v8988_v36  ;;  %v8991_v51 = vld [vmem:[#allocation6 + $0x188] sm:$0xff] }
 0x6c6   :  { %2949 = vmatprep.subr.mxu0 %v8937_v9  ;;  %3020 = vmatprep.subr.mxu1 %v11605_v63  ;;  %11623 = vst [vmem:[#allocation66_spill] sm:$0xff] %v8991_v51  ;;  %v8994_v63 = vld [vmem:[#allocation6 + $0x198] sm:$0xff] }
 0x6c7   :  { %2950 = vmatpush1.msra.mxu0 %v8941_v22  ;;  %3021 = vmatpush1.msra.mxu1 %v11606_v17  ;;  %11624 = vst [vmem:[#allocation61_spill] sm:$0xff] %v8994_v63  ;;  %v8997_v17 = vld [vmem:[#allocation6 + $0x180] sm:$0xff] }
 0x6c8   :  { %2951 = vmatprep.subr.mxu0 %v8945_v40  ;;  %3022 = vmatprep.subr.mxu1 %v11607_v1  ;;  %11625 = vst [vmem:[#allocation67_spill] sm:$0xff] %v8997_v17  ;;  %v9000_v1 = vld [vmem:[#allocation6 + $0x190] sm:$0xff] }
 0x6c9   :  { %2952 = vmatpush1.msra.mxu0 %v8949_v23  ;;  %3023 = vmatpush1.msra.mxu1 %v11608_v60  ;;  %11626 = vst [vmem:[#allocation63_spill] sm:$0xff] %v9000_v1  ;;  %v9003_v60 = vld [vmem:[#allocation6 + $0x148] sm:$0xff] }
 0x6ca   :  { %2953 = vmatprep.subr.mxu0 %v8953_v30  ;;  %3024 = vmatprep.subr.mxu1 %v11609_v11  ;;  %11627 = vst [vmem:[#allocation68_spill] sm:$0xff] %v9003_v60  ;;  %v9006_v11 = vld [vmem:[#allocation6 + $0x158] sm:$0xff] }
 0x6cb   :  { %2954 = vmatpush1.msra.mxu0 %v8957_v0  ;;  %3025 = vmatpush1.msra.mxu1 %v11610_v35  ;;  %11628 = vst [vmem:[#allocation69_spill] sm:$0xff] %v9006_v11  ;;  %v9009_v35 = vld [vmem:[#allocation6 + $0x140] sm:$0xff] }
 0x6cc   :  { %2955 = vmatprep.subr.mxu0 %v8961_v50  ;;  %3026 = vmatprep.subr.mxu1 %v11612_v27  ;;  %11629 = vst [vmem:[#allocation70_spill] sm:$0xff] %v9009_v35  ;;  %v9012_v27 = vld [vmem:[#allocation6 + $0x150] sm:$0xff] }
 0x6cd   :  { %2956 = vmatpush1.msra.mxu0 %v8965_v43  ;;  %3027 = vmatpush1.msra.mxu1 %v11614_v44  ;;  %11630 = vst [vmem:[#allocation71_spill] sm:$0xff] %v9012_v27  ;;  %v9015_v44 = vld [vmem:[#allocation6 + $0x108] sm:$0xff] }
 0x6ce   :  { %2957 = vmatprep.subr.mxu0 %v8969_v54  ;;  %3028 = vmatprep.subr.mxu1 %v11616_v25  ;;  %11631 = vst [vmem:[#allocation72_spill] sm:$0xff] %v9015_v44  ;;  %v9018_v25 = vld [vmem:[#allocation6 + $0x118] sm:$0xff] }
 0x6cf   :  { %2958 = vmatpush1.msra.mxu0 %v8973_v15  ;;  %3029 = vmatpush1.msra.mxu1 %v8976_v7  ;;  %11632 = vst [vmem:[#allocation73_spill] sm:$0xff] %v9018_v25 }
 0x6d0   :  { %2959 = vmatprep.subr.mxu0 %v8979_v5  ;;  %3030 = vmatprep.subr.mxu1 %v8982_v61  ;;  %v11710_v61 = vld [vmem:[#allocation23_spill] sm:$0xff] }
 0x6d1   :  { %2960 = vmatpush1.msra.mxu0 %v8985_v32  ;;  %3031 = vmatpush1.msra.mxu1 %v8988_v36 }
 0x6d2   :  { %2961 = vmatprep.subr.mxu0 %v8991_v51  ;;  %3032 = vmatprep.subr.mxu1 %v8994_v63 }
 0x6d3   :  { %2962 = vmatpush1.msra.mxu0 %v8997_v17  ;;  %3033 = vmatpush1.msra.mxu1 %v9000_v1 }
 0x6d4   :  { %2963 = vmatprep.subr.mxu0 %v9003_v60  ;;  %3034 = vmatprep.subr.mxu1 %v9006_v11  ;;  %v9021_v60 = vld [vmem:[#allocation6 + $0x100] sm:$0xff]  ;;  %v9024_v11 = vld [vmem:[#allocation6 + $0x110] sm:$0xff] }
 0x6d5   :  { %2964 = vmatpush1.msra.mxu0 %v9009_v35  ;;  %3035 = vmatpush1.msra.mxu1 %v9012_v27  ;;  %11633 = vst [vmem:[#allocation74_spill] sm:$0xff] %v9021_v60  ;;  %11634 = vst [vmem:[#allocation75_spill] sm:$0xff] %v9024_v11  ;;  %v9027_v35 = vld [vmem:[#allocation6 + $0xc8] sm:$0xff]  ;;  %v9030_v27 = vld [vmem:[#allocation6 + $0xd8] sm:$0xff] }
 0x6d6   :  { %2965 = vmatprep.subr.mxu0 %v9015_v44  ;;  %3036 = vmatprep.subr.mxu1 %v9018_v25  ;;  %11635 = vst [vmem:[#allocation77_spill] sm:$0xff] %v9027_v35  ;;  %11636 = vst [vmem:[#allocation79_spill] sm:$0xff] %v9030_v27  ;;  %v9033_v44 = vld [vmem:[#allocation6 + $0xc0] sm:$0xff]  ;;  %v9036_v25 = vld [vmem:[#allocation6 + $0xd0] sm:$0xff] }
 0x6d7   :  { %2966 = vmatpush1.msra.mxu0 %v9021_v60  ;;  %3037 = vmatpush1.msra.mxu1 %v9024_v11  ;;  %11637 = vst [vmem:[#allocation81_spill] sm:$0xff] %v9033_v44  ;;  %11638 = vst [vmem:[#allocation83_spill] sm:$0xff] %v9036_v25  ;;  %v9039_v60 = vld [vmem:[#allocation6 + $0x88] sm:$0xff]  ;;  %v9042_v11 = vld [vmem:[#allocation6 + $0x98] sm:$0xff] }
 0x6d8   :  { %2967 = vmatprep.subr.mxu0 %v9027_v35  ;;  %3038 = vmatprep.subr.mxu1 %v9030_v27  ;;  %11639 = vst [vmem:[#allocation85_spill] sm:$0xff] %v9039_v60  ;;  %11640 = vst [vmem:[#allocation87_spill] sm:$0xff] %v9042_v11  ;;  %v9045_v35 = vld [vmem:[#allocation6 + $0x80] sm:$0xff]  ;;  %v9048_v27 = vld [vmem:[#allocation6 + $0x90] sm:$0xff] }
 0x6d9   :  { %2968 = vmatpush1.msra.mxu0 %v9033_v44  ;;  %3039 = vmatpush1.msra.mxu1 %v9036_v25  ;;  %11641 = vst [vmem:[#allocation89_spill] sm:$0xff] %v9045_v35  ;;  %11642 = vst [vmem:[#allocation91_spill] sm:$0xff] %v9048_v27  ;;  %v9051_v44 = vld [vmem:[#allocation6 + $0x848] sm:$0xff]  ;;  %v9054_v25 = vld [vmem:[#allocation6 + $0x858] sm:$0xff] }
 0x6da   :  { %2969 = vmatprep.subr.mxu0 %v9039_v60  ;;  %3040 = vmatprep.subr.mxu1 %v9042_v11  ;;  %11643 = vst [vmem:[#allocation76_spill] sm:$0xff] %v9051_v44  ;;  %11644 = vst [vmem:[#allocation93_spill] sm:$0xff] %v9054_v25  ;;  %v9057_v60 = vld [vmem:[#allocation6 + $0x840] sm:$0xff]  ;;  %v9060_v11 = vld [vmem:[#allocation6 + $0x850] sm:$0xff] }
 0x6db   :  { %2970 = vmatpush1.msra.mxu0 %v9045_v35  ;;  %3041 = vmatpush1.msra.mxu1 %v9048_v27  ;;  %11645 = vst [vmem:[#allocation78_spill] sm:$0xff] %v9057_v60  ;;  %11646 = vst [vmem:[#allocation95_spill] sm:$0xff] %v9060_v11  ;;  %v9063_v35 = vld [vmem:[#allocation6 + $0x808] sm:$0xff]  ;;  %v9066_v27 = vld [vmem:[#allocation6 + $0x818] sm:$0xff] }
 0x6dc   :  { %2971 = vmatprep.subr.mxu0 %v9051_v44  ;;  %3042 = vmatprep.subr.mxu1 %v9054_v25  ;;  %11647 = vst [vmem:[#allocation80_spill] sm:$0xff] %v9063_v35  ;;  %11648 = vst [vmem:[#allocation97_spill] sm:$0xff] %v9066_v27  ;;  %v9069_v44 = vld [vmem:[#allocation6 + $0x800] sm:$0xff]  ;;  %v9072_v25 = vld [vmem:[#allocation6 + $0x810] sm:$0xff] }
 0x6dd   :  { %2972 = vmatpush2.msra.mxu0 %v9057_v60  ;;  %3043 = vmatpush2.msra.mxu1 %v9060_v11  ;;  %11649 = vst [vmem:[#allocation82_spill] sm:$0xff] %v9069_v44  ;;  %11650 = vst [vmem:[#allocation99_spill] sm:$0xff] %v9072_v25  ;;  %v9075_v60 = vld [vmem:[#allocation6 + $0x7c8] sm:$0xff]  ;;  %v9078_v11 = vld [vmem:[#allocation6 + $0x7d8] sm:$0xff] }
 0x6de   :  { %2973 = vmatprep.subr.mxu0 %v9063_v35  ;;  %3044 = vmatprep.subr.mxu1 %v9066_v27  ;;  %11651 = vst [vmem:[#allocation84_spill] sm:$0xff] %v9075_v60  ;;  %11652 = vst [vmem:[#allocation101_spill] sm:$0xff] %v9078_v11  ;;  %v9081_v35 = vld [vmem:[#allocation6 + $0x7c0] sm:$0xff]  ;;  %v9084_v27 = vld [vmem:[#allocation6 + $0x7d0] sm:$0xff] }
 0x6df   :  { %2974 = vmatpush2.msra.mxu0 %v9069_v44  ;;  %3045 = vmatpush2.msra.mxu1 %v9072_v25  ;;  %11653 = vst [vmem:[#allocation86_spill] sm:$0xff] %v9081_v35  ;;  %11654 = vst [vmem:[#allocation103_spill] sm:$0xff] %v9084_v27  ;;  %v9087_v44 = vld [vmem:[#allocation6 + $0x788] sm:$0xff]  ;;  %v9090_v25 = vld [vmem:[#allocation6 + $0x798] sm:$0xff] }
 0x6e0   :  { %2975 = vmatprep.subr.mxu0 %v9075_v60  ;;  %3046 = vmatprep.subr.mxu1 %v9078_v11  ;;  %11655 = vst [vmem:[#allocation88_spill] sm:$0xff] %v9087_v44  ;;  %11656 = vst [vmem:[#allocation105_spill] sm:$0xff] %v9090_v25  ;;  %v9093_v60 = vld [vmem:[#allocation6 + $0x780] sm:$0xff]  ;;  %v9096_v11 = vld [vmem:[#allocation6 + $0x790] sm:$0xff] }
 0x6e1   :  { %2976 = vmatpush2.msra.mxu0 %v9081_v35  ;;  %3047 = vmatpush2.msra.mxu1 %v9084_v27  ;;  %11657 = vst [vmem:[#allocation90_spill] sm:$0xff] %v9093_v60  ;;  %11658 = vst [vmem:[#allocation107_spill] sm:$0xff] %v9096_v11  ;;  %v9099_v35 = vld [vmem:[#allocation6 + $0x748] sm:$0xff]  ;;  %v9102_v27 = vld [vmem:[#allocation6 + $0x758] sm:$0xff] }
 0x6e2   :  { %2977 = vmatprep.subr.mxu0 %v9087_v44  ;;  %3048 = vmatprep.subr.mxu1 %v9090_v25  ;;  %11659 = vst [vmem:[#allocation92_spill] sm:$0xff] %v9099_v35  ;;  %11660 = vst [vmem:[#allocation109_spill] sm:$0xff] %v9102_v27  ;;  %v9105_v44 = vld [vmem:[#allocation6 + $0x740] sm:$0xff]  ;;  %v9108_v25 = vld [vmem:[#allocation6 + $0x750] sm:$0xff] }
 0x6e3   :  { %2978 = vmatpush2.msra.mxu0 %v9093_v60  ;;  %3049 = vmatpush2.msra.mxu1 %v9096_v11  ;;  %11661 = vst [vmem:[#allocation94_spill] sm:$0xff] %v9105_v44  ;;  %11662 = vst [vmem:[#allocation111_spill] sm:$0xff] %v9108_v25  ;;  %v9111_v60 = vld [vmem:[#allocation6 + $0x708] sm:$0xff]  ;;  %v9114_v11 = vld [vmem:[#allocation6 + $0x718] sm:$0xff] }
 0x6e4   :  { %2979 = vmatprep.subr.mxu0 %v9099_v35  ;;  %3050 = vmatprep.subr.mxu1 %v9102_v27  ;;  %11663 = vst [vmem:[#allocation96_spill] sm:$0xff] %v9111_v60  ;;  %11664 = vst [vmem:[#allocation113_spill] sm:$0xff] %v9114_v11  ;;  %v9117_v35 = vld [vmem:[#allocation6 + $0x700] sm:$0xff]  ;;  %v9120_v27 = vld [vmem:[#allocation6 + $0x710] sm:$0xff] }
 0x6e5   :  { %2980 = vmatpush2.msra.mxu0 %v9105_v44  ;;  %3051 = vmatpush2.msra.mxu1 %v9108_v25  ;;  %11665 = vst [vmem:[#allocation98_spill] sm:$0xff] %v9117_v35  ;;  %11666 = vst [vmem:[#allocation115_spill] sm:$0xff] %v9120_v27  ;;  %v9123_v44 = vld [vmem:[#allocation6 + $0x6c8] sm:$0xff]  ;;  %v9126_v25 = vld [vmem:[#allocation6 + $0x6d8] sm:$0xff] }
 0x6e6   :  { %2981 = vmatprep.subr.mxu0 %v9111_v60  ;;  %3052 = vmatprep.subr.mxu1 %v9114_v11  ;;  %11667 = vst [vmem:[#allocation100_spill] sm:$0xff] %v9123_v44  ;;  %11668 = vst [vmem:[#allocation117_spill] sm:$0xff] %v9126_v25  ;;  %v9129_v60 = vld [vmem:[#allocation6 + $0x6c0] sm:$0xff]  ;;  %v9132_v11 = vld [vmem:[#allocation6 + $0x6d0] sm:$0xff] }
 0x6e7   :  { %2982 = vmatpush2.msra.mxu0 %v9117_v35  ;;  %3053 = vmatpush2.msra.mxu1 %v9120_v27  ;;  %11669 = vst [vmem:[#allocation102_spill] sm:$0xff] %v9129_v60  ;;  %11670 = vst [vmem:[#allocation119_spill] sm:$0xff] %v9132_v11  ;;  %v9135_v35 = vld [vmem:[#allocation6 + $0x688] sm:$0xff]  ;;  %v9138_v27 = vld [vmem:[#allocation6 + $0x698] sm:$0xff] }
 0x6e8   :  { %2983 = vmatprep.subr.mxu0 %v9123_v44  ;;  %3054 = vmatprep.subr.mxu1 %v9126_v25  ;;  %11671 = vst [vmem:[#allocation104_spill] sm:$0xff] %v9135_v35  ;;  %11672 = vst [vmem:[#allocation121_spill] sm:$0xff] %v9138_v27  ;;  %v9141_v44 = vld [vmem:[#allocation6 + $0x680] sm:$0xff]  ;;  %v9144_v25 = vld [vmem:[#allocation6 + $0x690] sm:$0xff] }
 0x6e9   :  { %2984 = vmatpush2.msra.mxu0 %v9129_v60  ;;  %3055 = vmatpush2.msra.mxu1 %v9132_v11  ;;  %11673 = vst [vmem:[#allocation106_spill] sm:$0xff] %v9141_v44  ;;  %11674 = vst [vmem:[#allocation123_spill] sm:$0xff] %v9144_v25  ;;  %v9147_v60 = vld [vmem:[#allocation6 + $0x648] sm:$0xff]  ;;  %v9150_v11 = vld [vmem:[#allocation6 + $0x658] sm:$0xff] }
 0x6ea   :  { %2985 = vmatprep.subr.mxu0 %v9135_v35  ;;  %3056 = vmatprep.subr.mxu1 %v9138_v27  ;;  %11675 = vst [vmem:[#allocation108_spill] sm:$0xff] %v9147_v60  ;;  %11676 = vst [vmem:[#allocation125_spill] sm:$0xff] %v9150_v11  ;;  %v9153_v35 = vld [vmem:[#allocation6 + $0x640] sm:$0xff]  ;;  %v9156_v27 = vld [vmem:[#allocation6 + $0x650] sm:$0xff] }
 0x6eb   :  { %2986 = vmatpush2.msra.mxu0 %v9141_v44  ;;  %3057 = vmatpush2.msra.mxu1 %v9144_v25  ;;  %11677 = vst [vmem:[#allocation110_spill] sm:$0xff] %v9153_v35  ;;  %11678 = vst [vmem:[#allocation127_spill] sm:$0xff] %v9156_v27  ;;  %v9159_v44 = vld [vmem:[#allocation6 + $0x608] sm:$0xff]  ;;  %v9162_v25 = vld [vmem:[#allocation6 + $0x618] sm:$0xff] }
 0x6ec   :  { %2987 = vmatprep.subr.mxu0 %v9147_v60  ;;  %3058 = vmatprep.subr.mxu1 %v9150_v11  ;;  %11679 = vst [vmem:[#allocation112_spill] sm:$0xff] %v9159_v44  ;;  %11680 = vst [vmem:[#allocation129_spill] sm:$0xff] %v9162_v25  ;;  %v9165_v60 = vld [vmem:[#allocation6 + $0x600] sm:$0xff]  ;;  %v9168_v11 = vld [vmem:[#allocation6 + $0x610] sm:$0xff] }
 0x6ed   :  { %2988 = vmatpush2.msra.mxu0 %v9153_v35  ;;  %3059 = vmatpush2.msra.mxu1 %v9156_v27  ;;  %11681 = vst [vmem:[#allocation114_spill] sm:$0xff] %v9165_v60  ;;  %11682 = vst [vmem:[#allocation131_spill] sm:$0xff] %v9168_v11  ;;  %v9171_v35 = vld [vmem:[#allocation6 + $0x5c8] sm:$0xff]  ;;  %v9174_v27 = vld [vmem:[#allocation6 + $0x5d8] sm:$0xff] }
 0x6ee   :  { %2989 = vmatprep.subr.mxu0 %v9159_v44  ;;  %3060 = vmatprep.subr.mxu1 %v9162_v25  ;;  %11683 = vst [vmem:[#allocation116_spill] sm:$0xff] %v9171_v35  ;;  %11684 = vst [vmem:[#allocation133_spill] sm:$0xff] %v9174_v27  ;;  %v9177_v44 = vld [vmem:[#allocation6 + $0x5c0] sm:$0xff]  ;;  %v9180_v25 = vld [vmem:[#allocation6 + $0x5d0] sm:$0xff] }
 0x6ef   :  { %2990 = vmatpush2.msra.mxu0 %v9165_v60  ;;  %3061 = vmatpush2.msra.mxu1 %v9168_v11  ;;  %11685 = vst [vmem:[#allocation118_spill] sm:$0xff] %v9177_v44  ;;  %11686 = vst [vmem:[#allocation135_spill] sm:$0xff] %v9180_v25  ;;  %v9183_v60 = vld [vmem:[#allocation6 + $0x588] sm:$0xff]  ;;  %v9186_v11 = vld [vmem:[#allocation6 + $0x598] sm:$0xff] }
 0x6f0   :  { %2991 = vmatprep.subr.mxu0 %v9171_v35  ;;  %3062 = vmatprep.subr.mxu1 %v9174_v27  ;;  %11687 = vst [vmem:[#allocation120_spill] sm:$0xff] %v9183_v60  ;;  %11688 = vst [vmem:[#allocation137_spill] sm:$0xff] %v9186_v11  ;;  %v9189_v35 = vld [vmem:[#allocation6 + $0x580] sm:$0xff]  ;;  %v9192_v27 = vld [vmem:[#allocation6 + $0x590] sm:$0xff] }
 0x6f1   :  { %2992 = vmatpush2.msra.mxu0 %v9177_v44  ;;  %3063 = vmatpush2.msra.mxu1 %v9180_v25  ;;  %11689 = vst [vmem:[#allocation122_spill] sm:$0xff] %v9189_v35  ;;  %11690 = vst [vmem:[#allocation139_spill] sm:$0xff] %v9192_v27  ;;  %v9195_v44 = vld [vmem:[#allocation6 + $0x548] sm:$0xff]  ;;  %v9198_v25 = vld [vmem:[#allocation6 + $0x558] sm:$0xff] }
 0x6f2   :  { %2993 = vmatprep.subr.mxu0 %v9183_v60  ;;  %3064 = vmatprep.subr.mxu1 %v9186_v11  ;;  %11691 = vst [vmem:[#allocation124_spill] sm:$0xff] %v9195_v44  ;;  %11692 = vst [vmem:[#allocation141_spill] sm:$0xff] %v9198_v25  ;;  %v9201_v60 = vld [vmem:[#allocation6 + $0x540] sm:$0xff]  ;;  %v9204_v11 = vld [vmem:[#allocation6 + $0x550] sm:$0xff] }
 0x6f3   :  { %2994 = vmatpush2.msra.mxu0 %v9189_v35  ;;  %3065 = vmatpush2.msra.mxu1 %v9192_v27  ;;  %11693 = vst [vmem:[#allocation126_spill] sm:$0xff] %v9201_v60  ;;  %11694 = vst [vmem:[#allocation128_spill] sm:$0xff] %v9204_v11  ;;  %v9207_v35 = vld [vmem:[#allocation6 + $0x508] sm:$0xff]  ;;  %v9210_v27 = vld [vmem:[#allocation6 + $0x518] sm:$0xff] }
 0x6f4   :  { %2995 = vmatprep.subr.mxu0 %v9195_v44  ;;  %3066 = vmatprep.subr.mxu1 %v9198_v25  ;;  %11695 = vst [vmem:[#allocation130_spill] sm:$0xff] %v9207_v35  ;;  %11696 = vst [vmem:[#allocation145_spill] sm:$0xff] %v9210_v27  ;;  %v9213_v44 = vld [vmem:[#allocation6 + $0x500] sm:$0xff]  ;;  %v9216_v25 = vld [vmem:[#allocation6 + $0x510] sm:$0xff] }
 0x6f5   :  { %2996 = vmatpush2.msra.mxu0 %v9201_v60  ;;  %3067 = vmatpush2.msra.mxu1 %v9204_v11  ;;  %11697 = vst [vmem:[#allocation132_spill] sm:$0xff] %v9213_v44  ;;  %11698 = vst [vmem:[#allocation134_spill] sm:$0xff] %v9216_v25  ;;  %v9219_v60 = vld [vmem:[#allocation6 + $0x4c8] sm:$0xff]  ;;  %v9222_v11 = vld [vmem:[#allocation6 + $0x4d8] sm:$0xff] }
 0x6f6   :  { %2997 = vmatprep.subr.mxu0 %v9207_v35  ;;  %3068 = vmatprep.subr.mxu1 %v9210_v27  ;;  %11699 = vst [vmem:[#allocation148_spill] sm:$0xff] %v9219_v60  ;;  %11700 = vst [vmem:[#allocation136_spill] sm:$0xff] %v9222_v11  ;;  %v9225_v35 = vld [vmem:[#allocation6 + $0x4c0] sm:$0xff]  ;;  %v9228_v27 = vld [vmem:[#allocation6 + $0x4d0] sm:$0xff] }
 0x6f7   :  { %2998 = vmatpush2.msra.mxu0 %v9213_v44  ;;  %3069 = vmatpush2.msra.mxu1 %v9216_v25  ;;  %11701 = vst [vmem:[#allocation16_spill] sm:$0xff] %v9225_v35  ;;  %11702 = vst [vmem:[#allocation21_spill] sm:$0xff] %v9228_v27  ;;  %v9231_v44 = vld [vmem:[#allocation6 + $0x488] sm:$0xff]  ;;  %v9234_v25 = vld [vmem:[#allocation6 + $0x498] sm:$0xff] }
 0x6f8   :  { %2999 = vmatprep.subr.mxu0 %v9219_v60  ;;  %3070 = vmatprep.subr.mxu1 %v9222_v11  ;;  %11703 = vst [vmem:[#allocation28_spill] sm:$0xff] %v9231_v44  ;;  %11704 = vst [vmem:[#allocation38_spill] sm:$0xff] %v9234_v25  ;;  %v9237_v60 = vld [vmem:[#allocation6 + $0x480] sm:$0xff]  ;;  %v9240_v11 = vld [vmem:[#allocation6 + $0x490] sm:$0xff] }
 0x6f9   :  { %3000 = vmatpush2.msra.mxu0 %v9225_v35  ;;  %3071 = vmatpush2.msra.mxu1 %v9228_v27  ;;  %11705 = vst [vmem:[#allocation33_spill] sm:$0xff] %v9237_v60  ;;  %11706 = vst [vmem:[#allocation150_spill] sm:$0xff] %v9240_v11  ;;  %v9243_v35 = vld [vmem:[#allocation6 + $0x468] sm:$0xff]  ;;  %v9246_v27 = vld [vmem:[#allocation6 + $0x478] sm:$0xff] }
 0x6fa   :  { %3001 = vmatprep.subr.mxu0 %v9231_v44  ;;  %3072 = vmatprep.subr.mxu1 %v9234_v25  ;;  %11707 = vst [vmem:[#allocation138_spill] sm:$0xff] %v9243_v35  ;;  %11708 = vst [vmem:[#allocation151_spill] sm:$0xff] %v9246_v27 }
 0x6fb   :  { %3002 = vmatpush2.msra.mxu0 %v9237_v60  ;;  %3073 = vmatpush2.msra.mxu1 %v9240_v11  ;;  %v11709_v60 = vld [vmem:[#allocation17_spill] sm:$0xff] }
 0x6fc   :  { %3081 = vmatprep.subr.mxu0 %v9243_v35  ;;  %3152 = vmatprep.subr.mxu1 %v9246_v27 }
 0x73a   :  { %v2629_v44 = vpop.f32.mrf.mxu0  ;;  %v2700_v1 = vpop.f32.mrf.mxu1 }
 0x73b   :  { %v2855_v17 = vrot.slane %v2629_v44, 4  ;;  %v2857_v63 = vrot.slane %v2700_v1, 4 }
 0x73c   :  { %v2631_v25 = vpop.f32.mrf.mxu0  ;;  %v2702_v51 = vpop.f32.mrf.mxu1 }
 0x73d   :  { %v2856_v36 = vrot.slane %v2631_v25, 4  ;;  %v2871_v32 = vadd.f32 %v2855_v17, %v11709_v60  ;;  %v2873_v5 = vadd.f32 %v2857_v63, %v11710_v61  ;;  %v2858_v11 = vrot.slane %v2702_v51, 4 }
 0x73f   :  { %v2872_v7 = vadd.f32 %v2856_v36, %v11524_v4  ;;  %v4245_v15 = vmul.f32 -1.442695, %v2871_v32  ;;  %v4247_v35 = vmul.f32 -1.442695, %v2873_v5  ;;  %v2874_v54 = vadd.f32 %v2858_v11, %v11525_v10  ;;  %v11711_v32 = vld [vmem:[#allocation22_spill] sm:$0xff] }
 0x741   :  { %v4246_v43 = vmul.f32 -1.442695, %v2872_v7  ;;  %4478 = vpow2.f32 %v4245_v15  ;;  %v4248_v27 = vmul.f32 -1.442695, %v2874_v54 }
 0x742   :  { %4480 = vpow2.f32 %v4247_v35 }
 0x743   :  { %4482 = vpow2.f32 %v4246_v43  ;;  %v11712_v43 = vld [vmem:[#allocation24_spill] sm:$0xff] }
 0x744   :  { %4484 = vpow2.f32 %v4248_v27 }
 0x74e   :  { %v4479_v1 = vpop.eup %4478 }
 0x74f   :  { %v4481_v44 = vpop.eup %4480  ;;  %v2885_v50 = vadd.f32 1.0, %v4479_v1  ;;  %v11713_v1 = vld [vmem:[#allocation47_spill] sm:$0xff] }
 0x750   :  { %v4483_v25 = vpop.eup %4482  ;;  %v2897_v17 = vadd.f32 1.0, %v4481_v44 }
 0x751   :  { %v4485_v60 = vpop.eup %4484  ;;  %v2886_v61 = vadd.f32 1.0, %v4483_v25  ;;  %4486 = vrcp.f32 %v2885_v50 }
 0x752   :  { %4488 = vrcp.f32 %v2897_v17  ;;  %v2898_v10 = vadd.f32 1.0, %v4485_v60 }
 0x753   :  { %4490 = vrcp.f32 %v2886_v61 }
 0x75e   :  { %v4487_v17 = vpop.eup %4486 }
 0x75f   :  { %v4489_v60 = vpop.eup %4488 }
 0x77b   :  { %v2771_v51 = vpop.f32.mrf.mxu0  ;;  %v2842_v63 = vpop.f32.mrf.mxu1 }
 0x77c   :  { %v2859_v4 = vrot.slane %v2771_v51, 4  ;;  %v2861_v5 = vrot.slane %v2842_v63, 4  ;;  %v4491_v51 = vpop.eup %4490  ;;  %v2919_v63 = vrot.slane %v8705_v24, 4 }
 0x77d   :  { %v2773_v7 = vpop.f32.mrf.mxu0  ;;  %v2844_v15 = vpop.f32.mrf.mxu1 }
 0x77e   :  { %v2875_v54 = vadd.f32 %v2859_v4, %v11711_v32  ;;  %v2877_v36 = vadd.f32 %v2861_v5, %v11712_v43  ;;  %v2860_v11 = vrot.slane %v2773_v7, 4  ;;  %v2862_v35 = vrot.slane %v2844_v15, 4 }
 0x77f   :  { %v2923_v7 = vmul.f32 %v4489_v60, %v2919_v63  ;;  %v2920_v32 = vrot.slane %v8708_v12, 4  ;;  %v9382_v63 = vld [vmem:[#allocation6 + $0xb8] sm:$0xff] }
 0x780   :  { %4492 = vtanh.f32 %v2875_v54  ;;  %v4249_v27 = vmul.f32 -1.442695, %v2877_v36  ;;  %v2876_v44 = vadd.f32 %v2860_v11, %v11713_v1  ;;  %v2878_v25 = vadd.f32 %v2862_v35, %v11533_v52 }
 0x781   :  { %4494 = vrcp.f32 %v2898_v10 }
 0x782   :  { %4496 = vpow2.f32 %v4249_v27  ;;  %v4250_v50 = vmul.f32 -1.442695, %v2878_v25 }
 0x783   :  { %4498 = vtanh.f32 %v2876_v44 }
 0x784   :  { %4500 = vpow2.f32 %v4250_v50 }
 0x78d   :  { %v4493_v4 = vpop.eup %4492 }
 0x78e   :  { %v4495_v5 = vpop.eup %4494  ;;  %v2925_v61 = vmul.f32 %v4493_v4, %v4487_v17  ;;  %v9385_v4 = vld [vmem:[#allocation6 + $0xa0] sm:$0xff] }
 0x78f   :  { %v4497_v15 = vpop.eup %4496  ;;  %v2924_v36 = vmul.f32 %v4495_v5, %v2920_v32  ;;  %v9388_v5 = vld [vmem:[#allocation6 + $0xb0] sm:$0xff] }
 0x790   :  { %v4499_v54 = vpop.eup %4498  ;;  %v9259_v43 = vadd.f32 %v2925_v61, %v2923_v7  ;;  %v2911_v52 = vadd.f32 1.0, %v4497_v15  ;;  %v9391_v7 = vld [vmem:[#allocation6 + $0x868] sm:$0xff]  ;;  %v9394_v61 = vld [vmem:[#allocation6 + $0x878] sm:$0xff]  ;;  %v9397_v15 = vld [vmem:[#allocation6 + $0x860] sm:$0xff] }
 0x791   :  { %v4501_v10 = vpop.eup %4500  ;;  %v2926_v11 = vmul.f32 %v4499_v54, %v4491_v51  ;;  %v9379_v51 = vld [vmem:[#allocation6 + $0xa8] sm:$0xff]  ;;  %v9400_v32 = vld [vmem:[#allocation6 + $0x870] sm:$0xff] }
 0x792   :  { %4502 = vtanh.f32 %v9259_v43  ;;  %v2912_v35 = vadd.f32 1.0, %v4501_v10  ;;  %v9403_v54 = vld [vmem:[#allocation6 + $0x828] sm:$0xff]  ;;  %v9409_v10 = vld [vmem:[#allocation6 + $0x820] sm:$0xff] }
 0x793   :  { %4504 = vrcp.f32 %v2911_v52  ;;  %v9262_v27 = vadd.f32 %v2926_v11, %v2924_v36  ;;  %v9406_v52 = vld [vmem:[#allocation6 + $0x838] sm:$0xff]  ;;  %v9412_v36 = vld [vmem:[#allocation6 + $0x830] sm:$0xff]  ;;  %v9415_v11 = vld [vmem:[#allocation6 + $0x7e8] sm:$0xff] }
 0x794   :  { %4506 = vrcp.f32 %v2912_v35  ;;  %v9418_v35 = vld [vmem:[#allocation6 + $0x7f8] sm:$0xff] }
 0x795   :  { %4508 = vtanh.f32 %v9262_v27 }
 0x79f   :  { %v4503_v24 = vpop.eup %4502 }
 0x7a0   :  { %v4505_v1 = vpop.eup %4504 }
 0x7a1   :  { %v4507_v44 = vpop.eup %4506  ;;  %v2931_v25 = vmul.f32 %v4505_v1, %v4503_v24  ;;  %v9421_v24 = vld [vmem:[#allocation6 + $0x7e0] sm:$0xff]  ;;  %v9424_v1 = vld [vmem:[#allocation6 + $0x7f0] sm:$0xff] }
 0x7a2   :  { %v4509_v12 = vpop.eup %4508  ;;  %11717 = vst [vmem:[#allocation18_spill] sm:$0xff] %v9421_v24  ;;  %11718 = vst [vmem:[#allocation25_spill] sm:$0xff] %v9424_v1 }
 0x7a3   :  { %v2932_v50 = vmul.f32 %v4509_v12, %v4507_v44  ;;  %v9265_v60 = vrot.slane %v2931_v25, 4  ;;  %v9427_v44 = vld [vmem:[#allocation6 + $0x7a8] sm:$0xff]  ;;  %v9430_v12 = vld [vmem:[#allocation6 + $0x7b8] sm:$0xff]  ;;  %v9433_v25 = vld [vmem:[#allocation6 + $0x7a0] sm:$0xff] }
 0x7a4   :  { %11719 = vst [vmem:[#allocation30_spill] sm:$0xff] %v9427_v44  ;;  %11720 = vst [vmem:[#allocation40_spill] sm:$0xff] %v9430_v12 }
 0x7a5   :  { %v2936_v17 = vrot.slane %v2932_v50, 4  ;;  %11721 = vst [vmem:[#allocation35_spill] sm:$0xff] %v9433_v25  ;;  %v9436_v50 = vld [vmem:[#allocation6 + $0x7b0] sm:$0xff] }
 0x7a6   :  { %11722 = vst [vmem:[#allocation140_spill] sm:$0xff] %v9436_v50 }
 0x7a7   :  { %3003 = vmatprep.mubr.f32.mxu0 %v2936_v17  ;;  %3074 = vmatprep.mubr.f32.mxu1 %v2936_v17 }
 0x7a8   :  { %3004 = vmatmul.mubr.f32.vlgmr.msra.gmra.mxu0 %v9265_v60  ;;  %3075 = vmatmul.mubr.f32.vlgmr.msra.gmra.mxu1 %v9265_v60 }
 0x7a9   :  { %3082 = vmatpush1.msra.mxu0 %v8715_v45  ;;  %3153 = vmatpush1.msra.mxu1 %v8718_v14  ;;  %v11714_v45 = vld [vmem:[#allocation56_spill] sm:$0xff]  ;;  %v11715_v14 = vld [vmem:[#allocation49_spill] sm:$0xff] }
 0x7aa   :  { %3083 = vmatprep.subr.mxu0 %v8721_v42  ;;  %3145 = vmatprep.mubr.f32.mxu0 %v2936_v17  ;;  %v11716_v42 = vld [vmem:[#allocation58_spill] sm:$0xff] }
 0x7ab   :  { %3154 = vmatprep.subr.mxu1 %v8724_v46  ;;  %3216 = vmatprep.mubr.f32.mxu1 %v2936_v17  ;;  %v9285_v46 = vld [vmem:[#allocation6 + $0x360] sm:$0xff]  ;;  %v9439_v17 = vld [vmem:[#allocation6 + $0x768] sm:$0xff] }
 0x7ac   :  { %3084 = vmatpush1.msra.mxu0 %v8727_v48  ;;  %3155 = vmatpush1.msra.mxu1 %v8730_v34  ;;  %v9289_v48 = vld [vmem:[#allocation6 + $0x328] sm:$0xff]  ;;  %v9293_v34 = vld [vmem:[#allocation6 + $0x320] sm:$0xff]  ;;  %11723 = vst [vmem:[#allocation152_spill] sm:$0xff] %v9439_v17 }
 0x7ad   :  { %3085 = vmatprep.subr.mxu0 %v8733_v62  ;;  %3156 = vmatprep.subr.mxu1 %v8736_v49  ;;  %v9297_v62 = vld [vmem:[#allocation6 + $0x2e8] sm:$0xff]  ;;  %v9301_v49 = vld [vmem:[#allocation6 + $0x2e0] sm:$0xff] }
 0x7ae   :  { %3086 = vmatpush1.msra.mxu0 %v8739_v33  ;;  %3157 = vmatpush1.msra.mxu1 %v8742_v28  ;;  %v9305_v33 = vld [vmem:[#allocation6 + $0x2a8] sm:$0xff]  ;;  %v9309_v28 = vld [vmem:[#allocation6 + $0x2a0] sm:$0xff] }
 0x7af   :  { %3087 = vmatprep.subr.mxu0 %v8745_v38  ;;  %3158 = vmatprep.subr.mxu1 %v8748_v16  ;;  %v9313_v38 = vld [vmem:[#allocation6 + $0x268] sm:$0xff]  ;;  %v9317_v16 = vld [vmem:[#allocation6 + $0x260] sm:$0xff] }
 0x7b0   :  { %3088 = vmatpush1.msra.mxu0 %v11714_v45  ;;  %3159 = vmatpush1.msra.mxu1 %v11715_v14  ;;  %v9442_v45 = vld [vmem:[#allocation6 + $0x778] sm:$0xff]  ;;  %v9445_v14 = vld [vmem:[#allocation6 + $0x760] sm:$0xff] }
 0x7b1   :  { %3089 = vmatprep.subr.mxu0 %v8757_v39  ;;  %3160 = vmatprep.subr.mxu1 %v11716_v42  ;;  %v9329_v39 = vld [vmem:[#allocation6 + $0x1e8] sm:$0xff]  ;;  %11724 = vst [vmem:[#allocation142_spill] sm:$0xff] %v9442_v45  ;;  %11725 = vst [vmem:[#allocation153_spill] sm:$0xff] %v9445_v14  ;;  %v9448_v42 = vld [vmem:[#allocation6 + $0x770] sm:$0xff] }
 0x7b2   :  { %3090 = vmatpush1.msra.mxu0 %v9285_v46  ;;  %3161 = vmatpush1.msra.mxu1 %v8764_v13  ;;  %v9337_v13 = vld [vmem:[#allocation6 + $0x1a8] sm:$0xff]  ;;  %11726 = vst [vmem:[#allocation143_spill] sm:$0xff] %v9448_v42 }
 0x7b3   :  { %3091 = vmatprep.subr.mxu0 %v9289_v48  ;;  %3162 = vmatprep.subr.mxu1 %v8768_v59  ;;  %v9321_v59 = vld [vmem:[#allocation6 + $0x228] sm:$0xff] }
 0x7b4   :  { %3092 = vmatpush1.msra.mxu0 %v9293_v34  ;;  %3163 = vmatpush1.msra.mxu1 %v8772_v21  ;;  %v9325_v21 = vld [vmem:[#allocation6 + $0x220] sm:$0xff] }
 0x7b5   :  { %3093 = vmatprep.subr.mxu0 %v9297_v62  ;;  %3164 = vmatprep.subr.mxu1 %v8776_v31  ;;  %v9333_v31 = vld [vmem:[#allocation6 + $0x1e0] sm:$0xff] }
 0x7b6   :  { %3094 = vmatpush1.msra.mxu0 %v9301_v49  ;;  %3165 = vmatpush1.msra.mxu1 %v8780_v29  ;;  %v9341_v29 = vld [vmem:[#allocation6 + $0x1a0] sm:$0xff] }
 0x7b7   :  { %3095 = vmatprep.subr.mxu0 %v9305_v33  ;;  %3166 = vmatprep.subr.mxu1 %v8784_v57  ;;  %v9345_v57 = vld [vmem:[#allocation6 + $0x168] sm:$0xff] }
 0x7b8   :  { %3096 = vmatpush1.msra.mxu0 %v9309_v28  ;;  %3167 = vmatpush1.msra.mxu1 %v8788_v53  ;;  %v9349_v53 = vld [vmem:[#allocation6 + $0x160] sm:$0xff] }
 0x7b9   :  { %3097 = vmatprep.subr.mxu0 %v9313_v38  ;;  %3168 = vmatprep.subr.mxu1 %v8792_v47  ;;  %v9352_v47 = vld [vmem:[#allocation6 + $0x170] sm:$0xff] }
 0x7ba   :  { %3098 = vmatpush1.msra.mxu0 %v9317_v16  ;;  %3169 = vmatpush1.msra.mxu1 %v8796_v8  ;;  %v9355_v8 = vld [vmem:[#allocation6 + $0x128] sm:$0xff] }
 0x7bb   :  { %3099 = vmatprep.subr.mxu0 %v9321_v59  ;;  %3170 = vmatprep.subr.mxu1 %v8800_v41  ;;  %v9358_v41 = vld [vmem:[#allocation6 + $0x138] sm:$0xff] }
 0x7bc   :  { %3100 = vmatpush1.msra.mxu0 %v9325_v21  ;;  %3171 = vmatpush1.msra.mxu1 %v8804_v20  ;;  %v9361_v20 = vld [vmem:[#allocation6 + $0x120] sm:$0xff] }
 0x7bd   :  { %3101 = vmatprep.subr.mxu0 %v9329_v39  ;;  %3172 = vmatprep.subr.mxu1 %v8808_v55  ;;  %v9364_v55 = vld [vmem:[#allocation6 + $0x130] sm:$0xff] }
 0x7be   :  { %3102 = vmatpush1.msra.mxu0 %v9333_v31  ;;  %3173 = vmatpush1.msra.mxu1 %v8812_v6  ;;  %v9367_v6 = vld [vmem:[#allocation6 + $0xe8] sm:$0xff] }
 0x7bf   :  { %3103 = vmatprep.subr.mxu0 %v9337_v13  ;;  %3174 = vmatprep.subr.mxu1 %v8816_v26  ;;  %v9370_v26 = vld [vmem:[#allocation6 + $0xf8] sm:$0xff] }
 0x7c0   :  { %3104 = vmatpush1.msra.mxu0 %v9341_v29  ;;  %3175 = vmatpush1.msra.mxu1 %v8820_v19  ;;  %v9373_v19 = vld [vmem:[#allocation6 + $0xe0] sm:$0xff] }
 0x7c1   :  { %3105 = vmatprep.subr.mxu0 %v9345_v57  ;;  %3176 = vmatprep.subr.mxu1 %v8824_v37  ;;  %v9376_v37 = vld [vmem:[#allocation6 + $0xf0] sm:$0xff] }
 0x7c2   :  { %3106 = vmatpush1.msra.mxu0 %v9349_v53  ;;  %3177 = vmatpush1.msra.mxu1 %v9352_v47 }
 0x7c3   :  { %3107 = vmatprep.subr.mxu0 %v9355_v8  ;;  %3178 = vmatprep.subr.mxu1 %v9358_v41 }
 0x7c4   :  { %3108 = vmatpush1.msra.mxu0 %v9361_v20  ;;  %3179 = vmatpush1.msra.mxu1 %v9364_v55 }
 0x7c5   :  { %3109 = vmatprep.subr.mxu0 %v9367_v6  ;;  %3180 = vmatprep.subr.mxu1 %v9370_v26 }
 0x7c6   :  { %3110 = vmatpush1.msra.mxu0 %v9373_v19  ;;  %3181 = vmatpush1.msra.mxu1 %v9376_v37 }
 0x7c7   :  { %3111 = vmatprep.subr.mxu0 %v9379_v51  ;;  %3182 = vmatprep.subr.mxu1 %v9382_v63 }
 0x7c8   :  { %3112 = vmatpush1.msra.mxu0 %v9385_v4  ;;  %3183 = vmatpush1.msra.mxu1 %v9388_v5 }
 0x7c9   :  { %3113 = vmatprep.subr.mxu0 %v9391_v7  ;;  %3184 = vmatprep.subr.mxu1 %v9394_v61 }
 0x7ca   :  { %3114 = vmatpush2.msra.mxu0 %v9397_v15  ;;  %3185 = vmatpush2.msra.mxu1 %v9400_v32 }
 0x7cb   :  { %3115 = vmatprep.subr.mxu0 %v9403_v54  ;;  %3186 = vmatprep.subr.mxu1 %v9406_v52 }
 0x7cc   :  { %3116 = vmatpush2.msra.mxu0 %v9409_v10  ;;  %3187 = vmatpush2.msra.mxu1 %v9412_v36 }
 0x7cd   :  { %3117 = vmatprep.subr.mxu0 %v9415_v11  ;;  %3188 = vmatprep.subr.mxu1 %v9418_v35 }
 0x7ce   :  { %3118 = vmatpush2.msra.mxu0 %v9421_v24  ;;  %3189 = vmatpush2.msra.mxu1 %v9424_v1  ;;  %v5353_v1 = vld [vmem:[#allocation6 + $0x410] sm:$0xff]  ;;  %v5355_v24 = vld [vmem:[#allocation6 + $0x3d8] sm:$0xff] }
 0x7cf   :  { %3119 = vmatprep.subr.mxu0 %v9427_v44  ;;  %3190 = vmatprep.subr.mxu1 %v9430_v12  ;;  %v5349_v12 = vld [vmem:[#allocation6 + $0x450] sm:$0xff]  ;;  %v5351_v44 = vld [vmem:[#allocation6 + $0x418] sm:$0xff] }
 0x7d0   :  { %3120 = vmatpush2.msra.mxu0 %v9433_v25  ;;  %3191 = vmatpush2.msra.mxu1 %v9436_v50  ;;  %v9451_v25 = vld [vmem:[#allocation6 + $0x728] sm:$0xff]  ;;  %v9454_v50 = vld [vmem:[#allocation6 + $0x738] sm:$0xff] }
 0x7d1   :  { %3121 = vmatprep.subr.mxu0 %v9439_v17  ;;  %3192 = vmatprep.subr.mxu1 %v9442_v45  ;;  %11727 = vst [vmem:[#allocation144_spill] sm:$0xff] %v9451_v25  ;;  %11728 = vst [vmem:[#allocation154_spill] sm:$0xff] %v9454_v50  ;;  %v9457_v17 = vld [vmem:[#allocation6 + $0x720] sm:$0xff]  ;;  %v9460_v45 = vld [vmem:[#allocation6 + $0x730] sm:$0xff] }
 0x7d2   :  { %3122 = vmatpush2.msra.mxu0 %v9445_v14  ;;  %3193 = vmatpush2.msra.mxu1 %v9448_v42  ;;  %11729 = vst [vmem:[#allocation146_spill] sm:$0xff] %v9457_v17  ;;  %11730 = vst [vmem:[#allocation147_spill] sm:$0xff] %v9460_v45  ;;  %v9463_v14 = vld [vmem:[#allocation6 + $0x6e8] sm:$0xff]  ;;  %v9466_v42 = vld [vmem:[#allocation6 + $0x6f8] sm:$0xff] }
 0x7d3   :  { %3123 = vmatprep.subr.mxu0 %v9451_v25  ;;  %3194 = vmatprep.subr.mxu1 %v9454_v50  ;;  %11731 = vst [vmem:[#allocation156_spill] sm:$0xff] %v9463_v14  ;;  %11732 = vst [vmem:[#allocation149_spill] sm:$0xff] %v9466_v42  ;;  %v9469_v25 = vld [vmem:[#allocation6 + $0x6e0] sm:$0xff]  ;;  %v9472_v50 = vld [vmem:[#allocation6 + $0x6f0] sm:$0xff] }
 0x7d4   :  { %3124 = vmatpush2.msra.mxu0 %v9457_v17  ;;  %3195 = vmatpush2.msra.mxu1 %v9460_v45  ;;  %11733 = vst [vmem:[#allocation155_spill] sm:$0xff] %v9469_v25  ;;  %11734 = vst [vmem:[#allocation161_spill] sm:$0xff] %v9472_v50  ;;  %v9475_v17 = vld [vmem:[#allocation6 + $0x6a8] sm:$0xff]  ;;  %v9478_v45 = vld [vmem:[#allocation6 + $0x6b8] sm:$0xff] }
 0x7d5   :  { %3125 = vmatprep.subr.mxu0 %v9463_v14  ;;  %3196 = vmatprep.subr.mxu1 %v9466_v42  ;;  %11735 = vst [vmem:[#allocation157_spill] sm:$0xff] %v9475_v17  ;;  %11736 = vst [vmem:[#allocation163_spill] sm:$0xff] %v9478_v45  ;;  %v9481_v14 = vld [vmem:[#allocation6 + $0x6a0] sm:$0xff]  ;;  %v9484_v42 = vld [vmem:[#allocation6 + $0x6b0] sm:$0xff] }
 0x7d6   :  { %3126 = vmatpush2.msra.mxu0 %v9469_v25  ;;  %3197 = vmatpush2.msra.mxu1 %v9472_v50  ;;  %11737 = vst [vmem:[#allocation158_spill] sm:$0xff] %v9481_v14  ;;  %11738 = vst [vmem:[#allocation159_spill] sm:$0xff] %v9484_v42  ;;  %v9487_v25 = vld [vmem:[#allocation6 + $0x668] sm:$0xff]  ;;  %v9490_v50 = vld [vmem:[#allocation6 + $0x678] sm:$0xff] }
 0x7d7   :  { %3127 = vmatprep.subr.mxu0 %v9475_v17  ;;  %3198 = vmatprep.subr.mxu1 %v9478_v45  ;;  %11739 = vst [vmem:[#allocation160_spill] sm:$0xff] %v9487_v25  ;;  %11740 = vst [vmem:[#allocation162_spill] sm:$0xff] %v9490_v50  ;;  %v9493_v17 = vld [vmem:[#allocation6 + $0x660] sm:$0xff]  ;;  %v9496_v45 = vld [vmem:[#allocation6 + $0x670] sm:$0xff] }
 0x7d8   :  { %3128 = vmatpush2.msra.mxu0 %v9481_v14  ;;  %3199 = vmatpush2.msra.mxu1 %v9484_v42  ;;  %11741 = vst [vmem:[#allocation164_spill] sm:$0xff] %v9493_v17  ;;  %11742 = vst [vmem:[#allocation165_spill] sm:$0xff] %v9496_v45  ;;  %v9499_v14 = vld [vmem:[#allocation6 + $0x628] sm:$0xff]  ;;  %v9502_v42 = vld [vmem:[#allocation6 + $0x638] sm:$0xff] }
 0x7d9   :  { %3129 = vmatprep.subr.mxu0 %v9487_v25  ;;  %3200 = vmatprep.subr.mxu1 %v9490_v50  ;;  %11743 = vst [vmem:[#allocation166_spill] sm:$0xff] %v9499_v14  ;;  %11744 = vst [vmem:[#allocation36_spill] sm:$0xff] %v9502_v42  ;;  %v9505_v25 = vld [vmem:[#allocation6 + $0x620] sm:$0xff]  ;;  %v9508_v50 = vld [vmem:[#allocation6 + $0x630] sm:$0xff] }
 0x7da   :  { %3130 = vmatpush2.msra.mxu0 %v9493_v17  ;;  %3201 = vmatpush2.msra.mxu1 %v9496_v45  ;;  %11745 = vst [vmem:[#allocation46_spill] sm:$0xff] %v9505_v25  ;;  %11746 = vst [vmem:[#allocation39_spill] sm:$0xff] %v9508_v50  ;;  %v9511_v17 = vld [vmem:[#allocation6 + $0x5e8] sm:$0xff]  ;;  %v9514_v45 = vld [vmem:[#allocation6 + $0x5f8] sm:$0xff] }
 0x7db   :  { %3131 = vmatprep.subr.mxu0 %v9499_v14  ;;  %3202 = vmatprep.subr.mxu1 %v9502_v42  ;;  %11747 = vst [vmem:[#allocation48_spill] sm:$0xff] %v9511_v17  ;;  %11748 = vst [vmem:[#allocation41_spill] sm:$0xff] %v9514_v45  ;;  %v9517_v14 = vld [vmem:[#allocation6 + $0x5e0] sm:$0xff]  ;;  %v9520_v42 = vld [vmem:[#allocation6 + $0x5f0] sm:$0xff] }
 0x7dc   :  { %3132 = vmatpush2.msra.mxu0 %v9505_v25  ;;  %3203 = vmatpush2.msra.mxu1 %v9508_v50  ;;  %11749 = vst [vmem:[#allocation50_spill] sm:$0xff] %v9517_v14  ;;  %11750 = vst [vmem:[#allocation43_spill] sm:$0xff] %v9520_v42  ;;  %v9523_v25 = vld [vmem:[#allocation6 + $0x5a8] sm:$0xff]  ;;  %v9526_v50 = vld [vmem:[#allocation6 + $0x5b8] sm:$0xff] }
 0x7dd   :  { %3133 = vmatprep.subr.mxu0 %v9511_v17  ;;  %3204 = vmatprep.subr.mxu1 %v9514_v45  ;;  %11751 = vst [vmem:[#allocation52_spill] sm:$0xff] %v9523_v25  ;;  %11752 = vst [vmem:[#allocation167_spill] sm:$0xff] %v9526_v50  ;;  %v9529_v17 = vld [vmem:[#allocation6 + $0x5a0] sm:$0xff]  ;;  %v9532_v45 = vld [vmem:[#allocation6 + $0x5b0] sm:$0xff] }
 0x7de   :  { %3134 = vmatpush2.msra.mxu0 %v9517_v14  ;;  %3205 = vmatpush2.msra.mxu1 %v9520_v42  ;;  %11753 = vst [vmem:[#allocation168_spill] sm:$0xff] %v9529_v17  ;;  %11754 = vst [vmem:[#allocation169_spill] sm:$0xff] %v9532_v45  ;;  %v9535_v14 = vld [vmem:[#allocation6 + $0x568] sm:$0xff]  ;;  %v9538_v42 = vld [vmem:[#allocation6 + $0x578] sm:$0xff] }
 0x7df   :  { %3135 = vmatprep.subr.mxu0 %v9523_v25  ;;  %3206 = vmatprep.subr.mxu1 %v9526_v50  ;;  %11755 = vst [vmem:[#allocation170_spill] sm:$0xff] %v9535_v14  ;;  %11756 = vst [vmem:[#allocation171_spill] sm:$0xff] %v9538_v42  ;;  %v9541_v25 = vld [vmem:[#allocation6 + $0x560] sm:$0xff]  ;;  %v9544_v50 = vld [vmem:[#allocation6 + $0x570] sm:$0xff] }
 0x7e0   :  { %3136 = vmatpush2.msra.mxu0 %v9529_v17  ;;  %3207 = vmatpush2.msra.mxu1 %v9532_v45  ;;  %11757 = vst [vmem:[#allocation172_spill] sm:$0xff] %v9541_v25  ;;  %11758 = vst [vmem:[#allocation173_spill] sm:$0xff] %v9544_v50  ;;  %v9547_v17 = vld [vmem:[#allocation6 + $0x528] sm:$0xff]  ;;  %v9550_v45 = vld [vmem:[#allocation6 + $0x538] sm:$0xff] }
 0x7e1   :  { %3137 = vmatprep.subr.mxu0 %v9535_v14  ;;  %3208 = vmatprep.subr.mxu1 %v9538_v42  ;;  %11759 = vst [vmem:[#allocation174_spill] sm:$0xff] %v9547_v17  ;;  %11760 = vst [vmem:[#allocation175_spill] sm:$0xff] %v9550_v45  ;;  %v9553_v14 = vld [vmem:[#allocation6 + $0x520] sm:$0xff]  ;;  %v9556_v42 = vld [vmem:[#allocation6 + $0x530] sm:$0xff] }
 0x7e2   :  { %3138 = vmatpush2.msra.mxu0 %v9541_v25  ;;  %3209 = vmatpush2.msra.mxu1 %v9544_v50  ;;  %11761 = vst [vmem:[#allocation176_spill] sm:$0xff] %v9553_v14  ;;  %11762 = vst [vmem:[#allocation177_spill] sm:$0xff] %v9556_v42  ;;  %v9559_v25 = vld [vmem:[#allocation6 + $0x4e8] sm:$0xff]  ;;  %v9562_v50 = vld [vmem:[#allocation6 + $0x4f8] sm:$0xff] }
 0x7e3   :  { %3139 = vmatprep.subr.mxu0 %v9547_v17  ;;  %3210 = vmatprep.subr.mxu1 %v9550_v45  ;;  %11763 = vst [vmem:[#allocation178_spill] sm:$0xff] %v9559_v25  ;;  %11764 = vst [vmem:[#allocation179_spill] sm:$0xff] %v9562_v50  ;;  %v9565_v17 = vld [vmem:[#allocation6 + $0x4e0] sm:$0xff]  ;;  %v9568_v45 = vld [vmem:[#allocation6 + $0x4f0] sm:$0xff] }
 0x7e4   :  { %3140 = vmatpush2.msra.mxu0 %v9553_v14  ;;  %3211 = vmatpush2.msra.mxu1 %v9556_v42  ;;  %11765 = vst [vmem:[#allocation180_spill] sm:$0xff] %v9565_v17  ;;  %11766 = vst [vmem:[#allocation181_spill] sm:$0xff] %v9568_v45  ;;  %v9571_v14 = vld [vmem:[#allocation6 + $0x4a8] sm:$0xff]  ;;  %v9574_v42 = vld [vmem:[#allocation6 + $0x4b8] sm:$0xff] }
 0x7e5   :  { %3141 = vmatprep.subr.mxu0 %v9559_v25  ;;  %3212 = vmatprep.subr.mxu1 %v9562_v50  ;;  %11767 = vst [vmem:[#allocation182_spill] sm:$0xff] %v9571_v14  ;;  %11768 = vst [vmem:[#allocation183_spill] sm:$0xff] %v9574_v42  ;;  %v9577_v25 = vld [vmem:[#allocation6 + $0x4a0] sm:$0xff]  ;;  %v9580_v50 = vld [vmem:[#allocation6 + $0x4b0] sm:$0xff] }
 0x7e6   :  { %3142 = vmatpush2.msra.mxu0 %v9565_v17  ;;  %3213 = vmatpush2.msra.mxu1 %v9568_v45  ;;  %11769 = vst [vmem:[#allocation184_spill] sm:$0xff] %v9577_v25  ;;  %11770 = vst [vmem:[#allocation185_spill] sm:$0xff] %v9580_v50  ;;  %v5346_v45 = vld [vmem:[#allocation6 + $0x448] sm:$0xff]  ;;  %v5347_v17 = vld [vmem:[#allocation6 + $0x458] sm:$0xff] }
 0x7e7   :  { %3143 = vmatprep.subr.mxu0 %v9571_v14  ;;  %3214 = vmatprep.subr.mxu1 %v9574_v42  ;;  %v5348_v14 = vld [vmem:[#allocation6 + $0x440] sm:$0xff]  ;;  %v5350_v42 = vld [vmem:[#allocation6 + $0x408] sm:$0xff] }
 0x7e8   :  { %3144 = vmatpush2.msra.mxu0 %v9577_v25  ;;  %3215 = vmatpush2.msra.mxu1 %v9580_v50  ;;  %v5352_v25 = vld [vmem:[#allocation6 + $0x400] sm:$0xff]  ;;  %v5354_v50 = vld [vmem:[#allocation6 + $0x3c8] sm:$0xff] }
 0x7e9   :  { %3146 = vmatmul.mubr.f32.vlgmr.msra.gmra.mxu0 %v9265_v60  ;;  %3217 = vmatmul.mubr.f32.vlgmr.msra.gmra.mxu1 %v9265_v60  ;;  %v5356_v60 = vld [vmem:[#allocation6 + $0x3d0] sm:$0xff] }
 0x7ea   :  { %3285 = vmatprep.subr.mxu0 %v5346_v45  ;;  %3356 = vmatprep.subr.mxu1 %v5347_v17  ;;  %v5357_v17 = vld [vmem:[#allocation6 + $0x398] sm:$0xff]  ;;  %v11774_v45 = vld [vmem:[#allocation62_spill] sm:$0xff] }
 0x7eb   :  { %3286 = vmatpush1.msra.mxu0 %v5348_v14  ;;  %3357 = vmatpush1.msra.mxu1 %v5349_v12  ;;  %v5358_v12 = vld [vmem:[#allocation6 + $0x390] sm:$0xff]  ;;  %v11776_v14 = vld [vmem:[#allocation64_spill] sm:$0xff] }
 0x7ec   :  { %3287 = vmatprep.subr.mxu0 %v5350_v42  ;;  %3358 = vmatprep.subr.mxu1 %v5351_v44  ;;  %v5359_v44 = vld [vmem:[#allocation6 + $0x358] sm:$0xff]  ;;  %v11778_v42 = vld [vmem:[#allocation65_spill] sm:$0xff] }
 0x7ed   :  { %3288 = vmatpush1.msra.mxu0 %v5352_v25  ;;  %3359 = vmatpush1.msra.mxu1 %v5353_v1  ;;  %v5360_v1 = vld [vmem:[#allocation6 + $0x350] sm:$0xff]  ;;  %v11772_v25 = vld [vmem:[#allocation60_spill] sm:$0xff] }
 0x7ee   :  { %3289 = vmatprep.subr.mxu0 %v5354_v50  ;;  %3360 = vmatprep.subr.mxu1 %v5355_v24  ;;  %v11771_v24 = vld [vmem:[#allocation51_spill] sm:$0xff]  ;;  %v11773_v50 = vld [vmem:[#allocation53_spill] sm:$0xff] }
 0x7ef   :  { %3290 = vmatpush1.msra.mxu0 %v8917_v56  ;;  %3361 = vmatpush1.msra.mxu1 %v5356_v60  ;;  %v5361_v56 = vld [vmem:[#allocation6 + $0x318] sm:$0xff] }
 0x7f0   :  { %3291 = vmatprep.subr.mxu0 %v8921_v58  ;;  %3362 = vmatprep.subr.mxu1 %v5357_v17  ;;  %v5362_v58 = vld [vmem:[#allocation6 + $0x310] sm:$0xff]  ;;  %v11779_v60 = vld [vmem:[#allocation59_spill] sm:$0xff] }
 0x7f1   :  { %3292 = vmatpush1.msra.mxu0 %v8925_v18  ;;  %3363 = vmatpush1.msra.mxu1 %v5358_v12  ;;  %v5363_v18 = vld [vmem:[#allocation6 + $0x2d8] sm:$0xff]  ;;  %v11780_v17 = vld [vmem:[#allocation66_spill] sm:$0xff]  ;;  %v11781_v12 = vld [vmem:[#allocation61_spill] sm:$0xff] }
 0x7f2   :  { %3293 = vmatprep.subr.mxu0 %v8929_v3  ;;  %3364 = vmatprep.subr.mxu1 %v5359_v44  ;;  %v5364_v3 = vld [vmem:[#allocation6 + $0x2d0] sm:$0xff]  ;;  %v11782_v44 = vld [vmem:[#allocation67_spill] sm:$0xff] }
 0x7f3   :  { %3294 = vmatpush1.msra.mxu0 %v8933_v2  ;;  %3365 = vmatpush1.msra.mxu1 %v5360_v1  ;;  %v5365_v2 = vld [vmem:[#allocation6 + $0x298] sm:$0xff] }
 0x7f4   :  { %3295 = vmatprep.subr.mxu0 %v8937_v9  ;;  %3366 = vmatprep.subr.mxu1 %v5361_v56  ;;  %v5366_v9 = vld [vmem:[#allocation6 + $0x290] sm:$0xff]  ;;  %v11783_v1 = vld [vmem:[#allocation63_spill] sm:$0xff]  ;;  %v11784_v56 = vld [vmem:[#allocation68_spill] sm:$0xff] }
 0x7f5   :  { %3296 = vmatpush1.msra.mxu0 %v8941_v22  ;;  %3367 = vmatpush1.msra.mxu1 %v5362_v58  ;;  %v5367_v22 = vld [vmem:[#allocation6 + $0x258] sm:$0xff]  ;;  %v11785_v58 = vld [vmem:[#allocation69_spill] sm:$0xff] }
 0x7f6   :  { %3297 = vmatprep.subr.mxu0 %v8945_v40  ;;  %3368 = vmatprep.subr.mxu1 %v5363_v18  ;;  %v5368_v40 = vld [vmem:[#allocation6 + $0x250] sm:$0xff] }
 0x7f7   :  { %3298 = vmatpush1.msra.mxu0 %v8949_v23  ;;  %3369 = vmatpush1.msra.mxu1 %v5364_v3  ;;  %v5369_v23 = vld [vmem:[#allocation6 + $0x218] sm:$0xff]  ;;  %v11786_v18 = vld [vmem:[#allocation70_spill] sm:$0xff] }
 0x7f8   :  { %3299 = vmatprep.subr.mxu0 %v8953_v30  ;;  %3370 = vmatprep.subr.mxu1 %v5365_v2  ;;  %v11775_v30 = vld [vmem:[#allocation55_spill] sm:$0xff]  ;;  %v11788_v2 = vld [vmem:[#allocation72_spill] sm:$0xff] }
 0x7f9   :  { %3300 = vmatpush1.msra.mxu0 %v8957_v0  ;;  %3371 = vmatpush1.msra.mxu1 %v5366_v9  ;;  %v11777_v0 = vld [vmem:[#allocation57_spill] sm:$0xff]  ;;  %v11787_v3 = vld [vmem:[#allocation71_spill] sm:$0xff] }
 0x7fa   :  { %3301 = vmatprep.subr.mxu0 %v11771_v24  ;;  %3372 = vmatprep.subr.mxu1 %v5367_v22  ;;  %v11789_v9 = vld [vmem:[#allocation73_spill] sm:$0xff]  ;;  %v11790_v24 = vld [vmem:[#allocation74_spill] sm:$0xff]  ;;  %v11791_v22 = vld [vmem:[#allocation75_spill] sm:$0xff] }
 0x7fb   :  { %3302 = vmatpush1.msra.mxu0 %v11772_v25  ;;  %3373 = vmatpush1.msra.mxu1 %v5368_v40  ;;  %v11792_v25 = vld [vmem:[#allocation77_spill] sm:$0xff]  ;;  %v11793_v40 = vld [vmem:[#allocation79_spill] sm:$0xff] }
 0x7fc   :  { %3303 = vmatprep.subr.mxu0 %v11773_v50  ;;  %3374 = vmatprep.subr.mxu1 %v5369_v23  ;;  %v11794_v50 = vld [vmem:[#allocation81_spill] sm:$0xff]  ;;  %v11795_v23 = vld [vmem:[#allocation83_spill] sm:$0xff] }
 0x7fd   :  { %3304 = vmatpush1.msra.mxu0 %v11774_v45  ;;  %3375 = vmatpush1.msra.mxu1 %v11775_v30  ;;  %v11796_v45 = vld [vmem:[#allocation85_spill] sm:$0xff]  ;;  %v11797_v30 = vld [vmem:[#allocation87_spill] sm:$0xff] }
 0x7fe   :  { %3305 = vmatprep.subr.mxu0 %v11776_v14  ;;  %3376 = vmatprep.subr.mxu1 %v11777_v0  ;;  %v11798_v14 = vld [vmem:[#allocation89_spill] sm:$0xff]  ;;  %v11799_v0 = vld [vmem:[#allocation91_spill] sm:$0xff] }
 0x7ff   :  { %3306 = vmatpush1.msra.mxu0 %v11778_v42  ;;  %3377 = vmatpush1.msra.mxu1 %v11779_v60  ;;  %v11800_v42 = vld [vmem:[#allocation76_spill] sm:$0xff]  ;;  %v11801_v60 = vld [vmem:[#allocation93_spill] sm:$0xff] }
 0x800   :  { %3307 = vmatprep.subr.mxu0 %v11780_v17  ;;  %3378 = vmatprep.subr.mxu1 %v11781_v12  ;;  %v11802_v17 = vld [vmem:[#allocation78_spill] sm:$0xff]  ;;  %v11803_v12 = vld [vmem:[#allocation95_spill] sm:$0xff] }
 0x801   :  { %3308 = vmatpush1.msra.mxu0 %v11782_v44  ;;  %3379 = vmatpush1.msra.mxu1 %v11783_v1  ;;  %v11804_v44 = vld [vmem:[#allocation80_spill] sm:$0xff]  ;;  %v11805_v1 = vld [vmem:[#allocation97_spill] sm:$0xff] }
 0x802   :  { %3309 = vmatprep.subr.mxu0 %v11784_v56  ;;  %3380 = vmatprep.subr.mxu1 %v11785_v58  ;;  %v11806_v56 = vld [vmem:[#allocation82_spill] sm:$0xff]  ;;  %v11807_v58 = vld [vmem:[#allocation99_spill] sm:$0xff] }
 0x803   :  { %3310 = vmatpush1.msra.mxu0 %v11786_v18  ;;  %3381 = vmatpush1.msra.mxu1 %v11787_v3  ;;  %v11808_v18 = vld [vmem:[#allocation84_spill] sm:$0xff]  ;;  %v11809_v3 = vld [vmem:[#allocation101_spill] sm:$0xff] }
 0x804   :  { %3311 = vmatprep.subr.mxu0 %v11788_v2  ;;  %3382 = vmatprep.subr.mxu1 %v11789_v9  ;;  %v11810_v2 = vld [vmem:[#allocation86_spill] sm:$0xff]  ;;  %v11811_v9 = vld [vmem:[#allocation103_spill] sm:$0xff] }
 0x805   :  { %3312 = vmatpush1.msra.mxu0 %v11790_v24  ;;  %3383 = vmatpush1.msra.mxu1 %v11791_v22  ;;  %v11812_v24 = vld [vmem:[#allocation88_spill] sm:$0xff]  ;;  %v11813_v22 = vld [vmem:[#allocation105_spill] sm:$0xff] }
 0x806   :  { %3313 = vmatprep.subr.mxu0 %v11792_v25  ;;  %3384 = vmatprep.subr.mxu1 %v11793_v40  ;;  %v11814_v25 = vld [vmem:[#allocation90_spill] sm:$0xff]  ;;  %v11815_v40 = vld [vmem:[#allocation107_spill] sm:$0xff] }
 0x807   :  { %3314 = vmatpush1.msra.mxu0 %v11794_v50  ;;  %3385 = vmatpush1.msra.mxu1 %v11795_v23  ;;  %v11816_v50 = vld [vmem:[#allocation92_spill] sm:$0xff]  ;;  %v11817_v23 = vld [vmem:[#allocation109_spill] sm:$0xff] }
 0x808   :  { %3315 = vmatprep.subr.mxu0 %v11796_v45  ;;  %3386 = vmatprep.subr.mxu1 %v11797_v30  ;;  %v11818_v45 = vld [vmem:[#allocation94_spill] sm:$0xff]  ;;  %v11819_v30 = vld [vmem:[#allocation111_spill] sm:$0xff] }
 0x809   :  { %3316 = vmatpush1.msra.mxu0 %v11798_v14  ;;  %3387 = vmatpush1.msra.mxu1 %v11799_v0  ;;  %v11820_v14 = vld [vmem:[#allocation96_spill] sm:$0xff]  ;;  %v11821_v0 = vld [vmem:[#allocation113_spill] sm:$0xff] }
 0x80a   :  { %3317 = vmatprep.subr.mxu0 %v11800_v42  ;;  %3388 = vmatprep.subr.mxu1 %v11801_v60  ;;  %v11822_v42 = vld [vmem:[#allocation98_spill] sm:$0xff]  ;;  %v11823_v60 = vld [vmem:[#allocation115_spill] sm:$0xff] }
 0x80b   :  { %3318 = vmatpush2.msra.mxu0 %v11802_v17  ;;  %3389 = vmatpush2.msra.mxu1 %v11803_v12  ;;  %v11824_v17 = vld [vmem:[#allocation100_spill] sm:$0xff]  ;;  %v11825_v12 = vld [vmem:[#allocation117_spill] sm:$0xff] }
 0x80c   :  { %3319 = vmatprep.subr.mxu0 %v11804_v44  ;;  %3390 = vmatprep.subr.mxu1 %v11805_v1  ;;  %v11826_v44 = vld [vmem:[#allocation102_spill] sm:$0xff]  ;;  %v11827_v1 = vld [vmem:[#allocation119_spill] sm:$0xff] }
 0x80d   :  { %3320 = vmatpush2.msra.mxu0 %v11806_v56  ;;  %3391 = vmatpush2.msra.mxu1 %v11807_v58  ;;  %v11828_v56 = vld [vmem:[#allocation104_spill] sm:$0xff]  ;;  %v11829_v58 = vld [vmem:[#allocation121_spill] sm:$0xff] }
 0x80e   :  { %3321 = vmatprep.subr.mxu0 %v11808_v18  ;;  %3392 = vmatprep.subr.mxu1 %v11809_v3  ;;  %v11830_v18 = vld [vmem:[#allocation106_spill] sm:$0xff]  ;;  %v11831_v3 = vld [vmem:[#allocation123_spill] sm:$0xff] }
 0x80f   :  { %3322 = vmatpush2.msra.mxu0 %v11810_v2  ;;  %3393 = vmatpush2.msra.mxu1 %v11811_v9  ;;  %v11832_v2 = vld [vmem:[#allocation108_spill] sm:$0xff]  ;;  %v11833_v9 = vld [vmem:[#allocation125_spill] sm:$0xff] }
 0x810   :  { %3323 = vmatprep.subr.mxu0 %v11812_v24  ;;  %3394 = vmatprep.subr.mxu1 %v11813_v22  ;;  %v11834_v24 = vld [vmem:[#allocation110_spill] sm:$0xff]  ;;  %v11835_v22 = vld [vmem:[#allocation127_spill] sm:$0xff] }
 0x811   :  { %3324 = vmatpush2.msra.mxu0 %v11814_v25  ;;  %3395 = vmatpush2.msra.mxu1 %v11815_v40  ;;  %v11836_v25 = vld [vmem:[#allocation112_spill] sm:$0xff]  ;;  %v11837_v40 = vld [vmem:[#allocation129_spill] sm:$0xff] }
 0x812   :  { %3325 = vmatprep.subr.mxu0 %v11816_v50  ;;  %3396 = vmatprep.subr.mxu1 %v11817_v23  ;;  %v11838_v50 = vld [vmem:[#allocation114_spill] sm:$0xff]  ;;  %v11839_v23 = vld [vmem:[#allocation131_spill] sm:$0xff] }
 0x813   :  { %3326 = vmatpush2.msra.mxu0 %v11818_v45  ;;  %3397 = vmatpush2.msra.mxu1 %v11819_v30  ;;  %v11840_v45 = vld [vmem:[#allocation116_spill] sm:$0xff]  ;;  %v11841_v30 = vld [vmem:[#allocation133_spill] sm:$0xff] }
 0x814   :  { %3327 = vmatprep.subr.mxu0 %v11820_v14  ;;  %3398 = vmatprep.subr.mxu1 %v11821_v0  ;;  %v11842_v14 = vld [vmem:[#allocation118_spill] sm:$0xff]  ;;  %v11843_v0 = vld [vmem:[#allocation135_spill] sm:$0xff] }
 0x815   :  { %3328 = vmatpush2.msra.mxu0 %v11822_v42  ;;  %3399 = vmatpush2.msra.mxu1 %v11823_v60  ;;  %v11844_v42 = vld [vmem:[#allocation120_spill] sm:$0xff]  ;;  %v11845_v60 = vld [vmem:[#allocation137_spill] sm:$0xff] }
 0x816   :  { %3329 = vmatprep.subr.mxu0 %v11824_v17  ;;  %3400 = vmatprep.subr.mxu1 %v11825_v12  ;;  %v11846_v17 = vld [vmem:[#allocation122_spill] sm:$0xff]  ;;  %v11847_v12 = vld [vmem:[#allocation139_spill] sm:$0xff] }
 0x817   :  { %3330 = vmatpush2.msra.mxu0 %v11826_v44  ;;  %3401 = vmatpush2.msra.mxu1 %v11827_v1  ;;  %v11848_v44 = vld [vmem:[#allocation124_spill] sm:$0xff]  ;;  %v11849_v1 = vld [vmem:[#allocation141_spill] sm:$0xff] }
 0x818   :  { %3331 = vmatprep.subr.mxu0 %v11828_v56  ;;  %3402 = vmatprep.subr.mxu1 %v11829_v58  ;;  %v11850_v56 = vld [vmem:[#allocation126_spill] sm:$0xff]  ;;  %v11851_v58 = vld [vmem:[#allocation128_spill] sm:$0xff] }
 0x819   :  { %3332 = vmatpush2.msra.mxu0 %v11830_v18  ;;  %3403 = vmatpush2.msra.mxu1 %v11831_v3  ;;  %v11852_v18 = vld [vmem:[#allocation130_spill] sm:$0xff]  ;;  %v11853_v3 = vld [vmem:[#allocation145_spill] sm:$0xff] }
 0x81a   :  { %3333 = vmatprep.subr.mxu0 %v11832_v2  ;;  %3404 = vmatprep.subr.mxu1 %v11833_v9  ;;  %v11854_v2 = vld [vmem:[#allocation132_spill] sm:$0xff]  ;;  %v11855_v9 = vld [vmem:[#allocation134_spill] sm:$0xff] }
 0x81b   :  { %3334 = vmatpush2.msra.mxu0 %v11834_v24  ;;  %3405 = vmatpush2.msra.mxu1 %v11835_v22  ;;  %v11856_v24 = vld [vmem:[#allocation148_spill] sm:$0xff] }
 0x81c   :  { %3335 = vmatprep.subr.mxu0 %v11836_v25  ;;  %3406 = vmatprep.subr.mxu1 %v11837_v40  ;;  %v11857_v22 = vld [vmem:[#allocation136_spill] sm:$0xff]  ;;  %v11859_v40 = vld [vmem:[#allocation21_spill] sm:$0xff] }
 0x81d   :  { %3336 = vmatpush2.msra.mxu0 %v11838_v50  ;;  %3407 = vmatpush2.msra.mxu1 %v11839_v23  ;;  %v11858_v25 = vld [vmem:[#allocation16_spill] sm:$0xff]  ;;  %v11861_v23 = vld [vmem:[#allocation38_spill] sm:$0xff] }
 0x81e   :  { %3337 = vmatprep.subr.mxu0 %v11840_v45  ;;  %3408 = vmatprep.subr.mxu1 %v11841_v30  ;;  %v11860_v50 = vld [vmem:[#allocation28_spill] sm:$0xff]  ;;  %v11862_v45 = vld [vmem:[#allocation33_spill] sm:$0xff]  ;;  %v11863_v30 = vld [vmem:[#allocation150_spill] sm:$0xff] }
 0x81f   :  { %3338 = vmatpush2.msra.mxu0 %v11842_v14  ;;  %3409 = vmatpush2.msra.mxu1 %v11843_v0  ;;  %v11864_v14 = vld [vmem:[#allocation138_spill] sm:$0xff]  ;;  %v11865_v0 = vld [vmem:[#allocation151_spill] sm:$0xff] }
 0x820   :  { %3339 = vmatprep.subr.mxu0 %v11844_v42  ;;  %3410 = vmatprep.subr.mxu1 %v11845_v60 }
 0x821   :  { %3340 = vmatpush2.msra.mxu0 %v11846_v17  ;;  %3411 = vmatpush2.msra.mxu1 %v11847_v12  ;;  %v11866_v12 = vld [vmem:[#allocation20_spill] sm:$0xff] }
 0x822   :  { %3341 = vmatprep.subr.mxu0 %v11848_v44  ;;  %3412 = vmatprep.subr.mxu1 %v11849_v1  ;;  %v11867_v1 = vld [vmem:[#allocation27_spill] sm:$0xff] }
 0x823   :  { %3342 = vmatpush2.msra.mxu0 %v11850_v56  ;;  %3413 = vmatpush2.msra.mxu1 %v11851_v58 }
 0x824   :  { %3343 = vmatprep.subr.mxu0 %v11852_v18  ;;  %3414 = vmatprep.subr.mxu1 %v11853_v3  ;;  %v11868_v18 = vld [vmem:[#allocation31_spill] sm:$0xff] }
 0x825   :  { %3344 = vmatpush2.msra.mxu0 %v11854_v2  ;;  %3415 = vmatpush2.msra.mxu1 %v11855_v9  ;;  %v11869_v9 = vld [vmem:[#allocation29_spill] sm:$0xff] }
 0x826   :  { %3345 = vmatprep.subr.mxu0 %v11856_v24  ;;  %3416 = vmatprep.subr.mxu1 %v11857_v22 }
 0x827   :  { %3346 = vmatpush2.msra.mxu0 %v11858_v25  ;;  %3417 = vmatpush2.msra.mxu1 %v11859_v40 }
 0x828   :  { %3347 = vmatprep.subr.mxu0 %v11860_v50  ;;  %3418 = vmatprep.subr.mxu1 %v11861_v23 }
 0x829   :  { %3348 = vmatpush2.msra.mxu0 %v11862_v45  ;;  %3419 = vmatpush2.msra.mxu1 %v11863_v30 }
 0x82a   :  { %3427 = vmatprep.subr.mxu0 %v11864_v14  ;;  %3498 = vmatprep.subr.mxu1 %v11865_v0 }
 0x868   :  { %v3005_v42 = vpop.f32.mrf.mxu0  ;;  %v3076_v60 = vpop.f32.mrf.mxu1 }
 0x869   :  { %v3223_v44 = vadd.f32 %v3005_v42, %v11866_v12  ;;  %v3225_v56 = vadd.f32 %v3076_v60, %v11867_v1  ;;  %v11870_v60 = vld [vmem:[#allocation34_spill] sm:$0xff]  ;;  %v11871_v1 = vld [vmem:[#allocation32_spill] sm:$0xff] }
 0x86a   :  { %v3007_v17 = vpop.f32.mrf.mxu0  ;;  %v3078_v58 = vpop.f32.mrf.mxu1 }
 0x86b   :  { %v3224_v3 = vadd.f32 %v3007_v17, %v11868_v18  ;;  %v4251_v2 = vmul.f32 -1.442695, %v3223_v44  ;;  %v3226_v24 = vadd.f32 %v3078_v58, %v11869_v9  ;;  %v4253_v22 = vmul.f32 -1.442695, %v3225_v56 }
 0x86c   :  { %v9697_v17 = vadd.f32 %v11871_v1, %v11870_v60 }
 0x86d   :  { %v4252_v25 = vmul.f32 -1.442695, %v3224_v3  ;;  %4510 = vpow2.f32 %v4251_v2  ;;  %v4254_v40 = vmul.f32 -1.442695, %v3226_v24  ;;  %v11873_v3 = vld [vmem:[#allocation44_spill] sm:$0xff]  ;;  %v11874_v2 = vld [vmem:[#allocation42_spill] sm:$0xff] }
 0x86e   :  { %4512 = vpow2.f32 %v4253_v22  ;;  %11872 = vst [vmem:[#allocation186_spill] sm:$0xff] %v9697_v17  ;;  %v9701_v24 = vadd.f32 %v11874_v2, %v11873_v3 }
 0x86f   :  { %4514 = vpow2.f32 %v4252_v25  ;;  %v11876_v25 = vld [vmem:[#allocation26_spill] sm:$0xff] }
 0x870   :  { %4516 = vpow2.f32 %v4254_v40  ;;  %11875 = vst [vmem:[#allocation187_spill] sm:$0xff] %v9701_v24 }
 0x87a   :  { %v4511_v50 = vpop.eup %4510 }
 0x87b   :  { %v4513_v23 = vpop.eup %4512  ;;  %v3237_v30 = vadd.f32 1.0, %v4511_v50 }
 0x87c   :  { %v4515_v45 = vpop.eup %4514  ;;  %v3249_v0 = vadd.f32 1.0, %v4513_v23 }
 0x87d   :  { %v4517_v14 = vpop.eup %4516  ;;  %v3238_v42 = vadd.f32 1.0, %v4515_v45  ;;  %4518 = vrcp.f32 %v3237_v30  ;;  %v11877_v30 = vld [vmem:[#allocation37_spill] sm:$0xff] }
 0x87e   :  { %v3250_v44 = vadd.f32 1.0, %v4517_v14  ;;  %4520 = vrcp.f32 %v3249_v0 }
 0x87f   :  { %4522 = vrcp.f32 %v3238_v42 }
 0x88a   :  { %v4519_v3 = vpop.eup %4518 }
 0x88b   :  { %v4521_v0 = vpop.eup %4520 }
 0x88c   :  { %v4523_v2 = vpop.eup %4522 }
 0x8a9   :  { %v3147_v56 = vpop.f32.mrf.mxu0  ;;  %v3218_v58 = vpop.f32.mrf.mxu1 }
 0x8aa   :  { %v3227_v22 = vadd.f32 %v3147_v56, %v9697_v17  ;;  %v3229_v40 = vadd.f32 %v3218_v58, %v11876_v25  ;;  %v3271_v56 = vrot.slane %v9259_v43, 4 }
 0x8ab   :  { %v3149_v50 = vpop.f32.mrf.mxu0  ;;  %v3220_v23 = vpop.f32.mrf.mxu1 }
 0x8ac   :  { %4524 = vtanh.f32 %v3227_v22  ;;  %v4255_v45 = vmul.f32 -1.442695, %v3229_v40  ;;  %v3228_v1 = vadd.f32 %v3149_v50, %v9701_v24  ;;  %v3230_v14 = vadd.f32 %v3220_v23, %v11877_v30 }
 0x8ad   :  { %4526 = vrcp.f32 %v3250_v44  ;;  %v3275_v25 = vmul.f32 %v4521_v0, %v3271_v56  ;;  %v3272_v40 = vrot.slane %v9262_v27, 4 }
 0x8ae   :  { %4528 = vpow2.f32 %v4255_v45  ;;  %v4256_v60 = vmul.f32 -1.442695, %v3230_v14 }
 0x8af   :  { %4530 = vtanh.f32 %v3228_v1 }
 0x8b0   :  { %4532 = vpow2.f32 %v4256_v60 }
 0x8b9   :  { %v4525_v58 = vpop.eup %4524 }
 0x8ba   :  { %v4527_v42 = vpop.eup %4526  ;;  %v3277_v17 = vmul.f32 %v4525_v58, %v4519_v3  ;;  %v5372_v58 = vld [vmem:[#allocation6 + $0x428] sm:$0xff] }
 0x8bb   :  { %v4529_v22 = vpop.eup %4528  ;;  %v3276_v45 = vmul.f32 %v4527_v42, %v3272_v40  ;;  %v5373_v42 = vld [vmem:[#allocation6 + $0x438] sm:$0xff]  ;;  %v5375_v40 = vld [vmem:[#allocation6 + $0x430] sm:$0xff] }
 0x8bc   :  { %v4531_v50 = vpop.eup %4530  ;;  %v9709_v24 = vadd.f32 %v3277_v17, %v3275_v25  ;;  %v3263_v44 = vadd.f32 1.0, %v4529_v22  ;;  %v5370_v25 = vld [vmem:[#allocation6 + $0x460] sm:$0xff] }
 0x8bd   :  { %v4533_v23 = vpop.eup %4532  ;;  %v3278_v1 = vmul.f32 %v4531_v50, %v4523_v2  ;;  %v5371_v2 = vld [vmem:[#allocation6 + $0x470] sm:$0xff]  ;;  %v5374_v22 = vld [vmem:[#allocation6 + $0x420] sm:$0xff]  ;;  %v5376_v50 = vld [vmem:[#allocation6 + $0x3e8] sm:$0xff] }
 0x8be   :  { %4534 = vtanh.f32 %v9709_v24  ;;  %v3264_v14 = vadd.f32 1.0, %v4533_v23  ;;  %v5378_v23 = vld [vmem:[#allocation6 + $0x3e0] sm:$0xff] }
 0x8bf   :  { %4536 = vrcp.f32 %v3263_v44  ;;  %v9712_v60 = vadd.f32 %v3278_v1, %v3276_v45  ;;  %v5377_v44 = vld [vmem:[#allocation6 + $0x3f8] sm:$0xff]  ;;  %v5379_v45 = vld [vmem:[#allocation6 + $0x3f0] sm:$0xff]  ;;  %v5380_v1 = vld [vmem:[#allocation6 + $0x3a8] sm:$0xff] }
 0x8c0   :  { %4538 = vrcp.f32 %v3264_v14  ;;  %v5381_v14 = vld [vmem:[#allocation6 + $0x3b8] sm:$0xff] }
 0x8c1   :  { %4540 = vtanh.f32 %v9712_v60 }
 0x8cb   :  { %v4535_v43 = vpop.eup %4534 }
 0x8cc   :  { %v4537_v3 = vpop.eup %4536 }
 0x8cd   :  { %v4539_v0 = vpop.eup %4538  ;;  %v9715_v17 = vmul.f32 %v4537_v3, %v4535_v43  ;;  %v5382_v43 = vld [vmem:[#allocation6 + $0x3a0] sm:$0xff]  ;;  %v5383_v3 = vld [vmem:[#allocation6 + $0x3b0] sm:$0xff] }
 0x8ce   :  { %v4541_v27 = vpop.eup %4540 }
 0x8cf   :  { %v3284_v56 = vmul.f32 %v4541_v27, %v4539_v0  ;;  %v5384_v0 = vld [vmem:[#allocation6 + $0x368] sm:$0xff]  ;;  %v5385_v27 = vld [vmem:[#allocation6 + $0x378] sm:$0xff] }
 0x8d1   :  { %3349 = vmatprep.mubr.f32.mxu0 %v3284_v56  ;;  %3420 = vmatprep.mubr.f32.mxu1 %v3284_v56 }
 0x8d2   :  { %3350 = vmatmul.mubr.f32.vlgmr.msra.gmra.mxu0 %v9715_v17  ;;  %3421 = vmatmul.mubr.f32.vlgmr.msra.gmra.mxu1 %v9715_v17 }
 0x8d3   :  { %3428 = vmatpush1.msra.mxu0 %v5370_v25  ;;  %3499 = vmatpush1.msra.mxu1 %v5371_v2  ;;  %v5387_v25 = vld [vmem:[#allocation6 + $0x338] sm:$0xff]  ;;  %v5388_v2 = vld [vmem:[#allocation6 + $0x330] sm:$0xff] }
 0x8d4   :  { %3429 = vmatprep.subr.mxu0 %v5372_v58  ;;  %3491 = vmatprep.mubr.f32.mxu0 %v3284_v56  ;;  %v5389_v58 = vld [vmem:[#allocation6 + $0x2f8] sm:$0xff] }
 0x8d5   :  { %3500 = vmatprep.subr.mxu1 %v5373_v42  ;;  %3562 = vmatprep.mubr.f32.mxu1 %v3284_v56  ;;  %v5386_v56 = vld [vmem:[#allocation6 + $0x370] sm:$0xff] }
 0x8d6   :  { %3430 = vmatpush1.msra.mxu0 %v5374_v22  ;;  %3501 = vmatpush1.msra.mxu1 %v5375_v40  ;;  %v5390_v42 = vld [vmem:[#allocation6 + $0x2f0] sm:$0xff]  ;;  %v11907_v22 = vld [vmem:[#allocation39_spill] sm:$0xff]  ;;  %v11908_v40 = vld [vmem:[#allocation48_spill] sm:$0xff] }
 0x8d7   :  { %3431 = vmatprep.subr.mxu0 %v5376_v50  ;;  %3502 = vmatprep.subr.mxu1 %v5377_v44  ;;  %v11909_v50 = vld [vmem:[#allocation41_spill] sm:$0xff]  ;;  %v11910_v44 = vld [vmem:[#allocation50_spill] sm:$0xff] }
 0x8d8   :  { %3432 = vmatpush1.msra.mxu0 %v5378_v23  ;;  %3503 = vmatpush1.msra.mxu1 %v5379_v45  ;;  %v11911_v23 = vld [vmem:[#allocation43_spill] sm:$0xff]  ;;  %v11912_v45 = vld [vmem:[#allocation52_spill] sm:$0xff] }
 0x8d9   :  { %3433 = vmatprep.subr.mxu0 %v5380_v1  ;;  %3504 = vmatprep.subr.mxu1 %v5381_v14  ;;  %v11913_v1 = vld [vmem:[#allocation167_spill] sm:$0xff]  ;;  %v11914_v14 = vld [vmem:[#allocation168_spill] sm:$0xff] }
 0x8da   :  { %3434 = vmatpush1.msra.mxu0 %v5382_v43  ;;  %3505 = vmatpush1.msra.mxu1 %v5383_v3  ;;  %v11915_v43 = vld [vmem:[#allocation169_spill] sm:$0xff]  ;;  %v11916_v3 = vld [vmem:[#allocation170_spill] sm:$0xff] }
 0x8db   :  { %3435 = vmatprep.subr.mxu0 %v5384_v0  ;;  %3506 = vmatprep.subr.mxu1 %v5385_v27  ;;  %v11917_v0 = vld [vmem:[#allocation171_spill] sm:$0xff]  ;;  %v11918_v27 = vld [vmem:[#allocation172_spill] sm:$0xff] }
 0x8dc   :  { %3436 = vmatpush1.msra.mxu0 %v9285_v46  ;;  %3507 = vmatpush1.msra.mxu1 %v5386_v56  ;;  %v5391_v46 = vld [vmem:[#allocation6 + $0x2b8] sm:$0xff]  ;;  %v11919_v56 = vld [vmem:[#allocation173_spill] sm:$0xff] }
 0x8dd   :  { %3437 = vmatprep.subr.mxu0 %v9289_v48  ;;  %3508 = vmatprep.subr.mxu1 %v5387_v25  ;;  %v5392_v48 = vld [vmem:[#allocation6 + $0x2b0] sm:$0xff] }
 0x8de   :  { %3438 = vmatpush1.msra.mxu0 %v9293_v34  ;;  %3509 = vmatpush1.msra.mxu1 %v5388_v2  ;;  %v5393_v34 = vld [vmem:[#allocation6 + $0x278] sm:$0xff]  ;;  %v11920_v25 = vld [vmem:[#allocation174_spill] sm:$0xff] }
 0x8df   :  { %3439 = vmatprep.subr.mxu0 %v9297_v62  ;;  %3510 = vmatprep.subr.mxu1 %v5389_v58  ;;  %v5394_v62 = vld [vmem:[#allocation6 + $0x270] sm:$0xff]  ;;  %v11921_v2 = vld [vmem:[#allocation175_spill] sm:$0xff]  ;;  %v11922_v58 = vld [vmem:[#allocation176_spill] sm:$0xff] }
 0x8e0   :  { %3440 = vmatpush1.msra.mxu0 %v9301_v49  ;;  %3511 = vmatpush1.msra.mxu1 %v5390_v42  ;;  %v5395_v49 = vld [vmem:[#allocation6 + $0x238] sm:$0xff]  ;;  %v11923_v42 = vld [vmem:[#allocation177_spill] sm:$0xff] }
 0x8e1   :  { %3441 = vmatprep.subr.mxu0 %v9305_v33  ;;  %3512 = vmatprep.subr.mxu1 %v5391_v46  ;;  %v5396_v33 = vld [vmem:[#allocation6 + $0x230] sm:$0xff] }
 0x8e2   :  { %3442 = vmatpush1.msra.mxu0 %v9309_v28  ;;  %3513 = vmatpush1.msra.mxu1 %v5392_v48  ;;  %v5397_v28 = vld [vmem:[#allocation6 + $0x1f8] sm:$0xff]  ;;  %v11924_v46 = vld [vmem:[#allocation178_spill] sm:$0xff] }
 0x8e3   :  { %3443 = vmatprep.subr.mxu0 %v9313_v38  ;;  %3514 = vmatprep.subr.mxu1 %v5393_v34  ;;  %v5398_v38 = vld [vmem:[#allocation6 + $0x1f0] sm:$0xff]  ;;  %v11925_v48 = vld [vmem:[#allocation179_spill] sm:$0xff]  ;;  %v11926_v34 = vld [vmem:[#allocation180_spill] sm:$0xff] }
 0x8e4   :  { %3444 = vmatpush1.msra.mxu0 %v9317_v16  ;;  %3515 = vmatpush1.msra.mxu1 %v5394_v62  ;;  %v5399_v16 = vld [vmem:[#allocation6 + $0x1b8] sm:$0xff]  ;;  %v11927_v62 = vld [vmem:[#allocation181_spill] sm:$0xff] }
 0x8e5   :  { %3445 = vmatprep.subr.mxu0 %v9321_v59  ;;  %3516 = vmatprep.subr.mxu1 %v5395_v49  ;;  %v5400_v59 = vld [vmem:[#allocation6 + $0x1b0] sm:$0xff] }
 0x8e6   :  { %3446 = vmatpush1.msra.mxu0 %v9325_v21  ;;  %3517 = vmatpush1.msra.mxu1 %v5396_v33  ;;  %v5401_v21 = vld [vmem:[#allocation6 + $0x178] sm:$0xff]  ;;  %v11928_v49 = vld [vmem:[#allocation182_spill] sm:$0xff] }
 0x8e7   :  { %3447 = vmatprep.subr.mxu0 %v9329_v39  ;;  %3518 = vmatprep.subr.mxu1 %v5397_v28  ;;  %v11878_v39 = vld [vmem:[#allocation18_spill] sm:$0xff]  ;;  %v11929_v33 = vld [vmem:[#allocation183_spill] sm:$0xff]  ;;  %v3672_v28 = vld [vmem:[#allocation7 + $0x88] sm:$0x3f] }
 0x8e8   :  { %3448 = vmatpush1.msra.mxu0 %v9333_v31  ;;  %3519 = vmatpush1.msra.mxu1 %v5398_v38  ;;  %v11879_v31 = vld [vmem:[#allocation25_spill] sm:$0xff]  ;;  %v11930_v38 = vld [vmem:[#allocation184_spill] sm:$0xff] }
 0x8e9   :  { %3449 = vmatprep.subr.mxu0 %v9337_v13  ;;  %3520 = vmatprep.subr.mxu1 %v5399_v16  ;;  %v11880_v13 = vld [vmem:[#allocation30_spill] sm:$0xff]  ;;  %v11931_v16 = vld [vmem:[#allocation185_spill] sm:$0xff] }
 0x8ea   :  { %3450 = vmatpush1.msra.mxu0 %v9341_v29  ;;  %3521 = vmatpush1.msra.mxu1 %v5400_v59  ;;  %v11881_v29 = vld [vmem:[#allocation40_spill] sm:$0xff] }
 0x8eb   :  { %3451 = vmatprep.subr.mxu0 %v9345_v57  ;;  %3522 = vmatprep.subr.mxu1 %v5401_v21  ;;  %v11882_v57 = vld [vmem:[#allocation35_spill] sm:$0xff]  ;;  %v3671_v59 = vld [vmem:[#allocation7 + $0x80] sm:$0x3f] }
 0x8ec   :  { %3452 = vmatpush1.msra.mxu0 %v9349_v53  ;;  %3523 = vmatpush1.msra.mxu1 %v9352_v47  ;;  %v11883_v53 = vld [vmem:[#allocation140_spill] sm:$0xff]  ;;  %v3670_v21 = vld [vmem:[#allocation7 + $0x78] sm:$0xff] }
 0x8ed   :  { %3453 = vmatprep.subr.mxu0 %v9355_v8  ;;  %3524 = vmatprep.subr.mxu1 %v9358_v41  ;;  %v11884_v47 = vld [vmem:[#allocation152_spill] sm:$0xff]  ;;  %v11885_v8 = vld [vmem:[#allocation142_spill] sm:$0xff]  ;;  %v11886_v41 = vld [vmem:[#allocation153_spill] sm:$0xff] }
 0x8ee   :  { %3454 = vmatpush1.msra.mxu0 %v9361_v20  ;;  %3525 = vmatpush1.msra.mxu1 %v9364_v55  ;;  %v11887_v20 = vld [vmem:[#allocation143_spill] sm:$0xff]  ;;  %v11888_v55 = vld [vmem:[#allocation144_spill] sm:$0xff] }
 0x8ef   :  { %3455 = vmatprep.subr.mxu0 %v9367_v6  ;;  %3526 = vmatprep.subr.mxu1 %v9370_v26  ;;  %v11889_v6 = vld [vmem:[#allocation154_spill] sm:$0xff] }
 0x8f0   :  { %3456 = vmatpush1.msra.mxu0 %v9373_v19  ;;  %3527 = vmatpush1.msra.mxu1 %v9376_v37  ;;  %v11890_v26 = vld [vmem:[#allocation146_spill] sm:$0xff]  ;;  %v11891_v19 = vld [vmem:[#allocation147_spill] sm:$0xff]  ;;  %v11892_v37 = vld [vmem:[#allocation156_spill] sm:$0xff] }
 0x8f1   :  { %3457 = vmatprep.subr.mxu0 %v9379_v51  ;;  %3528 = vmatprep.subr.mxu1 %v9382_v63  ;;  %v11893_v51 = vld [vmem:[#allocation149_spill] sm:$0xff]  ;;  %v11894_v63 = vld [vmem:[#allocation155_spill] sm:$0xff] }
 0x8f2   :  { %3458 = vmatpush1.msra.mxu0 %v9385_v4  ;;  %3529 = vmatpush1.msra.mxu1 %v9388_v5  ;;  %v11895_v4 = vld [vmem:[#allocation161_spill] sm:$0xff] }
 0x8f3   :  { %3459 = vmatprep.subr.mxu0 %v9391_v7  ;;  %3530 = vmatprep.subr.mxu1 %v9394_v61  ;;  %v11896_v5 = vld [vmem:[#allocation157_spill] sm:$0xff]  ;;  %v11897_v7 = vld [vmem:[#allocation163_spill] sm:$0xff]  ;;  %v11898_v61 = vld [vmem:[#allocation158_spill] sm:$0xff] }
 0x8f4   :  { %3460 = vmatpush2.msra.mxu0 %v9397_v15  ;;  %3531 = vmatpush2.msra.mxu1 %v9400_v32  ;;  %v11899_v15 = vld [vmem:[#allocation159_spill] sm:$0xff]  ;;  %v11900_v32 = vld [vmem:[#allocation160_spill] sm:$0xff] }
 0x8f5   :  { %3461 = vmatprep.subr.mxu0 %v9403_v54  ;;  %3532 = vmatprep.subr.mxu1 %v9406_v52  ;;  %v11901_v54 = vld [vmem:[#allocation162_spill] sm:$0xff]  ;;  %v11902_v52 = vld [vmem:[#allocation164_spill] sm:$0xff] }
 0x8f6   :  { %3462 = vmatpush2.msra.mxu0 %v9409_v10  ;;  %3533 = vmatpush2.msra.mxu1 %v9412_v36  ;;  %v11903_v10 = vld [vmem:[#allocation165_spill] sm:$0xff]  ;;  %v11904_v36 = vld [vmem:[#allocation166_spill] sm:$0xff] }
 0x8f7   :  { %3463 = vmatprep.subr.mxu0 %v9415_v11  ;;  %3534 = vmatprep.subr.mxu1 %v9418_v35  ;;  %v11905_v11 = vld [vmem:[#allocation36_spill] sm:$0xff]  ;;  %v11906_v35 = vld [vmem:[#allocation46_spill] sm:$0xff] }
 0x8f8   :  { %3464 = vmatpush2.msra.mxu0 %v11878_v39  ;;  %3535 = vmatpush2.msra.mxu1 %v11879_v31  ;;  %v3669_v39 = vld [vmem:[#allocation7 + $0x70] sm:$0xff]  ;;  %v11932_v31 = vmov 0.0  }
 0x8f9   :  { %3465 = vmatprep.subr.mxu0 %v11880_v13  ;;  %3536 = vmatprep.subr.mxu1 %v11881_v29  ;;  %v3668_v13 = vld [vmem:[#allocation7 + $0x68] sm:$0xff]  ;;  %v3667_v29 = vld [vmem:[#allocation7 + $0x60] sm:$0xff] }
 0x8fa   :  { %3466 = vmatpush2.msra.mxu0 %v11882_v57  ;;  %3537 = vmatpush2.msra.mxu1 %v11883_v53  ;;  %v3666_v57 = vld [vmem:[#allocation7 + $0x58] sm:$0xff]  ;;  %v3665_v53 = vld [vmem:[#allocation7 + $0x50] sm:$0xff] }
 0x8fb   :  { %3467 = vmatprep.subr.mxu0 %v11884_v47  ;;  %3538 = vmatprep.subr.mxu1 %v11885_v8  ;;  %v3664_v47 = vld [vmem:[#allocation7 + $0x48] sm:$0xff]  ;;  %v3663_v8 = vld [vmem:[#allocation7 + $0x40] sm:$0xff] }
 0x8fc   :  { %3468 = vmatpush2.msra.mxu0 %v11886_v41  ;;  %3539 = vmatpush2.msra.mxu1 %v11887_v20  ;;  %v3662_v41 = vld [vmem:[#allocation7 + $0x38] sm:$0xff]  ;;  %v3660_v20 = vld [vmem:[#allocation7 + $0x28] sm:$0xff] }
 0x8fd   :  { %3469 = vmatprep.subr.mxu0 %v11888_v55  ;;  %3540 = vmatprep.subr.mxu1 %v11889_v6  ;;  %v3659_v55 = vld [vmem:[#allocation7 + $0x20] sm:$0xff]  ;;  %v3658_v6 = vld [vmem:[#allocation7 + $0x18] sm:$0xff] }
 0x8fe   :  { %3470 = vmatpush2.msra.mxu0 %v11890_v26  ;;  %3541 = vmatpush2.msra.mxu1 %v11891_v19  ;;  %v3657_v26 = vld [vmem:[#allocation7 + $0x10] sm:$0xff]  ;;  %v3656_v19 = vld [vmem:[#allocation7 + $0x8] sm:$0xff] }
 0x8ff   :  { %3471 = vmatprep.subr.mxu0 %v11892_v37  ;;  %3542 = vmatprep.subr.mxu1 %v11893_v51  ;;  %v3655_v37 = vld [vmem:[#allocation7] sm:$0xff]  ;;  %v3805_v51 = vld [vmem:[#allocation2] sm:$0xf] }
 0x900   :  { %3472 = vmatpush2.msra.mxu0 %v11894_v63  ;;  %3543 = vmatpush2.msra.mxu1 %v11895_v4  ;;  %v3706_v63 = vld [vmem:[#allocation7 + $0x188] sm:$0xff]  ;;  %v3705_v4 = vld [vmem:[#allocation7 + $0x180] sm:$0xff] }
 0x901   :  { %3473 = vmatprep.subr.mxu0 %v11896_v5  ;;  %3544 = vmatprep.subr.mxu1 %v11897_v7  ;;  %v3704_v5 = vld [vmem:[#allocation7 + $0x178] sm:$0xff]  ;;  %v3703_v7 = vld [vmem:[#allocation7 + $0x170] sm:$0xff] }
 0x902   :  { %3474 = vmatpush2.msra.mxu0 %v11898_v61  ;;  %3545 = vmatpush2.msra.mxu1 %v11899_v15  ;;  %v3702_v61 = vld [vmem:[#allocation7 + $0x168] sm:$0xff] }
 0x903   :  { %3475 = vmatprep.subr.mxu0 %v11900_v32  ;;  %3546 = vmatprep.subr.mxu1 %v11901_v54  ;;  %v3770_v15 = vld [vmem:[#allocation7 + $0x388] sm:$0xff]  ;;  %v3701_v32 = vld [vmem:[#allocation7 + $0x160] sm:$0xff] }
 0x904   :  { %3476 = vmatpush2.msra.mxu0 %v11902_v52  ;;  %3547 = vmatpush2.msra.mxu1 %v11903_v10  ;;  %v3769_v54 = vld [vmem:[#allocation7 + $0x380] sm:$0xff]  ;;  %v3768_v52 = vld [vmem:[#allocation7 + $0x378] sm:$0xff] }
 0x905   :  { %3477 = vmatprep.subr.mxu0 %v11904_v36  ;;  %3548 = vmatprep.subr.mxu1 %v11905_v11  ;;  %v3700_v10 = vld [vmem:[#allocation7 + $0x158] sm:$0xff]  ;;  %v3767_v36 = vld [vmem:[#allocation7 + $0x370] sm:$0xff] }
 0x906   :  { %3478 = vmatpush2.msra.mxu0 %v11906_v35  ;;  %3549 = vmatpush2.msra.mxu1 %v11907_v22  ;;  %v3699_v11 = vld [vmem:[#allocation7 + $0x150] sm:$0xff]  ;;  %v3766_v35 = vld [vmem:[#allocation7 + $0x368] sm:$0xff]  ;;  %v3765_v22 = vld [vmem:[#allocation7 + $0x360] sm:$0xff] }
 0x907   :  { %3479 = vmatprep.subr.mxu0 %v11908_v40  ;;  %3550 = vmatprep.subr.mxu1 %v11909_v50  ;;  %v3698_v40 = vld [vmem:[#allocation7 + $0x148] sm:$0xff]  ;;  %v3764_v50 = vld [vmem:[#allocation7 + $0x358] sm:$0xff] }
 0x908   :  { %3480 = vmatpush2.msra.mxu0 %v11910_v44  ;;  %3551 = vmatpush2.msra.mxu1 %v11911_v23  ;;  %v3697_v44 = vld [vmem:[#allocation7 + $0x140] sm:$0xff]  ;;  %v3763_v23 = vld [vmem:[#allocation7 + $0x350] sm:$0xff] }
 0x909   :  { %3481 = vmatprep.subr.mxu0 %v11912_v45  ;;  %3552 = vmatprep.subr.mxu1 %v11913_v1  ;;  %v3696_v45 = vld [vmem:[#allocation7 + $0x138] sm:$0xff]  ;;  %v3762_v1 = vld [vmem:[#allocation7 + $0x348] sm:$0xff] }
 0x90a   :  { %3482 = vmatpush2.msra.mxu0 %v11914_v14  ;;  %3553 = vmatpush2.msra.mxu1 %v11915_v43  ;;  %v3695_v14 = vld [vmem:[#allocation7 + $0x130] sm:$0xff]  ;;  %v3761_v43 = vld [vmem:[#allocation7 + $0x340] sm:$0xff] }
 0x90b   :  { %3483 = vmatprep.subr.mxu0 %v11916_v3  ;;  %3554 = vmatprep.subr.mxu1 %v11917_v0  ;;  %v3694_v3 = vld [vmem:[#allocation7 + $0x128] sm:$0xff]  ;;  %v3760_v0 = vld [vmem:[#allocation7 + $0x338] sm:$0xff] }
 0x90c   :  { %3484 = vmatpush2.msra.mxu0 %v11918_v27  ;;  %3555 = vmatpush2.msra.mxu1 %v11919_v56  ;;  %v3693_v27 = vld [vmem:[#allocation7 + $0x120] sm:$0xff]  ;;  %v3759_v56 = vld [vmem:[#allocation7 + $0x330] sm:$0xff] }
 0x90d   :  { %3485 = vmatprep.subr.mxu0 %v11920_v25  ;;  %3556 = vmatprep.subr.mxu1 %v11921_v2  ;;  %v3692_v25 = vld [vmem:[#allocation7 + $0x118] sm:$0xff]  ;;  %v3758_v2 = vld [vmem:[#allocation7 + $0x328] sm:$0xff] }
 0x90e   :  { %3486 = vmatpush2.msra.mxu0 %v11922_v58  ;;  %3557 = vmatpush2.msra.mxu1 %v11923_v42  ;;  %v3691_v58 = vld [vmem:[#allocation7 + $0x110] sm:$0xff]  ;;  %v3757_v42 = vld [vmem:[#allocation7 + $0x320] sm:$0xff] }
 0x90f   :  { %3487 = vmatprep.subr.mxu0 %v11924_v46  ;;  %3558 = vmatprep.subr.mxu1 %v11925_v48  ;;  %v3690_v46 = vld [vmem:[#allocation7 + $0x108] sm:$0xff]  ;;  %v3756_v48 = vld [vmem:[#allocation7 + $0x318] sm:$0xff] }
 0x910   :  { %3488 = vmatpush2.msra.mxu0 %v11926_v34  ;;  %3559 = vmatpush2.msra.mxu1 %v11927_v62  ;;  %v3689_v34 = vld [vmem:[#allocation7 + $0x100] sm:$0xff]  ;;  %v3755_v62 = vld [vmem:[#allocation7 + $0x310] sm:$0xff] }
 0x911   :  { %3489 = vmatprep.subr.mxu0 %v11928_v49  ;;  %3560 = vmatprep.subr.mxu1 %v11929_v33  ;;  %v3688_v49 = vld [vmem:[#allocation7 + $0xf8] sm:$0xff]  ;;  %v3754_v33 = vld [vmem:[#allocation7 + $0x308] sm:$0xff] }
 0x912   :  { %3490 = vmatpush2.msra.mxu0 %v11930_v38  ;;  %3561 = vmatpush2.msra.mxu1 %v11931_v16  ;;  %v3753_v38 = vld [vmem:[#allocation7 + $0x300] sm:$0xff]  ;;  %v3686_v16 = vld [vmem:[#allocation7 + $0xe8] sm:$0xff] }
 0x913   :  { %3492 = vmatmul.mubr.f32.vlgmr.msra.gmra.mxu0 %v9715_v17  ;;  %3563 = vmatmul.mubr.f32.vlgmr.msra.gmra.mxu1 %v9715_v17  ;;  %v3661_v17 = vld [vmem:[#allocation7 + $0x30] sm:$0xff] }
 0x914   :  { %4263 = vmatprep.subr.msk.mxu0 %vm3821_vm1, %v3672_v28  ;;  %3892 = vmatprep.mubr.f32.mxu0 %v11932_v31  ;;  %v3687_v28 = vld [vmem:[#allocation7 + $0xf0] sm:$0xff]  ;;  %v3684_v31 = vld [vmem:[#allocation7 + $0xd8] sm:$0xff] }
 0x915   :  { %4264 = vmatpush1.msk.msra.mxu0 %vm3821_vm1, %v3671_v59  ;;  %3918 = vmatprep.subr.mxu1 %v3706_v63  ;;  %v3752_v59 = vld [vmem:[#allocation7 + $0x2f8] sm:$0xff]  ;;  %v3738_v63 = vld [vmem:[#allocation7 + $0x288] sm:$0xff] }
 0x916   :  { %3844 = vmatprep.subr.mxu0 %v3670_v21  ;;  %3919 = vmatpush1.msra.mxu1 %v3705_v4  ;;  %v3685_v21 = vld [vmem:[#allocation7 + $0xe0] sm:$0xff]  ;;  %v3744_v4 = vld [vmem:[#allocation7 + $0x2b8] sm:$0xff] }
 0x917   :  { %3845 = vmatpush1.msra.mxu0 %v3669_v39  ;;  %3920 = vmatprep.subr.mxu1 %v3704_v5  ;;  %v3751_v39 = vld [vmem:[#allocation7 + $0x2f0] sm:$0xff]  ;;  %v3737_v5 = vld [vmem:[#allocation7 + $0x280] sm:$0xff] }
 0x918   :  { %3846 = vmatprep.subr.mxu0 %v3668_v13  ;;  %3921 = vmatpush1.msra.mxu1 %v3703_v7  ;;  %v3683_v13 = vld [vmem:[#allocation7 + $0xd0] sm:$0xff] }
 0x919   :  { %3847 = vmatpush1.msra.mxu0 %v3667_v29  ;;  %3922 = vmatprep.subr.mxu1 %v3702_v61  ;;  %v3682_v29 = vld [vmem:[#allocation7 + $0xc8] sm:$0xff]  ;;  %v3743_v7 = vld [vmem:[#allocation7 + $0x2b0] sm:$0xff]  ;;  %v3736_v61 = vld [vmem:[#allocation7 + $0x278] sm:$0xff] }
 0x91a   :  { %3848 = vmatprep.subr.mxu0 %v3666_v57  ;;  %3923 = vmatpush1.msra.mxu1 %v3701_v32  ;;  %v3681_v57 = vld [vmem:[#allocation7 + $0xc0] sm:$0xff]  ;;  %v3735_v32 = vld [vmem:[#allocation7 + $0x270] sm:$0xff] }
 0x91b   :  { %3849 = vmatpush1.msra.mxu0 %v3665_v53  ;;  %3924 = vmatprep.subr.mxu1 %v3700_v10  ;;  %v3680_v53 = vld [vmem:[#allocation7 + $0xb8] sm:$0xff] }
 0x91c   :  { %3850 = vmatprep.subr.mxu0 %v3664_v47  ;;  %3925 = vmatpush1.msra.mxu1 %v3699_v11  ;;  %v3750_v47 = vld [vmem:[#allocation7 + $0x2e8] sm:$0xff]  ;;  %v3740_v10 = vld [vmem:[#allocation7 + $0x298] sm:$0xff]  ;;  %v3739_v11 = vld [vmem:[#allocation7 + $0x290] sm:$0xff] }
 0x91d   :  { %3851 = vmatpush1.msra.mxu0 %v3663_v8  ;;  %3926 = vmatprep.subr.mxu1 %v3698_v40  ;;  %v3679_v8 = vld [vmem:[#allocation7 + $0xb0] sm:$0xff] }
 0x91e   :  { %3852 = vmatprep.subr.mxu0 %v3662_v41  ;;  %3927 = vmatpush1.msra.mxu1 %v3697_v44  ;;  %v3749_v41 = vld [vmem:[#allocation7 + $0x2e0] sm:$0xff]  ;;  %v3731_v40 = vld [vmem:[#allocation7 + $0x250] sm:$0xff]  ;;  %v3730_v44 = vld [vmem:[#allocation7 + $0x248] sm:$0xff] }
 0x91f   :  { %3853 = vmatpush1.msra.mxu0 %v3661_v17  ;;  %3928 = vmatprep.subr.mxu1 %v3696_v45  ;;  %v3678_v17 = vld [vmem:[#allocation7 + $0xa8] sm:$0xff]  ;;  %v3729_v45 = vld [vmem:[#allocation7 + $0x240] sm:$0xff] }
 0x920   :  { %3854 = vmatprep.subr.mxu0 %v3660_v20  ;;  %3929 = vmatpush1.msra.mxu1 %v3695_v14  ;;  %v3748_v20 = vld [vmem:[#allocation7 + $0x2d8] sm:$0xff] }
 0x921   :  { %3855 = vmatpush1.msra.mxu0 %v3659_v55  ;;  %3930 = vmatprep.subr.mxu1 %v3694_v3  ;;  %v3677_v55 = vld [vmem:[#allocation7 + $0xa0] sm:$0xff]  ;;  %v3728_v14 = vld [vmem:[#allocation7 + $0x238] sm:$0xff]  ;;  %v3727_v3 = vld [vmem:[#allocation7 + $0x230] sm:$0xff] }
 0x922   :  { %3856 = vmatprep.subr.mxu0 %v3658_v6  ;;  %3931 = vmatpush1.msra.mxu1 %v3693_v27  ;;  %v3747_v6 = vld [vmem:[#allocation7 + $0x2d0] sm:$0xff]  ;;  %v3726_v27 = vld [vmem:[#allocation7 + $0x228] sm:$0xff] }
 0x923   :  { %3857 = vmatpush1.msra.mxu0 %v3657_v26  ;;  %3932 = vmatprep.subr.mxu1 %v3692_v25  ;;  %v3676_v26 = vld [vmem:[#allocation7 + $0x98] sm:$0xff]  ;;  %v3725_v25 = vld [vmem:[#allocation7 + $0x220] sm:$0xff] }
 0x924   :  { %3858 = vmatprep.subr.mxu0 %v3656_v19  ;;  %3933 = vmatpush1.msra.mxu1 %v3691_v58  ;;  %v3746_v19 = vld [vmem:[#allocation7 + $0x2c8] sm:$0xff]  ;;  %v3724_v58 = vld [vmem:[#allocation7 + $0x218] sm:$0xff] }
 0x925   :  { %3859 = vmatpush1.msra.mxu0 %v3655_v37  ;;  %3934 = vmatprep.subr.mxu1 %v3690_v46  ;;  %v3675_v37 = vld [vmem:[#allocation7 + $0x90] sm:$0xff] }
 0x926   :  { %4265 = vmatmul.mubr.msk.f32.vlgmr.msra.gmra.mxu0 %vm3817_vm2, %v3805_v51  ;;  %3989 = vmatprep.subr.mxu0 %v3770_v15  ;;  %v3745_v51 = vld [vmem:[#allocation7 + $0x2c0] sm:$0xff]  ;;  %v3742_v15 = vld [vmem:[#allocation7 + $0x2a8] sm:$0xff]  ;;  %v3723_v46 = vld [vmem:[#allocation7 + $0x210] sm:$0xff] }
 0x927   :  { %3990 = vmatpush1.msra.mxu0 %v3769_v54  ;;  %3935 = vmatpush1.msra.mxu1 %v3689_v34  ;;  %v3741_v54 = vld [vmem:[#allocation7 + $0x2a0] sm:$0xff]  ;;  %v3722_v34 = vld [vmem:[#allocation7 + $0x208] sm:$0xff] }
 0x928   :  { %3991 = vmatprep.subr.mxu0 %v3768_v52  ;;  %3936 = vmatprep.subr.mxu1 %v3688_v49  ;;  %v3734_v52 = vld [vmem:[#allocation7 + $0x268] sm:$0xff]  ;;  %v3721_v49 = vld [vmem:[#allocation7 + $0x200] sm:$0xff] }
 0x929   :  { %3992 = vmatpush1.msra.mxu0 %v3767_v36  ;;  %3937 = vmatpush1.msra.mxu1 %v3687_v28  ;;  %v3733_v36 = vld [vmem:[#allocation7 + $0x260] sm:$0xff]  ;;  %v3720_v28 = vld [vmem:[#allocation7 + $0x1f8] sm:$0xff] }
 0x92a   :  { %3993 = vmatprep.subr.mxu0 %v3766_v35  ;;  %3938 = vmatprep.subr.mxu1 %v3686_v16  ;;  %v3732_v35 = vld [vmem:[#allocation7 + $0x258] sm:$0xff]  ;;  %v3719_v16 = vld [vmem:[#allocation7 + $0x1f0] sm:$0xff] }
 0x92b   :  { %3994 = vmatpush1.msra.mxu0 %v3765_v22  ;;  %3939 = vmatpush1.msra.mxu1 %v3685_v21  ;;  %v3802_v22 = vld [vmem:[#allocation7 + $0x488] sm:$0xff] }
 0x92c   :  { %3995 = vmatprep.subr.mxu0 %v3764_v50  ;;  %3940 = vmatprep.subr.mxu1 %v3684_v31  ;;  %v3801_v50 = vld [vmem:[#allocation7 + $0x480] sm:$0xff]  ;;  %v3718_v21 = vld [vmem:[#allocation7 + $0x1e8] sm:$0xff] }
 0x92d   :  { %3996 = vmatpush1.msra.mxu0 %v3763_v23  ;;  %3941 = vmatpush1.msra.mxu1 %v3683_v13  ;;  %v3800_v23 = vld [vmem:[#allocation7 + $0x478] sm:$0xff]  ;;  %v3717_v31 = vld [vmem:[#allocation7 + $0x1e0] sm:$0xff]  ;;  %v3787_v13 = vld [vmem:[#allocation7 + $0x410] sm:$0xff] }
 0x92e   :  { %3997 = vmatprep.subr.mxu0 %v3762_v1  ;;  %3942 = vmatprep.subr.mxu1 %v3682_v29  ;;  %v3799_v1 = vld [vmem:[#allocation7 + $0x470] sm:$0xff]  ;;  %v3716_v29 = vld [vmem:[#allocation7 + $0x1d8] sm:$0xff] }
 0x92f   :  { %3998 = vmatpush1.msra.mxu0 %v3761_v43  ;;  %3943 = vmatpush1.msra.mxu1 %v3681_v57  ;;  %v3798_v43 = vld [vmem:[#allocation7 + $0x468] sm:$0xff] }
 0x930   :  { %3999 = vmatprep.subr.mxu0 %v3760_v0  ;;  %3944 = vmatprep.subr.mxu1 %v3680_v53  ;;  %v3797_v0 = vld [vmem:[#allocation7 + $0x460] sm:$0xff]  ;;  %v3786_v57 = vld [vmem:[#allocation7 + $0x408] sm:$0xff]  ;;  %v3715_v53 = vld [vmem:[#allocation7 + $0x1d0] sm:$0xff] }
 0x931   :  { %4000 = vmatpush1.msra.mxu0 %v3759_v56  ;;  %3945 = vmatpush1.msra.mxu1 %v3679_v8  ;;  %v3796_v56 = vld [vmem:[#allocation7 + $0x458] sm:$0xff]  ;;  %v3714_v8 = vld [vmem:[#allocation7 + $0x1c8] sm:$0xff] }
 0x932   :  { %4001 = vmatprep.subr.mxu0 %v3758_v2  ;;  %3946 = vmatprep.subr.mxu1 %v3678_v17  ;;  %v3795_v2 = vld [vmem:[#allocation7 + $0x450] sm:$0xff]  ;;  %v3713_v17 = vld [vmem:[#allocation7 + $0x1c0] sm:$0xff] }
 0x933   :  { %4002 = vmatpush1.msra.mxu0 %v3757_v42  ;;  %3947 = vmatpush1.msra.mxu1 %v3677_v55  ;;  %v3794_v42 = vld [vmem:[#allocation7 + $0x448] sm:$0xff]  ;;  %v3712_v55 = vld [vmem:[#allocation7 + $0x1b8] sm:$0xff] }
 0x934   :  { %4003 = vmatprep.subr.mxu0 %v3756_v48  ;;  %3948 = vmatprep.subr.mxu1 %v3676_v26  ;;  %v3793_v48 = vld [vmem:[#allocation7 + $0x440] sm:$0xff]  ;;  %v3711_v26 = vld [vmem:[#allocation7 + $0x1b0] sm:$0xff] }
 0x935   :  { %4004 = vmatpush1.msra.mxu0 %v3755_v62  ;;  %3949 = vmatpush1.msra.mxu1 %v3675_v37  ;;  %v3792_v62 = vld [vmem:[#allocation7 + $0x438] sm:$0xff]  ;;  %v3710_v37 = vld [vmem:[#allocation7 + $0x1a8] sm:$0xff] }
 0x936   :  { %4005 = vmatprep.subr.mxu0 %v3754_v33  ;;  %3950 = vmatprep.subr.mxu1 %v3738_v63  ;;  %v3791_v33 = vld [vmem:[#allocation7 + $0x430] sm:$0xff]  ;;  %v3709_v63 = vld [vmem:[#allocation7 + $0x1a0] sm:$0xff] }
 0x937   :  { %4006 = vmatpush1.msra.mxu0 %v3753_v38  ;;  %3951 = vmatpush2.msra.mxu1 %v3737_v5  ;;  %v3790_v38 = vld [vmem:[#allocation7 + $0x428] sm:$0xff]  ;;  %v3708_v5 = vld [vmem:[#allocation7 + $0x198] sm:$0xff] }
 0x938   :  { %4007 = vmatprep.subr.mxu0 %v3752_v59  ;;  %3952 = vmatprep.subr.mxu1 %v3736_v61  ;;  %v3789_v59 = vld [vmem:[#allocation7 + $0x420] sm:$0xff]  ;;  %v3707_v61 = vld [vmem:[#allocation7 + $0x190] sm:$0xff] }
 0x939   :  { %4008 = vmatpush1.msra.mxu0 %v3751_v39  ;;  %3953 = vmatpush2.msra.mxu1 %v3735_v32  ;;  %v3788_v39 = vld [vmem:[#allocation7 + $0x418] sm:$0xff] }
 0x93a   :  { %4009 = vmatprep.subr.mxu0 %v3750_v47  ;;  %3954 = vmatprep.subr.mxu1 %v3734_v52  ;;  %v3785_v47 = vld [vmem:[#allocation7 + $0x400] sm:$0xff]  ;;  %v3776_v32 = vld [vmem:[#allocation7 + $0x3b8] sm:$0xff]  ;;  %v3774_v52 = vld [vmem:[#allocation7 + $0x3a8] sm:$0xff] }
 0x93b   :  { %4010 = vmatpush1.msra.mxu0 %v3749_v41  ;;  %3955 = vmatpush2.msra.mxu1 %v3733_v36  ;;  %v3784_v41 = vld [vmem:[#allocation7 + $0x3f8] sm:$0xff] }
 0x93c   :  { %4011 = vmatprep.subr.mxu0 %v3748_v20  ;;  %3956 = vmatprep.subr.mxu1 %v3732_v35  ;;  %v3783_v20 = vld [vmem:[#allocation7 + $0x3f0] sm:$0xff]  ;;  %v3772_v36 = vld [vmem:[#allocation7 + $0x398] sm:$0xff] }
 0x93d   :  { %4012 = vmatpush1.msra.mxu0 %v3747_v6  ;;  %3957 = vmatpush2.msra.mxu1 %v3731_v40  ;;  %v3782_v6 = vld [vmem:[#allocation7 + $0x3e8] sm:$0xff]  ;;  %v4093_v35 = vld [vmem:[#allocation9 + $0xf8] sm:$0xff] }
 0x93e   :  { %4013 = vmatprep.subr.mxu0 %v3746_v19  ;;  %3958 = vmatprep.subr.mxu1 %v3730_v44  ;;  %v3781_v19 = vld [vmem:[#allocation7 + $0x3e0] sm:$0xff] }
 0x93f   :  { %4014 = vmatpush1.msra.mxu0 %v3745_v51  ;;  %3959 = vmatpush2.msra.mxu1 %v3729_v45  ;;  %v3780_v51 = vld [vmem:[#allocation7 + $0x3d8] sm:$0xff] }
 0x940   :  { %4015 = vmatprep.subr.mxu0 %v3744_v4  ;;  %3960 = vmatprep.subr.mxu1 %v3728_v14  ;;  %v3779_v4 = vld [vmem:[#allocation7 + $0x3d0] sm:$0xff] }
 0x941   :  { %4016 = vmatpush1.msra.mxu0 %v3743_v7  ;;  %3961 = vmatpush2.msra.mxu1 %v3727_v3  ;;  %v3778_v7 = vld [vmem:[#allocation7 + $0x3c8] sm:$0xff] }
 0x942   :  { %4017 = vmatprep.subr.mxu0 %v3742_v15  ;;  %3962 = vmatprep.subr.mxu1 %v3726_v27  ;;  %v3777_v15 = vld [vmem:[#allocation7 + $0x3c0] sm:$0xff] }
 0x943   :  { %4018 = vmatpush1.msra.mxu0 %v3741_v54  ;;  %3963 = vmatpush2.msra.mxu1 %v3725_v25  ;;  %v3775_v54 = vld [vmem:[#allocation7 + $0x3b0] sm:$0xff] }
 0x944   :  { %4019 = vmatprep.subr.mxu0 %v3740_v10  ;;  %3964 = vmatprep.subr.mxu1 %v3724_v58  ;;  %v3773_v10 = vld [vmem:[#allocation7 + $0x3a0] sm:$0xff] }
 0x945   :  { %4020 = vmatpush1.msra.mxu0 %v3739_v11  ;;  %3965 = vmatpush2.msra.mxu1 %v3723_v46  ;;  %v3771_v11 = vld [vmem:[#allocation7 + $0x390] sm:$0xff] }
 0x946   :  { %4021 = vmatprep.subr.mxu0 %v3802_v22  ;;  %3966 = vmatprep.subr.mxu1 %v3722_v34 }
 0x947   :  { %4022 = vmatpush2.msra.mxu0 %v3801_v50  ;;  %3967 = vmatpush2.msra.mxu1 %v3721_v49 }
 0x948   :  { %4023 = vmatprep.subr.mxu0 %v3800_v23  ;;  %3968 = vmatprep.subr.mxu1 %v3720_v28 }
 0x949   :  { %4024 = vmatpush2.msra.mxu0 %v3799_v1  ;;  %3969 = vmatpush2.msra.mxu1 %v3719_v16 }
 0x94a   :  { %4025 = vmatprep.subr.mxu0 %v3798_v43  ;;  %3970 = vmatprep.subr.mxu1 %v3718_v21  ;;  %v11933_v43 = vld [vmem:[#allocation27_spill] sm:$0xff] }
 0x94b   :  { %4026 = vmatpush2.msra.mxu0 %v3797_v0  ;;  %3971 = vmatpush2.msra.mxu1 %v3717_v31 }
 0x94c   :  { %4027 = vmatprep.subr.mxu0 %v3796_v56  ;;  %3972 = vmatprep.subr.mxu1 %v3716_v29 }
 0x94d   :  { %4028 = vmatpush2.msra.mxu0 %v3795_v2  ;;  %3973 = vmatpush2.msra.mxu1 %v3715_v53 }
 0x94e   :  { %4029 = vmatprep.subr.mxu0 %v3794_v42  ;;  %3974 = vmatprep.subr.mxu1 %v3714_v8  ;;  %v11936_v8 = vld [vmem:[#allocation187_spill] sm:$0xff] }
 0x94f   :  { %4030 = vmatpush2.msra.mxu0 %v3793_v48  ;;  %3975 = vmatpush2.msra.mxu1 %v3713_v17 }
 0x950   :  { %4031 = vmatprep.subr.mxu0 %v3792_v62  ;;  %3976 = vmatprep.subr.mxu1 %v3712_v55  ;;  %v3674_v55 = vld [vmem:[#allocation7 + $0x490] ss:$8 sm:$0x3] }
 0x951   :  { %4032 = vmatpush2.msra.mxu0 %v3791_v33  ;;  %3977 = vmatpush2.msra.mxu1 %v3711_v26 }
 0x952   :  { %4033 = vmatprep.subr.mxu0 %v3790_v38  ;;  %3978 = vmatprep.subr.mxu1 %v3710_v37 }
 0x953   :  { %4034 = vmatpush2.msra.mxu0 %v3789_v59  ;;  %3979 = vmatpush2.msra.mxu1 %v3709_v63  ;;  %v3641_v63 = vrot.slane %v9709_v24, 4 }
 0x954   :  { %4035 = vmatprep.subr.mxu0 %v3788_v39  ;;  %3980 = vmatprep.subr.mxu1 %v3708_v5  ;;  %v11934_v39 = vld [vmem:[#allocation186_spill] sm:$0xff]  ;;  %v11938_v5 = vld [vmem:[#allocation19_spill] sm:$0xff] }
 0x955   :  { %4036 = vmatpush2.msra.mxu0 %v3787_v13  ;;  %3981 = vmatpush2.msra.mxu1 %v3707_v61  ;;  %v11935_v13 = vld [vmem:[#allocation26_spill] sm:$0xff] }
 0x956   :  { %4037 = vmatprep.subr.mxu0 %v3786_v57  ;;  %4267 = vmatprep.subr.mxu1 %v4093_v35 }
 0x957   :  { %4038 = vmatpush2.msra.mxu0 %v3785_v47 }
 0x958   :  { %4039 = vmatprep.subr.mxu0 %v3784_v41 }
 0x959   :  { %4040 = vmatpush2.msra.mxu0 %v3783_v20 }
 0x95a   :  { %4041 = vmatprep.subr.mxu0 %v3782_v6 }
 0x95b   :  { %4042 = vmatpush2.msra.mxu0 %v3781_v19  ;;  %v11937_v19 = vld [vmem:[#allocation13_spill] sm:$0xff] }
 0x95c   :  { %4043 = vmatprep.subr.mxu0 %v3780_v51  ;;  %v3810_v37 = vrot.slane %v3674_v55, %v11937_v19 }
 0x95d   :  { %4044 = vmatpush2.msra.mxu0 %v3779_v4 }
 0x95e   :  { %4045 = vmatprep.subr.mxu0 %v3778_v7  ;;  %v3814_v7 = vrot.slane %v3674_v55, %v11938_v5  ;;  %v4079_v55 = vld [vmem:[#allocation9 + $0x88] sm:$0xff] }
 0x95f   :  { %4046 = vmatpush2.msra.mxu0 %v3777_v15 }
 0x960   :  { %4047 = vmatprep.subr.mxu0 %v3776_v32 }
 0x961   :  { %4048 = vmatpush2.msra.mxu0 %v3775_v54 }
 0x962   :  { %4049 = vmatprep.subr.mxu0 %v3774_v52  ;;  %v3642_v52 = vrot.slane %v9712_v60, 4  ;;  %v4092_v60 = vld [vmem:[#allocation9 + $0xf0] sm:$0xff] }
 0x963   :  { %4050 = vmatpush2.msra.mxu0 %v3773_v10 }
 0x964   :  { %4051 = vmatprep.subr.mxu0 %v3772_v36 }
 0x965   :  { %4052 = vmatpush2.msra.mxu0 %v3771_v11 }
 0x992   :  { %v3351_v22 = vpop.f32.mrf.mxu0  ;;  %v3422_v40 = vpop.f32.mrf.mxu1 }
 0x993   :  { %v3577_v50 = vrot.slane %v3351_v22, 4  ;;  %v3579_v23 = vrot.slane %v3422_v40, 4 }
 0x994   :  { %v3353_v44 = vpop.f32.mrf.mxu0  ;;  %v3424_v45 = vpop.f32.mrf.mxu1 }
 0x995   :  { %v3578_v1 = vrot.slane %v3353_v44, 4  ;;  %v3593_v14 = vadd.f32 %v3577_v50, %v11866_v12  ;;  %v3595_v3 = vadd.f32 %v3579_v23, %v11933_v43  ;;  %v3580_v0 = vrot.slane %v3424_v45, 4  ;;  %v4077_v43 = vld [vmem:[#allocation9 + $0x78] sm:$0xff] }
 0x997   :  { %v3594_v27 = vadd.f32 %v3578_v1, %v11868_v18  ;;  %v4257_v56 = vmul.f32 -1.442695, %v3593_v14  ;;  %v4259_v25 = vmul.f32 -1.442695, %v3595_v3  ;;  %v3596_v2 = vadd.f32 %v3580_v0, %v11869_v9  ;;  %v4076_v3 = vld [vmem:[#allocation9 + $0x70] sm:$0xff]  ;;  %v4091_v0 = vld [vmem:[#allocation9 + $0xe8] sm:$0xff] }
 0x999   :  { %v4258_v58 = vmul.f32 -1.442695, %v3594_v27  ;;  %4542 = vpow2.f32 %v4257_v56  ;;  %v4260_v42 = vmul.f32 -1.442695, %v3596_v2  ;;  %v4075_v27 = vld [vmem:[#allocation9 + $0x68] sm:$0xff]  ;;  %v4090_v56 = vld [vmem:[#allocation9 + $0xe0] sm:$0xff] }
 0x99a   :  { %4544 = vpow2.f32 %v4259_v25  ;;  %v4074_v25 = vld [vmem:[#allocation9 + $0x60] sm:$0xff]  ;;  %v4089_v2 = vld [vmem:[#allocation9 + $0xd8] sm:$0xff] }
 0x99b   :  { %4546 = vpow2.f32 %v4258_v58  ;;  %v4073_v58 = vld [vmem:[#allocation9 + $0x58] sm:$0xff] }
 0x99c   :  { %4548 = vpow2.f32 %v4260_v42  ;;  %v4088_v42 = vld [vmem:[#allocation9 + $0xd0] sm:$0xff] }
 0x9a6   :  { %v4543_v46 = vpop.eup %4542 }
 0x9a7   :  { %v4545_v48 = vpop.eup %4544  ;;  %v3607_v62 = vadd.f32 1.0, %v4543_v46  ;;  %v4072_v46 = vld [vmem:[#allocation9 + $0x50] sm:$0xff] }
 0x9a8   :  { %v4547_v34 = vpop.eup %4546  ;;  %v3619_v12 = vadd.f32 1.0, %v4545_v48 }
 0x9a9   :  { %v4549_v49 = vpop.eup %4548  ;;  %v3608_v33 = vadd.f32 1.0, %v4547_v34  ;;  %4550 = vrcp.f32 %v3607_v62  ;;  %v4087_v34 = vld [vmem:[#allocation9 + $0xc8] sm:$0xff] }
 0x9aa   :  { %4552 = vrcp.f32 %v3619_v12  ;;  %v3620_v9 = vadd.f32 1.0, %v4549_v49  ;;  %v4071_v12 = vld [vmem:[#allocation9 + $0x48] sm:$0xff] }
 0x9ab   :  { %4554 = vrcp.f32 %v3608_v33  ;;  %v4086_v33 = vld [vmem:[#allocation9 + $0xc0] sm:$0xff] }
 0x9b6   :  { %v4551_v6 = vpop.eup %4550 }
 0x9b7   :  { %v4553_v26 = vpop.eup %4552 }
 0x9b8   :  { %v4555_v51 = vpop.eup %4554  ;;  %v3645_v15 = vmul.f32 %v4553_v26, %v3641_v63  ;;  %v4078_v26 = vld [vmem:[#allocation9 + $0x80] sm:$0xff] }
 0x9d3   :  { %v3493_v28 = vpop.f32.mrf.mxu0  ;;  %v3564_v38 = vpop.f32.mrf.mxu1 }
 0x9d4   :  { %v3581_v18 = vrot.slane %v3493_v28, 4  ;;  %v3583_v16 = vrot.slane %v3564_v38, 4 }
 0x9d5   :  { %v3495_v59 = vpop.f32.mrf.mxu0  ;;  %v3566_v21 = vpop.f32.mrf.mxu1 }
 0x9d6   :  { %v3597_v31 = vadd.f32 %v3581_v18, %v11934_v39  ;;  %v3599_v29 = vadd.f32 %v3583_v16, %v11935_v13  ;;  %v3582_v57 = vrot.slane %v3495_v59, 4  ;;  %v3584_v53 = vrot.slane %v3566_v21, 4  ;;  %v4070_v18 = vld [vmem:[#allocation9 + $0x40] sm:$0xff]  ;;  %v4069_v59 = vld [vmem:[#allocation9 + $0x38] sm:$0xff]  ;;  %v4068_v13 = vld [vmem:[#allocation9 + $0x30] sm:$0xff] }
 0x9d8   :  { %4556 = vtanh.f32 %v3597_v31  ;;  %v4261_v47 = vmul.f32 -1.442695, %v3599_v29  ;;  %v3598_v41 = vadd.f32 %v3582_v57, %v11936_v8  ;;  %v3600_v17 = vadd.f32 %v3584_v53, %v11877_v30  ;;  %v4084_v31 = vld [vmem:[#allocation9 + $0xb0] sm:$0xff]  ;;  %v4083_v29 = vld [vmem:[#allocation9 + $0xa8] sm:$0xff]  ;;  %v4082_v53 = vld [vmem:[#allocation9 + $0xa0] sm:$0xff] }
 0x9d9   :  { %4558 = vrcp.f32 %v3620_v9  ;;  %v4085_v9 = vld [vmem:[#allocation9 + $0xb8] sm:$0xff]  ;;  %v4067_v57 = vld [vmem:[#allocation9 + $0x28] sm:$0xff] }
 0x9da   :  { %4560 = vpow2.f32 %v4261_v47  ;;  %v4262_v20 = vmul.f32 -1.442695, %v3600_v17  ;;  %v4066_v47 = vld [vmem:[#allocation9 + $0x20] sm:$0xff]  ;;  %v4081_v8 = vld [vmem:[#allocation9 + $0x98] sm:$0xff]  ;;  %v4080_v17 = vld [vmem:[#allocation9 + $0x90] sm:$0xff] }
 0x9db   :  { %4562 = vtanh.f32 %v3598_v41  ;;  %v4065_v41 = vld [vmem:[#allocation9 + $0x18] sm:$0xff] }
 0x9dc   :  { %4564 = vpow2.f32 %v4262_v20  ;;  %v4064_v20 = vld [vmem:[#allocation9 + $0x10] sm:$0xff] }
 0x9e5   :  { %v4557_v4 = vpop.eup %4556 }
 0x9e6   :  { %v4559_v61 = vpop.eup %4558  ;;  %v3647_v32 = vmul.f32 %v4557_v4, %v4551_v6  ;;  %v3894_v30 = vpop.f32.mrf.mxu0  ;;  %v4063_v6 = vld [vmem:[#allocation9 + $0x8] sm:$0xff] }
 0x9e7   :  { %v4561_v54 = vpop.eup %4560  ;;  %v3895_v10 = vadd.f32 %v3894_v30, %v3810_v37  ;;  %v3646_v23 = vmul.f32 %v4559_v61, %v3642_v52  ;;  %v4062_v37 = vld [vmem:[#allocation9] sm:$0xff] }
 0x9e8   :  { %v4563_v36 = vpop.eup %4562  ;;  %v3649_v11 = vadd.f32 %v3647_v32, %v3645_v15  ;;  %v3633_v35 = vadd.f32 1.0, %v4561_v54  ;;  %v3896_v22 = vpop.f32.mrf.mxu0 }
 0x9e9   :  { %v4565_v40 = vpop.eup %4564  ;;  %v3648_v50 = vmul.f32 %v4563_v36, %v4555_v51  ;;  %v3897_v44 = vadd.f32 %v3896_v22, %v3814_v7  ;;  %v3899_v45 = vmax.f32 %v3895_v10, 0.0  ;;  %v3804_v51 = vld [vmem:[#allocation7 + $0x491] ss:$8 sm:$0x3]  ;;  %v4169_v22 = vld [vmem:[%s9839_s2] sm:$0xf] }
 0x9ea   :  { %4566 = vtanh.f32 %v3649_v11  ;;  %v3634_v24 = vadd.f32 1.0, %v4565_v40  ;;  %v3911_v4 = vrot.slane %v3804_v51, %v11937_v19  ;;  %v3915_v7 = vrot.slane %v3804_v51, %v11938_v5  ;;  %v4266_v40 = vld [vmem:[#allocation9 + $0x100] ss:$0 sm:$0xff] }
 0x9eb   :  { %4568 = vrcp.f32 %v3633_v35  ;;  %v3900_v1 = vmax.f32 %v3897_v44, 0.0  ;;  %v3650_v14 = vadd.f32 %v3648_v50, %v3646_v23  ;;  %vm4170_vm3 = vcmp.eq.f32.partialorder %v4169_v22, 0.0 }
 0x9ec   :  { %4570 = vrcp.f32 %v3634_v24 }
 0x9ed   :  { %3982 = vmatprep.mubr.f32.mxu1 %v3900_v1  ;;  %4572 = vtanh.f32 %v3650_v14 }
 0x9ee   :  { %3983 = vmatmul.mubr.f32.vlgmr.msra.gmra.mxu1 %v3899_v45 }
 0x9ef   :  { %4268 = vmatpush3.msra.mxu1 %v4077_v43 }
 0x9f0   :  { %4269 = vmatprep.subr.mxu1 %v4092_v60 }
 0x9f1   :  { %4270 = vmatpush3.msra.mxu1 %v4076_v3 }
 0x9f2   :  { %4271 = vmatprep.subr.mxu1 %v4091_v0 }
 0x9f3   :  { %4272 = vmatpush3.msra.mxu1 %v4075_v27  ;;  %v11939_v27 = vlaneseq }
 0x9f4   :  { %4273 = vmatprep.subr.mxu1 %v4090_v56 }
 0x9f5   :  { %4274 = vmatpush3.msra.mxu1 %v4074_v25  ;;  %v4188_v56 = vand.u32 127, %v11939_v27 }
 0x9f6   :  { %4275 = vmatprep.subr.mxu1 %v4089_v2 }
 0x9f7   :  { %v4567_v48 = vpop.eup %4566  ;;  %4276 = vmatpush3.msra.mxu1 %v4073_v58  ;;  %vm4189_vm5 = vcmp.eq.s32.totalorder %v4188_v56, 64 }
 0x9f8   :  { %v4569_v62 = vpop.eup %4568  ;;  %4277 = vmatprep.subr.mxu1 %v4088_v42 }
 0x9f9   :  { %v4571_v49 = vpop.eup %4570  ;;  %4278 = vmatpush3.msra.mxu1 %v4072_v46  ;;  %v3653_v38 = vmul.f32 %v4569_v62, %v4567_v48 }
 0x9fa   :  { %v4573_v28 = vpop.eup %4572  ;;  %4279 = vmatprep.subr.mxu1 %v4087_v34 }
 0x9fb   :  { %v3654_v16 = vmul.f32 %v4573_v28, %v4571_v49  ;;  %4280 = vmatpush3.msra.mxu1 %v4071_v12  ;;  %v3903_v39 = vrot.slane %v3653_v38, 4 }
 0x9fc   :  { %4281 = vmatprep.subr.mxu1 %v4086_v33 }
 0x9fd   :  { %v3904_v21 = vrot.slane %v3654_v16, 4  ;;  %4282 = vmatpush3.msra.mxu1 %v4070_v18 }
 0x9fe   :  { %4283 = vmatprep.subr.mxu1 %v4085_v9 }
 0x9ff   :  { %4053 = vmatprep.mubr.f32.mxu0 %v3904_v21  ;;  %4284 = vmatpush3.msra.mxu1 %v4069_v59 }
 0xa00   :  { %4054 = vmatmul.mubr.f32.vlgmr.msra.gmra.mxu0 %v3903_v39  ;;  %4285 = vmatprep.subr.mxu1 %v4084_v31 }
 0xa01   :  { %4286 = vmatpush3.msra.mxu1 %v4068_v13 }
 0xa02   :  { %4287 = vmatprep.subr.mxu1 %v4083_v29 }
 0xa03   :  { %4288 = vmatpush3.msra.mxu1 %v4067_v57 }
 0xa04   :  { %4289 = vmatprep.subr.mxu1 %v4082_v53 }
 0xa05   :  { %4290 = vmatpush3.msra.mxu1 %v4066_v47 }
 0xa06   :  { %4291 = vmatprep.subr.mxu1 %v4081_v8 }
 0xa07   :  { %4292 = vmatpush3.msra.mxu1 %v4065_v41 }
 0xa08   :  { %4293 = vmatprep.subr.mxu1 %v4080_v17 }
 0xa09   :  { %4294 = vmatpush3.msra.mxu1 %v4064_v20 }
 0xa0a   :  { %4295 = vmatprep.subr.mxu1 %v4079_v55 }
 0xa0b   :  { %4296 = vmatpush3.msra.mxu1 %v4063_v6 }
 0xa0c   :  { %4297 = vmatprep.subr.mxu1 %v4078_v26 }
 0xa0d   :  { %4298 = vmatpush3.msra.mxu1 %v4062_v37 }
 0xaae   :  { %v3984_v63 = vpop.f32.mrf.mxu1 }
 0xaaf   :  { %v3985_v15 = vadd.f32 %v3984_v63, %v3911_v4 }
 0xab0   :  { %v3986_v61 = vpop.f32.mrf.mxu1 }
 0xab1   :  { %v3987_v30 = vadd.f32 %v3986_v61, %v3915_v7 }
 0xac0   :  { %v4055_v32 = vpop.f32.mrf.mxu0 }
 0xac1   :  { %v4056_v54 = vadd.f32 %v4055_v32, %v3985_v15 }
 0xac2   :  { %v4057_v52 = vpop.f32.mrf.mxu0 }
 0xac3   :  { %v4058_v10 = vadd.f32 %v4057_v52, %v3987_v30  ;;  %v4060_v11 = vmax.f32 %v4056_v54, 0.0 }
 0xac5   :  { %v4061_v36 = vmax.f32 %v4058_v10, 0.0 }
 0xac7   :  { %4163 = vmatprep.mubr.f32.mxu1 %v4061_v36 }
 0xac8   :  { %4164 = vmatmul.mubr.f32.vlgmr.msra.gmra.mxu1 %v4060_v11 }
 0xb88   :  { %v4299_v35 = vpop.f32.mrf.mxu1 }
 0xb8a   :  { %v4300_v19 = vpop.f32.mrf.mxu1 }
 0xb8b   :  { %v4301_v50 = vadd.f32 %v4300_v19, %v4299_v35 }
 0xb8d   :  { %v4166_v5 = vadd.f32 %v4301_v50, %v4266_v40 }
 0xb8f   :  { %v4171_v44 = vsel %vm4170_vm3, -1e+09, %v4166_v5 }
 0xb90   :  { %v4173_v23 = vsel %vm4172_vm4, %v4171_v44, -inf }
 0xb91   :  { %4174 = vmax.xlane.f32.xlu0 %v4173_v23 }
 0xc1a   :  { %v4175_v24 = vpop.xlane.xlu0 %4174 }
 0xc1b   :  { %v4176_v45 = vsub.f32 %v4171_v44, %v4175_v24 }
 0xc1d   :  { %v4177_v1 = vmul.f32 1.442695, %v4176_v45 }
 0xc1f   :  { %4574 = vpow2.f32 %v4177_v1 }
 0xc2c   :  { %v4575_v14 = vpop.eup %4574 }
 0xc2d   :  { %v4179_v43 = vsel %vm4172_vm4, %v4575_v14, 0.0 }
 0xc2e   :  { %4180 = vadd.xlane.f32.xlu0 %v4179_v43 }
 0xcb7   :  { %v4181_v60 = vpop.xlane.xlu0 %4180 }
 0xcb8   :  { %4576 = vrcp.f32 %v4181_v60 }
 0xcc5   :  { %v4577_v3 = vpop.eup %4576 }
 0xcc6   :  { %v4183_v0 = vmul.f32 %v4577_v3, %v4181_v60 }
 0xcc8   :  { %v4184_v25 = vsub.f32 2.0, %v4183_v0 }
 0xcca   :  { %v4185_v2 = vmul.f32 %v4577_v3, %v4184_v25 }
 0xccc   :  { %v4186_v58 = vmul.f32 %v4575_v14, %v4185_v2 }
 0xcce   :  { %v4190_v42 = vsel %vm4189_vm5, %v4166_v5, %v4186_v58 }
 0xccf   :  { %4191 = vst [vmem:[%s9843_s6] sm:$0xf] %v4190_v42 }
 0xcd0   :  { %4196 = vsyncpa [#allocation3], 1 }
 0xcd1   :  { %4197 = vsyncpa [#allocation5], 1 }
 0xcd2   :  { %4198 = vsyncpa [#allocation8], 1 }

</bundles_post_ra>
